<compile_context>
chip_gen: v5e
topology: v5e:2x2
jax: 0.10.0
libtpu: 0.0.40
codegen_flags: <defaults>
</compile_context>

<pallas_src>
import functools

import jax
import jax.numpy as jnp
from jax.experimental import pallas as pl
from jax.experimental.pallas import tpu as pltpu


IN_DIM = 12
HID_DIM = 1024
OUT_DIM = 4
OUT_PAD = 128          # lane-dense padded output width
NEG_SLOPE = 0.01       # nn.LeakyReLU() default


def _round_up(n, m):
    return ((n + m - 1) // m) * m


def _device_traits():
    """(bf16_activation_math_ok, has_two_tensorcores)."""
    try:
        kind = jax.devices()[0].device_kind.lower()
    except Exception:
        kind = ""
    bf16_act = ("v6" in kind) or ("v7" in kind)   # v6e/v7x: bf16 VPU+EUP
    two_tc = "v7" in kind                         # v7x: 2 TensorCores/chip
    return bf16_act, two_tc


def _sigmoid_1t(h):
    """Single-transcendental sigmoid: 0.5 * tanh(0.5 * h) + 0.5."""
    half = jnp.asarray(0.5, h.dtype)
    return half * jnp.tanh(half * h) + half


def snake_mlp_kernel(x_ref, w1_ref, b1_ref, w2_ref, b2_ref, w3_ref, b3_ref,
                     o_ref, *, act_dtype):
    mm = jnp.bfloat16  # MXU operand dtype (f32 accumulation)

    # Layer 1: Linear(12, 1024) + sigmoid
    x = x_ref[...].astype(mm)                                   # (TB, 12)
    h1 = jnp.dot(x, w1_ref[...], preferred_element_type=jnp.float32)
    h1 = h1.astype(act_dtype) + b1_ref[...].astype(act_dtype)
    h1 = _sigmoid_1t(h1)

    # Layer 2: Linear(1024, 1024) + sigmoid
    h2 = jnp.dot(h1.astype(mm), w2_ref[...],
                 preferred_element_type=jnp.float32)
    h2 = h2.astype(act_dtype) + b2_ref[...].astype(act_dtype)
    h2 = _sigmoid_1t(h2)

    # Layer 3: Linear(1024, 4) [lane-padded to 128] + LeakyReLU(0.01)
    y = jnp.dot(h2.astype(mm), w3_ref[...],
                preferred_element_type=jnp.float32)
    y = y + b3_ref[...]                                         # f32 bias add
    o_ref[...] = jnp.where(y >= 0.0, y, NEG_SLOPE * y)


def _forward_impl(x_pad, kparams, tb, act_dtype, single_buffer):
    w1, b1, w2, b2, w3, b3 = kparams
    Bp = x_pad.shape[0]
    grid = (Bp // tb,)

    res_kwargs = {"pipeline_mode": pl.Buffered(1)} if single_buffer else {}

    def resident(arr):
        # Whole array is one block, same block every grid step -> DMA'd once,
        # stays resident in VMEM; Buffered(1) drops the unused second buffer.
        return pl.BlockSpec(arr.shape, lambda i: (0, 0), **res_kwargs)

    kernel = functools.partial(snake_mlp_kernel, act_dtype=act_dtype)

    return pl.pallas_call(
        kernel,
        out_shape=jax.ShapeDtypeStruct((Bp, OUT_PAD), jnp.float32),
        grid_spec=pltpu.PrefetchScalarGridSpec(
            num_scalar_prefetch=0,
            grid=grid,
            in_specs=[
                pl.BlockSpec((tb, IN_DIM), lambda i: (i, 0)),   # x tile
                resident(w1), resident(b1),
                resident(w2), resident(b2),
                resident(w3), resident(b3),
            ],
            out_specs=pl.BlockSpec((tb, OUT_PAD), lambda i: (i, 0)),
        ),
        compiler_params=pltpu.CompilerParams(
            dimension_semantics=("parallel",),   # megacore sharding (v7x)
            vmem_limit_bytes=32 << 20,
        ),
    )(x_pad, w1, b1, w2, b2, w3, b3)


def snake_forward(x, kparams, block_b=None):
    """x: (B, 12) f32. kparams from prepare_params(). Returns (B, 4) f32."""
    B = x.shape[0]
    bf16_act, two_tc = _device_traits()

    if block_b is None:
        block_b = 256 if bf16_act else 128   # 256 on v6e/v7x, 128 on v5e

    sub = 16 if bf16_act else 8              # sublane packing granularity
    if two_tc and B > 8:
        # Ensure >= 2 grid steps so both v7x TensorCores get work.
        tb = min(block_b, _round_up(-(-B // 2), sub))
    else:
        tb = min(block_b, _round_up(B, sub))
    Bp = _round_up(B, tb)
    x_pad = jnp.pad(x, ((0, Bp - B), (0, 0))) if Bp != B else x

    act_dtype = jnp.bfloat16 if bf16_act else jnp.float32
    try:
        out = _forward_impl(x_pad, kparams, tb, act_dtype, single_buffer=True)
    except Exception:
        # Conservative fallback: f32 activation math, default double-buffering.
        out = _forward_impl(x_pad, kparams, tb, jnp.float32,
                            single_buffer=False)
    return out[:B, :OUT_DIM]


def init_params(key):
    """Deterministic f32 params mirroring the PyTorch module:
       weights ~ U(-1, 1) (init.uniform_), biases keep nn.Linear default
       U(-1/sqrt(fan_in), 1/sqrt(fan_in)). Weights stored transposed (in, out)."""
    k = jax.random.split(key, 6)

    w1 = jax.random.uniform(k[0], (IN_DIM, HID_DIM), jnp.float32, -1.0, 1.0)
    b1 = jax.random.uniform(k[1], (1, HID_DIM), jnp.float32,
                            -1.0 / jnp.sqrt(IN_DIM), 1.0 / jnp.sqrt(IN_DIM))

    w2 = jax.random.uniform(k[2], (HID_DIM, HID_DIM), jnp.float32, -1.0, 1.0)
    b2 = jax.random.uniform(k[3], (1, HID_DIM), jnp.float32,
                            -1.0 / jnp.sqrt(HID_DIM), 1.0 / jnp.sqrt(HID_DIM))

    w3 = jax.random.uniform(k[4], (HID_DIM, OUT_DIM), jnp.float32, -1.0, 1.0)
    b3 = jax.random.uniform(k[5], (1, OUT_DIM), jnp.float32,
                            -1.0 / jnp.sqrt(HID_DIM), 1.0 / jnp.sqrt(HID_DIM))

    return w1, b1, w2, b2, w3, b3


def prepare_params(params):
    """Kernel layout: bf16 weights (halved HBM bytes), f32 biases,
       layer-3 weight/bias zero-padded to 128 lanes."""
    w1, b1, w2, b2, w3, b3 = params
    w3p = jnp.pad(w3, ((0, 0), (0, OUT_PAD - OUT_DIM)))
    b3p = jnp.pad(b3, ((0, 0), (0, OUT_PAD - OUT_DIM)))
    return (w1.astype(jnp.bfloat16), b1,
            w2.astype(jnp.bfloat16), b2,
            w3p.astype(jnp.bfloat16), b3p)


def reference_forward(x, kparams):
    """Pure-JAX reference using the same bf16 weights, computed in f32."""
    w1, b1, w2, b2, w3, b3 = kparams
    w1, w2, w3 = (w.astype(jnp.float32) for w in (w1, w2, w3))
    h1 = jax.nn.sigmoid(x @ w1 + b1)
    h2 = jax.nn.sigmoid(h1 @ w2 + b2)
    y = h2 @ w3 + b3
    y = jnp.where(y >= 0.0, y, NEG_SLOPE * y)
    return y[:, :OUT_DIM]


# TODO(synk): replay memory, epsilon-greedy game loop, Adam optimizer and the
# MSE training step are host-side training logic, not part of forward().

if __name__ == "__main__":
    key = jax.random.PRNGKey(0)
    k_params, k_x1, k_x2 = jax.random.split(key, 3)

    kparams = prepare_params(init_params(k_params))

    # Small-batch case (typical single-board inference).
    B1 = 8
    x1 = jax.random.uniform(k_x1, (B1, IN_DIM), jnp.float32, 0.0, 1.0)
    out1 = jax.block_until_ready(snake_forward(x1, kparams))
    ref1 = reference_forward(x1, kparams)
    assert out1.shape == (B1, OUT_DIM)
    assert jnp.allclose(out1, ref1, atol=2e-1, rtol=5e-2), "mismatch (B=8)"

    # Larger batch: exercises batch tiling (grid > 1) and padding path.
    B2 = 200
    x2 = jax.random.uniform(k_x2, (B2, IN_DIM), jnp.float32, 0.0, 1.0)
    out2 = jax.block_until_ready(snake_forward(x2, kparams))
    ref2 = reference_forward(x2, kparams)
    assert out2.shape == (B2, OUT_DIM)
    assert jnp.allclose(out2, ref2, atol=2e-1, rtol=5e-2), "mismatch (B=200)"

    print("KERNEL_OK")
</pallas_src>

<mosaic_0001>
module attributes {stable_mosaic.version = 11 : i64} {
  func.func @snake_mlp_kernel(%arg0: i32, %arg1: memref<8x12xf32, #tpu.memory_space<vmem>>, %arg2: memref<12x1024xbf16, #tpu.memory_space<vmem>>, %arg3: memref<1x1024xf32, #tpu.memory_space<vmem>>, %arg4: memref<1024x1024xbf16, #tpu.memory_space<vmem>>, %arg5: memref<1x1024xf32, #tpu.memory_space<vmem>>, %arg6: memref<1024x128xbf16, #tpu.memory_space<vmem>>, %arg7: memref<1x128xf32, #tpu.memory_space<vmem>>, %arg8: memref<8x128xf32, #tpu.memory_space<vmem>>) attributes {dimension_semantics = [#tpu.dimension_semantics<parallel>], iteration_bounds = array<i64: 1>, scalar_prefetch = 0 : i64, scratch_operands = 0 : i64, tpu.core_type = #tpu.core_type<tc>, window_params = [{transform_indices = @transform_0, window_bounds = array<i64: 8, 12>}, {pipeline_mode = #tpu.pipeline_mode<synchronous>, transform_indices = @transform_1, window_bounds = array<i64: 12, 1024>}, {pipeline_mode = #tpu.pipeline_mode<synchronous>, transform_indices = @transform_2, window_bounds = array<i64: 1, 1024>}, {pipeline_mode = #tpu.pipeline_mode<synchronous>, transform_indices = @transform_3, window_bounds = array<i64: 1024, 1024>}, {pipeline_mode = #tpu.pipeline_mode<synchronous>, transform_indices = @transform_4, window_bounds = array<i64: 1, 1024>}, {pipeline_mode = #tpu.pipeline_mode<synchronous>, transform_indices = @transform_5, window_bounds = array<i64: 1024, 128>}, {pipeline_mode = #tpu.pipeline_mode<synchronous>, transform_indices = @transform_6, window_bounds = array<i64: 1, 128>}, {transform_indices = @transform_7, window_bounds = array<i64: 8, 128>}]} {
    %c0 = arith.constant 0 : index
    %c0_0 = arith.constant 0 : index
    %0 = vector.load %arg1[%c0, %c0_0] : memref<8x12xf32, #tpu.memory_space<vmem>>, vector<8x12xf32>
    %1 = arith.truncf %0 : vector<8x12xf32> to vector<8x12xbf16>
    %c0_1 = arith.constant 0 : index
    %c0_2 = arith.constant 0 : index
    %2 = vector.load %arg2[%c0_1, %c0_2] : memref<12x1024xbf16, #tpu.memory_space<vmem>>, vector<12x1024xbf16>
    %cst = arith.constant dense<0.000000e+00> : vector<8x1024xf32>
    %3 = tpu.matmul %1, %2, %cst {dimension_numbers = #tpu.dot_dimension_numbers<[1], [0], [0], [1], [0, 0, 1, 1], [], []>} : vector<8x12xbf16>, vector<12x1024xbf16>, vector<8x1024xf32> -> vector<8x1024xf32>
    %c0_3 = arith.constant 0 : index
    %c0_4 = arith.constant 0 : index
    %4 = vector.load %arg3[%c0_3, %c0_4] : memref<1x1024xf32, #tpu.memory_space<vmem>>, vector<1x1024xf32>
    %5 = vector.broadcast %4 : vector<1x1024xf32> to vector<8x1024xf32>
    %6 = arith.addf %3, %5 : vector<8x1024xf32>
    %cst_5 = arith.constant 5.000000e-01 : f32
    %7 = vector.broadcast %cst_5 : f32 to vector<8x1024xf32>
    %8 = arith.mulf %7, %6 : vector<8x1024xf32>
    %9 = math.tanh %8 : vector<8x1024xf32>
    %cst_6 = arith.constant 5.000000e-01 : f32
    %10 = vector.broadcast %cst_6 : f32 to vector<8x1024xf32>
    %11 = arith.mulf %10, %9 : vector<8x1024xf32>
    %cst_7 = arith.constant 5.000000e-01 : f32
    %12 = vector.broadcast %cst_7 : f32 to vector<8x1024xf32>
    %13 = arith.addf %11, %12 : vector<8x1024xf32>
    %14 = arith.truncf %13 : vector<8x1024xf32> to vector<8x1024xbf16>
    %c0_8 = arith.constant 0 : index
    %c0_9 = arith.constant 0 : index
    %15 = vector.load %arg4[%c0_8, %c0_9] : memref<1024x1024xbf16, #tpu.memory_space<vmem>>, vector<1024x1024xbf16>
    %cst_10 = arith.constant dense<0.000000e+00> : vector<8x1024xf32>
    %16 = tpu.matmul %14, %15, %cst_10 {dimension_numbers = #tpu.dot_dimension_numbers<[1], [0], [0], [1], [0, 0, 1, 1], [], []>} : vector<8x1024xbf16>, vector<1024x1024xbf16>, vector<8x1024xf32> -> vector<8x1024xf32>
    %c0_11 = arith.constant 0 : index
    %c0_12 = arith.constant 0 : index
    %17 = vector.load %arg5[%c0_11, %c0_12] : memref<1x1024xf32, #tpu.memory_space<vmem>>, vector<1x1024xf32>
    %18 = vector.broadcast %17 : vector<1x1024xf32> to vector<8x1024xf32>
    %19 = arith.addf %16, %18 : vector<8x1024xf32>
    %cst_13 = arith.constant 5.000000e-01 : f32
    %20 = vector.broadcast %cst_13 : f32 to vector<8x1024xf32>
    %21 = arith.mulf %20, %19 : vector<8x1024xf32>
    %22 = math.tanh %21 : vector<8x1024xf32>
    %cst_14 = arith.constant 5.000000e-01 : f32
    %23 = vector.broadcast %cst_14 : f32 to vector<8x1024xf32>
    %24 = arith.mulf %23, %22 : vector<8x1024xf32>
    %cst_15 = arith.constant 5.000000e-01 : f32
    %25 = vector.broadcast %cst_15 : f32 to vector<8x1024xf32>
    %26 = arith.addf %24, %25 : vector<8x1024xf32>
    %27 = arith.truncf %26 : vector<8x1024xf32> to vector<8x1024xbf16>
    %c0_16 = arith.constant 0 : index
    %c0_17 = arith.constant 0 : index
    %28 = vector.load %arg6[%c0_16, %c0_17] : memref<1024x128xbf16, #tpu.memory_space<vmem>>, vector<1024x128xbf16>
    %cst_18 = arith.constant dense<0.000000e+00> : vector<8x128xf32>
    %29 = tpu.matmul %27, %28, %cst_18 {dimension_numbers = #tpu.dot_dimension_numbers<[1], [0], [0], [1], [0, 0, 1, 1], [], []>} : vector<8x1024xbf16>, vector<1024x128xbf16>, vector<8x128xf32> -> vector<8x128xf32>
    %c0_19 = arith.constant 0 : index
    %c0_20 = arith.constant 0 : index
    %30 = vector.load %arg7[%c0_19, %c0_20] : memref<1x128xf32, #tpu.memory_space<vmem>>, vector<1x128xf32>
    %31 = vector.broadcast %30 : vector<1x128xf32> to vector<8x128xf32>
    %32 = arith.addf %29, %31 : vector<8x128xf32>
    %cst_21 = arith.constant 0.000000e+00 : f32
    %33 = vector.broadcast %cst_21 : f32 to vector<8x128xf32>
    %34 = arith.cmpf oge, %32, %33 : vector<8x128xf32>
    %cst_22 = arith.constant 0.00999999977 : f32
    %35 = vector.broadcast %cst_22 : f32 to vector<8x128xf32>
    %36 = arith.mulf %35, %32 : vector<8x128xf32>
    %37 = arith.select %34, %32, %36 : vector<8x128xi1>, vector<8x128xf32>
    %c0_23 = arith.constant 0 : index
    %c0_24 = arith.constant 0 : index
    %38 = vector.load %arg8[%c0_23, %c0_24] : memref<8x128xf32, #tpu.memory_space<vmem>>, vector<8x128xf32>
    tpu.vector_store %arg8[%c0_23, %c0_24], %37 {strides = array<i32>} : memref<8x128xf32, #tpu.memory_space<vmem>>, vector<8x128xf32>,
    return
  }
  func.func @transform_0(%arg0: i32) -> (i32, i32) {
    %c0_i32 = arith.constant 0 : i32
    %c0_i32_0 = arith.constant 0 : i32
    return %arg0, %c0_i32 : i32, i32
  }
  func.func @transform_1(%arg0: i32) -> (i32, i32) {
    %c0_i32 = arith.constant 0 : i32
    %c0_i32_0 = arith.constant 0 : i32
    %c0_i32_1 = arith.constant 0 : i32
    return %c0_i32, %c0_i32_0 : i32, i32
  }
  func.func @transform_2(%arg0: i32) -> (i32, i32) {
    %c0_i32 = arith.constant 0 : i32
    %c0_i32_0 = arith.constant 0 : i32
    %c0_i32_1 = arith.constant 0 : i32
    return %c0_i32, %c0_i32_0 : i32, i32
  }
  func.func @transform_3(%arg0: i32) -> (i32, i32) {
    %c0_i32 = arith.constant 0 : i32
    %c0_i32_0 = arith.constant 0 : i32
    %c0_i32_1 = arith.constant 0 : i32
    return %c0_i32, %c0_i32_0 : i32, i32
  }
  func.func @transform_4(%arg0: i32) -> (i32, i32) {
    %c0_i32 = arith.constant 0 : i32
    %c0_i32_0 = arith.constant 0 : i32
    %c0_i32_1 = arith.constant 0 : i32
    return %c0_i32, %c0_i32_0 : i32, i32
  }
  func.func @transform_5(%arg0: i32) -> (i32, i32) {
    %c0_i32 = arith.constant 0 : i32
    %c0_i32_0 = arith.constant 0 : i32
    %c0_i32_1 = arith.constant 0 : i32
    return %c0_i32, %c0_i32_0 : i32, i32
  }
  func.func @transform_6(%arg0: i32) -> (i32, i32) {
    %c0_i32 = arith.constant 0 : i32
    %c0_i32_0 = arith.constant 0 : i32
    %c0_i32_1 = arith.constant 0 : i32
    return %c0_i32, %c0_i32_0 : i32, i32
  }
  func.func @transform_7(%arg0: i32) -> (i32, i32) {
    %c0_i32 = arith.constant 0 : i32
    %c0_i32_0 = arith.constant 0 : i32
    return %arg0, %c0_i32 : i32, i32
  }
}

module attributes {stable_mosaic.version = 11 : i64} {
  func.func @snake_mlp_kernel(%arg0: i32, %arg1: memref<8x12xf32, #tpu.memory_space<vmem>>, %arg2: memref<12x1024xbf16, #tpu.memory_space<vmem>>, %arg3: memref<1x1024xf32, #tpu.memory_space<vmem>>, %arg4: memref<1024x1024xbf16, #tpu.memory_space<vmem>>, %arg5: memref<1x1024xf32, #tpu.memory_space<vmem>>, %arg6: memref<1024x128xbf16, #tpu.memory_space<vmem>>, %arg7: memref<1x128xf32, #tpu.memory_space<vmem>>, %arg8: memref<8x128xf32, #tpu.memory_space<vmem>>) attributes {dimension_semantics = [#tpu.dimension_semantics<parallel>], iteration_bounds = array<i64: 1>, scalar_prefetch = 0 : i64, scratch_operands = 0 : i64, tpu.core_type = #tpu.core_type<tc>, window_params = [{transform_indices = @transform_0, window_bounds = array<i64: 8, 12>}, {pipeline_mode = #tpu.pipeline_mode<synchronous>, transform_indices = @transform_1, window_bounds = array<i64: 12, 1024>}, {pipeline_mode = #tpu.pipeline_mode<synchronous>, transform_indices = @transform_2, window_bounds = array<i64: 1, 1024>}, {pipeline_mode = #tpu.pipeline_mode<synchronous>, transform_indices = @transform_3, window_bounds = array<i64: 1024, 1024>}, {pipeline_mode = #tpu.pipeline_mode<synchronous>, transform_indices = @transform_4, window_bounds = array<i64: 1, 1024>}, {pipeline_mode = #tpu.pipeline_mode<synchronous>, transform_indices = @transform_5, window_bounds = array<i64: 1024, 128>}, {pipeline_mode = #tpu.pipeline_mode<synchronous>, transform_indices = @transform_6, window_bounds = array<i64: 1, 128>}, {transform_indices = @transform_7, window_bounds = array<i64: 8, 128>}]} {
    %c0 = arith.constant 0 : index
    %c0_0 = arith.constant 0 : index
    %0 = vector.load %arg1[%c0, %c0_0] : memref<8x12xf32, #tpu.memory_space<vmem>>, vector<8x12xf32>
    %1 = arith.truncf %0 : vector<8x12xf32> to vector<8x12xbf16>
    %c0_1 = arith.constant 0 : index
    %c0_2 = arith.constant 0 : index
    %2 = vector.load %arg2[%c0_1, %c0_2] : memref<12x1024xbf16, #tpu.memory_space<vmem>>, vector<12x1024xbf16>
    %cst = arith.constant dense<0.000000e+00> : vector<8x1024xf32>
    %3 = tpu.matmul %1, %2, %cst {dimension_numbers = #tpu.dot_dimension_numbers<[1], [0], [0], [1], [0, 0, 1, 1], [], []>} : vector<8x12xbf16>, vector<12x1024xbf16>, vector<8x1024xf32> -> vector<8x1024xf32>
    %c0_3 = arith.constant 0 : index
    %c0_4 = arith.constant 0 : index
    %4 = vector.load %arg3[%c0_3, %c0_4] : memref<1x1024xf32, #tpu.memory_space<vmem>>, vector<1x1024xf32>
    %5 = vector.broadcast %4 : vector<1x1024xf32> to vector<8x1024xf32>
    %6 = arith.addf %3, %5 : vector<8x1024xf32>
    %cst_5 = arith.constant 5.000000e-01 : f32
    %7 = vector.broadcast %cst_5 : f32 to vector<8x1024xf32>
    %8 = arith.mulf %7, %6 : vector<8x1024xf32>
    %9 = math.tanh %8 : vector<8x1024xf32>
    %cst_6 = arith.constant 5.000000e-01 : f32
    %10 = vector.broadcast %cst_6 : f32 to vector<8x1024xf32>
    %11 = arith.mulf %10, %9 : vector<8x1024xf32>
    %cst_7 = arith.constant 5.000000e-01 : f32
    %12 = vector.broadcast %cst_7 : f32 to vector<8x1024xf32>
    %13 = arith.addf %11, %12 : vector<8x1024xf32>
    %14 = arith.truncf %13 : vector<8x1024xf32> to vector<8x1024xbf16>
    %c0_8 = arith.constant 0 : index
    %c0_9 = arith.constant 0 : index
    %15 = vector.load %arg4[%c0_8, %c0_9] : memref<1024x1024xbf16, #tpu.memory_space<vmem>>, vector<1024x1024xbf16>
    %cst_10 = arith.constant dense<0.000000e+00> : vector<8x1024xf32>
    %16 = tpu.matmul %14, %15, %cst_10 {dimension_numbers = #tpu.dot_dimension_numbers<[1], [0], [0], [1], [0, 0, 1, 1], [], []>} : vector<8x1024xbf16>, vector<1024x1024xbf16>, vector<8x1024xf32> -> vector<8x1024xf32>
    %c0_11 = arith.constant 0 : index
    %c0_12 = arith.constant 0 : index
    %17 = vector.load %arg5[%c0_11, %c0_12] : memref<1x1024xf32, #tpu.memory_space<vmem>>, vector<1x1024xf32>
    %18 = vector.broadcast %17 : vector<1x1024xf32> to vector<8x1024xf32>
    %19 = arith.addf %16, %18 : vector<8x1024xf32>
    %cst_13 = arith.constant 5.000000e-01 : f32
    %20 = vector.broadcast %cst_13 : f32 to vector<8x1024xf32>
    %21 = arith.mulf %20, %19 : vector<8x1024xf32>
    %22 = math.tanh %21 : vector<8x1024xf32>
    %cst_14 = arith.constant 5.000000e-01 : f32
    %23 = vector.broadcast %cst_14 : f32 to vector<8x1024xf32>
    %24 = arith.mulf %23, %22 : vector<8x1024xf32>
    %cst_15 = arith.constant 5.000000e-01 : f32
    %25 = vector.broadcast %cst_15 : f32 to vector<8x1024xf32>
    %26 = arith.addf %24, %25 : vector<8x1024xf32>
    %27 = arith.truncf %26 : vector<8x1024xf32> to vector<8x1024xbf16>
    %c0_16 = arith.constant 0 : index
    %c0_17 = arith.constant 0 : index
    %28 = vector.load %arg6[%c0_16, %c0_17] : memref<1024x128xbf16, #tpu.memory_space<vmem>>, vector<1024x128xbf16>
    %cst_18 = arith.constant dense<0.000000e+00> : vector<8x128xf32>
    %29 = tpu.matmul %27, %28, %cst_18 {dimension_numbers = #tpu.dot_dimension_numbers<[1], [0], [0], [1], [0, 0, 1, 1], [], []>} : vector<8x1024xbf16>, vector<1024x128xbf16>, vector<8x128xf32> -> vector<8x128xf32>
    %c0_19 = arith.constant 0 : index
    %c0_20 = arith.constant 0 : index
    %30 = vector.load %arg7[%c0_19, %c0_20] : memref<1x128xf32, #tpu.memory_space<vmem>>, vector<1x128xf32>
    %31 = vector.broadcast %30 : vector<1x128xf32> to vector<8x128xf32>
    %32 = arith.addf %29, %31 : vector<8x128xf32>
    %cst_21 = arith.constant 0.000000e+00 : f32
    %33 = vector.broadcast %cst_21 : f32 to vector<8x128xf32>
    %34 = arith.cmpf oge, %32, %33 : vector<8x128xf32>
    %cst_22 = arith.constant 0.00999999977 : f32
    %35 = vector.broadcast %cst_22 : f32 to vector<8x128xf32>
    %36 = arith.mulf %35, %32 : vector<8x128xf32>
    %37 = arith.select %34, %32, %36 : vector<8x128xi1>, vector<8x128xf32>
    %c0_23 = arith.constant 0 : index
    %c0_24 = arith.constant 0 : index
    %38 = vector.load %arg8[%c0_23, %c0_24] : memref<8x128xf32, #tpu.memory_space<vmem>>, vector<8x128xf32>
    tpu.vector_store %arg8[%c0_23, %c0_24], %37 {strides = array<i32>} : memref<8x128xf32, #tpu.memory_space<vmem>>, vector<8x128xf32>,
    return
  }
  func.func @transform_0(%arg0: i32) -> (i32, i32) {
    %c0_i32 = arith.constant 0 : i32
    %c0_i32_0 = arith.constant 0 : i32
    return %arg0, %c0_i32 : i32, i32
  }
  func.func @transform_1(%arg0: i32) -> (i32, i32) {
    %c0_i32 = arith.constant 0 : i32
    %c0_i32_0 = arith.constant 0 : i32
    %c0_i32_1 = arith.constant 0 : i32
    return %c0_i32, %c0_i32_0 : i32, i32
  }
  func.func @transform_2(%arg0: i32) -> (i32, i32) {
    %c0_i32 = arith.constant 0 : i32
    %c0_i32_0 = arith.constant 0 : i32
    %c0_i32_1 = arith.constant 0 : i32
    return %c0_i32, %c0_i32_0 : i32, i32
  }
  func.func @transform_3(%arg0: i32) -> (i32, i32) {
    %c0_i32 = arith.constant 0 : i32
    %c0_i32_0 = arith.constant 0 : i32
    %c0_i32_1 = arith.constant 0 : i32
    return %c0_i32, %c0_i32_0 : i32, i32
  }
  func.func @transform_4(%arg0: i32) -> (i32, i32) {
    %c0_i32 = arith.constant 0 : i32
    %c0_i32_0 = arith.constant 0 : i32
    %c0_i32_1 = arith.constant 0 : i32
    return %c0_i32, %c0_i32_0 : i32, i32
  }
  func.func @transform_5(%arg0: i32) -> (i32, i32) {
    %c0_i32 = arith.constant 0 : i32
    %c0_i32_0 = arith.constant 0 : i32
    %c0_i32_1 = arith.constant 0 : i32
    return %c0_i32, %c0_i32_0 : i32, i32
  }
  func.func @transform_6(%arg0: i32) -> (i32, i32) {
    %c0_i32 = arith.constant 0 : i32
    %c0_i32_0 = arith.constant 0 : i32
    %c0_i32_1 = arith.constant 0 : i32
    return %c0_i32, %c0_i32_0 : i32, i32
  }
  func.func @transform_7(%arg0: i32) -> (i32, i32) {
    %c0_i32 = arith.constant 0 : i32
    %c0_i32_0 = arith.constant 0 : i32
    return %arg0, %c0_i32 : i32, i32
  }
}

</mosaic_0001>

<bundles_post_ra>
// kernel: tpu_custom_call.1
= control target key start
LH: loop header
LB: loop body
LE: loop exit
PB: predicated region body
PF: predicated region fallthrough
CT: control target
= control target key end

     0   :  { %12 = vsyncpa [#allocation3], 0  ;;  %s8390_s0 = inlined_call_operand.hbm [shape: f32[8,12], index: 0, kind: input, shape index: {}]   ;;  %s8391_s1 = inlined_call_operand.hbm [shape: bf16[12,1024], index: 1, kind: input, shape index: {}]   ;;  %s8392_s2 = inlined_call_operand.hbm [shape: f32[1,1024], index: 2, kind: input, shape index: {}]   ;;  %s8393_s3 = inlined_call_operand.hbm [shape: bf16[1024,1024], index: 3, kind: input, shape index: {}]   ;;  %s8394_s4 = inlined_call_operand.hbm [shape: f32[1,1024], index: 4, kind: input, shape index: {}]   ;;  %s8395_s5 = inlined_call_operand.hbm [shape: bf16[1024,128], index: 5, kind: input, shape index: {}]   ;;  %s8396_s6 = inlined_call_operand.hbm [shape: f32[1,128], index: 6, kind: input, shape index: {}]   ;;  %s8397_s7 = inlined_call_operand.hbm [shape: f32[8,128], index: 7, kind: output, shape index: {}]  }
   0x1   :  { %13 = vsyncpa [#allocation6], 0 }
   0x2   :  { %14 = vsyncpa [#allocation9], 0 }
   0x3   :  { %15 = vsyncpa [#allocation12], 0  ;;  %s32_s26 = sshll.u32 %s8391_s1, 4  ;;  %s33_s26 = int_to_ptr.hbm [resolvable:$true] %s32_s26 }
   0x4   :  { %16 = vsyncpa [#allocation4], 0  ;;  %s8145_s27 = smov [#allocation5]   ;;  %s56_s8 = sshll.u32 %s8393_s3, 4  ;;  %s57_s8 = int_to_ptr.hbm [resolvable:$true] %s56_s8 }
   0x5   :  { %s34_s28 = sshll.u32 %s8145_s27, 4  ;;  %s8146_s9 = smov 512   ;;  %s35_s28 = int_to_ptr.vmem [resolvable:$true] %s34_s28 }
   0x6   :  { %s8147_s10 = smov 32   ;;  %s8148_s11 = smov [#allocation8]  }
   0x7   :  { %40 = dma.hbm_to_vmem [thread:$0]  %s33_s26, 1024, %s35_s28, [#allocation6], %s8146_s9, %s8146_s9, %s8147_s10  }
   0x8   :  { %s58_s12 = sshll.u32 %s8148_s11, 4  ;;  %s80_s15 = sshll.u32 %s8395_s5, 4  ;;  %s59_s12 = int_to_ptr.vmem [resolvable:$true] %s58_s12  ;;  %s81_s15 = int_to_ptr.hbm [resolvable:$true] %s80_s15 }
   0x9   :  { %64 = dma.hbm_to_vmem [thread:$0]  %s57_s8, 65536, %s59_s12, [#allocation9], %s8146_s9, %s8146_s9, %s8147_s10  }
   0xa   :  { %s8149_s1 = smov [#allocation11]   ;;  %s22_s3 = sshll.u32 %s8390_s0, 4  ;;  %s23_s3 = int_to_ptr.hbm [resolvable:$true] %s22_s3 }
   0xb   :  { %s82_s16 = sshll.u32 %s8149_s1, 4  ;;  %s8150_s19 = smov 64   ;;  %s83_s16 = int_to_ptr.vmem [resolvable:$true] %s82_s16 }
   0xc   :  { %s8151_s20 = smov 4   ;;  %s8152_s21 = smov [#allocation2]  }
   0xd   :  { %88 = dma.hbm_to_vmem [thread:$0]  %s81_s15, 8192, %s83_s16, [#allocation12], %s8150_s19, %s8150_s19, %s8151_s20  }
   0xe   :  { %s24_s22 = sshll.u32 %s8152_s21, 4  ;;  %s46_s5 = sshll.u32 %s8392_s2, 4  ;;  %s25_s22 = int_to_ptr.vmem [resolvable:$true] %s24_s22  ;;  %s47_s5 = int_to_ptr.hbm [resolvable:$true] %s46_s5 }
   0xf   :  { %27 = dma.hbm_to_vmem [thread:$0]  %s23_s3, 128, %s25_s22, [#allocation3]  }
  0x10   :  { %s70_s27 = sshll.u32 %s8394_s4, 4  ;;  %s8153_s28 = smov [#allocation7]   ;;  %s71_s27 = int_to_ptr.hbm [resolvable:$true] %s70_s27 }
  0x11   :  { %s48_s29 = sshll.u32 %s8153_s28, 4  ;;  %s8154_s0 = smov [#allocation10]   ;;  %s49_s29 = int_to_ptr.vmem [resolvable:$true] %s48_s29 }
  0x12   :  { %51 = dma.hbm_to_vmem [thread:$0]  %s47_s5, 128, %s49_s29, [#allocation6]  }
  0x13   :  { %s72_s30 = sshll.u32 %s8154_s0, 4  ;;  %s94_s10 = sshll.u32 %s8396_s6, 4  ;;  %s73_s30 = int_to_ptr.vmem [resolvable:$true] %s72_s30  ;;  %s95_s10 = int_to_ptr.hbm [resolvable:$true] %s94_s10 }
  0x14   :  { %75 = dma.hbm_to_vmem [thread:$0]  %s71_s27, 128, %s73_s30, [#allocation9]  }
  0x15   :  { %s8155_s2 = smov [#allocation13]  }
  0x16   :  { %s96_s11 = sshll.u32 %s8155_s2, 4  ;;  %s97_s11 = int_to_ptr.vmem [resolvable:$true] %s96_s11 }
  0x17   :  { %99 = dma.hbm_to_vmem [thread:$0]  %s95_s10, 16, %s97_s11, [#allocation12]  }
  0x18   :  { %8135 = dma.done.wait [#allocation3], 128  }
  0x19   :  { %8136 = vsyncadd [#allocation3], 4294967168 }
  0x1a   :  { %8137 = dma.done.wait [#allocation6], 1152  }
  0x1b   :  { %8138 = vsyncadd [#allocation6], 4294966144 }
  0x1c   :  { %8139 = dma.done.wait [#allocation9], 65664  }
  0x1d   :  { %8140 = vsyncadd [#allocation9], 4294901632 }
  0x1e   :  { %8141 = dma.done.wait [#allocation12], 8208  }
  0x1f   :  { %8142 = vsyncadd [#allocation12], 4294959088  ;;  %vm193_vm0 = vcmask 1045504   ;;  %v4970_v0 = vld [vmem:[#allocation5] sm:$0xf]  ;;  %v129_v11 = vld [vmem:[#allocation2] sm:$0xff] }
  0x20   :  { %v7316_v1 = vld [vmem:[#allocation5 + $0x1c] sm:$0x30]  ;;  %v7312_v2 = vld [vmem:[#allocation5 + $0x4] sm:$0xf]  ;;  %v4978_v5 = vld [vmem:[#allocation5 + $0x8] sm:$0xf]  ;;  %v8219_v14 = vpack.c.bf16 %v129_v11, %v129_v11 }
  0x21   :  { %v4971_v3 = vor.u32 %v7316_v1, %v4970_v0  ;;  %v4972_v4 = vld [vmem:[#allocation5 + $0x20] sm:$0x30]  ;;  %v7317_v6 = vld [vmem:[#allocation5 + $0x24] sm:$0x30]  ;;  %v7313_v9 = vld [vmem:[#allocation5 + $0xc] sm:$0xf] }
  0x22   :  { %v4975_v7 = vor.u32 %v7312_v2, %v4972_v4  ;;  %v4979_v8 = vor.u32 %v7317_v6, %v4978_v5  ;;  %v4980_v10 = vld [vmem:[#allocation5 + $0x28] sm:$0x30]  ;;  %vm189_vm1 = vcmask 97280   ;;  %v4986_v15 = vld [vmem:[#allocation5 + $0x10] sm:$0xf]  ;;  %s8156_s4 = smov [#allocation14]  }
  0x23   :  { %v195_v12 = vsel %vm193_vm0, %v4971_v3, 0  ;;  %v4983_v13 = vor.u32 %v7313_v9, %v4980_v10  ;;  %v7318_v16 = vld [vmem:[#allocation5 + $0x2c] sm:$0x30]  ;;  %v7314_v20 = vld [vmem:[#allocation5 + $0x14] sm:$0xf]  ;;  %s4953_s6 = sshll.u32 %s8156_s4, 4  ;;  %s4954_s6 = int_to_ptr.vmem [resolvable:$true] %s4953_s6 }
  0x24   :  { %225 = vmatpush.bf16.msra.mxu0 %v195_v12  ;;  %v198_v17 = vsel %vm193_vm0, %v4975_v7, 0  ;;  %v201_v18 = vsel %vm193_vm0, %v4979_v8, 0  ;;  %v4987_v19 = vor.u32 %v7318_v16, %v4986_v15  ;;  %v4988_v21 = vld [vmem:[#allocation5 + $0x30] sm:$0x30]  ;;  %v4994_v24 = vld [vmem:[#allocation5 + $0x18] sm:$0xf] }
  0x25   :  { %238 = vmatpush.bf16.msra.mxu1 %v198_v17  ;;  %251 = vmatpush.bf16.msra.mxu2 %v201_v18  ;;  %v204_v22 = vsel %vm193_vm0, %v4983_v13, 0  ;;  %v4991_v23 = vor.u32 %v7314_v20, %v4988_v21  ;;  %v7319_v25 = vld [vmem:[#allocation5 + $0x34] sm:$0x30]  ;;  %v7315_v28 = vld [vmem:[#allocation5 + $0x1c] sm:$0xf]  ;;  %s4955_s14 = sshll.u32 %s8397_s7, 4  ;;  %s4956_s14 = int_to_ptr.hbm [resolvable:$true] %s4955_s14 }
  0x26   :  { %264 = vmatpush.bf16.msra.mxu3 %v204_v22  ;;  %v207_v26 = vsel %vm193_vm0, %v4987_v19, 0  ;;  %v4995_v27 = vor.u32 %v7319_v25, %v4994_v24  ;;  %v4996_v29 = vld [vmem:[#allocation5 + $0x38] sm:$0x30]  ;;  %v5234_v32 = vld [vmem:[#allocation8 + $0x1c0] sm:$0xf] }
  0x27   :  { %5000 = vmatmul.msk.bf16.vlgmr.msra.gmra.mxu0 %vm189_vm1, %v8219_v14  ;;  %v210_v30 = vsel %vm193_vm0, %v4991_v23, 0  ;;  %v4999_v31 = vor.u32 %v7315_v28, %v4996_v29  ;;  %v7380_v33 = vld [vmem:[#allocation8 + $0x1dc] sm:$0xf0] }
  0x28   :  { %5001 = vmatmul.msk.bf16.vlgmr.msra.gmra.mxu1 %vm189_vm1, %v8219_v14  ;;  %5002 = vmatmul.msk.bf16.vlgmr.msra.gmra.mxu2 %vm189_vm1, %v8219_v14  ;;  %v213_v34 = vsel %vm193_vm0, %v4995_v27, 0  ;;  %v5235_v35 = vor.u32 %v7380_v33, %v5234_v32  ;;  %v5490_v36 = vld [vmem:[#allocation8 + $0x3c0] sm:$0xf] }
  0x29   :  { %v7444_v37 = vld [vmem:[#allocation8 + $0x3dc] sm:$0xf0]  ;;  %5003 = vmatmul.msk.bf16.vlgmr.msra.gmra.mxu3 %vm189_vm1, %v8219_v14  ;;  %277 = vmatpush.bf16.msrb.mxu0 %v207_v26  ;;  %v216_v38 = vsel %vm193_vm0, %v4999_v31, 0 }
  0x2a   :  { %v5491_v39 = vor.u32 %v7444_v37, %v5490_v36  ;;  %v5202_v40 = vld [vmem:[#allocation8 + $0x180] sm:$0xf]  ;;  %290 = vmatpush.bf16.msrb.mxu1 %v210_v30  ;;  %303 = vmatpush.bf16.msrb.mxu2 %v213_v34 }
  0x2b   :  { %v7372_v41 = vld [vmem:[#allocation8 + $0x19c] sm:$0xf0]  ;;  %316 = vmatpush.bf16.msrb.mxu3 %v216_v38 }
  0x2c   :  { %v5458_v42 = vld [vmem:[#allocation8 + $0x380] sm:$0xf]  ;;  %v5203_v45 = vor.u32 %v7372_v41, %v5202_v40 }
  0x2d   :  { %v7436_v43 = vld [vmem:[#allocation8 + $0x39c] sm:$0xf0]  ;;  %3452 = vmatpush.bf16.msra.mxu0 %v5235_v35 }
  0x2e   :  { %v5746_v44 = vld [vmem:[#allocation8 + $0x5c0] sm:$0xf]  ;;  %3465 = vmatpush.bf16.msra.mxu1 %v5491_v39  ;;  %v5459_v49 = vor.u32 %v7436_v43, %v5458_v42 }
  0x2f   :  { %v7508_v46 = vld [vmem:[#allocation8 + $0x5dc] sm:$0xf0] }
  0x30   :  { %v6002_v47 = vld [vmem:[#allocation8 + $0x7c0] sm:$0xf]  ;;  %v5747_v50 = vor.u32 %v7508_v46, %v5746_v44 }
  0x31   :  { %v7572_v48 = vld [vmem:[#allocation8 + $0x7dc] sm:$0xf0]  ;;  %3453 = vmatpush.bf16.msra.mxu0 %v5203_v45 }
  0x32   :  { %v6003_v51 = vor.u32 %v7572_v48, %v6002_v47  ;;  %v5170_v52 = vld [vmem:[#allocation8 + $0x140] sm:$0xf]  ;;  %3478 = vmatpush.bf16.msra.mxu2 %v5747_v50  ;;  %3466 = vmatpush.bf16.msra.mxu1 %v5459_v49 }
  0x33   :  { %v7364_v53 = vld [vmem:[#allocation8 + $0x15c] sm:$0xf0] }
  0x34   :  { %v5426_v54 = vld [vmem:[#allocation8 + $0x340] sm:$0xf]  ;;  %3491 = vmatpush.bf16.msra.mxu3 %v6003_v51  ;;  %v5171_v61 = vor.u32 %v7364_v53, %v5170_v52 }
  0x35   :  { %v7428_v55 = vld [vmem:[#allocation8 + $0x35c] sm:$0xf0] }
  0x36   :  { %v5714_v56 = vld [vmem:[#allocation8 + $0x580] sm:$0xf]  ;;  %v5427_v63 = vor.u32 %v7428_v55, %v5426_v54  ;;  %3454 = vmatpush.bf16.msra.mxu0 %v5171_v61 }
  0x37   :  { %v7500_v57 = vld [vmem:[#allocation8 + $0x59c] sm:$0xf0]  ;;  %5004 = vmatmul.msk.bf16.vlgmr.msrb.gmra.mxu0 %vm189_vm1, %v8219_v14 }
  0x38   :  { %v5715_v58 = vor.u32 %v7500_v57, %v5714_v56  ;;  %v5970_v59 = vld [vmem:[#allocation8 + $0x780] sm:$0xf]  ;;  %3467 = vmatpush.bf16.msra.mxu1 %v5427_v63  ;;  %5006 = vmatmul.msk.bf16.vlgmr.msrb.gmra.mxu2 %vm189_vm1, %v8219_v14 }
  0x39   :  { %v7564_v60 = vld [vmem:[#allocation8 + $0x79c] sm:$0xf0]  ;;  %5005 = vmatmul.msk.bf16.vlgmr.msrb.gmra.mxu1 %vm189_vm1, %v8219_v14  ;;  %5007 = vmatmul.msk.bf16.vlgmr.msrb.gmra.mxu3 %vm189_vm1, %v8219_v14 }
  0x3a   :  { %v5971_v62 = vor.u32 %v7564_v60, %v5970_v59  ;;  %v5682_v0 = vld [vmem:[#allocation8 + $0x540] sm:$0xf]  ;;  %3479 = vmatpush.bf16.msra.mxu2 %v5715_v58 }
  0x3b   :  { %v7492_v1 = vld [vmem:[#allocation8 + $0x55c] sm:$0xf0] }
  0x3c   :  { %v5938_v2 = vld [vmem:[#allocation8 + $0x740] sm:$0xf]  ;;  %3492 = vmatpush.bf16.msra.mxu3 %v5971_v62  ;;  %v5683_v7 = vor.u32 %v7492_v1, %v5682_v0 }
  0x3d   :  { %v7556_v3 = vld [vmem:[#allocation8 + $0x75c] sm:$0xf0] }
  0x3e   :  { %v5138_v4 = vld [vmem:[#allocation8 + $0x100] sm:$0xf]  ;;  %v5939_v8 = vor.u32 %v7556_v3, %v5938_v2  ;;  %3480 = vmatpush.bf16.msra.mxu2 %v5683_v7 }
  0x3f   :  { %v7356_v5 = vld [vmem:[#allocation8 + $0x11c] sm:$0xf0] }
  0x40   :  { %v5394_v6 = vld [vmem:[#allocation8 + $0x300] sm:$0xf]  ;;  %v5139_v15 = vor.u32 %v7356_v5, %v5138_v4  ;;  %3493 = vmatpush.bf16.msra.mxu3 %v5939_v8 }
  0x41   :  { %v7420_v9 = vld [vmem:[#allocation8 + $0x31c] sm:$0xf0] }
  0x42   :  { %v5650_v10 = vld [vmem:[#allocation8 + $0x500] sm:$0xf]  ;;  %v5395_v16 = vor.u32 %v7420_v9, %v5394_v6  ;;  %3455 = vmatpush.bf16.msra.mxu0 %v5139_v15 }
  0x43   :  { %v7484_v11 = vld [vmem:[#allocation8 + $0x51c] sm:$0xf0] }
  0x44   :  { %v5906_v12 = vld [vmem:[#allocation8 + $0x700] sm:$0xf]  ;;  %v5651_v20 = vor.u32 %v7484_v11, %v5650_v10  ;;  %3468 = vmatpush.bf16.msra.mxu1 %v5395_v16 }
  0x45   :  { %v7548_v13 = vld [vmem:[#allocation8 + $0x71c] sm:$0xf0] }
  0x46   :  { %v5106_v17 = vld [vmem:[#allocation8 + $0xc0] sm:$0xf]  ;;  %v5907_v22 = vor.u32 %v7548_v13, %v5906_v12  ;;  %3481 = vmatpush.bf16.msra.mxu2 %v5651_v20 }
  0x47   :  { %v7348_v18 = vld [vmem:[#allocation8 + $0xdc] sm:$0xf0] }
  0x48   :  { %v5362_v19 = vld [vmem:[#allocation8 + $0x2c0] sm:$0xf]  ;;  %v5107_v27 = vor.u32 %v7348_v18, %v5106_v17  ;;  %3494 = vmatpush.bf16.msra.mxu3 %v5907_v22 }
  0x49   :  { %v7412_v21 = vld [vmem:[#allocation8 + $0x2dc] sm:$0xf0] }
  0x4a   :  { %v5618_v23 = vld [vmem:[#allocation8 + $0x4c0] sm:$0xf]  ;;  %v5363_v28 = vor.u32 %v7412_v21, %v5362_v19  ;;  %3456 = vmatpush.bf16.msra.mxu0 %v5107_v27 }
  0x4b   :  { %v7476_v24 = vld [vmem:[#allocation8 + $0x4dc] sm:$0xf0] }
  0x4c   :  { %v5874_v25 = vld [vmem:[#allocation8 + $0x6c0] sm:$0xf]  ;;  %v5619_v32 = vor.u32 %v7476_v24, %v5618_v23  ;;  %3469 = vmatpush.bf16.msra.mxu1 %v5363_v28 }
  0x4d   :  { %v7540_v26 = vld [vmem:[#allocation8 + $0x6dc] sm:$0xf0] }
  0x4e   :  { %v5074_v29 = vld [vmem:[#allocation8 + $0x80] sm:$0xf]  ;;  %v5875_v34 = vor.u32 %v7540_v26, %v5874_v25  ;;  %3482 = vmatpush.bf16.msra.mxu2 %v5619_v32 }
  0x4f   :  { %v7340_v30 = vld [vmem:[#allocation8 + $0x9c] sm:$0xf0] }
  0x50   :  { %v5330_v31 = vld [vmem:[#allocation8 + $0x280] sm:$0xf]  ;;  %v5075_v39 = vor.u32 %v7340_v30, %v5074_v29  ;;  %3495 = vmatpush.bf16.msra.mxu3 %v5875_v34 }
  0x51   :  { %v7404_v33 = vld [vmem:[#allocation8 + $0x29c] sm:$0xf0] }
  0x52   :  { %v5586_v35 = vld [vmem:[#allocation8 + $0x480] sm:$0xf]  ;;  %v5331_v14 = vor.u32 %v7404_v33, %v5330_v31  ;;  %3457 = vmatpush.bf16.msra.mxu0 %v5075_v39 }
  0x53   :  { %v7468_v36 = vld [vmem:[#allocation8 + $0x49c] sm:$0xf0] }
  0x54   :  { %v5842_v37 = vld [vmem:[#allocation8 + $0x680] sm:$0xf]  ;;  %v5587_v43 = vor.u32 %v7468_v36, %v5586_v35  ;;  %3470 = vmatpush.bf16.msra.mxu1 %v5331_v14 }
  0x55   :  { %v7532_v38 = vld [vmem:[#allocation8 + $0x69c] sm:$0xf0] }
  0x56   :  { %v5042_v40 = vld [vmem:[#allocation8 + $0x40] sm:$0xf]  ;;  %v5843_v45 = vor.u32 %v7532_v38, %v5842_v37  ;;  %3483 = vmatpush.bf16.msra.mxu2 %v5587_v43 }
  0x57   :  { %v7332_v41 = vld [vmem:[#allocation8 + $0x5c] sm:$0xf0] }
  0x58   :  { %v5298_v42 = vld [vmem:[#allocation8 + $0x240] sm:$0xf]  ;;  %v5043_v50 = vor.u32 %v7332_v41, %v5042_v40  ;;  %3496 = vmatpush.bf16.msra.mxu3 %v5843_v45 }
  0x59   :  { %v7396_v44 = vld [vmem:[#allocation8 + $0x25c] sm:$0xf0] }
  0x5a   :  { %v5554_v46 = vld [vmem:[#allocation8 + $0x440] sm:$0xf]  ;;  %v5299_v54 = vor.u32 %v7396_v44, %v5298_v42  ;;  %3458 = vmatpush.bf16.msra.mxu0 %v5043_v50 }
  0x5b   :  { %v7460_v47 = vld [vmem:[#allocation8 + $0x45c] sm:$0xf0] }
  0x5c   :  { %v5810_v48 = vld [vmem:[#allocation8 + $0x640] sm:$0xf]  ;;  %v5555_v58 = vor.u32 %v7460_v47, %v5554_v46  ;;  %3471 = vmatpush.bf16.msra.mxu1 %v5299_v54 }
  0x5d   :  { %v7524_v49 = vld [vmem:[#allocation8 + $0x65c] sm:$0xf0] }
  0x5e   :  { %v5010_v51 = vld [vmem:[#allocation8] sm:$0xf]  ;;  %v5811_v61 = vor.u32 %v7524_v49, %v5810_v48  ;;  %3484 = vmatpush.bf16.msra.mxu2 %v5555_v58 }
  0x5f   :  { %v7324_v52 = vld [vmem:[#allocation8 + $0x1c] sm:$0xf0] }
  0x60   :  { %v5266_v53 = vld [vmem:[#allocation8 + $0x200] sm:$0xf]  ;;  %v5011_v1 = vor.u32 %v7324_v52, %v5010_v51  ;;  %3497 = vmatpush.bf16.msra.mxu3 %v5811_v61 }
  0x61   :  { %v7388_v55 = vld [vmem:[#allocation8 + $0x21c] sm:$0xf0] }
  0x62   :  { %v6258_v56 = vld [vmem:[#allocation8 + $0x9c0] sm:$0xf]  ;;  %v5267_v5 = vor.u32 %v7388_v55, %v5266_v53  ;;  %3459 = vmatpush.bf16.msra.mxu0 %v5011_v1 }
  0x63   :  { %v7636_v57 = vld [vmem:[#allocation8 + $0x9dc] sm:$0xf0] }
  0x64   :  { %v6514_v59 = vld [vmem:[#allocation8 + $0xbc0] sm:$0xf]  ;;  %v6259_v6 = vor.u32 %v7636_v57, %v6258_v56  ;;  %3472 = vmatpush.bf16.msra.mxu1 %v5267_v5 }
  0x65   :  { %v7700_v60 = vld [vmem:[#allocation8 + $0xbdc] sm:$0xf0] }
  0x66   :  { %v5522_v62 = vld [vmem:[#allocation8 + $0x400] sm:$0xf]  ;;  %v6515_v9 = vor.u32 %v7700_v60, %v6514_v59  ;;  %3504 = vmatpush.bf16.msrb.mxu0 %v6259_v6 }
  0x67   :  { %v7452_v63 = vld [vmem:[#allocation8 + $0x41c] sm:$0xf0] }
  0x68   :  { %v5778_v0 = vld [vmem:[#allocation8 + $0x600] sm:$0xf]  ;;  %v5523_v12 = vor.u32 %v7452_v63, %v5522_v62  ;;  %3517 = vmatpush.bf16.msrb.mxu1 %v6515_v9 }
  0x69   :  { %v7516_v2 = vld [vmem:[#allocation8 + $0x61c] sm:$0xf0] }
  0x6a   :  { %v6770_v3 = vld [vmem:[#allocation8 + $0xdc0] sm:$0xf]  ;;  %v5779_v16 = vor.u32 %v7516_v2, %v5778_v0  ;;  %3485 = vmatpush.bf16.msra.mxu2 %v5523_v12 }
  0x6b   :  { %v7764_v4 = vld [vmem:[#allocation8 + $0xddc] sm:$0xf0] }
  0x6c   :  { %v7026_v7 = vld [vmem:[#allocation8 + $0xfc0] sm:$0xf]  ;;  %v6771_v17 = vor.u32 %v7764_v4, %v6770_v3  ;;  %3498 = vmatpush.bf16.msra.mxu3 %v5779_v16 }
  0x6d   :  { %v7828_v8 = vld [vmem:[#allocation8 + $0xfdc] sm:$0xf0] }
  0x6e   :  { %v6226_v10 = vld [vmem:[#allocation8 + $0x980] sm:$0xf]  ;;  %v7027_v18 = vor.u32 %v7828_v8, %v7026_v7  ;;  %3530 = vmatpush.bf16.msrb.mxu2 %v6771_v17 }
  0x6f   :  { %v7628_v11 = vld [vmem:[#allocation8 + $0x99c] sm:$0xf0] }
  0x70   :  { %v6482_v13 = vld [vmem:[#allocation8 + $0xb80] sm:$0xf]  ;;  %v6227_v21 = vor.u32 %v7628_v11, %v6226_v10  ;;  %3543 = vmatpush.bf16.msrb.mxu3 %v7027_v18 }
  0x71   :  { %v7692_v15 = vld [vmem:[#allocation8 + $0xb9c] sm:$0xf0] }
  0x72   :  { %v6738_v19 = vld [vmem:[#allocation8 + $0xd80] sm:$0xf]  ;;  %v6483_v24 = vor.u32 %v7692_v15, %v6482_v13  ;;  %3505 = vmatpush.bf16.msrb.mxu0 %v6227_v21 }
  0x73   :  { %v7756_v20 = vld [vmem:[#allocation8 + $0xd9c] sm:$0xf0] }
  0x74   :  { %v6994_v22 = vld [vmem:[#allocation8 + $0xf80] sm:$0xf]  ;;  %v6739_v29 = vor.u32 %v7756_v20, %v6738_v19  ;;  %3518 = vmatpush.bf16.msrb.mxu1 %v6483_v24 }
  0x75   :  { %v7820_v23 = vld [vmem:[#allocation8 + $0xf9c] sm:$0xf0] }
  0x76   :  { %v6194_v25 = vld [vmem:[#allocation8 + $0x940] sm:$0xf]  ;;  %v6995_v30 = vor.u32 %v7820_v23, %v6994_v22  ;;  %3531 = vmatpush.bf16.msrb.mxu2 %v6739_v29 }
  0x77   :  { %v7620_v26 = vld [vmem:[#allocation8 + $0x95c] sm:$0xf0] }
  0x78   :  { %v6450_v27 = vld [vmem:[#allocation8 + $0xb40] sm:$0xf]  ;;  %v6195_v31 = vor.u32 %v7620_v26, %v6194_v25  ;;  %3544 = vmatpush.bf16.msrb.mxu3 %v6995_v30 }
  0x79   :  { %v7684_v28 = vld [vmem:[#allocation8 + $0xb5c] sm:$0xf0] }
  0x7a   :  { %v6451_v32 = vor.u32 %v7684_v28, %v6450_v27  ;;  %3506 = vmatpush.bf16.msrb.mxu0 %v6195_v31  ;;  %v6162_v33 = vld [vmem:[#allocation8 + $0x900] sm:$0xf] }
  0x7b   :  { %v7612_v34 = vld [vmem:[#allocation8 + $0x91c] sm:$0xf0] }
  0x7c   :  { %3519 = vmatpush.bf16.msrb.mxu1 %v6451_v32  ;;  %v6418_v35 = vld [vmem:[#allocation8 + $0xb00] sm:$0xf]  ;;  %v6163_v36 = vor.u32 %v7612_v34, %v6162_v33 }
  0x7d   :  { %v7676_v37 = vld [vmem:[#allocation8 + $0xb1c] sm:$0xf0] }
  0x7e   :  { %v6419_v38 = vor.u32 %v7676_v37, %v6418_v35  ;;  %v6706_v39 = vld [vmem:[#allocation8 + $0xd40] sm:$0xf]  ;;  %3507 = vmatpush.bf16.msrb.mxu0 %v6163_v36  ;;  %v8244_v35 = vld [vmem:[#allocation7] sm:$0xff] }
  0x7f   :  { %v7748_v14 = vld [vmem:[#allocation8 + $0xd5c] sm:$0xf0]  ;;  %v141_v36 = vperm.slane %v8244_v35, 0  ;;  %v142_v37 = vperm.slane %v8244_v35, 1 }
  0x80   :  { %v6962_v40 = vld [vmem:[#allocation8 + $0xf40] sm:$0xf]  ;;  %v6707_v41 = vor.u32 %v7748_v14, %v6706_v39  ;;  %3520 = vmatpush.bf16.msrb.mxu1 %v6419_v38 }
  0x81   :  { %v7812_v42 = vld [vmem:[#allocation8 + $0xf5c] sm:$0xf0] }
  0x82   :  { %v6963_v43 = vor.u32 %v7812_v42, %v6962_v40  ;;  %v6130_v44 = vld [vmem:[#allocation8 + $0x8c0] sm:$0xf]  ;;  %3532 = vmatpush.bf16.msrb.mxu2 %v6707_v41 }
  0x83   :  { %v7604_v45 = vld [vmem:[#allocation8 + $0x8dc] sm:$0xf0] }
  0x84   :  { %v6386_v46 = vld [vmem:[#allocation8 + $0xac0] sm:$0xf]  ;;  %v6131_v47 = vor.u32 %v7604_v45, %v6130_v44  ;;  %3545 = vmatpush.bf16.msrb.mxu3 %v6963_v43  ;;  %v143_v43 = vperm.slane %v8244_v35, 2  ;;  %v144_v44 = vperm.slane %v8244_v35, 3 }
  0x85   :  { %v7668_v48 = vld [vmem:[#allocation8 + $0xadc] sm:$0xf0] }
  0x86   :  { %v6387_v49 = vor.u32 %v7668_v48, %v6386_v46  ;;  %v6674_v50 = vld [vmem:[#allocation8 + $0xd00] sm:$0xf]  ;;  %3508 = vmatpush.bf16.msrb.mxu0 %v6131_v47 }
  0x87   :  { %v7740_v51 = vld [vmem:[#allocation8 + $0xd1c] sm:$0xf0] }
  0x88   :  { %v6930_v52 = vld [vmem:[#allocation8 + $0xf00] sm:$0xf]  ;;  %v6675_v53 = vor.u32 %v7740_v51, %v6674_v50  ;;  %3521 = vmatpush.bf16.msrb.mxu1 %v6387_v49 }
  0x89   :  { %v7804_v54 = vld [vmem:[#allocation8 + $0xf1c] sm:$0xf0] }
  0x8a   :  { %v6931_v55 = vor.u32 %v7804_v54, %v6930_v52  ;;  %v6098_v56 = vld [vmem:[#allocation8 + $0x880] sm:$0xf]  ;;  %3533 = vmatpush.bf16.msrb.mxu2 %v6675_v53 }
  0x8b   :  { %v7596_v57 = vld [vmem:[#allocation8 + $0x89c] sm:$0xf0] }
  0x8c   :  { %v6354_v58 = vld [vmem:[#allocation8 + $0xa80] sm:$0xf]  ;;  %v6099_v59 = vor.u32 %v7596_v57, %v6098_v56  ;;  %3546 = vmatpush.bf16.msrb.mxu3 %v6931_v55  ;;  %v7376_v56 = vld [vmem:[#allocation8 + $0x1c4] sm:$0xf] }
  0x8d   :  { %v7660_v60 = vld [vmem:[#allocation8 + $0xa9c] sm:$0xf0]  ;;  %v5236_v57 = vld [vmem:[#allocation8 + $0x1e0] sm:$0xf0] }
  0x8e   :  { %v6355_v61 = vor.u32 %v7660_v60, %v6354_v58  ;;  %v6642_v62 = vld [vmem:[#allocation8 + $0xcc0] sm:$0xf]  ;;  %3509 = vmatpush.bf16.msrb.mxu0 %v6099_v59  ;;  %v145_v59 = vperm.slane %v8244_v35, 4  ;;  %v7440_v60 = vld [vmem:[#allocation8 + $0x3c4] sm:$0xf] }
  0x8f   :  { %v7732_v63 = vld [vmem:[#allocation8 + $0xcdc] sm:$0xf0] }
  0x90   :  { %v6898_v0 = vld [vmem:[#allocation8 + $0xec0] sm:$0xf]  ;;  %v6643_v1 = vor.u32 %v7732_v63, %v6642_v62  ;;  %3522 = vmatpush.bf16.msrb.mxu1 %v6355_v61  ;;  %v5492_v61 = vld [vmem:[#allocation8 + $0x3e0] sm:$0xf0]  ;;  %v146_v63 = vperm.slane %v8244_v35, 5 }
  0x91   :  { %v7796_v2 = vld [vmem:[#allocation8 + $0xedc] sm:$0xf0] }
  0x92   :  { %v6899_v3 = vor.u32 %v7796_v2, %v6898_v0  ;;  %v6066_v4 = vld [vmem:[#allocation8 + $0x840] sm:$0xf]  ;;  %3534 = vmatpush.bf16.msrb.mxu2 %v6643_v1  ;;  %v5239_v2 = vor.u32 %v7376_v56, %v5236_v57  ;;  %v7488_v57 = vld [vmem:[#allocation8 + $0x544] sm:$0xf] }
  0x93   :  { %v7588_v5 = vld [vmem:[#allocation8 + $0x85c] sm:$0xf0] }
  0x94   :  { %v6322_v6 = vld [vmem:[#allocation8 + $0xa40] sm:$0xf]  ;;  %v6067_v7 = vor.u32 %v7588_v5, %v6066_v4  ;;  %3547 = vmatpush.bf16.msrb.mxu3 %v6899_v3 }
  0x95   :  { %v7652_v8 = vld [vmem:[#allocation8 + $0xa5c] sm:$0xf0] }
  0x96   :  { %v6323_v9 = vor.u32 %v7652_v8, %v6322_v6  ;;  %v6610_v10 = vld [vmem:[#allocation8 + $0xc80] sm:$0xf]  ;;  %3510 = vmatpush.bf16.msrb.mxu0 %v6067_v7  ;;  %v5495_v6 = vor.u32 %v7440_v60, %v5492_v61  ;;  %v7368_v7 = vld [vmem:[#allocation8 + $0x184] sm:$0xf] }
  0x97   :  { %v7724_v11 = vld [vmem:[#allocation8 + $0xc9c] sm:$0xf0]  ;;  %v5204_v8 = vld [vmem:[#allocation8 + $0x1a0] sm:$0xf0] }
  0x98   :  { %v6866_v12 = vld [vmem:[#allocation8 + $0xe80] sm:$0xf]  ;;  %v6611_v13 = vor.u32 %v7724_v11, %v6610_v10  ;;  %3523 = vmatpush.bf16.msrb.mxu1 %v6323_v9 }
  0x99   :  { %v7788_v15 = vld [vmem:[#allocation8 + $0xe9c] sm:$0xf0] }
  0x9a   :  { %v6867_v16 = vor.u32 %v7788_v15, %v6866_v12  ;;  %v6034_v17 = vld [vmem:[#allocation8 + $0x800] sm:$0xf]  ;;  %3535 = vmatpush.bf16.msrb.mxu2 %v6611_v13  ;;  %v7432_v12 = vld [vmem:[#allocation8 + $0x384] sm:$0xf] }
  0x9b   :  { %v7580_v18 = vld [vmem:[#allocation8 + $0x81c] sm:$0xf0]  ;;  %v5460_v13 = vld [vmem:[#allocation8 + $0x3a0] sm:$0xf0] }
  0x9c   :  { %v6290_v19 = vld [vmem:[#allocation8 + $0xa00] sm:$0xf]  ;;  %v6035_v20 = vor.u32 %v7580_v18, %v6034_v17  ;;  %3548 = vmatpush.bf16.msrb.mxu3 %v6867_v16  ;;  %v147_v17 = vperm.slane %v8244_v35, 6  ;;  %v7504_v18 = vld [vmem:[#allocation8 + $0x5c4] sm:$0xf] }
  0x9d   :  { %v7644_v21 = vld [vmem:[#allocation8 + $0xa1c] sm:$0xf0] }
  0x9e   :  { %v6291_v22 = vor.u32 %v7644_v21, %v6290_v19  ;;  %3511 = vmatpush.bf16.msrb.mxu0 %v6035_v20  ;;  %v6578_v23 = vld [vmem:[#allocation8 + $0xc40] sm:$0xf]  ;;  %v5748_v19 = vld [vmem:[#allocation8 + $0x5e0] sm:$0xf0] }
  0x9f   :  { %v7716_v24 = vld [vmem:[#allocation8 + $0xc5c] sm:$0xf0] }
  0xa0   :  { %v6834_v25 = vld [vmem:[#allocation8 + $0xe40] sm:$0xf]  ;;  %3524 = vmatpush.bf16.msrb.mxu1 %v6291_v22  ;;  %v6579_v26 = vor.u32 %v7716_v24, %v6578_v23  ;;  %v5207_v23 = vor.u32 %v7368_v7, %v5204_v8  ;;  %v7568_v24 = vld [vmem:[#allocation8 + $0x7c4] sm:$0xf] }
  0xa1   :  { %v7780_v27 = vld [vmem:[#allocation8 + $0xe5c] sm:$0xf0]  ;;  %v7408_v8 = vld [vmem:[#allocation8 + $0x2c4] sm:$0xf] }
  0xa2   :  { %v6835_v28 = vor.u32 %v7780_v27, %v6834_v25  ;;  %3536 = vmatpush.bf16.msrb.mxu2 %v6579_v26  ;;  %v6546_v29 = vld [vmem:[#allocation8 + $0xc00] sm:$0xf]  ;;  %v6004_v25 = vld [vmem:[#allocation8 + $0x7e0] sm:$0xf0] }
  0xa3   :  { %v7708_v30 = vld [vmem:[#allocation8 + $0xc1c] sm:$0xf0] }
  0xa4   :  { %3549 = vmatpush.bf16.msrb.mxu3 %v6835_v28  ;;  %v6547_v31 = vor.u32 %v7708_v30, %v6546_v29  ;;  %v6802_v32 = vld [vmem:[#allocation8 + $0xe00] sm:$0xf]  ;;  %v227_v38 = vpop.f32.mrf.mxu0  ;;  %v5463_v28 = vor.u32 %v7432_v12, %v5460_v13  ;;  %v7360_v29 = vld [vmem:[#allocation8 + $0x144] sm:$0xf] }
  0xa5   :  { %v7772_v33 = vld [vmem:[#allocation8 + $0xe1c] sm:$0xf0]  ;;  %v228_v39 = vadd.f32 %v227_v38, %v141_v36  ;;  %v240_v14 = vpop.f32.mrf.mxu1  ;;  %v5172_v30 = vld [vmem:[#allocation8 + $0x160] sm:$0xf0] }
  0xa6   :  { %v6803_v34 = vor.u32 %v7772_v33, %v6802_v32  ;;  %3537 = vmatpush.bf16.msrb.mxu2 %v6547_v31  ;;  %v241_v40 = vadd.f32 %v240_v14, %v142_v37  ;;  %v148_v32 = vperm.slane %v8244_v35, 7  ;;  %v7424_v33 = vld [vmem:[#allocation8 + $0x344] sm:$0xf]  ;;  %v5751_v37 = vor.u32 %v7504_v18, %v5748_v19 }
  0xa7   :  { %v322_v41 = vmul.f32 0.5, %v228_v39  ;;  %v6007_v14 = vor.u32 %v7568_v24, %v6004_v25  ;;  %v5652_v18 = vld [vmem:[#allocation8 + $0x520] sm:$0xf0] }
  0xa8   :  { %3550 = vmatpush.bf16.msrb.mxu3 %v6803_v34  ;;  %v323_v42 = vmul.f32 0.5, %v241_v40  ;;  %v5428_v34 = vld [vmem:[#allocation8 + $0x360] sm:$0xf0]  ;;  %v5175_v40 = vor.u32 %v7360_v29, %v5172_v30 }
  0xa9   :  { %7909 = vtanh.f32 %v322_v41  ;;  %v7496_v41 = vld [vmem:[#allocation8 + $0x584] sm:$0xf]  ;;  %v5431_v35 = vor.u32 %v7424_v33, %v5428_v34 }
  0xaa   :  { %7911 = vtanh.f32 %v323_v42  ;;  %v5716_v42 = vld [vmem:[#allocation8 + $0x5a0] sm:$0xf0] }
  0xab   :  { %v253_v45 = vpop.f32.mrf.mxu2  ;;  %v5719_v56 = vor.u32 %v7496_v41, %v5716_v42  ;;  %v7336_v25 = vld [vmem:[#allocation8 + $0x84] sm:$0xf] }
  0xac   :  { %v254_v46 = vadd.f32 %v253_v45, %v143_v43  ;;  %v266_v47 = vpop.f32.mrf.mxu3  ;;  %v229_v48 = vpop.f32.mrf.mxu0  ;;  %v7560_v43 = vld [vmem:[#allocation8 + $0x784] sm:$0xf] }
  0xad   :  { %v267_v49 = vadd.f32 %v266_v47, %v144_v44  ;;  %v242_v50 = vpop.f32.mrf.mxu1  ;;  %v5972_v47 = vld [vmem:[#allocation8 + $0x7a0] sm:$0xf0] }
  0xae   :  { %v324_v51 = vmul.f32 0.5, %v254_v46  ;;  %v7352_v48 = vld [vmem:[#allocation8 + $0x104] sm:$0xf]  ;;  %v5975_v61 = vor.u32 %v7560_v43, %v5972_v47 }
  0xaf   :  { %v7910_v52 = vpop.eup %7909  ;;  %v325_v53 = vmul.f32 0.5, %v267_v49  ;;  %v5140_v49 = vld [vmem:[#allocation8 + $0x120] sm:$0xf0] }
  0xb0   :  { %v7912_v54 = vpop.eup %7911  ;;  %v338_v55 = vmul.f32 0.5, %v7910_v52  ;;  %7913 = vtanh.f32 %v324_v51  ;;  %v7416_v52 = vld [vmem:[#allocation8 + $0x304] sm:$0xf] }
  0xb1   :  { %v339_v58 = vmul.f32 0.5, %v7912_v54  ;;  %7915 = vtanh.f32 %v325_v53  ;;  %v5396_v53 = vld [vmem:[#allocation8 + $0x320] sm:$0xf0] }
  0xb2   :  { %v346_v62 = vadd.f32 0.5, %v338_v55  ;;  %v5332_v29 = vld [vmem:[#allocation8 + $0x2a0] sm:$0xf0] }
  0xb3   :  { %v347_v0 = vadd.f32 0.5, %v339_v58  ;;  %v255_v1 = vpop.f32.mrf.mxu2  ;;  %v5684_v58 = vld [vmem:[#allocation8 + $0x560] sm:$0xf0] }
  0xb4   :  { %v8252_v3 = vpack.c.bf16 %v346_v62, %v346_v62  ;;  %v268_v4 = vpop.f32.mrf.mxu3  ;;  %v279_v5 = vpop.f32.mrf.mxu0  ;;  %v5143_v62 = vor.u32 %v7352_v48, %v5140_v49  ;;  %v5687_v12 = vor.u32 %v7488_v57, %v5684_v58  ;;  %v5620_v33 = vld [vmem:[#allocation8 + $0x4e0] sm:$0xf0] }
  0xb5   :  { %v8254_v9 = vpack.c.bf16 %v347_v0, %v347_v0  ;;  %v280_v10 = vadd.f32 %v279_v5, %v145_v59  ;;  %v5940_v0 = vld [vmem:[#allocation8 + $0x760] sm:$0xf0]  ;;  %v5399_v4 = vor.u32 %v7416_v52, %v5396_v53 }
  0xb6   :  { %v292_v11 = vpop.f32.mrf.mxu1  ;;  %v7914_v15 = vpop.eup %7913  ;;  %3460 = vmatmul.bf16.vlgmr.msra.gmra.mxu0 %v8252_v3  ;;  %v7344_v5 = vld [vmem:[#allocation8 + $0xc4] sm:$0xf] }
  0xb7   :  { %v293_v16 = vadd.f32 %v292_v11, %v146_v63  ;;  %v7916_v20 = vpop.eup %7915  ;;  %v340_v21 = vmul.f32 0.5, %v7914_v15  ;;  %v326_v22 = vmul.f32 0.5, %v280_v10  ;;  %3473 = vmatmul.bf16.vlgmr.msra.gmra.mxu1 %v8254_v9  ;;  %3556 = vmatpush.bf16.msra.mxu0 %v5239_v2  ;;  %v7552_v63 = vld [vmem:[#allocation8 + $0x744] sm:$0xf] }
  0xb8   :  { %v341_v26 = vmul.f32 0.5, %v7916_v20  ;;  %3569 = vmatpush.bf16.msra.mxu1 %v5495_v6  ;;  %v5108_v6 = vld [vmem:[#allocation8 + $0xe0] sm:$0xf0]  ;;  %v5943_v15 = vor.u32 %v7552_v63, %v5940_v0 }
  0xb9   :  { %v327_v27 = vmul.f32 0.5, %v293_v16  ;;  %v348_v31 = vadd.f32 0.5, %v340_v21  ;;  %7917 = vtanh.f32 %v326_v22  ;;  %v5364_v10 = vld [vmem:[#allocation8 + $0x2e0] sm:$0xf0]  ;;  %v5111_v20 = vor.u32 %v7344_v5, %v5108_v6 }
  0xba   :  { %v349_v36 = vadd.f32 0.5, %v341_v26  ;;  %v5367_v21 = vor.u32 %v7408_v8, %v5364_v10  ;;  %v7544_v22 = vld [vmem:[#allocation8 + $0x704] sm:$0xf] }
  0xbb   :  { %7919 = vtanh.f32 %v327_v27  ;;  %v8260_v38 = vpack.c.bf16 %v348_v31, %v348_v31  ;;  %v305_v39 = vpop.f32.mrf.mxu2  ;;  %3557 = vmatpush.bf16.msra.mxu0 %v5207_v23  ;;  %v5908_v23 = vld [vmem:[#allocation8 + $0x720] sm:$0xf0] }
  0xbc   :  { %v8262_v44 = vpack.c.bf16 %v349_v36, %v349_v36  ;;  %v306_v45 = vadd.f32 %v305_v39, %v147_v17  ;;  %v318_v46 = vpop.f32.mrf.mxu3  ;;  %3570 = vmatpush.bf16.msra.mxu1 %v5463_v28  ;;  %v281_v50 = vpop.f32.mrf.mxu0  ;;  %v7480_v17 = vld [vmem:[#allocation8 + $0x504] sm:$0xf] }
  0xbd   :  { %v319_v51 = vadd.f32 %v318_v46, %v148_v32  ;;  %3486 = vmatmul.bf16.vlgmr.msra.gmra.mxu2 %v8260_v38  ;;  %v5076_v27 = vld [vmem:[#allocation8 + $0xa0] sm:$0xf0]  ;;  %v5655_v31 = vor.u32 %v7480_v17, %v5652_v18 }
  0xbe   :  { %v294_v54 = vpop.f32.mrf.mxu1  ;;  %v328_v55 = vmul.f32 0.5, %v306_v45  ;;  %3499 = vmatmul.bf16.vlgmr.msra.gmra.mxu3 %v8262_v44  ;;  %3582 = vmatpush.bf16.msra.mxu2 %v5751_v37  ;;  %v7400_v28 = vld [vmem:[#allocation8 + $0x284] sm:$0xf]  ;;  %v5911_v37 = vor.u32 %v7544_v22, %v5908_v23  ;;  %v5079_v41 = vor.u32 %v7336_v25, %v5076_v27 }
  0xbf   :  { %v7918_v59 = vpop.eup %7917  ;;  %v329_v60 = vmul.f32 0.5, %v319_v51  ;;  %3595 = vmatpush.bf16.msra.mxu3 %v6007_v14  ;;  %3558 = vmatpush.bf16.msra.mxu0 %v5175_v40  ;;  %v7472_v32 = vld [vmem:[#allocation8 + $0x4c4] sm:$0xf]  ;;  %v5335_v42 = vor.u32 %v7400_v28, %v5332_v29 }
  0xc0   :  { %v342_v2 = vmul.f32 0.5, %v7918_v59  ;;  %7921 = vtanh.f32 %v328_v55  ;;  %3571 = vmatpush.bf16.msra.mxu1 %v5431_v35  ;;  %v7536_v39 = vld [vmem:[#allocation8 + $0x6c4] sm:$0xf]  ;;  %v5623_v49 = vor.u32 %v7472_v32, %v5620_v33 }
  0xc1   :  { %v7920_v1 = vpop.eup %7919  ;;  %7923 = vtanh.f32 %v329_v60  ;;  %v5876_v14 = vld [vmem:[#allocation8 + $0x6e0] sm:$0xf0] }
  0xc2   :  { %v343_v7 = vmul.f32 0.5, %v7920_v1  ;;  %v350_v11 = vadd.f32 0.5, %v342_v2  ;;  %3583 = vmatpush.bf16.msra.mxu2 %v5719_v56  ;;  %v7328_v43 = vld [vmem:[#allocation8 + $0x44] sm:$0xf]  ;;  %v5879_v51 = vor.u32 %v7536_v39, %v5876_v14 }
  0xc3   :  { %3596 = vmatpush.bf16.msra.mxu3 %v5975_v61  ;;  %3559 = vmatpush.bf16.msra.mxu0 %v5143_v62  ;;  %v307_v16 = vpop.f32.mrf.mxu2  ;;  %v5044_v45 = vld [vmem:[#allocation8 + $0x60] sm:$0xf0] }
  0xc4   :  { %v351_v13 = vadd.f32 0.5, %v343_v7  ;;  %v8266_v19 = vpack.c.bf16 %v350_v11, %v350_v11  ;;  %3572 = vmatpush.bf16.msra.mxu1 %v5399_v4  ;;  %v320_v24 = vpop.f32.mrf.mxu3  ;;  %v7392_v35 = vld [vmem:[#allocation8 + $0x244] sm:$0xf]  ;;  %v5047_v56 = vor.u32 %v7328_v43, %v5044_v45 }
  0xc5   :  { %v5300_v47 = vld [vmem:[#allocation8 + $0x260] sm:$0xf0] }
  0xc6   :  { %v8268_v26 = vpack.c.bf16 %v351_v13, %v351_v13  ;;  %v7922_v30 = vpop.eup %7921  ;;  %3584 = vmatpush.bf16.msra.mxu2 %v5687_v12  ;;  %3512 = vmatmul.bf16.vlgmr.msrb.gmra.mxu0 %v8266_v19  ;;  %v7464_v52 = vld [vmem:[#allocation8 + $0x484] sm:$0xf]  ;;  %v5303_v57 = vor.u32 %v7392_v35, %v5300_v47 }
  0xc7   :  { %v7924_v34 = vpop.eup %7923  ;;  %v344_v36 = vmul.f32 0.5, %v7922_v30  ;;  %3597 = vmatpush.bf16.msra.mxu3 %v5943_v15  ;;  %3560 = vmatpush.bf16.msra.mxu0 %v5111_v20  ;;  %v5588_v53 = vld [vmem:[#allocation8 + $0x4a0] sm:$0xf0] }
  0xc8   :  { %3525 = vmatmul.bf16.vlgmr.msrb.gmra.mxu1 %v8268_v26  ;;  %v345_v40 = vmul.f32 0.5, %v7924_v34  ;;  %v7528_v54 = vld [vmem:[#allocation8 + $0x684] sm:$0xf]  ;;  %v5591_v0 = vor.u32 %v7464_v52, %v5588_v53 }
  0xc9   :  { %3573 = vmatpush.bf16.msra.mxu1 %v5367_v21  ;;  %v352_v46 = vadd.f32 0.5, %v344_v36  ;;  %v5844_v58 = vld [vmem:[#allocation8 + $0x6a0] sm:$0xf0] }
  0xca   :  { %v353_v48 = vadd.f32 0.5, %v345_v40  ;;  %3585 = vmatpush.bf16.msra.mxu2 %v5655_v31  ;;  %v7320_v59 = vld [vmem:[#allocation8 + $0x4] sm:$0xf]  ;;  %v5847_v5 = vor.u32 %v7528_v54, %v5844_v58 }
  0xcb   :  { %v8272_v50 = vpack.c.bf16 %v352_v46, %v352_v46  ;;  %3598 = vmatpush.bf16.msra.mxu3 %v5911_v37  ;;  %3561 = vmatpush.bf16.msra.mxu0 %v5079_v41  ;;  %v5012_v60 = vld [vmem:[#allocation8 + $0x20] sm:$0xf0] }
  0xcc   :  { %v8274_v55 = vpack.c.bf16 %v353_v48, %v353_v48  ;;  %v7384_v61 = vld [vmem:[#allocation8 + $0x204] sm:$0xf]  ;;  %v5015_v8 = vor.u32 %v7320_v59, %v5012_v60 }
  0xcd   :  { %3574 = vmatpush.bf16.msra.mxu1 %v5335_v42  ;;  %3538 = vmatmul.bf16.vlgmr.msrb.gmra.mxu2 %v8272_v50  ;;  %v5268_v62 = vld [vmem:[#allocation8 + $0x220] sm:$0xf0] }
  0xce   :  { %v7632_v63 = vld [vmem:[#allocation8 + $0x9c4] sm:$0xf]  ;;  %3551 = vmatmul.bf16.vlgmr.msrb.gmra.mxu3 %v8274_v55  ;;  %3586 = vmatpush.bf16.msra.mxu2 %v5623_v49  ;;  %v5271_v10 = vor.u32 %v7384_v61, %v5268_v62 }
  0xcf   :  { %v6260_v1 = vld [vmem:[#allocation8 + $0x9e0] sm:$0xf0]  ;;  %3599 = vmatpush.bf16.msra.mxu3 %v5879_v51  ;;  %3562 = vmatpush.bf16.msra.mxu0 %v5047_v56 }
  0xd0   :  { %v7696_v2 = vld [vmem:[#allocation8 + $0xbc4] sm:$0xf]  ;;  %v6263_v13 = vor.u32 %v7632_v63, %v6260_v1 }
  0xd1   :  { %v6516_v4 = vld [vmem:[#allocation8 + $0xbe0] sm:$0xf0]  ;;  %3575 = vmatpush.bf16.msra.mxu1 %v5303_v57 }
  0xd2   :  { %v7456_v6 = vld [vmem:[#allocation8 + $0x444] sm:$0xf]  ;;  %v6519_v15 = vor.u32 %v7696_v2, %v6516_v4  ;;  %3587 = vmatpush.bf16.msra.mxu2 %v5591_v0 }
  0xd3   :  { %v5556_v7 = vld [vmem:[#allocation8 + $0x460] sm:$0xf0]  ;;  %3600 = vmatpush.bf16.msra.mxu3 %v5847_v5  ;;  %3563 = vmatpush.bf16.msra.mxu0 %v5015_v8 }
  0xd4   :  { %v7520_v11 = vld [vmem:[#allocation8 + $0x644] sm:$0xf]  ;;  %v5559_v17 = vor.u32 %v7456_v6, %v5556_v7 }
  0xd5   :  { %v5812_v12 = vld [vmem:[#allocation8 + $0x660] sm:$0xf0]  ;;  %3576 = vmatpush.bf16.msra.mxu1 %v5271_v10 }
  0xd6   :  { %v7624_v16 = vld [vmem:[#allocation8 + $0x984] sm:$0xf]  ;;  %v5815_v22 = vor.u32 %v7520_v11, %v5812_v12  ;;  %3588 = vmatpush.bf16.msra.mxu2 %v5559_v17  ;;  %3564 = vmatmul.bf16.vlgmr.msra.gmra.mxu0 %v8252_v3 }
  0xd7   :  { %v6228_v18 = vld [vmem:[#allocation8 + $0x9a0] sm:$0xf0]  ;;  %3608 = vmatpush.bf16.msrb.mxu0 %v6263_v13 }
  0xd8   :  { %v7688_v20 = vld [vmem:[#allocation8 + $0xb84] sm:$0xf]  ;;  %v6231_v30 = vor.u32 %v7624_v16, %v6228_v18  ;;  %3601 = vmatpush.bf16.msra.mxu3 %v5815_v22  ;;  %3577 = vmatmul.bf16.vlgmr.msra.gmra.mxu1 %v8254_v9 }
  0xd9   :  { %v6484_v21 = vld [vmem:[#allocation8 + $0xba0] sm:$0xf0]  ;;  %3621 = vmatpush.bf16.msrb.mxu1 %v6519_v15 }
  0xda   :  { %v7448_v23 = vld [vmem:[#allocation8 + $0x404] sm:$0xf]  ;;  %v6487_v31 = vor.u32 %v7688_v20, %v6484_v21 }
  0xdb   :  { %v5524_v24 = vld [vmem:[#allocation8 + $0x420] sm:$0xf0]  ;;  %3609 = vmatpush.bf16.msrb.mxu0 %v6231_v30 }
  0xdc   :  { %v7512_v25 = vld [vmem:[#allocation8 + $0x604] sm:$0xf]  ;;  %v5527_v36 = vor.u32 %v7448_v23, %v5524_v24 }
  0xdd   :  { %v5780_v27 = vld [vmem:[#allocation8 + $0x620] sm:$0xf0]  ;;  %3622 = vmatpush.bf16.msrb.mxu1 %v6487_v31 }
  0xde   :  { %v7760_v28 = vld [vmem:[#allocation8 + $0xdc4] sm:$0xf]  ;;  %v5783_v40 = vor.u32 %v7512_v25, %v5780_v27  ;;  %3589 = vmatpush.bf16.msra.mxu2 %v5527_v36 }
  0xdf   :  { %v6772_v29 = vld [vmem:[#allocation8 + $0xde0] sm:$0xf0] }
  0xe0   :  { %v7824_v32 = vld [vmem:[#allocation8 + $0xfc4] sm:$0xf]  ;;  %v6775_v41 = vor.u32 %v7760_v28, %v6772_v29  ;;  %3602 = vmatpush.bf16.msra.mxu3 %v5783_v40 }
  0xe1   :  { %v7028_v33 = vld [vmem:[#allocation8 + $0xfe0] sm:$0xf0]  ;;  %3590 = vmatmul.bf16.vlgmr.msra.gmra.mxu2 %v8260_v38 }
  0xe2   :  { %v7616_v34 = vld [vmem:[#allocation8 + $0x944] sm:$0xf]  ;;  %v7031_v42 = vor.u32 %v7824_v32, %v7028_v33  ;;  %3634 = vmatpush.bf16.msrb.mxu2 %v6775_v41 }
  0xe3   :  { %v6196_v37 = vld [vmem:[#allocation8 + $0x960] sm:$0xf0]  ;;  %3603 = vmatmul.bf16.vlgmr.msra.gmra.mxu3 %v8262_v44 }
  0xe4   :  { %v7680_v39 = vld [vmem:[#allocation8 + $0xb44] sm:$0xf]  ;;  %v6199_v46 = vor.u32 %v7616_v34, %v6196_v37  ;;  %3647 = vmatpush.bf16.msrb.mxu3 %v7031_v42 }
  0xe5   :  { %v6452_v14 = vld [vmem:[#allocation8 + $0xb60] sm:$0xf0] }
  0xe6   :  { %v7752_v43 = vld [vmem:[#allocation8 + $0xd84] sm:$0xf]  ;;  %v6455_v35 = vor.u32 %v7680_v39, %v6452_v14  ;;  %3610 = vmatpush.bf16.msrb.mxu0 %v6199_v46  ;;  %v5242_v46 = vld [vmem:[#allocation8 + $0x1c8] sm:$0xf] }
  0xe7   :  { %v6740_v45 = vld [vmem:[#allocation8 + $0xda0] sm:$0xf0] }
  0xe8   :  { %v7816_v47 = vld [vmem:[#allocation8 + $0xf84] sm:$0xf]  ;;  %v6743_v54 = vor.u32 %v7752_v43, %v6740_v45  ;;  %3623 = vmatpush.bf16.msrb.mxu1 %v6455_v35 }
  0xe9   :  { %v6996_v48 = vld [vmem:[#allocation8 + $0xfa0] sm:$0xf0] }
  0xea   :  { %v7608_v49 = vld [vmem:[#allocation8 + $0x904] sm:$0xf]  ;;  %v6999_v56 = vor.u32 %v7816_v47, %v6996_v48  ;;  %3635 = vmatpush.bf16.msrb.mxu2 %v6743_v54  ;;  %v7381_v47 = vld [vmem:[#allocation8 + $0x1e4] sm:$0xf0] }
  0xeb   :  { %v6164_v51 = vld [vmem:[#allocation8 + $0x920] sm:$0xf0]  ;;  %v5498_v48 = vld [vmem:[#allocation8 + $0x3c8] sm:$0xf] }
  0xec   :  { %v7672_v52 = vld [vmem:[#allocation8 + $0xb04] sm:$0xf]  ;;  %v6167_v59 = vor.u32 %v7608_v49, %v6164_v51  ;;  %3648 = vmatpush.bf16.msrb.mxu3 %v6999_v56  ;;  %v7445_v49 = vld [vmem:[#allocation8 + $0x3e4] sm:$0xf0] }
  0xed   :  { %v6420_v53 = vld [vmem:[#allocation8 + $0xb20] sm:$0xf0] }
  0xee   :  { %v7744_v57 = vld [vmem:[#allocation8 + $0xd44] sm:$0xf]  ;;  %v6423_v60 = vor.u32 %v7672_v52, %v6420_v53  ;;  %3611 = vmatpush.bf16.msrb.mxu0 %v6167_v59  ;;  %v5243_v59 = vor.u32 %v7381_v47, %v5242_v46  ;;  %v5114_v46 = vld [vmem:[#allocation8 + $0xc8] sm:$0xf] }
  0xef   :  { %v6708_v58 = vld [vmem:[#allocation8 + $0xd60] sm:$0xf0] }
  0xf0   :  { %v7808_v61 = vld [vmem:[#allocation8 + $0xf44] sm:$0xf]  ;;  %v6711_v4 = vor.u32 %v7744_v57, %v6708_v58  ;;  %3624 = vmatpush.bf16.msrb.mxu1 %v6423_v60  ;;  %v5499_v60 = vor.u32 %v7445_v49, %v5498_v48  ;;  %v5370_v48 = vld [vmem:[#allocation8 + $0x2c8] sm:$0xf] }
  0xf1   :  { %v6964_v62 = vld [vmem:[#allocation8 + $0xf60] sm:$0xf0]  ;;  %v7413_v49 = vld [vmem:[#allocation8 + $0x2e4] sm:$0xf0] }
  0xf2   :  { %v7600_v63 = vld [vmem:[#allocation8 + $0x8c4] sm:$0xf]  ;;  %v6967_v5 = vor.u32 %v7808_v61, %v6964_v62  ;;  %3636 = vmatpush.bf16.msrb.mxu2 %v6711_v4  ;;  %v5210_v61 = vld [vmem:[#allocation8 + $0x188] sm:$0xf] }
  0xf3   :  { %v6132_v0 = vld [vmem:[#allocation8 + $0x8e0] sm:$0xf0] }
  0xf4   :  { %v7664_v1 = vld [vmem:[#allocation8 + $0xac4] sm:$0xf]  ;;  %v6135_v8 = vor.u32 %v7600_v63, %v6132_v0  ;;  %3649 = vmatpush.bf16.msrb.mxu3 %v6967_v5  ;;  %v7373_v63 = vld [vmem:[#allocation8 + $0x1a4] sm:$0xf0] }
  0xf5   :  { %v6388_v2 = vld [vmem:[#allocation8 + $0xae0] sm:$0xf0]  ;;  %v5466_v0 = vld [vmem:[#allocation8 + $0x388] sm:$0xf] }
  0xf6   :  { %v7736_v6 = vld [vmem:[#allocation8 + $0xd04] sm:$0xf]  ;;  %v6391_v10 = vor.u32 %v7664_v1, %v6388_v2  ;;  %3612 = vmatpush.bf16.msrb.mxu0 %v6135_v8  ;;  %v7437_v1 = vld [vmem:[#allocation8 + $0x3a4] sm:$0xf0] }
  0xf7   :  { %v6676_v7 = vld [vmem:[#allocation8 + $0xd20] sm:$0xf0]  ;;  %v5754_v8 = vld [vmem:[#allocation8 + $0x5c8] sm:$0xf] }
  0xf8   :  { %v7800_v11 = vld [vmem:[#allocation8 + $0xf04] sm:$0xf]  ;;  %v6679_v18 = vor.u32 %v7736_v6, %v6676_v7  ;;  %3625 = vmatpush.bf16.msrb.mxu1 %v6391_v10  ;;  %v7509_v10 = vld [vmem:[#allocation8 + $0x5e4] sm:$0xf0] }
  0xf9   :  { %v6932_v12 = vld [vmem:[#allocation8 + $0xf20] sm:$0xf0] }
  0xfa   :  { %v7592_v13 = vld [vmem:[#allocation8 + $0x884] sm:$0xf]  ;;  %v6935_v20 = vor.u32 %v7800_v11, %v6932_v12  ;;  %3637 = vmatpush.bf16.msrb.mxu2 %v6679_v18  ;;  %v5211_v11 = vor.u32 %v7373_v63, %v5210_v61  ;;  %v5467_v12 = vor.u32 %v7437_v1, %v5466_v0  ;;  %v7365_v18 = vld [vmem:[#allocation8 + $0x164] sm:$0xf0] }
  0xfb   :  { %v6100_v15 = vld [vmem:[#allocation8 + $0x8a0] sm:$0xf0]  ;;  %v7405_v63 = vld [vmem:[#allocation8 + $0x2a4] sm:$0xf0] }
  0xfc   :  { %v7656_v16 = vld [vmem:[#allocation8 + $0xa84] sm:$0xf]  ;;  %v6103_v23 = vor.u32 %v7592_v13, %v6100_v15  ;;  %3650 = vmatpush.bf16.msrb.mxu3 %v6935_v20  ;;  %v6010_v13 = vld [vmem:[#allocation8 + $0x7c8] sm:$0xf] }
  0xfd   :  { %v6356_v17 = vld [vmem:[#allocation8 + $0xaa0] sm:$0xf0]  ;;  %v7573_v15 = vld [vmem:[#allocation8 + $0x7e4] sm:$0xf0] }
  0xfe   :  { %v7728_v21 = vld [vmem:[#allocation8 + $0xcc4] sm:$0xf]  ;;  %v6359_v24 = vor.u32 %v7656_v16, %v6356_v17  ;;  %3613 = vmatpush.bf16.msrb.mxu0 %v6103_v23  ;;  %v5178_v17 = vld [vmem:[#allocation8 + $0x148] sm:$0xf] }
  0xff   :  { %v6644_v22 = vld [vmem:[#allocation8 + $0xce0] sm:$0xf0]  ;;  %v7429_v23 = vld [vmem:[#allocation8 + $0x364] sm:$0xf0] }
 0x100   :  { %v7792_v25 = vld [vmem:[#allocation8 + $0xec4] sm:$0xf]  ;;  %v6647_v32 = vor.u32 %v7728_v21, %v6644_v22  ;;  %3626 = vmatpush.bf16.msrb.mxu1 %v6359_v24  ;;  %v5755_v21 = vor.u32 %v7509_v10, %v5754_v8  ;;  %v5434_v22 = vld [vmem:[#allocation8 + $0x348] sm:$0xf]  ;;  %v6011_v24 = vor.u32 %v7573_v15, %v6010_v13 }
 0x101   :  { %v6900_v27 = vld [vmem:[#allocation8 + $0xee0] sm:$0xf0]  ;;  %v5626_v1 = vld [vmem:[#allocation8 + $0x4c8] sm:$0xf] }
 0x102   :  { %v7584_v28 = vld [vmem:[#allocation8 + $0x844] sm:$0xf]  ;;  %v6903_v33 = vor.u32 %v7792_v25, %v6900_v27  ;;  %3638 = vmatpush.bf16.msrb.mxu2 %v6647_v32  ;;  %v5722_v25 = vld [vmem:[#allocation8 + $0x588] sm:$0xf] }
 0x103   :  { %v6068_v29 = vld [vmem:[#allocation8 + $0x860] sm:$0xf0]  ;;  %v7501_v27 = vld [vmem:[#allocation8 + $0x5a4] sm:$0xf0] }
 0x104   :  { %v7648_v30 = vld [vmem:[#allocation8 + $0xa44] sm:$0xf]  ;;  %v6071_v39 = vor.u32 %v7584_v28, %v6068_v29  ;;  %3651 = vmatpush.bf16.msrb.mxu3 %v6903_v33  ;;  %v5179_v28 = vor.u32 %v7365_v18, %v5178_v17  ;;  %v5978_v29 = vld [vmem:[#allocation8 + $0x788] sm:$0xf] }
 0x105   :  { %v6324_v31 = vld [vmem:[#allocation8 + $0xa60] sm:$0xf0]  ;;  %v5146_v32 = vld [vmem:[#allocation8 + $0x108] sm:$0xf] }
 0x106   :  { %v7720_v34 = vld [vmem:[#allocation8 + $0xc84] sm:$0xf]  ;;  %v6327_v14 = vor.u32 %v7648_v30, %v6324_v31  ;;  %3614 = vmatpush.bf16.msrb.mxu0 %v6071_v39  ;;  %v7565_v30 = vld [vmem:[#allocation8 + $0x7a4] sm:$0xf0]  ;;  %v5435_v31 = vor.u32 %v7429_v23, %v5434_v22 }
 0x107   :  { %v6612_v36 = vld [vmem:[#allocation8 + $0xca0] sm:$0xf0]  ;;  %v7357_v33 = vld [vmem:[#allocation8 + $0x124] sm:$0xf0]  ;;  %v5979_v39 = vor.u32 %v7565_v30, %v5978_v29 }
 0x108   :  { %v7784_v37 = vld [vmem:[#allocation8 + $0xe84] sm:$0xf]  ;;  %v6615_v35 = vor.u32 %v7720_v34, %v6612_v36  ;;  %3627 = vmatpush.bf16.msrb.mxu1 %v6327_v14  ;;  %v5723_v34 = vor.u32 %v7501_v27, %v5722_v25  ;;  %v5402_v36 = vld [vmem:[#allocation8 + $0x308] sm:$0xf] }
 0x109   :  { %v6868_v40 = vld [vmem:[#allocation8 + $0xea0] sm:$0xf0]  ;;  %v5690_v14 = vld [vmem:[#allocation8 + $0x548] sm:$0xf] }
 0x10a   :  { %v7576_v41 = vld [vmem:[#allocation8 + $0x804] sm:$0xf]  ;;  %v6871_v51 = vor.u32 %v7784_v37, %v6868_v40  ;;  %3639 = vmatpush.bf16.msrb.mxu2 %v6615_v35  ;;  %v7421_v37 = vld [vmem:[#allocation8 + $0x324] sm:$0xf0] }
 0x10b   :  { %v6036_v42 = vld [vmem:[#allocation8 + $0x820] sm:$0xf0]  ;;  %v7493_v40 = vld [vmem:[#allocation8 + $0x564] sm:$0xf0] }
 0x10c   :  { %v7640_v43 = vld [vmem:[#allocation8 + $0xa04] sm:$0xf]  ;;  %v6039_v54 = vor.u32 %v7576_v41, %v6036_v42  ;;  %3652 = vmatpush.bf16.msrb.mxu3 %v6871_v51  ;;  %v5147_v41 = vor.u32 %v7357_v33, %v5146_v32  ;;  %v5946_v42 = vld [vmem:[#allocation8 + $0x748] sm:$0xf]  ;;  %v5691_v47 = vor.u32 %v7493_v40, %v5690_v14 }
 0x10d   :  { %v6292_v45 = vld [vmem:[#allocation8 + $0xa20] sm:$0xf0]  ;;  %v7349_v35 = vld [vmem:[#allocation8 + $0xe4] sm:$0xf0] }
 0x10e   :  { %v7712_v52 = vld [vmem:[#allocation8 + $0xc44] sm:$0xf]  ;;  %v6295_v56 = vor.u32 %v7640_v43, %v6292_v45  ;;  %3615 = vmatpush.bf16.msrb.mxu0 %v6039_v54  ;;  %v7557_v43 = vld [vmem:[#allocation8 + $0x764] sm:$0xf0]  ;;  %v5403_v45 = vor.u32 %v7421_v37, %v5402_v36  ;;  %v5115_v54 = vor.u32 %v7349_v35, %v5114_v46 }
 0x10f   :  { %v6580_v53 = vld [vmem:[#allocation8 + $0xc60] sm:$0xf0]  ;;  %v5947_v51 = vor.u32 %v7557_v43, %v5946_v42  ;;  %v5050_v8 = vld [vmem:[#allocation8 + $0x48] sm:$0xf] }
 0x110   :  { %v7776_v57 = vld [vmem:[#allocation8 + $0xe44] sm:$0xf]  ;;  %v6583_v62 = vor.u32 %v7712_v52, %v6580_v53  ;;  %3628 = vmatpush.bf16.msrb.mxu1 %v6295_v56  ;;  %v5658_v52 = vld [vmem:[#allocation8 + $0x508] sm:$0xf] }
 0x111   :  { %v6836_v58 = vld [vmem:[#allocation8 + $0xe60] sm:$0xf0]  ;;  %3616 = vmatmul.bf16.vlgmr.msrb.gmra.mxu0 %v8266_v19  ;;  %v7485_v53 = vld [vmem:[#allocation8 + $0x524] sm:$0xf0] }
 0x112   :  { %v6839_v2 = vor.u32 %v7776_v57, %v6836_v58  ;;  %v7704_v4 = vld [vmem:[#allocation8 + $0xc04] sm:$0xf]  ;;  %3660 = vmatpush.bf16.msra.mxu0 %v5243_v59  ;;  %3640 = vmatpush.bf16.msrb.mxu2 %v6583_v62  ;;  %v5914_v56 = vld [vmem:[#allocation8 + $0x708] sm:$0xf]  ;;  %v5371_v58 = vor.u32 %v7413_v49, %v5370_v48  ;;  %v5659_v61 = vor.u32 %v7485_v53, %v5658_v52 }
 0x113   :  { %v6548_v5 = vld [vmem:[#allocation8 + $0xc20] sm:$0xf0]  ;;  %3629 = vmatmul.bf16.vlgmr.msrb.gmra.mxu1 %v8268_v26  ;;  %v7549_v57 = vld [vmem:[#allocation8 + $0x724] sm:$0xf0] }
 0x114   :  { %v7768_v6 = vld [vmem:[#allocation8 + $0xe04] sm:$0xf]  ;;  %3673 = vmatpush.bf16.msra.mxu1 %v5499_v60  ;;  %v6551_v16 = vor.u32 %v7704_v4, %v6548_v5  ;;  %3653 = vmatpush.bf16.msrb.mxu3 %v6839_v2  ;;  %v5082_v59 = vld [vmem:[#allocation8 + $0x88] sm:$0xf]  ;;  %v5915_v0 = vor.u32 %v7549_v57, %v5914_v56 }
 0x115   :  { %v6804_v7 = vld [vmem:[#allocation8 + $0xe20] sm:$0xf0]  ;;  %v7341_v60 = vld [vmem:[#allocation8 + $0xa4] sm:$0xf0] }
 0x116   :  { %v6807_v20 = vor.u32 %v7768_v6, %v6804_v7  ;;  %3661 = vmatpush.bf16.msra.mxu0 %v5211_v11  ;;  %3641 = vmatpush.bf16.msrb.mxu2 %v6551_v16  ;;  %v5338_v62 = vld [vmem:[#allocation8 + $0x288] sm:$0xf]  ;;  %v5083_v4 = vor.u32 %v7341_v60, %v5082_v59 }
 0x117   :  { %v7477_v2 = vld [vmem:[#allocation8 + $0x4e4] sm:$0xf0]  ;;  %v5339_v7 = vor.u32 %v7405_v63, %v5338_v62 }
 0x118   :  { %3674 = vmatpush.bf16.msra.mxu1 %v5467_v12  ;;  %3654 = vmatpush.bf16.msrb.mxu3 %v6807_v20  ;;  %v5882_v5 = vld [vmem:[#allocation8 + $0x6c8] sm:$0xf]  ;;  %v5627_v11 = vor.u32 %v7477_v2, %v5626_v1 }
 0x119   :  { %3642 = vmatmul.bf16.vlgmr.msrb.gmra.mxu2 %v8272_v50  ;;  %v7541_v6 = vld [vmem:[#allocation8 + $0x6e4] sm:$0xf0] }
 0x11a   :  { %3686 = vmatpush.bf16.msra.mxu2 %v5755_v21  ;;  %3662 = vmatpush.bf16.msra.mxu0 %v5179_v28  ;;  %v7333_v10 = vld [vmem:[#allocation8 + $0x64] sm:$0xf0]  ;;  %v5883_v15 = vor.u32 %v7541_v6, %v5882_v5 }
 0x11b   :  { %3655 = vmatmul.bf16.vlgmr.msrb.gmra.mxu3 %v8274_v55  ;;  %v5306_v12 = vld [vmem:[#allocation8 + $0x248] sm:$0xf]  ;;  %v5051_v18 = vor.u32 %v7333_v10, %v5050_v8 }
 0x11c   :  { %3699 = vmatpush.bf16.msra.mxu3 %v6011_v24  ;;  %3675 = vmatpush.bf16.msra.mxu1 %v5435_v31  ;;  %v7397_v13 = vld [vmem:[#allocation8 + $0x264] sm:$0xf0] }
 0x11d   :  { %v5594_v16 = vld [vmem:[#allocation8 + $0x488] sm:$0xf]  ;;  %v5307_v23 = vor.u32 %v7397_v13, %v5306_v12 }
 0x11e   :  { %3687 = vmatpush.bf16.msra.mxu2 %v5723_v34  ;;  %3663 = vmatpush.bf16.msra.mxu0 %v5147_v41  ;;  %v7469_v17 = vld [vmem:[#allocation8 + $0x4a4] sm:$0xf0] }
 0x11f   :  { %v5850_v20 = vld [vmem:[#allocation8 + $0x688] sm:$0xf]  ;;  %v5595_v28 = vor.u32 %v7469_v17, %v5594_v16 }
 0x120   :  { %3700 = vmatpush.bf16.msra.mxu3 %v5979_v39  ;;  %3676 = vmatpush.bf16.msra.mxu1 %v5403_v45  ;;  %v7533_v21 = vld [vmem:[#allocation8 + $0x6a4] sm:$0xf0] }
 0x121   :  { %v5018_v22 = vld [vmem:[#allocation8 + $0x8] sm:$0xf]  ;;  %v5851_v32 = vor.u32 %v7533_v21, %v5850_v20 }
 0x122   :  { %3688 = vmatpush.bf16.msra.mxu2 %v5691_v47  ;;  %3664 = vmatpush.bf16.msra.mxu0 %v5115_v54  ;;  %v7325_v24 = vld [vmem:[#allocation8 + $0x24] sm:$0xf0] }
 0x123   :  { %v5274_v25 = vld [vmem:[#allocation8 + $0x208] sm:$0xf]  ;;  %v5019_v37 = vor.u32 %v7325_v24, %v5018_v22 }
 0x124   :  { %3701 = vmatpush.bf16.msra.mxu3 %v5947_v51  ;;  %3677 = vmatpush.bf16.msra.mxu1 %v5371_v58  ;;  %v7389_v27 = vld [vmem:[#allocation8 + $0x224] sm:$0xf0] }
 0x125   :  { %v6266_v29 = vld [vmem:[#allocation8 + $0x9c8] sm:$0xf]  ;;  %v5275_v40 = vor.u32 %v7389_v27, %v5274_v25 }
 0x126   :  { %3689 = vmatpush.bf16.msra.mxu2 %v5659_v61  ;;  %3665 = vmatpush.bf16.msra.mxu0 %v5083_v4  ;;  %v7637_v30 = vld [vmem:[#allocation8 + $0x9e4] sm:$0xf0] }
 0x127   :  { %v6522_v31 = vld [vmem:[#allocation8 + $0xbc8] sm:$0xf]  ;;  %v6267_v41 = vor.u32 %v7637_v30, %v6266_v29 }
 0x128   :  { %3702 = vmatpush.bf16.msra.mxu3 %v5915_v0  ;;  %3678 = vmatpush.bf16.msra.mxu1 %v5339_v7  ;;  %v7701_v33 = vld [vmem:[#allocation8 + $0xbe4] sm:$0xf0] }
 0x129   :  { %v5562_v34 = vld [vmem:[#allocation8 + $0x448] sm:$0xf]  ;;  %v6523_v43 = vor.u32 %v7701_v33, %v6522_v31 }
 0x12a   :  { %3690 = vmatpush.bf16.msra.mxu2 %v5627_v11  ;;  %v7461_v36 = vld [vmem:[#allocation8 + $0x464] sm:$0xf0]  ;;  %3666 = vmatpush.bf16.msra.mxu0 %v5051_v18 }
 0x12b   :  { %v5818_v39 = vld [vmem:[#allocation8 + $0x648] sm:$0xf]  ;;  %v5563_v45 = vor.u32 %v7461_v36, %v5562_v34 }
 0x12c   :  { %3703 = vmatpush.bf16.msra.mxu3 %v5883_v15  ;;  %v7525_v14 = vld [vmem:[#allocation8 + $0x664] sm:$0xf0]  ;;  %3679 = vmatpush.bf16.msra.mxu1 %v5307_v23 }
 0x12d   :  { %v6234_v42 = vld [vmem:[#allocation8 + $0x988] sm:$0xf]  ;;  %v5819_v48 = vor.u32 %v7525_v14, %v5818_v39 }
 0x12e   :  { %3691 = vmatpush.bf16.msra.mxu2 %v5595_v28  ;;  %v7629_v46 = vld [vmem:[#allocation8 + $0x9a4] sm:$0xf0]  ;;  %3667 = vmatpush.bf16.msra.mxu0 %v5019_v37 }
 0x12f   :  { %v6490_v35 = vld [vmem:[#allocation8 + $0xb88] sm:$0xf]  ;;  %v6235_v57 = vor.u32 %v7629_v46, %v6234_v42 }
 0x130   :  { %v7693_v47 = vld [vmem:[#allocation8 + $0xba4] sm:$0xf0]  ;;  %3704 = vmatpush.bf16.msra.mxu3 %v5851_v32  ;;  %3680 = vmatpush.bf16.msra.mxu1 %v5275_v40 }
 0x131   :  { %v5530_v49 = vld [vmem:[#allocation8 + $0x408] sm:$0xf]  ;;  %v6491_v60 = vor.u32 %v7693_v47, %v6490_v35  ;;  %3668 = vmatmul.bf16.vlgmr.msra.gmra.mxu0 %v8252_v3 }
 0x132   :  { %v7453_v51 = vld [vmem:[#allocation8 + $0x424] sm:$0xf0]  ;;  %3712 = vmatpush.bf16.msrb.mxu0 %v6267_v41  ;;  %3692 = vmatpush.bf16.msra.mxu2 %v5563_v45 }
 0x133   :  { %v5786_v52 = vld [vmem:[#allocation8 + $0x608] sm:$0xf]  ;;  %v5531_v61 = vor.u32 %v7453_v51, %v5530_v49  ;;  %3681 = vmatmul.bf16.vlgmr.msra.gmra.mxu1 %v8254_v9 }
 0x134   :  { %v7517_v53 = vld [vmem:[#allocation8 + $0x624] sm:$0xf0]  ;;  %3725 = vmatpush.bf16.msrb.mxu1 %v6523_v43  ;;  %3705 = vmatpush.bf16.msra.mxu3 %v5819_v48 }
 0x135   :  { %v6778_v54 = vld [vmem:[#allocation8 + $0xdc8] sm:$0xf]  ;;  %v5787_v0 = vor.u32 %v7517_v53, %v5786_v52 }
 0x136   :  { %v7765_v56 = vld [vmem:[#allocation8 + $0xde4] sm:$0xf0]  ;;  %3713 = vmatpush.bf16.msrb.mxu0 %v6235_v57  ;;  %3693 = vmatpush.bf16.msra.mxu2 %v5531_v61 }
 0x137   :  { %v7034_v58 = vld [vmem:[#allocation8 + $0xfc8] sm:$0xf]  ;;  %v6779_v1 = vor.u32 %v7765_v56, %v6778_v54 }
 0x138   :  { %v7829_v59 = vld [vmem:[#allocation8 + $0xfe4] sm:$0xf0]  ;;  %3726 = vmatpush.bf16.msrb.mxu1 %v6491_v60  ;;  %3706 = vmatpush.bf16.msra.mxu3 %v5787_v0 }
 0x139   :  { %v6202_v62 = vld [vmem:[#allocation8 + $0x948] sm:$0xf]  ;;  %v7035_v5 = vor.u32 %v7829_v59, %v7034_v58  ;;  %3694 = vmatmul.bf16.vlgmr.msra.gmra.mxu2 %v8260_v38 }
 0x13a   :  { %v7621_v63 = vld [vmem:[#allocation8 + $0x964] sm:$0xf0]  ;;  %3738 = vmatpush.bf16.msrb.mxu2 %v6779_v1 }
 0x13b   :  { %v6458_v2 = vld [vmem:[#allocation8 + $0xb48] sm:$0xf]  ;;  %v6203_v8 = vor.u32 %v7621_v63, %v6202_v62  ;;  %3707 = vmatmul.bf16.vlgmr.msra.gmra.mxu3 %v8262_v44 }
 0x13c   :  { %v7685_v4 = vld [vmem:[#allocation8 + $0xb64] sm:$0xf0]  ;;  %3751 = vmatpush.bf16.msrb.mxu3 %v7035_v5 }
 0x13d   :  { %v6746_v6 = vld [vmem:[#allocation8 + $0xd88] sm:$0xf]  ;;  %v6459_v12 = vor.u32 %v7685_v4, %v6458_v2  ;;  %3714 = vmatpush.bf16.msrb.mxu0 %v6203_v8 }
 0x13e   :  { %v7757_v7 = vld [vmem:[#allocation8 + $0xda4] sm:$0xf0] }
 0x13f   :  { %v7002_v10 = vld [vmem:[#allocation8 + $0xf88] sm:$0xf]  ;;  %v6747_v16 = vor.u32 %v7757_v7, %v6746_v6  ;;  %3727 = vmatpush.bf16.msrb.mxu1 %v6459_v12  ;;  %v7441_v12 = vld [vmem:[#allocation8 + $0x3cc] sm:$0xf] }
 0x140   :  { %v7821_v11 = vld [vmem:[#allocation8 + $0xfa4] sm:$0xf0] }
 0x141   :  { %v6170_v13 = vld [vmem:[#allocation8 + $0x908] sm:$0xf]  ;;  %v7003_v20 = vor.u32 %v7821_v11, %v7002_v10  ;;  %3739 = vmatpush.bf16.msrb.mxu2 %v6747_v16  ;;  %v7377_v10 = vld [vmem:[#allocation8 + $0x1cc] sm:$0xf] }
 0x142   :  { %v7613_v15 = vld [vmem:[#allocation8 + $0x924] sm:$0xf0]  ;;  %v5244_v11 = vld [vmem:[#allocation8 + $0x1e8] sm:$0xf0] }
 0x143   :  { %v6426_v17 = vld [vmem:[#allocation8 + $0xb08] sm:$0xf]  ;;  %v6171_v23 = vor.u32 %v7613_v15, %v6170_v13  ;;  %3752 = vmatpush.bf16.msrb.mxu3 %v7003_v20  ;;  %v5500_v15 = vld [vmem:[#allocation8 + $0x3e8] sm:$0xf0] }
 0x144   :  { %v7677_v18 = vld [vmem:[#allocation8 + $0xb24] sm:$0xf0] }
 0x145   :  { %v6714_v21 = vld [vmem:[#allocation8 + $0xd48] sm:$0xf]  ;;  %v6427_v27 = vor.u32 %v7677_v18, %v6426_v17  ;;  %3715 = vmatpush.bf16.msrb.mxu0 %v6171_v23  ;;  %v5247_v23 = vor.u32 %v7377_v10, %v5244_v11  ;;  %v7553_v11 = vld [vmem:[#allocation8 + $0x74c] sm:$0xf] }
 0x146   :  { %v7749_v22 = vld [vmem:[#allocation8 + $0xd64] sm:$0xf0] }
 0x147   :  { %v6970_v24 = vld [vmem:[#allocation8 + $0xf48] sm:$0xf]  ;;  %v6715_v30 = vor.u32 %v7749_v22, %v6714_v21  ;;  %3728 = vmatpush.bf16.msrb.mxu1 %v6427_v27 }
 0x148   :  { %v7813_v25 = vld [vmem:[#allocation8 + $0xf64] sm:$0xf0] }
 0x149   :  { %v6138_v28 = vld [vmem:[#allocation8 + $0x8c8] sm:$0xf]  ;;  %v6971_v33 = vor.u32 %v7813_v25, %v6970_v24  ;;  %3740 = vmatpush.bf16.msrb.mxu2 %v6715_v30  ;;  %v7369_v24 = vld [vmem:[#allocation8 + $0x18c] sm:$0xf]  ;;  %v5503_v25 = vor.u32 %v7441_v12, %v5500_v15 }
 0x14a   :  { %v7605_v29 = vld [vmem:[#allocation8 + $0x8e4] sm:$0xf0]  ;;  %v5468_v30 = vld [vmem:[#allocation8 + $0x3a8] sm:$0xf0] }
 0x14b   :  { %v6394_v31 = vld [vmem:[#allocation8 + $0xac8] sm:$0xf]  ;;  %v6139_v37 = vor.u32 %v7605_v29, %v6138_v28  ;;  %3753 = vmatpush.bf16.msrb.mxu3 %v6971_v33  ;;  %v5212_v28 = vld [vmem:[#allocation8 + $0x1a8] sm:$0xf0] }
 0x14c   :  { %v7669_v32 = vld [vmem:[#allocation8 + $0xae4] sm:$0xf0]  ;;  %v7433_v29 = vld [vmem:[#allocation8 + $0x38c] sm:$0xf] }
 0x14d   :  { %v6682_v34 = vld [vmem:[#allocation8 + $0xd08] sm:$0xf]  ;;  %v6395_v40 = vor.u32 %v7669_v32, %v6394_v31  ;;  %3716 = vmatpush.bf16.msrb.mxu0 %v6139_v37  ;;  %v7505_v37 = vld [vmem:[#allocation8 + $0x5cc] sm:$0xf] }
 0x14e   :  { %v7741_v36 = vld [vmem:[#allocation8 + $0xd24] sm:$0xf0]  ;;  %v5948_v12 = vld [vmem:[#allocation8 + $0x768] sm:$0xf0] }
 0x14f   :  { %v6938_v39 = vld [vmem:[#allocation8 + $0xf08] sm:$0xf]  ;;  %v6683_v43 = vor.u32 %v7741_v36, %v6682_v34  ;;  %3729 = vmatpush.bf16.msrb.mxu1 %v6395_v40  ;;  %v7569_v40 = vld [vmem:[#allocation8 + $0x7cc] sm:$0xf] }
 0x150   :  { %v7805_v14 = vld [vmem:[#allocation8 + $0xf24] sm:$0xf0]  ;;  %v7345_v15 = vld [vmem:[#allocation8 + $0xcc] sm:$0xf] }
 0x151   :  { %v6106_v41 = vld [vmem:[#allocation8 + $0x888] sm:$0xf]  ;;  %v6939_v35 = vor.u32 %v7805_v14, %v6938_v39  ;;  %3741 = vmatpush.bf16.msrb.mxu2 %v6683_v43  ;;  %v5756_v39 = vld [vmem:[#allocation8 + $0x5e8] sm:$0xf0]  ;;  %v5215_v14 = vor.u32 %v7369_v24, %v5212_v28 }
 0x152   :  { %v7597_v42 = vld [vmem:[#allocation8 + $0x8a4] sm:$0xf0]  ;;  %v5660_v24 = vld [vmem:[#allocation8 + $0x528] sm:$0xf0] }
 0x153   :  { %v6362_v45 = vld [vmem:[#allocation8 + $0xa88] sm:$0xf]  ;;  %v6107_v49 = vor.u32 %v7597_v42, %v6106_v41  ;;  %3754 = vmatpush.bf16.msrb.mxu3 %v6939_v35  ;;  %v6012_v41 = vld [vmem:[#allocation8 + $0x7e8] sm:$0xf0]  ;;  %v5471_v42 = vor.u32 %v7433_v29, %v5468_v30  ;;  %v8290_v35 = vld [vmem:[#allocation10] sm:$0xff] }
 0x154   :  { %v7661_v46 = vld [vmem:[#allocation8 + $0xaa4] sm:$0xf0]  ;;  %v5916_v28 = vld [vmem:[#allocation8 + $0x728] sm:$0xf0] }
 0x155   :  { %v6650_v47 = vld [vmem:[#allocation8 + $0xcc8] sm:$0xf]  ;;  %v6363_v53 = vor.u32 %v7661_v46, %v6362_v45  ;;  %3717 = vmatpush.bf16.msrb.mxu0 %v6107_v49  ;;  %v7361_v45 = vld [vmem:[#allocation8 + $0x14c] sm:$0xf] }
 0x156   :  { %v7733_v48 = vld [vmem:[#allocation8 + $0xce4] sm:$0xf0]  ;;  %v5180_v46 = vld [vmem:[#allocation8 + $0x168] sm:$0xf0] }
 0x157   :  { %v6906_v51 = vld [vmem:[#allocation8 + $0xec8] sm:$0xf]  ;;  %v6651_v57 = vor.u32 %v7733_v48, %v6650_v47  ;;  %3730 = vmatpush.bf16.msrb.mxu1 %v6363_v53  ;;  %v5759_v48 = vor.u32 %v7505_v37, %v5756_v39  ;;  %v7425_v49 = vld [vmem:[#allocation8 + $0x34c] sm:$0xf] }
 0x158   :  { %v7797_v52 = vld [vmem:[#allocation8 + $0xee4] sm:$0xf0]  ;;  %v7497_v53 = vld [vmem:[#allocation8 + $0x58c] sm:$0xf] }
 0x159   :  { %v6074_v54 = vld [vmem:[#allocation8 + $0x848] sm:$0xf]  ;;  %v6907_v60 = vor.u32 %v7797_v52, %v6906_v51  ;;  %3742 = vmatpush.bf16.msrb.mxu2 %v6651_v57  ;;  %v5436_v51 = vld [vmem:[#allocation8 + $0x368] sm:$0xf0]  ;;  %v6015_v52 = vor.u32 %v7569_v40, %v6012_v41  ;;  %v876_v57 = vperm.slane %v8290_v35, 0 }
 0x15a   :  { %v7589_v56 = vld [vmem:[#allocation8 + $0x864] sm:$0xf0]  ;;  %v7337_v30 = vld [vmem:[#allocation8 + $0x8c] sm:$0xf] }
 0x15b   :  { %v6330_v58 = vld [vmem:[#allocation8 + $0xa48] sm:$0xf]  ;;  %v6075_v63 = vor.u32 %v7589_v56, %v6074_v54  ;;  %3755 = vmatpush.bf16.msrb.mxu3 %v6907_v60  ;;  %v5724_v54 = vld [vmem:[#allocation8 + $0x5a8] sm:$0xf0]  ;;  %v5183_v56 = vor.u32 %v7361_v45, %v5180_v46  ;;  %v5439_v60 = vor.u32 %v7425_v49, %v5436_v51 }
 0x15c   :  { %v7653_v59 = vld [vmem:[#allocation8 + $0xa64] sm:$0xf0]  ;;  %v7473_v39 = vld [vmem:[#allocation8 + $0x4cc] sm:$0xf] }
 0x15d   :  { %v6618_v61 = vld [vmem:[#allocation8 + $0xc88] sm:$0xf]  ;;  %v6331_v4 = vor.u32 %v7653_v59, %v6330_v58  ;;  %3718 = vmatpush.bf16.msrb.mxu0 %v6075_v63  ;;  %v7561_v58 = vld [vmem:[#allocation8 + $0x78c] sm:$0xf]  ;;  %v5727_v63 = vor.u32 %v7497_v53, %v5724_v54 }
 0x15e   :  { %v7725_v62 = vld [vmem:[#allocation8 + $0xca4] sm:$0xf0]  ;;  %v5980_v59 = vld [vmem:[#allocation8 + $0x7a8] sm:$0xf0] }
 0x15f   :  { %v6874_v0 = vld [vmem:[#allocation8 + $0xe88] sm:$0xf]  ;;  %v6619_v8 = vor.u32 %v7725_v62, %v6618_v61  ;;  %3731 = vmatpush.bf16.msrb.mxu1 %v6331_v4  ;;  %v7353_v61 = vld [vmem:[#allocation8 + $0x10c] sm:$0xf]  ;;  %v5983_v4 = vor.u32 %v7561_v58, %v5980_v59 }
 0x160   :  { %v7789_v1 = vld [vmem:[#allocation8 + $0xea4] sm:$0xf0]  ;;  %v5148_v62 = vld [vmem:[#allocation8 + $0x128] sm:$0xf0] }
 0x161   :  { %v6042_v2 = vld [vmem:[#allocation8 + $0x808] sm:$0xf]  ;;  %v6875_v13 = vor.u32 %v7789_v1, %v6874_v0  ;;  %3743 = vmatpush.bf16.msrb.mxu2 %v6619_v8  ;;  %v7417_v0 = vld [vmem:[#allocation8 + $0x30c] sm:$0xf]  ;;  %v3474_v8 = vpop.f32.mrf.mxu1  ;;  %v5151_v10 = vor.u32 %v7353_v61, %v5148_v62  ;;  %v3500_v62 = vpop.f32.mrf.mxu3 }
 0x162   :  { %v7581_v5 = vld [vmem:[#allocation8 + $0x824] sm:$0xf0]  ;;  %v5404_v1 = vld [vmem:[#allocation8 + $0x328] sm:$0xf0] }
 0x163   :  { %v6298_v6 = vld [vmem:[#allocation8 + $0xa08] sm:$0xf]  ;;  %v6043_v18 = vor.u32 %v7581_v5, %v6042_v2  ;;  %3756 = vmatpush.bf16.msrb.mxu3 %v6875_v13  ;;  %v3461_v2 = vpop.f32.mrf.mxu0  ;;  %v7489_v5 = vld [vmem:[#allocation8 + $0x54c] sm:$0xf]  ;;  %v5407_v13 = vor.u32 %v7417_v0, %v5404_v1 }
 0x164   :  { %v7645_v7 = vld [vmem:[#allocation8 + $0xa24] sm:$0xf0]  ;;  %v7329_v46 = vld [vmem:[#allocation8 + $0x4c] sm:$0xf] }
 0x165   :  { %v6586_v16 = vld [vmem:[#allocation8 + $0xc48] sm:$0xf]  ;;  %v6299_v22 = vor.u32 %v7645_v7, %v6298_v6  ;;  %3719 = vmatpush.bf16.msrb.mxu0 %v6043_v18  ;;  %v5692_v6 = vld [vmem:[#allocation8 + $0x568] sm:$0xf0]  ;;  %v3462_v7 = vadd.f32 %v3461_v2, %v876_v57 }
 0x166   :  { %v7717_v17 = vld [vmem:[#allocation8 + $0xc64] sm:$0xf0]  ;;  %v5695_v18 = vor.u32 %v7489_v5, %v5692_v6  ;;  %v7393_v49 = vld [vmem:[#allocation8 + $0x24c] sm:$0xf] }
 0x167   :  { %v6842_v20 = vld [vmem:[#allocation8 + $0xe48] sm:$0xf]  ;;  %v6587_v27 = vor.u32 %v7717_v17, %v6586_v16  ;;  %3732 = vmatpush.bf16.msrb.mxu1 %v6299_v22  ;;  %v5116_v16 = vld [vmem:[#allocation8 + $0xe8] sm:$0xf0]  ;;  %v3475_v17 = vadd.f32 %v3474_v8, %v3462_v7  ;;  %v5951_v22 = vor.u32 %v7553_v11, %v5948_v12 }
 0x168   :  { %v7781_v21 = vld [vmem:[#allocation8 + $0xe64] sm:$0xf0]  ;;  %3720 = vmatmul.bf16.vlgmr.msrb.gmra.mxu0 %v8266_v19  ;;  %v5308_v51 = vld [vmem:[#allocation8 + $0x268] sm:$0xf0] }
 0x169   :  { %v6843_v31 = vor.u32 %v7781_v21, %v6842_v20  ;;  %v6554_v32 = vld [vmem:[#allocation8 + $0xc08] sm:$0xf]  ;;  %3764 = vmatpush.bf16.msra.mxu0 %v5247_v23  ;;  %3744 = vmatpush.bf16.msrb.mxu2 %v6587_v27  ;;  %v7409_v20 = vld [vmem:[#allocation8 + $0x2cc] sm:$0xf]  ;;  %v3476_v40 = vpop.f32.mrf.mxu1 }
 0x16a   :  { %v7709_v33 = vld [vmem:[#allocation8 + $0xc24] sm:$0xf0]  ;;  %3733 = vmatmul.bf16.vlgmr.msrb.gmra.mxu1 %v8268_v26  ;;  %v5372_v21 = vld [vmem:[#allocation8 + $0x2e8] sm:$0xf0] }
 0x16b   :  { %v6810_v34 = vld [vmem:[#allocation8 + $0xe08] sm:$0xf]  ;;  %3777 = vmatpush.bf16.msra.mxu1 %v5503_v25  ;;  %v6555_v43 = vor.u32 %v7709_v33, %v6554_v32  ;;  %3757 = vmatpush.bf16.msrb.mxu3 %v6843_v31  ;;  %v7481_v23 = vld [vmem:[#allocation8 + $0x50c] sm:$0xf]  ;;  %v5119_v25 = vor.u32 %v7345_v15, %v5116_v16  ;;  %v5375_v29 = vor.u32 %v7409_v20, %v5372_v21 }
 0x16c   :  { %v7773_v36 = vld [vmem:[#allocation8 + $0xe24] sm:$0xf0]  ;;  %v7545_v27 = vld [vmem:[#allocation8 + $0x70c] sm:$0xf]  ;;  %v5663_v32 = vor.u32 %v7481_v23, %v5660_v24 }
 0x16d   :  { %v6811_v47 = vor.u32 %v7773_v36, %v6810_v34  ;;  %3765 = vmatpush.bf16.msra.mxu0 %v5215_v14  ;;  %3745 = vmatpush.bf16.msrb.mxu2 %v6555_v43  ;;  %v5084_v31 = vld [vmem:[#allocation8 + $0xa8] sm:$0xf0]  ;;  %v3463_v36 = vpop.f32.mrf.mxu0  ;;  %v5919_v37 = vor.u32 %v7545_v27, %v5916_v28 }
 0x16e   :  { %v7401_v33 = vld [vmem:[#allocation8 + $0x28c] sm:$0xf]  ;;  %v5087_v41 = vor.u32 %v7337_v30, %v5084_v31 }
 0x16f   :  { %3778 = vmatpush.bf16.msra.mxu1 %v5471_v42  ;;  %3758 = vmatpush.bf16.msrb.mxu3 %v6811_v47  ;;  %v5340_v34 = vld [vmem:[#allocation8 + $0x2a8] sm:$0xf0] }
 0x170   :  { %3746 = vmatmul.bf16.vlgmr.msrb.gmra.mxu2 %v8272_v50  ;;  %v5628_v14 = vld [vmem:[#allocation8 + $0x4e8] sm:$0xf0]  ;;  %v5343_v45 = vor.u32 %v7401_v33, %v5340_v34 }
 0x171   :  { %3790 = vmatpush.bf16.msra.mxu2 %v5759_v48  ;;  %3766 = vmatpush.bf16.msra.mxu0 %v5183_v56  ;;  %v7537_v42 = vld [vmem:[#allocation8 + $0x6cc] sm:$0xf]  ;;  %v5631_v48 = vor.u32 %v7473_v39, %v5628_v14  ;;  %v3487_v56 = vpop.f32.mrf.mxu2  ;;  %v3526_v16 = vpop.f32.mrf.mxu1 }
 0x172   :  { %3759 = vmatmul.bf16.vlgmr.msrb.gmra.mxu3 %v8274_v55  ;;  %v5884_v43 = vld [vmem:[#allocation8 + $0x6e8] sm:$0xf0]  ;;  %v3488_v61 = vadd.f32 %v3487_v56, %v3475_v17 }
 0x173   :  { %3803 = vmatpush.bf16.msra.mxu3 %v6015_v52  ;;  %3779 = vmatpush.bf16.msra.mxu1 %v5439_v60  ;;  %v5052_v47 = vld [vmem:[#allocation8 + $0x68] sm:$0xf0]  ;;  %v5887_v52 = vor.u32 %v7537_v42, %v5884_v43 }
 0x174   :  { %v7465_v53 = vld [vmem:[#allocation8 + $0x48c] sm:$0xf]  ;;  %v5055_v57 = vor.u32 %v7329_v46, %v5052_v47  ;;  %v3501_v8 = vadd.f32 %v3500_v62, %v3488_v61 }
 0x175   :  { %3791 = vmatpush.bf16.msra.mxu2 %v5727_v63  ;;  %3767 = vmatpush.bf16.msra.mxu0 %v5151_v10  ;;  %v5596_v54 = vld [vmem:[#allocation8 + $0x4a8] sm:$0xf0]  ;;  %v5311_v63 = vor.u32 %v7393_v49, %v5308_v51  ;;  %v3513_v10 = vpop.f32.mrf.mxu0 }
 0x176   :  { %v7529_v58 = vld [vmem:[#allocation8 + $0x68c] sm:$0xf]  ;;  %v3514_v21 = vadd.f32 %v3513_v10, %v3501_v8 }
 0x177   :  { %3804 = vmatpush.bf16.msra.mxu3 %v5983_v4  ;;  %3780 = vmatpush.bf16.msra.mxu1 %v5407_v13  ;;  %v5852_v59 = vld [vmem:[#allocation8 + $0x6a8] sm:$0xf0]  ;;  %v5599_v4 = vor.u32 %v7465_v53, %v5596_v54 }
 0x178   :  { %v7321_v60 = vld [vmem:[#allocation8 + $0xc] sm:$0xf]  ;;  %v5855_v11 = vor.u32 %v7529_v58, %v5852_v59  ;;  %v3527_v31 = vadd.f32 %v3526_v16, %v3514_v21 }
 0x179   :  { %3792 = vmatpush.bf16.msra.mxu2 %v5695_v18  ;;  %3768 = vmatpush.bf16.msra.mxu0 %v5119_v25  ;;  %v5020_v0 = vld [vmem:[#allocation8 + $0x28] sm:$0xf0] }
 0x17a   :  { %v7385_v1 = vld [vmem:[#allocation8 + $0x20c] sm:$0xf]  ;;  %v5023_v17 = vor.u32 %v7321_v60, %v5020_v0 }
 0x17b   :  { %3805 = vmatpush.bf16.msra.mxu3 %v5951_v22  ;;  %3781 = vmatpush.bf16.msra.mxu1 %v5375_v29  ;;  %v5276_v2 = vld [vmem:[#allocation8 + $0x228] sm:$0xf0] }
 0x17c   :  { %v7633_v5 = vld [vmem:[#allocation8 + $0x9cc] sm:$0xf]  ;;  %v5279_v22 = vor.u32 %v7385_v1, %v5276_v2 }
 0x17d   :  { %3793 = vmatpush.bf16.msra.mxu2 %v5663_v32  ;;  %3769 = vmatpush.bf16.msra.mxu0 %v5087_v41  ;;  %v6268_v6 = vld [vmem:[#allocation8 + $0x9e8] sm:$0xf0]  ;;  %v3502_v41 = vpop.f32.mrf.mxu3  ;;  %v3515_v51 = vpop.f32.mrf.mxu0 }
 0x17e   :  { %v7697_v7 = vld [vmem:[#allocation8 + $0xbcc] sm:$0xf]  ;;  %v6271_v23 = vor.u32 %v7633_v5, %v6268_v6 }
 0x17f   :  { %3806 = vmatpush.bf16.msra.mxu3 %v5919_v37  ;;  %3782 = vmatpush.bf16.msra.mxu1 %v5343_v45  ;;  %v6524_v12 = vld [vmem:[#allocation8 + $0xbe8] sm:$0xf0]  ;;  %v3489_v37 = vpop.f32.mrf.mxu2 }
 0x180   :  { %v7457_v13 = vld [vmem:[#allocation8 + $0x44c] sm:$0xf]  ;;  %v6527_v25 = vor.u32 %v7697_v7, %v6524_v12 }
 0x181   :  { %3794 = vmatpush.bf16.msra.mxu2 %v5631_v48  ;;  %v5564_v15 = vld [vmem:[#allocation8 + $0x468] sm:$0xf0]  ;;  %3770 = vmatpush.bf16.msra.mxu0 %v5055_v57  ;;  %v3528_v57 = vpop.f32.mrf.mxu1 }
 0x182   :  { %v7521_v18 = vld [vmem:[#allocation8 + $0x64c] sm:$0xf]  ;;  %v5567_v27 = vor.u32 %v7457_v13, %v5564_v15  ;;  %v877_v15 = vperm.slane %v8290_v35, 1 }
 0x183   :  { %3807 = vmatpush.bf16.msra.mxu3 %v5887_v52  ;;  %v5820_v20 = vld [vmem:[#allocation8 + $0x668] sm:$0xf0]  ;;  %3783 = vmatpush.bf16.msra.mxu1 %v5311_v63 }
 0x184   :  { %v7625_v24 = vld [vmem:[#allocation8 + $0x98c] sm:$0xf]  ;;  %v5823_v32 = vor.u32 %v7521_v18, %v5820_v20 }
 0x185   :  { %3795 = vmatpush.bf16.msra.mxu2 %v5599_v4  ;;  %v6236_v28 = vld [vmem:[#allocation8 + $0x9a8] sm:$0xf0]  ;;  %3771 = vmatpush.bf16.msra.mxu0 %v5023_v17  ;;  %v3552_v13 = vpop.f32.mrf.mxu3 }
 0x186   :  { %v7689_v29 = vld [vmem:[#allocation8 + $0xb8c] sm:$0xf]  ;;  %v6239_v42 = vor.u32 %v7625_v24, %v6236_v28  ;;  %v3565_v28 = vpop.f32.mrf.mxu0 }
 0x187   :  { %v6492_v30 = vld [vmem:[#allocation8 + $0xba8] sm:$0xf0]  ;;  %3808 = vmatpush.bf16.msra.mxu3 %v5855_v11  ;;  %3784 = vmatpush.bf16.msra.mxu1 %v5279_v22  ;;  %v3539_v7 = vpop.f32.mrf.mxu2 }
 0x188   :  { %v7449_v33 = vld [vmem:[#allocation8 + $0x40c] sm:$0xf]  ;;  %v6495_v46 = vor.u32 %v7689_v29, %v6492_v30  ;;  %3772 = vmatmul.bf16.vlgmr.msra.gmra.mxu0 %v8252_v3  ;;  %v3540_v12 = vadd.f32 %v3539_v7, %v3527_v31 }
 0x189   :  { %v5532_v34 = vld [vmem:[#allocation8 + $0x428] sm:$0xf0]  ;;  %3816 = vmatpush.bf16.msrb.mxu0 %v6271_v23  ;;  %3796 = vmatpush.bf16.msra.mxu2 %v5567_v27 }
 0x18a   :  { %v7513_v36 = vld [vmem:[#allocation8 + $0x60c] sm:$0xf]  ;;  %v5535_v47 = vor.u32 %v7449_v33, %v5532_v34  ;;  %3785 = vmatmul.bf16.vlgmr.msra.gmra.mxu1 %v8254_v9  ;;  %v8302_v23 = vadd.f32 %v3552_v13, %v3540_v12  ;;  %v3578_v33 = vpop.f32.mrf.mxu1 }
 0x18b   :  { %v5788_v39 = vld [vmem:[#allocation8 + $0x628] sm:$0xf0]  ;;  %3829 = vmatpush.bf16.msrb.mxu1 %v6527_v25  ;;  %3809 = vmatpush.bf16.msra.mxu3 %v5823_v32  ;;  %v3566_v32 = vadd.f32 %v3565_v28, %v877_v15  ;;  %v5250_v15 = vld [vmem:[#allocation8 + $0x1d0] sm:$0xf] }
 0x18c   :  { %v7761_v14 = vld [vmem:[#allocation8 + $0xdcc] sm:$0xf]  ;;  %v5791_v52 = vor.u32 %v7513_v36, %v5788_v39 }
 0x18d   :  { %v6780_v40 = vld [vmem:[#allocation8 + $0xde8] sm:$0xf0]  ;;  %3817 = vmatpush.bf16.msrb.mxu0 %v6239_v42  ;;  %3797 = vmatpush.bf16.msra.mxu2 %v5535_v47  ;;  %v3579_v41 = vadd.f32 %v3578_v33, %v3566_v32  ;;  %v3554_v51 = vpop.f32.mrf.mxu3  ;;  %v5218_v33 = vld [vmem:[#allocation8 + $0x190] sm:$0xf] }
 0x18e   :  { %v7825_v43 = vld [vmem:[#allocation8 + $0xfcc] sm:$0xf]  ;;  %v6783_v53 = vor.u32 %v7761_v14, %v6780_v40  ;;  %v6018_v51 = vld [vmem:[#allocation8 + $0x7d0] sm:$0xf] }
 0x18f   :  { %v7036_v45 = vld [vmem:[#allocation8 + $0xfe8] sm:$0xf0]  ;;  %3830 = vmatpush.bf16.msrb.mxu1 %v6495_v46  ;;  %3810 = vmatpush.bf16.msra.mxu3 %v5791_v52  ;;  %v3541_v46 = vpop.f32.mrf.mxu2 }
 0x190   :  { %v7617_v48 = vld [vmem:[#allocation8 + $0x94c] sm:$0xf]  ;;  %v7039_v58 = vor.u32 %v7825_v43, %v7036_v45  ;;  %3798 = vmatmul.bf16.vlgmr.msra.gmra.mxu2 %v8260_v38 }
 0x191   :  { %v6204_v49 = vld [vmem:[#allocation8 + $0x968] sm:$0xf0]  ;;  %3842 = vmatpush.bf16.msrb.mxu2 %v6783_v53 }
 0x192   :  { %v7681_v54 = vld [vmem:[#allocation8 + $0xb4c] sm:$0xf]  ;;  %v6207_v61 = vor.u32 %v7617_v48, %v6204_v49  ;;  %3811 = vmatmul.bf16.vlgmr.msra.gmra.mxu3 %v8262_v44 }
 0x193   :  { %v6460_v56 = vld [vmem:[#allocation8 + $0xb68] sm:$0xf0]  ;;  %3855 = vmatpush.bf16.msrb.mxu3 %v7039_v58 }
 0x194   :  { %v7753_v59 = vld [vmem:[#allocation8 + $0xd8c] sm:$0xf]  ;;  %v6463_v0 = vor.u32 %v7681_v54, %v6460_v56  ;;  %3818 = vmatpush.bf16.msrb.mxu0 %v6207_v61 }
 0x195   :  { %v6748_v60 = vld [vmem:[#allocation8 + $0xda8] sm:$0xf0] }
 0x196   :  { %v7817_v62 = vld [vmem:[#allocation8 + $0xf8c] sm:$0xf]  ;;  %v6751_v4 = vor.u32 %v7753_v59, %v6748_v60  ;;  %3831 = vmatpush.bf16.msrb.mxu1 %v6463_v0 }
 0x197   :  { %v7004_v63 = vld [vmem:[#allocation8 + $0xfa8] sm:$0xf0] }
 0x198   :  { %v7609_v1 = vld [vmem:[#allocation8 + $0x90c] sm:$0xf]  ;;  %v7007_v8 = vor.u32 %v7817_v62, %v7004_v63  ;;  %3843 = vmatpush.bf16.msrb.mxu2 %v6751_v4  ;;  %v3567_v62 = vpop.f32.mrf.mxu0 }
 0x199   :  { %v6172_v2 = vld [vmem:[#allocation8 + $0x928] sm:$0xf0] }
 0x19a   :  { %v7673_v5 = vld [vmem:[#allocation8 + $0xb0c] sm:$0xf]  ;;  %v6175_v16 = vor.u32 %v7609_v1, %v6172_v2  ;;  %3856 = vmatpush.bf16.msrb.mxu3 %v7007_v8  ;;  %v3580_v2 = vpop.f32.mrf.mxu1 }
 0x19b   :  { %v6428_v6 = vld [vmem:[#allocation8 + $0xb28] sm:$0xf0]  ;;  %v7502_v2 = vld [vmem:[#allocation8 + $0x5ac] sm:$0xf0] }
 0x19c   :  { %v7745_v10 = vld [vmem:[#allocation8 + $0xd4c] sm:$0xf]  ;;  %v6431_v20 = vor.u32 %v7673_v5, %v6428_v6  ;;  %3819 = vmatpush.bf16.msrb.mxu0 %v6175_v16  ;;  %v7382_v16 = vld [vmem:[#allocation8 + $0x1ec] sm:$0xf0] }
 0x19d   :  { %v6716_v11 = vld [vmem:[#allocation8 + $0xd68] sm:$0xf0]  ;;  %v5251_v32 = vor.u32 %v7382_v16, %v5250_v15  ;;  %v5698_v16 = vld [vmem:[#allocation8 + $0x550] sm:$0xf] }
 0x19e   :  { %v7809_v17 = vld [vmem:[#allocation8 + $0xf4c] sm:$0xf]  ;;  %v6719_v24 = vor.u32 %v7745_v10, %v6716_v11  ;;  %3832 = vmatpush.bf16.msrb.mxu1 %v6431_v20  ;;  %v7446_v20 = vld [vmem:[#allocation8 + $0x3ec] sm:$0xf0] }
 0x19f   :  { %v6972_v18 = vld [vmem:[#allocation8 + $0xf68] sm:$0xf0] }
 0x1a0   :  { %v7601_v21 = vld [vmem:[#allocation8 + $0x8cc] sm:$0xf]  ;;  %v6975_v29 = vor.u32 %v7809_v17, %v6972_v18  ;;  %3844 = vmatpush.bf16.msrb.mxu2 %v6719_v24  ;;  %v5506_v17 = vld [vmem:[#allocation8 + $0x3d0] sm:$0xf]  ;;  %v3591_v24 = vpop.f32.mrf.mxu2 }
 0x1a1   :  { %v6140_v22 = vld [vmem:[#allocation8 + $0x8e8] sm:$0xf0] }
 0x1a2   :  { %v7665_v25 = vld [vmem:[#allocation8 + $0xacc] sm:$0xf]  ;;  %v6143_v34 = vor.u32 %v7601_v21, %v6140_v22  ;;  %3857 = vmatpush.bf16.msrb.mxu3 %v6975_v29 }
 0x1a3   :  { %v6396_v27 = vld [vmem:[#allocation8 + $0xae8] sm:$0xf0] }
 0x1a4   :  { %v7737_v30 = vld [vmem:[#allocation8 + $0xd0c] sm:$0xf]  ;;  %v6399_v39 = vor.u32 %v7665_v25, %v6396_v27  ;;  %3820 = vmatpush.bf16.msrb.mxu0 %v6143_v34  ;;  %v3604_v25 = vpop.f32.mrf.mxu3  ;;  %v5507_v34 = vor.u32 %v7446_v20, %v5506_v17  ;;  %v7494_v17 = vld [vmem:[#allocation8 + $0x56c] sm:$0xf0] }
 0x1a5   :  { %v6684_v31 = vld [vmem:[#allocation8 + $0xd28] sm:$0xf0]  ;;  %v5954_v20 = vld [vmem:[#allocation8 + $0x750] sm:$0xf] }
 0x1a6   :  { %v7801_v36 = vld [vmem:[#allocation8 + $0xf0c] sm:$0xf]  ;;  %v6687_v42 = vor.u32 %v7737_v30, %v6684_v31  ;;  %3833 = vmatpush.bf16.msrb.mxu1 %v6399_v39  ;;  %v3592_v30 = vadd.f32 %v3591_v24, %v3579_v41  ;;  %v5474_v39 = vld [vmem:[#allocation8 + $0x390] sm:$0xf] }
 0x1a7   :  { %v6940_v37 = vld [vmem:[#allocation8 + $0xf28] sm:$0xf0]  ;;  %v5762_v41 = vld [vmem:[#allocation8 + $0x5d0] sm:$0xf] }
 0x1a8   :  { %v7593_v14 = vld [vmem:[#allocation8 + $0x88c] sm:$0xf]  ;;  %v6943_v47 = vor.u32 %v7801_v36, %v6940_v37  ;;  %3845 = vmatpush.bf16.msrb.mxu2 %v6687_v42  ;;  %v7374_v37 = vld [vmem:[#allocation8 + $0x1ac] sm:$0xf0]  ;;  %v3593_v62 = vpop.f32.mrf.mxu2 }
 0x1a9   :  { %v6108_v40 = vld [vmem:[#allocation8 + $0x8a8] sm:$0xf0]  ;;  %v5122_v24 = vld [vmem:[#allocation8 + $0xd0] sm:$0xf] }
 0x1aa   :  { %v7657_v43 = vld [vmem:[#allocation8 + $0xa8c] sm:$0xf]  ;;  %v6111_v52 = vor.u32 %v7593_v14, %v6108_v40  ;;  %3858 = vmatpush.bf16.msrb.mxu3 %v6943_v47  ;;  %v7438_v14 = vld [vmem:[#allocation8 + $0x3ac] sm:$0xf0]  ;;  %v8304_v40 = vadd.f32 %v3604_v25, %v3592_v30  ;;  %v3617_v30 = vpop.f32.mrf.mxu0 }
 0x1ab   :  { %v6364_v45 = vld [vmem:[#allocation8 + $0xaa8] sm:$0xf0]  ;;  %v7350_v25 = vld [vmem:[#allocation8 + $0xec] sm:$0xf0] }
 0x1ac   :  { %v7729_v48 = vld [vmem:[#allocation8 + $0xccc] sm:$0xf]  ;;  %v6367_v56 = vor.u32 %v7657_v43, %v6364_v45  ;;  %3821 = vmatpush.bf16.msrb.mxu0 %v6111_v52  ;;  %v7574_v52 = vld [vmem:[#allocation8 + $0x7ec] sm:$0xf0] }
 0x1ad   :  { %v6652_v49 = vld [vmem:[#allocation8 + $0xce8] sm:$0xf0] }
 0x1ae   :  { %v7793_v53 = vld [vmem:[#allocation8 + $0xecc] sm:$0xf]  ;;  %v6655_v59 = vor.u32 %v7729_v48, %v6652_v49  ;;  %3834 = vmatpush.bf16.msrb.mxu1 %v6367_v56  ;;  %v7510_v48 = vld [vmem:[#allocation8 + $0x5ec] sm:$0xf0]  ;;  %v5219_v49 = vor.u32 %v7374_v37, %v5218_v33  ;;  %v5123_v37 = vor.u32 %v7350_v25, %v5122_v24 }
 0x1af   :  { %v6908_v54 = vld [vmem:[#allocation8 + $0xee8] sm:$0xf0]  ;;  %v5186_v56 = vld [vmem:[#allocation8 + $0x150] sm:$0xf] }
 0x1b0   :  { %v7585_v57 = vld [vmem:[#allocation8 + $0x84c] sm:$0xf]  ;;  %v6911_v63 = vor.u32 %v7793_v53, %v6908_v54  ;;  %3846 = vmatpush.bf16.msrb.mxu2 %v6655_v59  ;;  %v5475_v53 = vor.u32 %v7438_v14, %v5474_v39  ;;  %v5763_v59 = vor.u32 %v7510_v48, %v5762_v41  ;;  %v7486_v33 = vld [vmem:[#allocation8 + $0x52c] sm:$0xf0] }
 0x1b1   :  { %v6076_v58 = vld [vmem:[#allocation8 + $0x868] sm:$0xf0]  ;;  %v5922_v39 = vld [vmem:[#allocation8 + $0x710] sm:$0xf] }
 0x1b2   :  { %v7649_v60 = vld [vmem:[#allocation8 + $0xa4c] sm:$0xf]  ;;  %v6079_v4 = vor.u32 %v7585_v57, %v6076_v58  ;;  %3859 = vmatpush.bf16.msrb.mxu3 %v6911_v63  ;;  %v7366_v57 = vld [vmem:[#allocation8 + $0x16c] sm:$0xf0]  ;;  %v3606_v63 = vpop.f32.mrf.mxu3  ;;  %v3619_v62 = vpop.f32.mrf.mxu0 }
 0x1b3   :  { %v6332_v61 = vld [vmem:[#allocation8 + $0xa68] sm:$0xf0]  ;;  %v7550_v14 = vld [vmem:[#allocation8 + $0x72c] sm:$0xf0] }
 0x1b4   :  { %v7721_v0 = vld [vmem:[#allocation8 + $0xc8c] sm:$0xf]  ;;  %v6335_v8 = vor.u32 %v7649_v60, %v6332_v61  ;;  %3822 = vmatpush.bf16.msrb.mxu0 %v6079_v4  ;;  %v5442_v60 = vld [vmem:[#allocation8 + $0x350] sm:$0xf]  ;;  %v5187_v4 = vor.u32 %v7366_v57, %v5186_v56 }
 0x1b5   :  { %v6620_v1 = vld [vmem:[#allocation8 + $0xca8] sm:$0xf0]  ;;  %v7430_v61 = vld [vmem:[#allocation8 + $0x36c] sm:$0xf0] }
 0x1b6   :  { %v7785_v5 = vld [vmem:[#allocation8 + $0xe8c] sm:$0xf]  ;;  %v6623_v13 = vor.u32 %v7721_v0, %v6620_v1  ;;  %3835 = vmatpush.bf16.msrb.mxu1 %v6335_v8  ;;  %v6019_v0 = vor.u32 %v7574_v52, %v6018_v51  ;;  %v5730_v1 = vld [vmem:[#allocation8 + $0x590] sm:$0xf] }
 0x1b7   :  { %v6876_v6 = vld [vmem:[#allocation8 + $0xea8] sm:$0xf0]  ;;  %v5154_v8 = vld [vmem:[#allocation8 + $0x110] sm:$0xf] }
 0x1b8   :  { %v7577_v7 = vld [vmem:[#allocation8 + $0x80c] sm:$0xf]  ;;  %v6879_v18 = vor.u32 %v7785_v5, %v6876_v6  ;;  %3847 = vmatpush.bf16.msrb.mxu2 %v6623_v13  ;;  %v5986_v5 = vld [vmem:[#allocation8 + $0x790] sm:$0xf] }
 0x1b9   :  { %v6044_v10 = vld [vmem:[#allocation8 + $0x828] sm:$0xf0]  ;;  %v7566_v6 = vld [vmem:[#allocation8 + $0x7ac] sm:$0xf0] }
 0x1ba   :  { %v7641_v11 = vld [vmem:[#allocation8 + $0xa0c] sm:$0xf]  ;;  %v6047_v27 = vor.u32 %v7577_v7, %v6044_v10  ;;  %3860 = vmatpush.bf16.msrb.mxu3 %v6879_v18  ;;  %v5443_v7 = vor.u32 %v7430_v61, %v5442_v60  ;;  %v7358_v10 = vld [vmem:[#allocation8 + $0x12c] sm:$0xf0]  ;;  %v5987_v15 = vor.u32 %v7566_v6, %v5986_v5 }
 0x1bb   :  { %v6300_v12 = vld [vmem:[#allocation8 + $0xa28] sm:$0xf0]  ;;  %v7422_v13 = vld [vmem:[#allocation8 + $0x32c] sm:$0xf0]  ;;  %v5155_v18 = vor.u32 %v7358_v10, %v5154_v8 }
 0x1bc   :  { %v7713_v21 = vld [vmem:[#allocation8 + $0xc4c] sm:$0xf]  ;;  %v6303_v31 = vor.u32 %v7641_v11, %v6300_v12  ;;  %3823 = vmatpush.bf16.msrb.mxu0 %v6047_v27  ;;  %v5731_v11 = vor.u32 %v7502_v2, %v5730_v1  ;;  %v5410_v12 = vld [vmem:[#allocation8 + $0x310] sm:$0xf]  ;;  %v5699_v27 = vor.u32 %v7494_v17, %v5698_v16 }
 0x1bd   :  { %v6588_v22 = vld [vmem:[#allocation8 + $0xc68] sm:$0xf0]  ;;  %v5346_v41 = vld [vmem:[#allocation8 + $0x290] sm:$0xf] }
 0x1be   :  { %v7777_v28 = vld [vmem:[#allocation8 + $0xe4c] sm:$0xf]  ;;  %v6591_v36 = vor.u32 %v7713_v21, %v6588_v22  ;;  %3836 = vmatpush.bf16.msrb.mxu1 %v6303_v31  ;;  %v7558_v21 = vld [vmem:[#allocation8 + $0x76c] sm:$0xf0]  ;;  %v5411_v22 = vor.u32 %v7422_v13, %v5410_v12 }
 0x1bf   :  { %v6844_v29 = vld [vmem:[#allocation8 + $0xe68] sm:$0xf0]  ;;  %3824 = vmatmul.bf16.vlgmr.msrb.gmra.mxu0 %v8266_v19  ;;  %v5955_v31 = vor.u32 %v7558_v21, %v5954_v20  ;;  %v7406_v48 = vld [vmem:[#allocation8 + $0x2ac] sm:$0xf0] }
 0x1c0   :  { %v6847_v42 = vor.u32 %v7777_v28, %v6844_v29  ;;  %v7705_v43 = vld [vmem:[#allocation8 + $0xc0c] sm:$0xf]  ;;  %3868 = vmatpush.bf16.msra.mxu0 %v5251_v32  ;;  %3848 = vmatpush.bf16.msrb.mxu2 %v6591_v36  ;;  %v5378_v28 = vld [vmem:[#allocation8 + $0x2d0] sm:$0xf]  ;;  %v3630_v36 = vpop.f32.mrf.mxu1  ;;  %v5347_v56 = vor.u32 %v7406_v48, %v5346_v41 }
 0x1c1   :  { %v6556_v45 = vld [vmem:[#allocation8 + $0xc28] sm:$0xf0]  ;;  %3837 = vmatmul.bf16.vlgmr.msrb.gmra.mxu1 %v8268_v26  ;;  %v7414_v29 = vld [vmem:[#allocation8 + $0x2ec] sm:$0xf0] }
 0x1c2   :  { %v7769_v46 = vld [vmem:[#allocation8 + $0xe0c] sm:$0xf]  ;;  %3881 = vmatpush.bf16.msra.mxu1 %v5507_v34  ;;  %v6559_v54 = vor.u32 %v7705_v43, %v6556_v45  ;;  %3861 = vmatpush.bf16.msrb.mxu3 %v6847_v42  ;;  %v5666_v32 = vld [vmem:[#allocation8 + $0x510] sm:$0xf]  ;;  %v3618_v34 = vadd.f32 %v3617_v30, %v8304_v40  ;;  %v5379_v42 = vor.u32 %v7414_v29, %v5378_v28 }
 0x1c3   :  { %v6812_v47 = vld [vmem:[#allocation8 + $0xe28] sm:$0xf0]  ;;  %v5090_v43 = vld [vmem:[#allocation8 + $0x90] sm:$0xf] }
 0x1c4   :  { %v6815_v58 = vor.u32 %v7769_v46, %v6812_v47  ;;  %3869 = vmatpush.bf16.msra.mxu0 %v5219_v49  ;;  %3849 = vmatpush.bf16.msrb.mxu2 %v6559_v54  ;;  %v7342_v45 = vld [vmem:[#allocation8 + $0xac] sm:$0xf0]  ;;  %v3631_v46 = vadd.f32 %v3630_v36, %v3618_v34  ;;  %v5667_v47 = vor.u32 %v7486_v33, %v5666_v32 }
 0x1c5   :  { %v5923_v49 = vor.u32 %v7550_v14, %v5922_v39  ;;  %v5634_v51 = vld [vmem:[#allocation8 + $0x4d0] sm:$0xf]  ;;  %v5091_v40 = vor.u32 %v7342_v45, %v5090_v43 }
 0x1c6   :  { %3882 = vmatpush.bf16.msra.mxu1 %v5475_v53  ;;  %3862 = vmatpush.bf16.msrb.mxu3 %v6815_v58  ;;  %v7478_v52 = vld [vmem:[#allocation8 + $0x4ec] sm:$0xf0] }
 0x1c7   :  { %3850 = vmatmul.bf16.vlgmr.msrb.gmra.mxu2 %v8272_v50  ;;  %v5890_v53 = vld [vmem:[#allocation8 + $0x6d0] sm:$0xf] }
 0x1c8   :  { %3894 = vmatpush.bf16.msra.mxu2 %v5763_v59  ;;  %3870 = vmatpush.bf16.msra.mxu0 %v5187_v4  ;;  %v7542_v54 = vld [vmem:[#allocation8 + $0x6ec] sm:$0xf0]  ;;  %v5635_v59 = vor.u32 %v7478_v52, %v5634_v51  ;;  %v3632_v2 = vpop.f32.mrf.mxu1 }
 0x1c9   :  { %3863 = vmatmul.bf16.vlgmr.msrb.gmra.mxu3 %v8274_v55  ;;  %v5058_v57 = vld [vmem:[#allocation8 + $0x50] sm:$0xf]  ;;  %v5891_v63 = vor.u32 %v7542_v54, %v5890_v53 }
 0x1ca   :  { %3907 = vmatpush.bf16.msra.mxu3 %v6019_v0  ;;  %3883 = vmatpush.bf16.msra.mxu1 %v5443_v7  ;;  %v7334_v58 = vld [vmem:[#allocation8 + $0x6c] sm:$0xf0] }
 0x1cb   :  { %v5314_v60 = vld [vmem:[#allocation8 + $0x250] sm:$0xf]  ;;  %v5059_v4 = vor.u32 %v7334_v58, %v5058_v57 }
 0x1cc   :  { %3895 = vmatpush.bf16.msra.mxu2 %v5731_v11  ;;  %3871 = vmatpush.bf16.msra.mxu0 %v5155_v18  ;;  %v7398_v61 = vld [vmem:[#allocation8 + $0x26c] sm:$0xf0]  ;;  %v3643_v18 = vpop.f32.mrf.mxu2 }
 0x1cd   :  { %v5602_v0 = vld [vmem:[#allocation8 + $0x490] sm:$0xf]  ;;  %v5315_v8 = vor.u32 %v7398_v61, %v5314_v60  ;;  %v3644_v25 = vadd.f32 %v3643_v18, %v3631_v46  ;;  %v878_v18 = vperm.slane %v8290_v35, 2 }
 0x1ce   :  { %3908 = vmatpush.bf16.msra.mxu3 %v5987_v15  ;;  %3884 = vmatpush.bf16.msra.mxu1 %v5411_v22  ;;  %v7470_v1 = vld [vmem:[#allocation8 + $0x4ac] sm:$0xf0] }
 0x1cf   :  { %v5858_v5 = vld [vmem:[#allocation8 + $0x690] sm:$0xf]  ;;  %v5603_v13 = vor.u32 %v7470_v1, %v5602_v0 }
 0x1d0   :  { %3896 = vmatpush.bf16.msra.mxu2 %v5699_v27  ;;  %3872 = vmatpush.bf16.msra.mxu0 %v5123_v37  ;;  %v7534_v6 = vld [vmem:[#allocation8 + $0x6ac] sm:$0xf0]  ;;  %v3656_v27 = vpop.f32.mrf.mxu3  ;;  %v3682_v35 = vpop.f32.mrf.mxu1 }
 0x1d1   :  { %v5026_v7 = vld [vmem:[#allocation8 + $0x10] sm:$0xf]  ;;  %v5859_v20 = vor.u32 %v7534_v6, %v5858_v5  ;;  %v8311_v34 = vadd.f32 %v3656_v27, %v3644_v25 }
 0x1d2   :  { %3909 = vmatpush.bf16.msra.mxu3 %v5955_v31  ;;  %3885 = vmatpush.bf16.msra.mxu1 %v5379_v42  ;;  %v7326_v10 = vld [vmem:[#allocation8 + $0x2c] sm:$0xf0] }
 0x1d3   :  { %v5282_v11 = vld [vmem:[#allocation8 + $0x210] sm:$0xf]  ;;  %v5027_v28 = vor.u32 %v7326_v10, %v5026_v7 }
 0x1d4   :  { %3897 = vmatpush.bf16.msra.mxu2 %v5667_v47  ;;  %3873 = vmatpush.bf16.msra.mxu0 %v5091_v40  ;;  %v7390_v12 = vld [vmem:[#allocation8 + $0x22c] sm:$0xf0]  ;;  %v3645_v58 = vpop.f32.mrf.mxu2 }
 0x1d5   :  { %v6274_v15 = vld [vmem:[#allocation8 + $0x9d0] sm:$0xf]  ;;  %v5283_v31 = vor.u32 %v7390_v12, %v5282_v11 }
 0x1d6   :  { %3910 = vmatpush.bf16.msra.mxu3 %v5923_v49  ;;  %3886 = vmatpush.bf16.msra.mxu1 %v5347_v56  ;;  %v7638_v16 = vld [vmem:[#allocation8 + $0x9ec] sm:$0xf0] }
 0x1d7   :  { %v6530_v17 = vld [vmem:[#allocation8 + $0xbd0] sm:$0xf]  ;;  %v6275_v32 = vor.u32 %v7638_v16, %v6274_v15 }
 0x1d8   :  { %3898 = vmatpush.bf16.msra.mxu2 %v5635_v59  ;;  %v7702_v21 = vld [vmem:[#allocation8 + $0xbec] sm:$0xf0]  ;;  %3874 = vmatpush.bf16.msra.mxu0 %v5059_v4 }
 0x1d9   :  { %v5570_v22 = vld [vmem:[#allocation8 + $0x450] sm:$0xf]  ;;  %v6531_v36 = vor.u32 %v7702_v21, %v6530_v17 }
 0x1da   :  { %3911 = vmatpush.bf16.msra.mxu3 %v5891_v63  ;;  %v7462_v24 = vld [vmem:[#allocation8 + $0x46c] sm:$0xf0]  ;;  %3887 = vmatpush.bf16.msra.mxu1 %v5315_v8  ;;  %v3658_v63 = vpop.f32.mrf.mxu3 }
 0x1db   :  { %v5826_v29 = vld [vmem:[#allocation8 + $0x650] sm:$0xf]  ;;  %v5571_v37 = vor.u32 %v7462_v24, %v5570_v22 }
 0x1dc   :  { %v7526_v30 = vld [vmem:[#allocation8 + $0x66c] sm:$0xf0]  ;;  %3899 = vmatpush.bf16.msra.mxu2 %v5603_v13  ;;  %3875 = vmatpush.bf16.msra.mxu0 %v5027_v28 }
 0x1dd   :  { %v6242_v33 = vld [vmem:[#allocation8 + $0x990] sm:$0xf]  ;;  %v5827_v43 = vor.u32 %v7526_v30, %v5826_v29 }
 0x1de   :  { %v7630_v39 = vld [vmem:[#allocation8 + $0x9ac] sm:$0xf0]  ;;  %3912 = vmatpush.bf16.msra.mxu3 %v5859_v20  ;;  %3888 = vmatpush.bf16.msra.mxu1 %v5283_v31  ;;  %v3669_v31 = vpop.f32.mrf.mxu0 }
 0x1df   :  { %v6498_v14 = vld [vmem:[#allocation8 + $0xb90] sm:$0xf]  ;;  %v6243_v51 = vor.u32 %v7630_v39, %v6242_v33  ;;  %3876 = vmatmul.bf16.vlgmr.msra.gmra.mxu0 %v8252_v3 }
 0x1e0   :  { %v7694_v42 = vld [vmem:[#allocation8 + $0xbac] sm:$0xf0]  ;;  %3920 = vmatpush.bf16.msrb.mxu0 %v6275_v32  ;;  %3900 = vmatpush.bf16.msra.mxu2 %v5571_v37  ;;  %v3670_v37 = vadd.f32 %v3669_v31, %v878_v18  ;;  %v7442_v18 = vld [vmem:[#allocation8 + $0x3d4] sm:$0xf] }
 0x1e1   :  { %v5538_v45 = vld [vmem:[#allocation8 + $0x410] sm:$0xf]  ;;  %v6499_v53 = vor.u32 %v7694_v42, %v6498_v14  ;;  %3889 = vmatmul.bf16.vlgmr.msra.gmra.mxu1 %v8254_v9 }
 0x1e2   :  { %v7454_v46 = vld [vmem:[#allocation8 + $0x42c] sm:$0xf0]  ;;  %3933 = vmatpush.bf16.msrb.mxu1 %v6531_v36  ;;  %3913 = vmatpush.bf16.msra.mxu3 %v5827_v43 }
 0x1e3   :  { %v5794_v47 = vld [vmem:[#allocation8 + $0x610] sm:$0xf]  ;;  %v5539_v54 = vor.u32 %v7454_v46, %v5538_v45 }
 0x1e4   :  { %v7518_v41 = vld [vmem:[#allocation8 + $0x62c] sm:$0xf0]  ;;  %3921 = vmatpush.bf16.msrb.mxu0 %v6243_v51 }
 0x1e5   :  { %v6786_v48 = vld [vmem:[#allocation8 + $0xdd0] sm:$0xf]  ;;  %v5795_v59 = vor.u32 %v7518_v41, %v5794_v47  ;;  %3901 = vmatpush.bf16.msra.mxu2 %v5539_v54  ;;  %v3683_v47 = vadd.f32 %v3682_v35, %v3670_v37 }
 0x1e6   :  { %v7766_v49 = vld [vmem:[#allocation8 + $0xdec] sm:$0xf0]  ;;  %3934 = vmatpush.bf16.msrb.mxu1 %v6499_v53  ;;  %v3671_v63 = vpop.f32.mrf.mxu0 }
 0x1e7   :  { %v7042_v52 = vld [vmem:[#allocation8 + $0xfd0] sm:$0xf]  ;;  %v6787_v60 = vor.u32 %v7766_v49, %v6786_v48  ;;  %3914 = vmatpush.bf16.msra.mxu3 %v5795_v59  ;;  %v5444_v63 = vld [vmem:[#allocation8 + $0x370] sm:$0xf0] }
 0x1e8   :  { %v7830_v40 = vld [vmem:[#allocation8 + $0xfec] sm:$0xf0]  ;;  %3902 = vmatmul.bf16.vlgmr.msra.gmra.mxu2 %v8260_v38 }
 0x1e9   :  { %v6210_v56 = vld [vmem:[#allocation8 + $0x950] sm:$0xf]  ;;  %v7043_v0 = vor.u32 %v7830_v40, %v7042_v52  ;;  %3946 = vmatpush.bf16.msrb.mxu2 %v6787_v60 }
 0x1ea   :  { %v7622_v57 = vld [vmem:[#allocation8 + $0x96c] sm:$0xf0]  ;;  %3915 = vmatmul.bf16.vlgmr.msra.gmra.mxu3 %v8262_v44 }
 0x1eb   :  { %v6466_v61 = vld [vmem:[#allocation8 + $0xb50] sm:$0xf]  ;;  %v6211_v4 = vor.u32 %v7622_v57, %v6210_v56  ;;  %3959 = vmatpush.bf16.msrb.mxu3 %v7043_v0 }
 0x1ec   :  { %v7686_v62 = vld [vmem:[#allocation8 + $0xb6c] sm:$0xf0] }
 0x1ed   :  { %v6754_v1 = vld [vmem:[#allocation8 + $0xd90] sm:$0xf]  ;;  %v6467_v7 = vor.u32 %v7686_v62, %v6466_v61  ;;  %3922 = vmatpush.bf16.msrb.mxu0 %v6211_v4  ;;  %v3684_v4 = vpop.f32.mrf.mxu1 }
 0x1ee   :  { %v7758_v2 = vld [vmem:[#allocation8 + $0xdac] sm:$0xf0]  ;;  %v5732_v4 = vld [vmem:[#allocation8 + $0x5b0] sm:$0xf0] }
 0x1ef   :  { %v7010_v5 = vld [vmem:[#allocation8 + $0xf90] sm:$0xf]  ;;  %v6755_v11 = vor.u32 %v7758_v2, %v6754_v1  ;;  %3935 = vmatpush.bf16.msrb.mxu1 %v6467_v7 }
 0x1f0   :  { %v7822_v6 = vld [vmem:[#allocation8 + $0xfac] sm:$0xf0] }
 0x1f1   :  { %v6178_v8 = vld [vmem:[#allocation8 + $0x910] sm:$0xf]  ;;  %v7011_v15 = vor.u32 %v7822_v6, %v7010_v5  ;;  %3947 = vmatpush.bf16.msrb.mxu2 %v6755_v11 }
 0x1f2   :  { %v7614_v10 = vld [vmem:[#allocation8 + $0x92c] sm:$0xf0] }
 0x1f3   :  { %v6434_v12 = vld [vmem:[#allocation8 + $0xb10] sm:$0xf]  ;;  %v6179_v20 = vor.u32 %v7614_v10, %v6178_v8  ;;  %3960 = vmatpush.bf16.msrb.mxu3 %v7011_v15 }
 0x1f4   :  { %v7678_v13 = vld [vmem:[#allocation8 + $0xb2c] sm:$0xf0] }
 0x1f5   :  { %v6722_v16 = vld [vmem:[#allocation8 + $0xd50] sm:$0xf]  ;;  %v6435_v24 = vor.u32 %v7678_v13, %v6434_v12  ;;  %3923 = vmatpush.bf16.msrb.mxu0 %v6179_v20  ;;  %v3695_v20 = vpop.f32.mrf.mxu2 }
 0x1f6   :  { %v7750_v17 = vld [vmem:[#allocation8 + $0xd6c] sm:$0xf0] }
 0x1f7   :  { %v6978_v21 = vld [vmem:[#allocation8 + $0xf50] sm:$0xf]  ;;  %v6723_v28 = vor.u32 %v7750_v17, %v6722_v16  ;;  %3936 = vmatpush.bf16.msrb.mxu1 %v6435_v24  ;;  %v7378_v16 = vld [vmem:[#allocation8 + $0x1d4] sm:$0xf] }
 0x1f8   :  { %v7814_v22 = vld [vmem:[#allocation8 + $0xf6c] sm:$0xf0]  ;;  %v5252_v17 = vld [vmem:[#allocation8 + $0x1f0] sm:$0xf0] }
 0x1f9   :  { %v6146_v25 = vld [vmem:[#allocation8 + $0x8d0] sm:$0xf]  ;;  %v6979_v32 = vor.u32 %v7814_v22, %v6978_v21  ;;  %3948 = vmatpush.bf16.msrb.mxu2 %v6723_v28  ;;  %v5508_v22 = vld [vmem:[#allocation8 + $0x3f0] sm:$0xf0]  ;;  %v3708_v28 = vpop.f32.mrf.mxu3 }
 0x1fa   :  { %v7606_v27 = vld [vmem:[#allocation8 + $0x8ec] sm:$0xf0]  ;;  %v5511_v35 = vor.u32 %v7442_v18, %v5508_v22  ;;  %v5700_v18 = vld [vmem:[#allocation8 + $0x570] sm:$0xf0] }
 0x1fb   :  { %v6402_v29 = vld [vmem:[#allocation8 + $0xad0] sm:$0xf]  ;;  %v6147_v39 = vor.u32 %v7606_v27, %v6146_v25  ;;  %3961 = vmatpush.bf16.msrb.mxu3 %v6979_v32  ;;  %v3696_v27 = vadd.f32 %v3695_v20, %v3683_v47  ;;  %v5956_v22 = vld [vmem:[#allocation8 + $0x770] sm:$0xf0] }
 0x1fc   :  { %v7670_v30 = vld [vmem:[#allocation8 + $0xaec] sm:$0xf0] }
 0x1fd   :  { %v6690_v33 = vld [vmem:[#allocation8 + $0xd10] sm:$0xf]  ;;  %v6403_v43 = vor.u32 %v7670_v30, %v6402_v29  ;;  %3924 = vmatpush.bf16.msrb.mxu0 %v6147_v39  ;;  %v8318_v37 = vadd.f32 %v3708_v28, %v3696_v27  ;;  %v5124_v27 = vld [vmem:[#allocation8 + $0xf0] sm:$0xf0] }
 0x1fe   :  { %v7742_v36 = vld [vmem:[#allocation8 + $0xd2c] sm:$0xf0] }
 0x1ff   :  { %v6946_v14 = vld [vmem:[#allocation8 + $0xf10] sm:$0xf]  ;;  %v6691_v41 = vor.u32 %v7742_v36, %v6690_v33  ;;  %3937 = vmatpush.bf16.msrb.mxu1 %v6403_v43  ;;  %v5255_v33 = vor.u32 %v7378_v16, %v5252_v17  ;;  %v7370_v36 = vld [vmem:[#allocation8 + $0x194] sm:$0xf] }
 0x200   :  { %v7806_v42 = vld [vmem:[#allocation8 + $0xf2c] sm:$0xf0]  ;;  %v5476_v43 = vld [vmem:[#allocation8 + $0x3b0] sm:$0xf0] }
 0x201   :  { %v6114_v45 = vld [vmem:[#allocation8 + $0x890] sm:$0xf]  ;;  %v6947_v51 = vor.u32 %v7806_v42, %v6946_v14  ;;  %3949 = vmatpush.bf16.msrb.mxu2 %v6691_v41  ;;  %v5220_v14 = vld [vmem:[#allocation8 + $0x1b0] sm:$0xf0] }
 0x202   :  { %v7598_v46 = vld [vmem:[#allocation8 + $0x8ac] sm:$0xf0]  ;;  %v7434_v42 = vld [vmem:[#allocation8 + $0x394] sm:$0xf] }
 0x203   :  { %v6370_v48 = vld [vmem:[#allocation8 + $0xa90] sm:$0xf]  ;;  %v6115_v53 = vor.u32 %v7598_v46, %v6114_v45  ;;  %3962 = vmatpush.bf16.msrb.mxu3 %v6947_v51  ;;  %v5764_v51 = vld [vmem:[#allocation8 + $0x5f0] sm:$0xf0] }
 0x204   :  { %v7662_v49 = vld [vmem:[#allocation8 + $0xaac] sm:$0xf0]  ;;  %v7490_v17 = vld [vmem:[#allocation8 + $0x554] sm:$0xf] }
 0x205   :  { %v6658_v52 = vld [vmem:[#allocation8 + $0xcd0] sm:$0xf]  ;;  %v6371_v57 = vor.u32 %v7662_v49, %v6370_v48  ;;  %3925 = vmatpush.bf16.msrb.mxu0 %v6115_v53  ;;  %v7506_v49 = vld [vmem:[#allocation8 + $0x5d4] sm:$0xf]  ;;  %v5703_v28 = vor.u32 %v7490_v17, %v5700_v18 }
 0x206   :  { %v7734_v40 = vld [vmem:[#allocation8 + $0xcec] sm:$0xf0]  ;;  %v6020_v53 = vld [vmem:[#allocation8 + $0x7f0] sm:$0xf0] }
 0x207   :  { %v6914_v54 = vld [vmem:[#allocation8 + $0xed0] sm:$0xf]  ;;  %v6659_v60 = vor.u32 %v7734_v40, %v6658_v52  ;;  %3938 = vmatpush.bf16.msrb.mxu1 %v6371_v57  ;;  %v5223_v52 = vor.u32 %v7370_v36, %v5220_v14  ;;  %v7570_v40 = vld [vmem:[#allocation8 + $0x7d4] sm:$0xf] }
 0x208   :  { %v7798_v56 = vld [vmem:[#allocation8 + $0xeec] sm:$0xf0]  ;;  %v7362_v57 = vld [vmem:[#allocation8 + $0x154] sm:$0xf] }
 0x209   :  { %v6082_v58 = vld [vmem:[#allocation8 + $0x850] sm:$0xf]  ;;  %v6915_v0 = vor.u32 %v7798_v56, %v6914_v54  ;;  %3950 = vmatpush.bf16.msrb.mxu2 %v6659_v60  ;;  %v5479_v54 = vor.u32 %v7434_v42, %v5476_v43  ;;  %v5668_v36 = vld [vmem:[#allocation8 + $0x530] sm:$0xf0] }
 0x20a   :  { %v7590_v59 = vld [vmem:[#allocation8 + $0x86c] sm:$0xf0]  ;;  %v7546_v42 = vld [vmem:[#allocation8 + $0x714] sm:$0xf] }
 0x20b   :  { %v6338_v61 = vld [vmem:[#allocation8 + $0xa50] sm:$0xf]  ;;  %v6083_v5 = vor.u32 %v7590_v59, %v6082_v58  ;;  %3963 = vmatpush.bf16.msrb.mxu3 %v6915_v0  ;;  %v5188_v58 = vld [vmem:[#allocation8 + $0x170] sm:$0xf0]  ;;  %v3697_v59 = vpop.f32.mrf.mxu2  ;;  %v3710_v0 = vpop.f32.mrf.mxu3 }
 0x20c   :  { %v7654_v62 = vld [vmem:[#allocation8 + $0xa6c] sm:$0xf0]  ;;  %v5924_v43 = vld [vmem:[#allocation8 + $0x730] sm:$0xf0] }
 0x20d   :  { %v6626_v1 = vld [vmem:[#allocation8 + $0xc90] sm:$0xf]  ;;  %v6339_v10 = vor.u32 %v7654_v62, %v6338_v61  ;;  %3926 = vmatpush.bf16.msrb.mxu0 %v6083_v5  ;;  %v5767_v61 = vor.u32 %v7506_v49, %v5764_v51  ;;  %v7426_v62 = vld [vmem:[#allocation8 + $0x354] sm:$0xf]  ;;  %v5191_v5 = vor.u32 %v7362_v57, %v5188_v58 }
 0x20e   :  { %v7726_v2 = vld [vmem:[#allocation8 + $0xcac] sm:$0xf0]  ;;  %v7402_v49 = vld [vmem:[#allocation8 + $0x294] sm:$0xf] }
 0x20f   :  { %v6882_v6 = vld [vmem:[#allocation8 + $0xe90] sm:$0xf]  ;;  %v6627_v15 = vor.u32 %v7726_v2, %v6626_v1  ;;  %3939 = vmatpush.bf16.msrb.mxu1 %v6339_v10  ;;  %v6023_v1 = vor.u32 %v7570_v40, %v6020_v53  ;;  %v7498_v2 = vld [vmem:[#allocation8 + $0x594] sm:$0xf] }
 0x210   :  { %v7790_v7 = vld [vmem:[#allocation8 + $0xeac] sm:$0xf0]  ;;  %v7354_v10 = vld [vmem:[#allocation8 + $0x114] sm:$0xf] }
 0x211   :  { %v6050_v8 = vld [vmem:[#allocation8 + $0x810] sm:$0xf]  ;;  %v6883_v21 = vor.u32 %v7790_v7, %v6882_v6  ;;  %3951 = vmatpush.bf16.msrb.mxu2 %v6627_v15  ;;  %v7562_v6 = vld [vmem:[#allocation8 + $0x794] sm:$0xf] }
 0x212   :  { %v7582_v11 = vld [vmem:[#allocation8 + $0x82c] sm:$0xf0]  ;;  %v5988_v7 = vld [vmem:[#allocation8 + $0x7b0] sm:$0xf0] }
 0x213   :  { %v6306_v12 = vld [vmem:[#allocation8 + $0xa10] sm:$0xf]  ;;  %v6051_v29 = vor.u32 %v7582_v11, %v6050_v8  ;;  %3964 = vmatpush.bf16.msrb.mxu3 %v6883_v21  ;;  %v5447_v8 = vor.u32 %v7426_v62, %v5444_v63  ;;  %v5156_v11 = vld [vmem:[#allocation8 + $0x130] sm:$0xf0]  ;;  %v5991_v16 = vor.u32 %v7562_v6, %v5988_v7 }
 0x214   :  { %v7646_v13 = vld [vmem:[#allocation8 + $0xa2c] sm:$0xf0]  ;;  %v5412_v15 = vld [vmem:[#allocation8 + $0x330] sm:$0xf0]  ;;  %v5159_v20 = vor.u32 %v7354_v10, %v5156_v11 }
 0x215   :  { %v6594_v24 = vld [vmem:[#allocation8 + $0xc50] sm:$0xf]  ;;  %v6307_v32 = vor.u32 %v7646_v13, %v6306_v12  ;;  %3927 = vmatpush.bf16.msrb.mxu0 %v6051_v29  ;;  %v5735_v12 = vor.u32 %v7498_v2, %v5732_v4  ;;  %v7418_v13 = vld [vmem:[#allocation8 + $0x314] sm:$0xf] }
 0x216   :  { %v7718_v25 = vld [vmem:[#allocation8 + $0xc6c] sm:$0xf0]  ;;  %v7554_v21 = vld [vmem:[#allocation8 + $0x754] sm:$0xf] }
 0x217   :  { %v6850_v30 = vld [vmem:[#allocation8 + $0xe50] sm:$0xf]  ;;  %v6595_v39 = vor.u32 %v7718_v25, %v6594_v24  ;;  %3940 = vmatpush.bf16.msrb.mxu1 %v6307_v32  ;;  %v5415_v24 = vor.u32 %v7418_v13, %v5412_v15  ;;  %v7346_v25 = vld [vmem:[#allocation8 + $0xd4] sm:$0xf]  ;;  %v5959_v32 = vor.u32 %v7554_v21, %v5956_v22 }
 0x218   :  { %v7782_v31 = vld [vmem:[#allocation8 + $0xe6c] sm:$0xf0]  ;;  %3928 = vmatmul.bf16.vlgmr.msrb.gmra.mxu0 %v8266_v19  ;;  %v7410_v29 = vld [vmem:[#allocation8 + $0x2d4] sm:$0xf]  ;;  %v5127_v14 = vor.u32 %v7346_v25, %v5124_v27 }
 0x219   :  { %v6851_v45 = vor.u32 %v7782_v31, %v6850_v30  ;;  %v6562_v46 = vld [vmem:[#allocation8 + $0xc10] sm:$0xf]  ;;  %3972 = vmatpush.bf16.msra.mxu0 %v5255_v33  ;;  %3952 = vmatpush.bf16.msrb.mxu2 %v6595_v39  ;;  %v5380_v30 = vld [vmem:[#allocation8 + $0x2f0] sm:$0xf0]  ;;  %v3721_v31 = vpop.f32.mrf.mxu0  ;;  %v3734_v39 = vpop.f32.mrf.mxu1 }
 0x21a   :  { %v7710_v47 = vld [vmem:[#allocation8 + $0xc2c] sm:$0xf0]  ;;  %3941 = vmatmul.bf16.vlgmr.msrb.gmra.mxu1 %v8268_v26  ;;  %v7482_v33 = vld [vmem:[#allocation8 + $0x514] sm:$0xf] }
 0x21b   :  { %v6818_v41 = vld [vmem:[#allocation8 + $0xe10] sm:$0xf]  ;;  %3985 = vmatpush.bf16.msra.mxu1 %v5511_v35  ;;  %v6563_v56 = vor.u32 %v7710_v47, %v6562_v46  ;;  %3965 = vmatpush.bf16.msrb.mxu3 %v6851_v45  ;;  %v3722_v35 = vadd.f32 %v3721_v31, %v8318_v37  ;;  %v5383_v45 = vor.u32 %v7410_v29, %v5380_v30  ;;  %v7338_v46 = vld [vmem:[#allocation8 + $0x94] sm:$0xf] }
 0x21c   :  { %v7774_v48 = vld [vmem:[#allocation8 + $0xe2c] sm:$0xf0]  ;;  %v5092_v47 = vld [vmem:[#allocation8 + $0xb0] sm:$0xf0] }
 0x21d   :  { %v6819_v60 = vor.u32 %v7774_v48, %v6818_v41  ;;  %3973 = vmatpush.bf16.msra.mxu0 %v5223_v52  ;;  %3953 = vmatpush.bf16.msrb.mxu2 %v6563_v56  ;;  %v3735_v41 = vadd.f32 %v3734_v39, %v3722_v35  ;;  %v5671_v48 = vor.u32 %v7482_v33, %v5668_v36  ;;  %v5348_v51 = vld [vmem:[#allocation8 + $0x2b0] sm:$0xf0] }
 0x21e   :  { %v5927_v52 = vor.u32 %v7546_v42, %v5924_v43  ;;  %v7474_v40 = vld [vmem:[#allocation8 + $0x4d4] sm:$0xf]  ;;  %v5095_v37 = vor.u32 %v7338_v46, %v5092_v47  ;;  %v5351_v57 = vor.u32 %v7402_v49, %v5348_v51 }
 0x21f   :  { %3986 = vmatpush.bf16.msra.mxu1 %v5479_v54  ;;  %3966 = vmatpush.bf16.msrb.mxu3 %v6819_v60  ;;  %v5636_v53 = vld [vmem:[#allocation8 + $0x4f0] sm:$0xf0] }
 0x220   :  { %3954 = vmatmul.bf16.vlgmr.msrb.gmra.mxu2 %v8272_v50  ;;  %v7538_v54 = vld [vmem:[#allocation8 + $0x6d4] sm:$0xf]  ;;  %v5639_v60 = vor.u32 %v7474_v40, %v5636_v53 }
 0x221   :  { %3998 = vmatpush.bf16.msra.mxu2 %v5767_v61  ;;  %3974 = vmatpush.bf16.msra.mxu0 %v5191_v5  ;;  %v5892_v56 = vld [vmem:[#allocation8 + $0x6f0] sm:$0xf0]  ;;  %v3723_v63 = vpop.f32.mrf.mxu0  ;;  %v3736_v4 = vpop.f32.mrf.mxu1 }
 0x222   :  { %3967 = vmatmul.bf16.vlgmr.msrb.gmra.mxu3 %v8274_v55  ;;  %v7330_v58 = vld [vmem:[#allocation8 + $0x54] sm:$0xf]  ;;  %v5895_v0 = vor.u32 %v7538_v54, %v5892_v56 }
 0x223   :  { %4011 = vmatpush.bf16.msra.mxu3 %v6023_v1  ;;  %3987 = vmatpush.bf16.msra.mxu1 %v5447_v8  ;;  %v5060_v59 = vld [vmem:[#allocation8 + $0x70] sm:$0xf0] }
 0x224   :  { %v7394_v61 = vld [vmem:[#allocation8 + $0x254] sm:$0xf]  ;;  %v5063_v5 = vor.u32 %v7330_v58, %v5060_v59 }
 0x225   :  { %3999 = vmatpush.bf16.msra.mxu2 %v5735_v12  ;;  %3975 = vmatpush.bf16.msra.mxu0 %v5159_v20  ;;  %v5316_v62 = vld [vmem:[#allocation8 + $0x270] sm:$0xf0]  ;;  %v3747_v20 = vpop.f32.mrf.mxu2 }
 0x226   :  { %v7466_v1 = vld [vmem:[#allocation8 + $0x494] sm:$0xf]  ;;  %v5319_v10 = vor.u32 %v7394_v61, %v5316_v62  ;;  %v3748_v27 = vadd.f32 %v3747_v20, %v3735_v41  ;;  %v8330_v20 = vld [vmem:[#allocation10] sm:$0xff] }
 0x227   :  { %4012 = vmatpush.bf16.msra.mxu3 %v5991_v16  ;;  %3988 = vmatpush.bf16.msra.mxu1 %v5415_v24  ;;  %v5604_v2 = vld [vmem:[#allocation8 + $0x4b0] sm:$0xf0] }
 0x228   :  { %v7530_v6 = vld [vmem:[#allocation8 + $0x694] sm:$0xf]  ;;  %v5607_v15 = vor.u32 %v7466_v1, %v5604_v2 }
 0x229   :  { %4000 = vmatpush.bf16.msra.mxu2 %v5703_v28  ;;  %3976 = vmatpush.bf16.msra.mxu0 %v5127_v14  ;;  %v5860_v7 = vld [vmem:[#allocation8 + $0x6b0] sm:$0xf0]  ;;  %v3760_v28 = vpop.f32.mrf.mxu3 }
 0x22a   :  { %v7322_v8 = vld [vmem:[#allocation8 + $0x14] sm:$0xf]  ;;  %v5863_v21 = vor.u32 %v7530_v6, %v5860_v7  ;;  %v8325_v35 = vadd.f32 %v3760_v28, %v3748_v27 }
 0x22b   :  { %4013 = vmatpush.bf16.msra.mxu3 %v5959_v32  ;;  %3989 = vmatpush.bf16.msra.mxu1 %v5383_v45  ;;  %v5028_v11 = vld [vmem:[#allocation8 + $0x30] sm:$0xf0] }
 0x22c   :  { %v7386_v12 = vld [vmem:[#allocation8 + $0x214] sm:$0xf]  ;;  %v5031_v29 = vor.u32 %v7322_v8, %v5028_v11 }
 0x22d   :  { %4001 = vmatpush.bf16.msra.mxu2 %v5671_v48  ;;  %3977 = vmatpush.bf16.msra.mxu0 %v5095_v37  ;;  %v5284_v13 = vld [vmem:[#allocation8 + $0x230] sm:$0xf0]  ;;  %v3749_v59 = vpop.f32.mrf.mxu2 }
 0x22e   :  { %v7634_v16 = vld [vmem:[#allocation8 + $0x9d4] sm:$0xf]  ;;  %v5287_v32 = vor.u32 %v7386_v12, %v5284_v13 }
 0x22f   :  { %4014 = vmatpush.bf16.msra.mxu3 %v5927_v52  ;;  %3990 = vmatpush.bf16.msra.mxu1 %v5351_v57  ;;  %v6276_v17 = vld [vmem:[#allocation8 + $0x9f0] sm:$0xf0] }
 0x230   :  { %v7698_v18 = vld [vmem:[#allocation8 + $0xbd4] sm:$0xf]  ;;  %v6279_v33 = vor.u32 %v7634_v16, %v6276_v17 }
 0x231   :  { %4002 = vmatpush.bf16.msra.mxu2 %v5639_v60  ;;  %v6532_v22 = vld [vmem:[#allocation8 + $0xbf0] sm:$0xf0]  ;;  %3978 = vmatpush.bf16.msra.mxu0 %v5063_v5 }
 0x232   :  { %v7458_v24 = vld [vmem:[#allocation8 + $0x454] sm:$0xf]  ;;  %v6535_v39 = vor.u32 %v7698_v18, %v6532_v22 }
 0x233   :  { %4015 = vmatpush.bf16.msra.mxu3 %v5895_v0  ;;  %v5572_v25 = vld [vmem:[#allocation8 + $0x470] sm:$0xf0]  ;;  %3991 = vmatpush.bf16.msra.mxu1 %v5319_v10  ;;  %v3762_v0 = vpop.f32.mrf.mxu3 }
 0x234   :  { %v7522_v30 = vld [vmem:[#allocation8 + $0x654] sm:$0xf]  ;;  %v5575_v14 = vor.u32 %v7458_v24, %v5572_v25 }
 0x235   :  { %v5828_v31 = vld [vmem:[#allocation8 + $0x670] sm:$0xf0]  ;;  %4003 = vmatpush.bf16.msra.mxu2 %v5607_v15  ;;  %3979 = vmatpush.bf16.msra.mxu0 %v5031_v29 }
 0x236   :  { %v7626_v36 = vld [vmem:[#allocation8 + $0x994] sm:$0xf]  ;;  %v5831_v46 = vor.u32 %v7522_v30, %v5828_v31 }
 0x237   :  { %v6244_v42 = vld [vmem:[#allocation8 + $0x9b0] sm:$0xf0]  ;;  %4016 = vmatpush.bf16.msra.mxu3 %v5863_v21  ;;  %3992 = vmatpush.bf16.msra.mxu1 %v5287_v32  ;;  %v879_v21 = vperm.slane %v8330_v20, 3 }
 0x238   :  { %v7690_v43 = vld [vmem:[#allocation8 + $0xb94] sm:$0xf]  ;;  %v6247_v40 = vor.u32 %v7626_v36, %v6244_v42  ;;  %3980 = vmatmul.bf16.vlgmr.msra.gmra.mxu0 %v8252_v3 }
 0x239   :  { %v6500_v45 = vld [vmem:[#allocation8 + $0xbb0] sm:$0xf0]  ;;  %4024 = vmatpush.bf16.msrb.mxu0 %v6279_v33  ;;  %4004 = vmatpush.bf16.msra.mxu2 %v5575_v14  ;;  %v3773_v33 = vpop.f32.mrf.mxu0 }
 0x23a   :  { %v7450_v47 = vld [vmem:[#allocation8 + $0x414] sm:$0xf]  ;;  %v6503_v54 = vor.u32 %v7690_v43, %v6500_v45  ;;  %3993 = vmatmul.bf16.vlgmr.msra.gmra.mxu1 %v8254_v9  ;;  %v3774_v42 = vadd.f32 %v3773_v33, %v879_v21  ;;  %v3786_v43 = vpop.f32.mrf.mxu1  ;;  %v5258_v21 = vld [vmem:[#allocation8 + $0x1d8] sm:$0xf] }
 0x23b   :  { %v5540_v41 = vld [vmem:[#allocation8 + $0x430] sm:$0xf0]  ;;  %4037 = vmatpush.bf16.msrb.mxu1 %v6535_v39  ;;  %4017 = vmatpush.bf16.msra.mxu3 %v5831_v46 }
 0x23c   :  { %v7514_v48 = vld [vmem:[#allocation8 + $0x614] sm:$0xf]  ;;  %v5543_v56 = vor.u32 %v7450_v47, %v5540_v41 }
 0x23d   :  { %v5796_v49 = vld [vmem:[#allocation8 + $0x630] sm:$0xf0]  ;;  %4025 = vmatpush.bf16.msrb.mxu0 %v6247_v40 }
 0x23e   :  { %v7762_v51 = vld [vmem:[#allocation8 + $0xdd4] sm:$0xf]  ;;  %v5799_v60 = vor.u32 %v7514_v48, %v5796_v49  ;;  %4005 = vmatpush.bf16.msra.mxu2 %v5543_v56 }
 0x23f   :  { %v6788_v52 = vld [vmem:[#allocation8 + $0xdf0] sm:$0xf0]  ;;  %4038 = vmatpush.bf16.msrb.mxu1 %v6503_v54 }
 0x240   :  { %v7826_v53 = vld [vmem:[#allocation8 + $0xfd4] sm:$0xf]  ;;  %v6791_v61 = vor.u32 %v7762_v51, %v6788_v52  ;;  %4018 = vmatpush.bf16.msra.mxu3 %v5799_v60  ;;  %v3787_v51 = vadd.f32 %v3786_v43, %v3774_v42  ;;  %v5226_v43 = vld [vmem:[#allocation8 + $0x198] sm:$0xf] }
 0x241   :  { %v7044_v37 = vld [vmem:[#allocation8 + $0xff0] sm:$0xf0]  ;;  %4006 = vmatmul.bf16.vlgmr.msra.gmra.mxu2 %v8260_v38 }
 0x242   :  { %v7618_v57 = vld [vmem:[#allocation8 + $0x954] sm:$0xf]  ;;  %v7047_v1 = vor.u32 %v7826_v53, %v7044_v37  ;;  %4050 = vmatpush.bf16.msrb.mxu2 %v6791_v61 }
 0x243   :  { %v6212_v58 = vld [vmem:[#allocation8 + $0x970] sm:$0xf0]  ;;  %4019 = vmatmul.bf16.vlgmr.msra.gmra.mxu3 %v8262_v44 }
 0x244   :  { %v7682_v62 = vld [vmem:[#allocation8 + $0xb54] sm:$0xf]  ;;  %v6215_v5 = vor.u32 %v7618_v57, %v6212_v58  ;;  %4063 = vmatpush.bf16.msrb.mxu3 %v7047_v1 }
 0x245   :  { %v6468_v63 = vld [vmem:[#allocation8 + $0xb70] sm:$0xf0] }
 0x246   :  { %v7754_v2 = vld [vmem:[#allocation8 + $0xd94] sm:$0xf]  ;;  %v6471_v8 = vor.u32 %v7682_v62, %v6468_v63  ;;  %4026 = vmatpush.bf16.msrb.mxu0 %v6215_v5 }
 0x247   :  { %v6756_v4 = vld [vmem:[#allocation8 + $0xdb0] sm:$0xf0] }
 0x248   :  { %v7818_v6 = vld [vmem:[#allocation8 + $0xf94] sm:$0xf]  ;;  %v6759_v12 = vor.u32 %v7754_v2, %v6756_v4  ;;  %4039 = vmatpush.bf16.msrb.mxu1 %v6471_v8  ;;  %v3775_v2 = vpop.f32.mrf.mxu0 }
 0x249   :  { %v7012_v7 = vld [vmem:[#allocation8 + $0xfb0] sm:$0xf0] }
 0x24a   :  { %v7610_v10 = vld [vmem:[#allocation8 + $0x914] sm:$0xf]  ;;  %v7015_v16 = vor.u32 %v7818_v6, %v7012_v7  ;;  %4051 = vmatpush.bf16.msrb.mxu2 %v6759_v12  ;;  %v3788_v7 = vpop.f32.mrf.mxu1 }
 0x24b   :  { %v6180_v11 = vld [vmem:[#allocation8 + $0x930] sm:$0xf0] }
 0x24c   :  { %v7674_v13 = vld [vmem:[#allocation8 + $0xb14] sm:$0xf]  ;;  %v6183_v22 = vor.u32 %v7610_v10, %v6180_v11  ;;  %4064 = vmatpush.bf16.msrb.mxu3 %v7015_v16 }
 0x24d   :  { %v6436_v15 = vld [vmem:[#allocation8 + $0xb30] sm:$0xf0] }
 0x24e   :  { %v7746_v17 = vld [vmem:[#allocation8 + $0xd54] sm:$0xf]  ;;  %v6439_v27 = vor.u32 %v7674_v13, %v6436_v15  ;;  %4027 = vmatpush.bf16.msrb.mxu0 %v6183_v22  ;;  %v7383_v22 = vld [vmem:[#allocation8 + $0x1f4] sm:$0xf0] }
 0x24f   :  { %v6724_v18 = vld [vmem:[#allocation8 + $0xd70] sm:$0xf0]  ;;  %v5259_v42 = vor.u32 %v7383_v22, %v5258_v21  ;;  %v5418_v21 = vld [vmem:[#allocation8 + $0x318] sm:$0xf] }
 0x250   :  { %v7810_v24 = vld [vmem:[#allocation8 + $0xf54] sm:$0xf]  ;;  %v6727_v30 = vor.u32 %v7746_v17, %v6724_v18  ;;  %4040 = vmatpush.bf16.msrb.mxu1 %v6439_v27  ;;  %v7423_v22 = vld [vmem:[#allocation8 + $0x334] sm:$0xf0] }
 0x251   :  { %v6980_v25 = vld [vmem:[#allocation8 + $0xf70] sm:$0xf0] }
 0x252   :  { %v7602_v28 = vld [vmem:[#allocation8 + $0x8d4] sm:$0xf]  ;;  %v6983_v36 = vor.u32 %v7810_v24, %v6980_v25  ;;  %4052 = vmatpush.bf16.msrb.mxu2 %v6727_v30  ;;  %v5514_v24 = vld [vmem:[#allocation8 + $0x3d8] sm:$0xf]  ;;  %v3799_v25 = vpop.f32.mrf.mxu2 }
 0x253   :  { %v6148_v29 = vld [vmem:[#allocation8 + $0x8f0] sm:$0xf0] }
 0x254   :  { %v7666_v31 = vld [vmem:[#allocation8 + $0xad4] sm:$0xf]  ;;  %v6151_v45 = vor.u32 %v7602_v28, %v6148_v29  ;;  %4065 = vmatpush.bf16.msrb.mxu3 %v6983_v36  ;;  %v7447_v28 = vld [vmem:[#allocation8 + $0x3f4] sm:$0xf0] }
 0x255   :  { %v6404_v32 = vld [vmem:[#allocation8 + $0xaf0] sm:$0xf0] }
 0x256   :  { %v7738_v39 = vld [vmem:[#allocation8 + $0xd14] sm:$0xf]  ;;  %v6407_v41 = vor.u32 %v7666_v31, %v6404_v32  ;;  %4028 = vmatpush.bf16.msrb.mxu0 %v6151_v45  ;;  %v3800_v31 = vadd.f32 %v3799_v25, %v3787_v51  ;;  %v3812_v32 = vpop.f32.mrf.mxu3  ;;  %v5706_v25 = vld [vmem:[#allocation8 + $0x558] sm:$0xf] }
 0x257   :  { %v6692_v14 = vld [vmem:[#allocation8 + $0xd30] sm:$0xf0] }
 0x258   :  { %v7802_v46 = vld [vmem:[#allocation8 + $0xf14] sm:$0xf]  ;;  %v6695_v52 = vor.u32 %v7738_v39, %v6692_v14  ;;  %4041 = vmatpush.bf16.msrb.mxu1 %v6407_v41  ;;  %v8334_v45 = vadd.f32 %v3812_v32, %v3800_v31  ;;  %v7375_v41 = vld [vmem:[#allocation8 + $0x1b4] sm:$0xf0]  ;;  %v5419_v31 = vor.u32 %v7423_v22, %v5418_v21 }
 0x259   :  { %v6948_v47 = vld [vmem:[#allocation8 + $0xf30] sm:$0xf0]  ;;  %v5130_v32 = vld [vmem:[#allocation8 + $0xd8] sm:$0xf] }
 0x25a   :  { %v7594_v48 = vld [vmem:[#allocation8 + $0x894] sm:$0xf]  ;;  %v6951_v37 = vor.u32 %v7802_v46, %v6948_v47  ;;  %4053 = vmatpush.bf16.msrb.mxu2 %v6695_v52  ;;  %v5515_v46 = vor.u32 %v7447_v28, %v5514_v24  ;;  %v7327_v21 = vld [vmem:[#allocation8 + $0x34] sm:$0xf0] }
 0x25b   :  { %v6116_v49 = vld [vmem:[#allocation8 + $0x8b0] sm:$0xf0]  ;;  %v5290_v22 = vld [vmem:[#allocation8 + $0x218] sm:$0xf] }
 0x25c   :  { %v7658_v40 = vld [vmem:[#allocation8 + $0xa94] sm:$0xf]  ;;  %v6119_v57 = vor.u32 %v7594_v48, %v6116_v49  ;;  %4066 = vmatpush.bf16.msrb.mxu3 %v6951_v37  ;;  %v5482_v48 = vld [vmem:[#allocation8 + $0x398] sm:$0xf] }
 0x25d   :  { %v6372_v53 = vld [vmem:[#allocation8 + $0xab0] sm:$0xf0]  ;;  %v7439_v49 = vld [vmem:[#allocation8 + $0x3b4] sm:$0xf0] }
 0x25e   :  { %v7730_v54 = vld [vmem:[#allocation8 + $0xcd4] sm:$0xf]  ;;  %v6375_v60 = vor.u32 %v7658_v40, %v6372_v53  ;;  %4029 = vmatpush.bf16.msrb.mxu0 %v6119_v57  ;;  %v5227_v57 = vor.u32 %v7375_v41, %v5226_v43 }
 0x25f   :  { %v6660_v56 = vld [vmem:[#allocation8 + $0xcf0] sm:$0xf0] }
 0x260   :  { %v7794_v58 = vld [vmem:[#allocation8 + $0xed4] sm:$0xf]  ;;  %v6663_v63 = vor.u32 %v7730_v54, %v6660_v56  ;;  %4042 = vmatpush.bf16.msrb.mxu1 %v6375_v60  ;;  %v5770_v54 = vld [vmem:[#allocation8 + $0x5d8] sm:$0xf]  ;;  %v5483_v60 = vor.u32 %v7439_v49, %v5482_v48  ;;  %v3838_v48 = vpop.f32.mrf.mxu1 }
 0x261   :  { %v6916_v59 = vld [vmem:[#allocation8 + $0xef0] sm:$0xf0]  ;;  %v7511_v56 = vld [vmem:[#allocation8 + $0x5f4] sm:$0xf0] }
 0x262   :  { %v7586_v61 = vld [vmem:[#allocation8 + $0x854] sm:$0xf]  ;;  %v6919_v4 = vor.u32 %v7794_v58, %v6916_v59  ;;  %4054 = vmatpush.bf16.msrb.mxu2 %v6663_v63  ;;  %v6026_v58 = vld [vmem:[#allocation8 + $0x7d8] sm:$0xf]  ;;  %v5771_v2 = vor.u32 %v7511_v56, %v5770_v54 }
 0x263   :  { %v6084_v62 = vld [vmem:[#allocation8 + $0x870] sm:$0xf0]  ;;  %v7575_v59 = vld [vmem:[#allocation8 + $0x7f4] sm:$0xf0] }
 0x264   :  { %v7650_v0 = vld [vmem:[#allocation8 + $0xa54] sm:$0xf]  ;;  %v6087_v8 = vor.u32 %v7586_v61, %v6084_v62  ;;  %4067 = vmatpush.bf16.msrb.mxu3 %v6919_v4  ;;  %v5194_v62 = vld [vmem:[#allocation8 + $0x158] sm:$0xf]  ;;  %v6027_v7 = vor.u32 %v7575_v59, %v6026_v58 }
 0x265   :  { %v6340_v1 = vld [vmem:[#allocation8 + $0xa70] sm:$0xf0]  ;;  %v7367_v63 = vld [vmem:[#allocation8 + $0x174] sm:$0xf0] }
 0x266   :  { %v7722_v5 = vld [vmem:[#allocation8 + $0xc94] sm:$0xf]  ;;  %v6343_v13 = vor.u32 %v7650_v0, %v6340_v1  ;;  %4030 = vmatpush.bf16.msrb.mxu0 %v6087_v8  ;;  %v3801_v0 = vpop.f32.mrf.mxu2  ;;  %v5450_v4 = vld [vmem:[#allocation8 + $0x358] sm:$0xf] }
 0x267   :  { %v6628_v6 = vld [vmem:[#allocation8 + $0xcb0] sm:$0xf0]  ;;  %v5738_v8 = vld [vmem:[#allocation8 + $0x598] sm:$0xf] }
 0x268   :  { %v7786_v10 = vld [vmem:[#allocation8 + $0xe94] sm:$0xf]  ;;  %v6631_v18 = vor.u32 %v7722_v5, %v6628_v6  ;;  %4043 = vmatpush.bf16.msrb.mxu1 %v6343_v13  ;;  %v7431_v5 = vld [vmem:[#allocation8 + $0x374] sm:$0xf0]  ;;  %v3814_v6 = vpop.f32.mrf.mxu3 }
 0x269   :  { %v6884_v11 = vld [vmem:[#allocation8 + $0xeb0] sm:$0xf0]  ;;  %v7567_v13 = vld [vmem:[#allocation8 + $0x7b4] sm:$0xf0] }
 0x26a   :  { %v7578_v12 = vld [vmem:[#allocation8 + $0x814] sm:$0xf]  ;;  %v6887_v27 = vor.u32 %v7786_v10, %v6884_v11  ;;  %4055 = vmatpush.bf16.msrb.mxu2 %v6631_v18  ;;  %v7503_v10 = vld [vmem:[#allocation8 + $0x5b4] sm:$0xf0]  ;;  %v5195_v11 = vor.u32 %v7367_v63, %v5194_v62 }
 0x26b   :  { %v6052_v15 = vld [vmem:[#allocation8 + $0x830] sm:$0xf0]  ;;  %v5739_v18 = vor.u32 %v7503_v10, %v5738_v8  ;;  %v7407_v58 = vld [vmem:[#allocation8 + $0x2b4] sm:$0xf0] }
 0x26c   :  { %v7642_v16 = vld [vmem:[#allocation8 + $0xa14] sm:$0xf]  ;;  %v6055_v33 = vor.u32 %v7578_v12, %v6052_v15  ;;  %4068 = vmatpush.bf16.msrb.mxu3 %v6887_v27  ;;  %v5994_v12 = vld [vmem:[#allocation8 + $0x798] sm:$0xf]  ;;  %v5451_v15 = vor.u32 %v7431_v5, %v5450_v4 }
 0x26d   :  { %v6308_v17 = vld [vmem:[#allocation8 + $0xa30] sm:$0xf0]  ;;  %v5995_v24 = vor.u32 %v7567_v13, %v5994_v12  ;;  %v7495_v27 = vld [vmem:[#allocation8 + $0x574] sm:$0xf0]  ;;  %v3840_v12 = vpop.f32.mrf.mxu1 }
 0x26e   :  { %v7714_v29 = vld [vmem:[#allocation8 + $0xc54] sm:$0xf]  ;;  %v6311_v14 = vor.u32 %v7642_v16, %v6308_v17  ;;  %4031 = vmatpush.bf16.msrb.mxu0 %v6055_v33  ;;  %v5162_v16 = vld [vmem:[#allocation8 + $0x118] sm:$0xf] }
 0x26f   :  { %v6596_v30 = vld [vmem:[#allocation8 + $0xc70] sm:$0xf0]  ;;  %v7359_v17 = vld [vmem:[#allocation8 + $0x134] sm:$0xf0] }
 0x270   :  { %v7778_v36 = vld [vmem:[#allocation8 + $0xe54] sm:$0xf]  ;;  %v6599_v47 = vor.u32 %v7714_v29, %v6596_v30  ;;  %4044 = vmatpush.bf16.msrb.mxu1 %v6311_v14  ;;  %v5163_v28 = vor.u32 %v7359_v17, %v5162_v16  ;;  %v5962_v29 = vld [vmem:[#allocation8 + $0x758] sm:$0xf] }
 0x271   :  { %v6852_v39 = vld [vmem:[#allocation8 + $0xe70] sm:$0xf0]  ;;  %4032 = vmatmul.bf16.vlgmr.msrb.gmra.mxu0 %v8266_v19  ;;  %v7559_v30 = vld [vmem:[#allocation8 + $0x774] sm:$0xf0] }
 0x272   :  { %v6855_v52 = vor.u32 %v7778_v36, %v6852_v39  ;;  %v7706_v51 = vld [vmem:[#allocation8 + $0xc14] sm:$0xf]  ;;  %4076 = vmatpush.bf16.msra.mxu0 %v5259_v42  ;;  %4056 = vmatpush.bf16.msrb.mxu2 %v6599_v47  ;;  %v7351_v33 = vld [vmem:[#allocation8 + $0xf4] sm:$0xf0]  ;;  %v5707_v36 = vor.u32 %v7495_v27, %v5706_v25  ;;  %v3825_v42 = vpop.f32.mrf.mxu0  ;;  %v5963_v43 = vor.u32 %v7559_v30, %v5962_v29  ;;  %v3851_v30 = vpop.f32.mrf.mxu2 }
 0x273   :  { %v6564_v40 = vld [vmem:[#allocation8 + $0xc30] sm:$0xf0]  ;;  %4045 = vmatmul.bf16.vlgmr.msrb.gmra.mxu1 %v8268_v26  ;;  %v5386_v39 = vld [vmem:[#allocation8 + $0x2d8] sm:$0xf]  ;;  %v3826_v41 = vadd.f32 %v3825_v42, %v8334_v45  ;;  %v5131_v49 = vor.u32 %v7351_v33, %v5130_v32 }
 0x274   :  { %v7770_v53 = vld [vmem:[#allocation8 + $0xe14] sm:$0xf]  ;;  %4089 = vmatpush.bf16.msra.mxu1 %v5515_v46  ;;  %v6567_v61 = vor.u32 %v7706_v51, %v6564_v40  ;;  %4069 = vmatpush.bf16.msrb.mxu3 %v6855_v52  ;;  %v7415_v14 = vld [vmem:[#allocation8 + $0x2f4] sm:$0xf0] }
 0x275   :  { %v6820_v37 = vld [vmem:[#allocation8 + $0xe30] sm:$0xf0]  ;;  %v5674_v46 = vld [vmem:[#allocation8 + $0x518] sm:$0xf]  ;;  %v5387_v40 = vor.u32 %v7415_v14, %v5386_v39  ;;  %v3839_v54 = vadd.f32 %v3838_v48, %v3826_v41  ;;  %v3864_v14 = vpop.f32.mrf.mxu3 }
 0x276   :  { %v6823_v1 = vor.u32 %v7770_v53, %v6820_v37  ;;  %4077 = vmatpush.bf16.msra.mxu0 %v5227_v57  ;;  %4057 = vmatpush.bf16.msrb.mxu2 %v6567_v61  ;;  %v7487_v47 = vld [vmem:[#allocation8 + $0x534] sm:$0xf0] }
 0x277   :  { %v5930_v52 = vld [vmem:[#allocation8 + $0x718] sm:$0xf]  ;;  %v5675_v56 = vor.u32 %v7487_v47, %v5674_v46  ;;  %v3852_v39 = vadd.f32 %v3851_v30, %v3839_v54 }
 0x278   :  { %4090 = vmatpush.bf16.msra.mxu1 %v5483_v60  ;;  %4070 = vmatpush.bf16.msrb.mxu3 %v6823_v1  ;;  %v7551_v51 = vld [vmem:[#allocation8 + $0x734] sm:$0xf0] }
 0x279   :  { %4058 = vmatmul.bf16.vlgmr.msrb.gmra.mxu2 %v8272_v50  ;;  %v5098_v53 = vld [vmem:[#allocation8 + $0x98] sm:$0xf]  ;;  %v5931_v59 = vor.u32 %v7551_v51, %v5930_v52 }
 0x27a   :  { %4102 = vmatpush.bf16.msra.mxu2 %v5771_v2  ;;  %4078 = vmatpush.bf16.msra.mxu0 %v5195_v11  ;;  %v7343_v37 = vld [vmem:[#allocation8 + $0xb4] sm:$0xf0] }
 0x27b   :  { %4071 = vmatmul.bf16.vlgmr.msrb.gmra.mxu3 %v8274_v55  ;;  %v5354_v57 = vld [vmem:[#allocation8 + $0x298] sm:$0xf]  ;;  %v5099_v45 = vor.u32 %v7343_v37, %v5098_v53 }
 0x27c   :  { %4115 = vmatpush.bf16.msra.mxu3 %v6027_v7  ;;  %4091 = vmatpush.bf16.msra.mxu1 %v5451_v15  ;;  %v5642_v60 = vld [vmem:[#allocation8 + $0x4d8] sm:$0xf]  ;;  %v5355_v0 = vor.u32 %v7407_v58, %v5354_v57  ;;  %v3827_v7 = vpop.f32.mrf.mxu0 }
 0x27d   :  { %v7479_v61 = vld [vmem:[#allocation8 + $0x4f4] sm:$0xf0] }
 0x27e   :  { %4103 = vmatpush.bf16.msra.mxu2 %v5739_v18  ;;  %4079 = vmatpush.bf16.msra.mxu0 %v5163_v28  ;;  %v5898_v62 = vld [vmem:[#allocation8 + $0x6d8] sm:$0xf]  ;;  %v5643_v4 = vor.u32 %v7479_v61, %v5642_v60 }
 0x27f   :  { %v7543_v63 = vld [vmem:[#allocation8 + $0x6f4] sm:$0xf0] }
 0x280   :  { %4116 = vmatpush.bf16.msra.mxu3 %v5995_v24  ;;  %4092 = vmatpush.bf16.msra.mxu1 %v5419_v31  ;;  %v5066_v1 = vld [vmem:[#allocation8 + $0x58] sm:$0xf]  ;;  %v5899_v8 = vor.u32 %v7543_v63, %v5898_v62 }
 0x281   :  { %v7335_v2 = vld [vmem:[#allocation8 + $0x74] sm:$0xf0] }
 0x282   :  { %4104 = vmatpush.bf16.msra.mxu2 %v5707_v36  ;;  %4080 = vmatpush.bf16.msra.mxu0 %v5131_v49  ;;  %v5322_v5 = vld [vmem:[#allocation8 + $0x258] sm:$0xf]  ;;  %v5067_v13 = vor.u32 %v7335_v2, %v5066_v1  ;;  %v8341_v49 = vadd.f32 %v3864_v14, %v3852_v39 }
 0x283   :  { %v7399_v6 = vld [vmem:[#allocation8 + $0x274] sm:$0xf0] }
 0x284   :  { %4117 = vmatpush.bf16.msra.mxu3 %v5963_v43  ;;  %4093 = vmatpush.bf16.msra.mxu1 %v5387_v40  ;;  %v5610_v10 = vld [vmem:[#allocation8 + $0x498] sm:$0xf]  ;;  %v5323_v18 = vor.u32 %v7399_v6, %v5322_v5  ;;  %v3853_v5 = vpop.f32.mrf.mxu2 }
 0x285   :  { %v7471_v11 = vld [vmem:[#allocation8 + $0x4b4] sm:$0xf0] }
 0x286   :  { %4105 = vmatpush.bf16.msra.mxu2 %v5675_v56  ;;  %4081 = vmatpush.bf16.msra.mxu0 %v5099_v45  ;;  %v5866_v15 = vld [vmem:[#allocation8 + $0x698] sm:$0xf]  ;;  %v5611_v25 = vor.u32 %v7471_v11, %v5610_v10  ;;  %v3866_v11 = vpop.f32.mrf.mxu3 }
 0x287   :  { %v7535_v16 = vld [vmem:[#allocation8 + $0x6b4] sm:$0xf0] }
 0x288   :  { %4118 = vmatpush.bf16.msra.mxu3 %v5931_v59  ;;  %v5034_v17 = vld [vmem:[#allocation8 + $0x18] sm:$0xf]  ;;  %4094 = vmatpush.bf16.msra.mxu1 %v5355_v0  ;;  %v5867_v31 = vor.u32 %v7535_v16, %v5866_v15 }
 0x289   :  { %v7391_v24 = vld [vmem:[#allocation8 + $0x234] sm:$0xf0]  ;;  %v5035_v42 = vor.u32 %v7327_v21, %v5034_v17 }
 0x28a   :  { %4106 = vmatpush.bf16.msra.mxu2 %v5643_v4  ;;  %v6282_v27 = vld [vmem:[#allocation8 + $0x9d8] sm:$0xf]  ;;  %4082 = vmatpush.bf16.msra.mxu0 %v5067_v13  ;;  %v5291_v47 = vor.u32 %v7391_v24, %v5290_v22 }
 0x28b   :  { %v7639_v28 = vld [vmem:[#allocation8 + $0x9f4] sm:$0xf0] }
 0x28c   :  { %v6538_v29 = vld [vmem:[#allocation8 + $0xbd8] sm:$0xf]  ;;  %4119 = vmatpush.bf16.msra.mxu3 %v5899_v8  ;;  %4095 = vmatpush.bf16.msra.mxu1 %v5323_v18  ;;  %v6283_v41 = vor.u32 %v7639_v28, %v6282_v27 }
 0x28d   :  { %v7703_v32 = vld [vmem:[#allocation8 + $0xbf4] sm:$0xf0] }
 0x28e   :  { %v5578_v33 = vld [vmem:[#allocation8 + $0x458] sm:$0xf]  ;;  %4107 = vmatpush.bf16.msra.mxu2 %v5611_v25  ;;  %v6539_v52 = vor.u32 %v7703_v32, %v6538_v29  ;;  %4083 = vmatpush.bf16.msra.mxu0 %v5035_v42  ;;  %v880_v32 = vperm.slane %v8330_v20, 4  ;;  %v3890_v20 = vpop.f32.mrf.mxu1 }
 0x28f   :  { %v7463_v36 = vld [vmem:[#allocation8 + $0x474] sm:$0xf0] }
 0x290   :  { %v5834_v43 = vld [vmem:[#allocation8 + $0x658] sm:$0xf]  ;;  %v5579_v51 = vor.u32 %v7463_v36, %v5578_v33  ;;  %4120 = vmatpush.bf16.msra.mxu3 %v5867_v31  ;;  %4096 = vmatpush.bf16.msra.mxu1 %v5291_v47 }
 0x291   :  { %v7527_v46 = vld [vmem:[#allocation8 + $0x674] sm:$0xf0]  ;;  %4084 = vmatmul.bf16.vlgmr.msra.gmra.mxu0 %v8252_v3 }
 0x292   :  { %v6250_v48 = vld [vmem:[#allocation8 + $0x998] sm:$0xf]  ;;  %v5835_v56 = vor.u32 %v7527_v46, %v5834_v43  ;;  %4128 = vmatpush.bf16.msrb.mxu0 %v6283_v41  ;;  %4108 = vmatpush.bf16.msra.mxu2 %v5579_v51 }
 0x293   :  { %v7631_v40 = vld [vmem:[#allocation8 + $0x9b4] sm:$0xf0]  ;;  %4097 = vmatmul.bf16.vlgmr.msra.gmra.mxu1 %v8254_v9 }
 0x294   :  { %v6506_v53 = vld [vmem:[#allocation8 + $0xb98] sm:$0xf]  ;;  %v6251_v45 = vor.u32 %v7631_v40, %v6250_v48  ;;  %4141 = vmatpush.bf16.msrb.mxu1 %v6539_v52  ;;  %4121 = vmatpush.bf16.msra.mxu3 %v5835_v56  ;;  %v3877_v48 = vpop.f32.mrf.mxu0 }
 0x295   :  { %v7695_v37 = vld [vmem:[#allocation8 + $0xbb4] sm:$0xf0] }
 0x296   :  { %v5546_v54 = vld [vmem:[#allocation8 + $0x418] sm:$0xf]  ;;  %v6507_v0 = vor.u32 %v7695_v37, %v6506_v53  ;;  %4129 = vmatpush.bf16.msrb.mxu0 %v6251_v45  ;;  %v3878_v53 = vadd.f32 %v3877_v48, %v880_v32  ;;  %v7379_v32 = vld [vmem:[#allocation8 + $0x1dc] sm:$0xf] }
 0x297   :  { %v7455_v57 = vld [vmem:[#allocation8 + $0x434] sm:$0xf0] }
 0x298   :  { %v5802_v58 = vld [vmem:[#allocation8 + $0x618] sm:$0xf]  ;;  %v5547_v1 = vor.u32 %v7455_v57, %v5546_v54  ;;  %4142 = vmatpush.bf16.msrb.mxu1 %v6507_v0 }
 0x299   :  { %v7519_v59 = vld [vmem:[#allocation8 + $0x634] sm:$0xf0] }
 0x29a   :  { %v6794_v60 = vld [vmem:[#allocation8 + $0xdd8] sm:$0xf]  ;;  %v5803_v6 = vor.u32 %v7519_v59, %v5802_v58  ;;  %4109 = vmatpush.bf16.msra.mxu2 %v5547_v1 }
 0x29b   :  { %v7767_v61 = vld [vmem:[#allocation8 + $0xdf4] sm:$0xf0] }
 0x29c   :  { %v7050_v62 = vld [vmem:[#allocation8 + $0xfd8] sm:$0xf]  ;;  %v6795_v7 = vor.u32 %v7767_v61, %v6794_v60  ;;  %4122 = vmatpush.bf16.msra.mxu3 %v5803_v6  ;;  %v3891_v60 = vadd.f32 %v3890_v20, %v3878_v53  ;;  %v7371_v20 = vld [vmem:[#allocation8 + $0x19c] sm:$0xf] }
 0x29d   :  { %v7831_v63 = vld [vmem:[#allocation8 + $0xff4] sm:$0xf0]  ;;  %4110 = vmatmul.bf16.vlgmr.msra.gmra.mxu2 %v8260_v38 }
 0x29e   :  { %v6218_v2 = vld [vmem:[#allocation8 + $0x958] sm:$0xf]  ;;  %v7051_v12 = vor.u32 %v7831_v63, %v7050_v62  ;;  %4154 = vmatpush.bf16.msrb.mxu2 %v6795_v7 }
 0x29f   :  { %v7623_v4 = vld [vmem:[#allocation8 + $0x974] sm:$0xf0]  ;;  %4123 = vmatmul.bf16.vlgmr.msra.gmra.mxu3 %v8262_v44 }
 0x2a0   :  { %v6474_v8 = vld [vmem:[#allocation8 + $0xb58] sm:$0xf]  ;;  %v6219_v16 = vor.u32 %v7623_v4, %v6218_v2  ;;  %4167 = vmatpush.bf16.msrb.mxu3 %v7051_v12 }
 0x2a1   :  { %v7687_v10 = vld [vmem:[#allocation8 + $0xb74] sm:$0xf0] }
 0x2a2   :  { %v6762_v13 = vld [vmem:[#allocation8 + $0xd98] sm:$0xf]  ;;  %v6475_v21 = vor.u32 %v7687_v10, %v6474_v8  ;;  %4130 = vmatpush.bf16.msrb.mxu0 %v6219_v16 }
 0x2a3   :  { %v7759_v15 = vld [vmem:[#allocation8 + $0xdb4] sm:$0xf0] }
 0x2a4   :  { %v7018_v17 = vld [vmem:[#allocation8 + $0xf98] sm:$0xf]  ;;  %v6763_v25 = vor.u32 %v7759_v15, %v6762_v13  ;;  %4143 = vmatpush.bf16.msrb.mxu1 %v6475_v21  ;;  %v3879_v13 = vpop.f32.mrf.mxu0 }
 0x2a5   :  { %v7823_v18 = vld [vmem:[#allocation8 + $0xfb4] sm:$0xf0] }
 0x2a6   :  { %v6186_v22 = vld [vmem:[#allocation8 + $0x918] sm:$0xf]  ;;  %v7019_v29 = vor.u32 %v7823_v18, %v7018_v17  ;;  %4155 = vmatpush.bf16.msrb.mxu2 %v6763_v25  ;;  %v3892_v18 = vpop.f32.mrf.mxu1 }
 0x2a7   :  { %v7615_v24 = vld [vmem:[#allocation8 + $0x934] sm:$0xf0] }
 0x2a8   :  { %v6442_v27 = vld [vmem:[#allocation8 + $0xb18] sm:$0xf]  ;;  %v6187_v33 = vor.u32 %v7615_v24, %v6186_v22  ;;  %4168 = vmatpush.bf16.msrb.mxu3 %v7019_v29 }
 0x2a9   :  { %v7679_v28 = vld [vmem:[#allocation8 + $0xb34] sm:$0xf0] }
 0x2aa   :  { %v6730_v30 = vld [vmem:[#allocation8 + $0xd58] sm:$0xf]  ;;  %v6443_v14 = vor.u32 %v7679_v28, %v6442_v27  ;;  %4131 = vmatpush.bf16.msrb.mxu0 %v6187_v33  ;;  %v5260_v33 = vld [vmem:[#allocation8 + $0x1f8] sm:$0xf0] }
 0x2ab   :  { %v7751_v31 = vld [vmem:[#allocation8 + $0xd74] sm:$0xf0]  ;;  %v5263_v53 = vor.u32 %v7379_v32, %v5260_v33  ;;  %v7419_v32 = vld [vmem:[#allocation8 + $0x31c] sm:$0xf] }
 0x2ac   :  { %v6986_v36 = vld [vmem:[#allocation8 + $0xf58] sm:$0xf]  ;;  %v6731_v46 = vor.u32 %v7751_v31, %v6730_v30  ;;  %4144 = vmatpush.bf16.msrb.mxu1 %v6443_v14  ;;  %v5420_v33 = vld [vmem:[#allocation8 + $0x338] sm:$0xf0] }
 0x2ad   :  { %v7815_v39 = vld [vmem:[#allocation8 + $0xf74] sm:$0xf0] }
 0x2ae   :  { %v6154_v42 = vld [vmem:[#allocation8 + $0x8d8] sm:$0xf]  ;;  %v6987_v52 = vor.u32 %v7815_v39, %v6986_v36  ;;  %4156 = vmatpush.bf16.msrb.mxu2 %v6731_v46  ;;  %v7443_v36 = vld [vmem:[#allocation8 + $0x3dc] sm:$0xf]  ;;  %v3903_v39 = vpop.f32.mrf.mxu2 }
 0x2af   :  { %v7607_v43 = vld [vmem:[#allocation8 + $0x8f4] sm:$0xf0] }
 0x2b0   :  { %v6410_v47 = vld [vmem:[#allocation8 + $0xad8] sm:$0xf]  ;;  %v6155_v37 = vor.u32 %v7607_v43, %v6154_v42  ;;  %4169 = vmatpush.bf16.msrb.mxu3 %v6987_v52  ;;  %v5516_v42 = vld [vmem:[#allocation8 + $0x3f8] sm:$0xf0] }
 0x2b1   :  { %v7671_v41 = vld [vmem:[#allocation8 + $0xaf4] sm:$0xf0] }
 0x2b2   :  { %v6698_v51 = vld [vmem:[#allocation8 + $0xd18] sm:$0xf]  ;;  %v6411_v57 = vor.u32 %v7671_v41, %v6410_v47  ;;  %4132 = vmatpush.bf16.msrb.mxu0 %v6155_v37  ;;  %v3904_v47 = vadd.f32 %v3903_v39, %v3891_v60  ;;  %v3916_v41 = vpop.f32.mrf.mxu3  ;;  %v7491_v39 = vld [vmem:[#allocation8 + $0x55c] sm:$0xf] }
 0x2b3   :  { %v7743_v40 = vld [vmem:[#allocation8 + $0xd34] sm:$0xf0] }
 0x2b4   :  { %v6954_v56 = vld [vmem:[#allocation8 + $0xf18] sm:$0xf]  ;;  %v6699_v61 = vor.u32 %v7743_v40, %v6698_v51  ;;  %4145 = vmatpush.bf16.msrb.mxu1 %v6411_v57  ;;  %v8348_v37 = vadd.f32 %v3916_v41, %v3904_v47  ;;  %v5228_v57 = vld [vmem:[#allocation8 + $0x1b8] sm:$0xf0]  ;;  %v5423_v47 = vor.u32 %v7419_v32, %v5420_v33 }
 0x2b5   :  { %v7807_v54 = vld [vmem:[#allocation8 + $0xf34] sm:$0xf0]  ;;  %v7347_v41 = vld [vmem:[#allocation8 + $0xdc] sm:$0xf] }
 0x2b6   :  { %v6122_v58 = vld [vmem:[#allocation8 + $0x898] sm:$0xf]  ;;  %v6955_v63 = vor.u32 %v7807_v54, %v6954_v56  ;;  %4157 = vmatpush.bf16.msrb.mxu2 %v6699_v61  ;;  %v5519_v56 = vor.u32 %v7443_v36, %v5516_v42  ;;  %v5036_v32 = vld [vmem:[#allocation8 + $0x38] sm:$0xf0] }
 0x2b7   :  { %v7599_v59 = vld [vmem:[#allocation8 + $0x8b4] sm:$0xf0]  ;;  %v7387_v33 = vld [vmem:[#allocation8 + $0x21c] sm:$0xf] }
 0x2b8   :  { %v6378_v45 = vld [vmem:[#allocation8 + $0xa98] sm:$0xf]  ;;  %v6123_v2 = vor.u32 %v7599_v59, %v6122_v58  ;;  %4170 = vmatpush.bf16.msrb.mxu3 %v6955_v63  ;;  %v7435_v58 = vld [vmem:[#allocation8 + $0x39c] sm:$0xf] }
 0x2b9   :  { %v7663_v62 = vld [vmem:[#allocation8 + $0xab4] sm:$0xf0]  ;;  %v5484_v59 = vld [vmem:[#allocation8 + $0x3b8] sm:$0xf0] }
 0x2ba   :  { %v6666_v0 = vld [vmem:[#allocation8 + $0xcd8] sm:$0xf]  ;;  %v6379_v6 = vor.u32 %v7663_v62, %v6378_v45  ;;  %4133 = vmatpush.bf16.msrb.mxu0 %v6123_v2  ;;  %v5231_v2 = vor.u32 %v7371_v20, %v5228_v57 }
 0x2bb   :  { %v7735_v1 = vld [vmem:[#allocation8 + $0xcf4] sm:$0xf0] }
 0x2bc   :  { %v6922_v4 = vld [vmem:[#allocation8 + $0xed8] sm:$0xf]  ;;  %v6667_v10 = vor.u32 %v7735_v1, %v6666_v0  ;;  %4146 = vmatpush.bf16.msrb.mxu1 %v6379_v6  ;;  %v7507_v0 = vld [vmem:[#allocation8 + $0x5dc] sm:$0xf]  ;;  %v5487_v6 = vor.u32 %v7435_v58, %v5484_v59  ;;  %v3942_v58 = vpop.f32.mrf.mxu1 }
 0x2bd   :  { %v7799_v5 = vld [vmem:[#allocation8 + $0xef4] sm:$0xf0]  ;;  %v5772_v1 = vld [vmem:[#allocation8 + $0x5f8] sm:$0xf0] }
 0x2be   :  { %v6090_v7 = vld [vmem:[#allocation8 + $0x858] sm:$0xf]  ;;  %v6923_v15 = vor.u32 %v7799_v5, %v6922_v4  ;;  %4158 = vmatpush.bf16.msrb.mxu2 %v6667_v10  ;;  %v7571_v4 = vld [vmem:[#allocation8 + $0x7dc] sm:$0xf]  ;;  %v5775_v13 = vor.u32 %v7507_v0, %v5772_v1 }
 0x2bf   :  { %v7591_v8 = vld [vmem:[#allocation8 + $0x874] sm:$0xf0]  ;;  %v6028_v5 = vld [vmem:[#allocation8 + $0x7f8] sm:$0xf0] }
 0x2c0   :  { %v6346_v11 = vld [vmem:[#allocation8 + $0xa58] sm:$0xf]  ;;  %v6091_v21 = vor.u32 %v7591_v8, %v6090_v7  ;;  %4171 = vmatpush.bf16.msrb.mxu3 %v6923_v15  ;;  %v7363_v8 = vld [vmem:[#allocation8 + $0x15c] sm:$0xf]  ;;  %v6031_v18 = vor.u32 %v7571_v4, %v6028_v5 }
 0x2c1   :  { %v7655_v12 = vld [vmem:[#allocation8 + $0xa74] sm:$0xf0]  ;;  %v5196_v10 = vld [vmem:[#allocation8 + $0x178] sm:$0xf0] }
 0x2c2   :  { %v6634_v16 = vld [vmem:[#allocation8 + $0xc98] sm:$0xf]  ;;  %v6347_v27 = vor.u32 %v7655_v12, %v6346_v11  ;;  %4134 = vmatpush.bf16.msrb.mxu0 %v6091_v21  ;;  %v3905_v11 = vpop.f32.mrf.mxu2  ;;  %v7427_v15 = vld [vmem:[#allocation8 + $0x35c] sm:$0xf] }
 0x2c3   :  { %v7727_v17 = vld [vmem:[#allocation8 + $0xcb4] sm:$0xf0]  ;;  %v7499_v21 = vld [vmem:[#allocation8 + $0x59c] sm:$0xf] }
 0x2c4   :  { %v6890_v22 = vld [vmem:[#allocation8 + $0xe98] sm:$0xf]  ;;  %v6635_v31 = vor.u32 %v7727_v17, %v6634_v16  ;;  %4147 = vmatpush.bf16.msrb.mxu1 %v6347_v27  ;;  %v5452_v16 = vld [vmem:[#allocation8 + $0x378] sm:$0xf0]  ;;  %v3918_v17 = vpop.f32.mrf.mxu3 }
 0x2c5   :  { %v7791_v24 = vld [vmem:[#allocation8 + $0xeb4] sm:$0xf0]  ;;  %v5996_v27 = vld [vmem:[#allocation8 + $0x7b8] sm:$0xf0] }
 0x2c6   :  { %v6058_v25 = vld [vmem:[#allocation8 + $0x818] sm:$0xf]  ;;  %v6891_v14 = vor.u32 %v7791_v24, %v6890_v22  ;;  %4159 = vmatpush.bf16.msrb.mxu2 %v6635_v31  ;;  %v5740_v22 = vld [vmem:[#allocation8 + $0x5b8] sm:$0xf0]  ;;  %v5199_v24 = vor.u32 %v7363_v8, %v5196_v10 }
 0x2c7   :  { %v7583_v28 = vld [vmem:[#allocation8 + $0x834] sm:$0xf0]  ;;  %v5743_v31 = vor.u32 %v7499_v21, %v5740_v22  ;;  %v5356_v4 = vld [vmem:[#allocation8 + $0x2b8] sm:$0xf0] }
 0x2c8   :  { %v6314_v29 = vld [vmem:[#allocation8 + $0xa18] sm:$0xf]  ;;  %v6059_v48 = vor.u32 %v7583_v28, %v6058_v25  ;;  %4172 = vmatpush.bf16.msrb.mxu3 %v6891_v14  ;;  %v7563_v25 = vld [vmem:[#allocation8 + $0x79c] sm:$0xf]  ;;  %v5455_v28 = vor.u32 %v7427_v15, %v5452_v16 }
 0x2c9   :  { %v7647_v30 = vld [vmem:[#allocation8 + $0xa34] sm:$0xf0]  ;;  %v5999_v36 = vor.u32 %v7563_v25, %v5996_v27  ;;  %v5708_v14 = vld [vmem:[#allocation8 + $0x578] sm:$0xf0]  ;;  %v3944_v25 = vpop.f32.mrf.mxu1 }
 0x2ca   :  { %v6602_v43 = vld [vmem:[#allocation8 + $0xc58] sm:$0xf]  ;;  %v6315_v40 = vor.u32 %v7647_v30, %v6314_v29  ;;  %4135 = vmatpush.bf16.msrb.mxu0 %v6059_v48  ;;  %v7355_v29 = vld [vmem:[#allocation8 + $0x11c] sm:$0xf] }
 0x2cb   :  { %v7719_v46 = vld [vmem:[#allocation8 + $0xc74] sm:$0xf0]  ;;  %v5164_v30 = vld [vmem:[#allocation8 + $0x138] sm:$0xf0] }
 0x2cc   :  { %v6858_v52 = vld [vmem:[#allocation8 + $0xe58] sm:$0xf]  ;;  %v6603_v54 = vor.u32 %v7719_v46, %v6602_v43  ;;  %4148 = vmatpush.bf16.msrb.mxu1 %v6315_v40  ;;  %v5167_v42 = vor.u32 %v7355_v29, %v5164_v30  ;;  %v7555_v43 = vld [vmem:[#allocation8 + $0x75c] sm:$0xf] }
 0x2cd   :  { %v7783_v51 = vld [vmem:[#allocation8 + $0xe74] sm:$0xf0]  ;;  %4136 = vmatmul.bf16.vlgmr.msrb.gmra.mxu0 %v8266_v19  ;;  %v5964_v46 = vld [vmem:[#allocation8 + $0x778] sm:$0xf0] }
 0x2ce   :  { %v6859_v61 = vor.u32 %v7783_v51, %v6858_v52  ;;  %v6570_v60 = vld [vmem:[#allocation8 + $0xc18] sm:$0xf]  ;;  %4180 = vmatpush.bf16.msra.mxu0 %v5263_v53  ;;  %4160 = vmatpush.bf16.msrb.mxu2 %v6603_v54  ;;  %v5132_v48 = vld [vmem:[#allocation8 + $0xf8] sm:$0xf0]  ;;  %v5711_v52 = vor.u32 %v7491_v39, %v5708_v14  ;;  %v3929_v53 = vpop.f32.mrf.mxu0  ;;  %v5967_v20 = vor.u32 %v7555_v43, %v5964_v46  ;;  %v3955_v46 = vpop.f32.mrf.mxu2 }
 0x2cf   :  { %v7711_v45 = vld [vmem:[#allocation8 + $0xc34] sm:$0xf0]  ;;  %4149 = vmatmul.bf16.vlgmr.msrb.gmra.mxu1 %v8268_v26  ;;  %v7411_v51 = vld [vmem:[#allocation8 + $0x2dc] sm:$0xf]  ;;  %v3930_v57 = vadd.f32 %v3929_v53, %v8348_v37  ;;  %v5135_v59 = vor.u32 %v7347_v41, %v5132_v48 }
 0x2d0   :  { %v6826_v62 = vld [vmem:[#allocation8 + $0xe18] sm:$0xf]  ;;  %4193 = vmatpush.bf16.msra.mxu1 %v5519_v56  ;;  %v6571_v7 = vor.u32 %v7711_v45, %v6570_v60  ;;  %4173 = vmatpush.bf16.msrb.mxu3 %v6859_v61  ;;  %v5388_v40 = vld [vmem:[#allocation8 + $0x2f8] sm:$0xf0] }
 0x2d1   :  { %v7775_v63 = vld [vmem:[#allocation8 + $0xe34] sm:$0xf0]  ;;  %v7483_v56 = vld [vmem:[#allocation8 + $0x51c] sm:$0xf]  ;;  %v5391_v45 = vor.u32 %v7411_v51, %v5388_v40  ;;  %v3943_v0 = vadd.f32 %v3942_v58, %v3930_v57  ;;  %v3968_v40 = vpop.f32.mrf.mxu3 }
 0x2d2   :  { %v6827_v12 = vor.u32 %v7775_v63, %v6826_v62  ;;  %4181 = vmatpush.bf16.msra.mxu0 %v5231_v2  ;;  %4161 = vmatpush.bf16.msrb.mxu2 %v6571_v7  ;;  %v5676_v54 = vld [vmem:[#allocation8 + $0x538] sm:$0xf0] }
 0x2d3   :  { %v7547_v61 = vld [vmem:[#allocation8 + $0x71c] sm:$0xf]  ;;  %v5679_v1 = vor.u32 %v7483_v56, %v5676_v54  ;;  %v3956_v51 = vadd.f32 %v3955_v46, %v3943_v0 }
 0x2d4   :  { %4194 = vmatpush.bf16.msra.mxu1 %v5487_v6  ;;  %4174 = vmatpush.bf16.msrb.mxu3 %v6827_v12  ;;  %v5932_v60 = vld [vmem:[#allocation8 + $0x738] sm:$0xf0] }
 0x2d5   :  { %4162 = vmatmul.bf16.vlgmr.msrb.gmra.mxu2 %v8272_v50  ;;  %v7339_v62 = vld [vmem:[#allocation8 + $0x9c] sm:$0xf]  ;;  %v5935_v5 = vor.u32 %v7547_v61, %v5932_v60 }
 0x2d6   :  { %4206 = vmatpush.bf16.msra.mxu2 %v5775_v13  ;;  %4182 = vmatpush.bf16.msra.mxu0 %v5199_v24  ;;  %v5100_v63 = vld [vmem:[#allocation8 + $0xb8] sm:$0xf0] }
 0x2d7   :  { %4175 = vmatmul.bf16.vlgmr.msrb.gmra.mxu3 %v8274_v55  ;;  %v7403_v2 = vld [vmem:[#allocation8 + $0x29c] sm:$0xf]  ;;  %v5103_v37 = vor.u32 %v7339_v62, %v5100_v63 }
 0x2d8   :  { %4219 = vmatpush.bf16.msra.mxu3 %v6031_v18  ;;  %4195 = vmatpush.bf16.msra.mxu1 %v5455_v28  ;;  %v7475_v6 = vld [vmem:[#allocation8 + $0x4dc] sm:$0xf]  ;;  %v5359_v11 = vor.u32 %v7403_v2, %v5356_v4  ;;  %v3931_v18 = vpop.f32.mrf.mxu0 }
 0x2d9   :  { %v5644_v7 = vld [vmem:[#allocation8 + $0x4f8] sm:$0xf0] }
 0x2da   :  { %4207 = vmatpush.bf16.msra.mxu2 %v5743_v31  ;;  %4183 = vmatpush.bf16.msra.mxu0 %v5167_v42  ;;  %v7539_v8 = vld [vmem:[#allocation8 + $0x6dc] sm:$0xf]  ;;  %v5647_v15 = vor.u32 %v7475_v6, %v5644_v7 }
 0x2db   :  { %v5900_v10 = vld [vmem:[#allocation8 + $0x6f8] sm:$0xf0] }
 0x2dc   :  { %4220 = vmatpush.bf16.msra.mxu3 %v5999_v36  ;;  %4196 = vmatpush.bf16.msra.mxu1 %v5423_v47  ;;  %v7331_v12 = vld [vmem:[#allocation8 + $0x5c] sm:$0xf]  ;;  %v5903_v21 = vor.u32 %v7539_v8, %v5900_v10 }
 0x2dd   :  { %v5068_v13 = vld [vmem:[#allocation8 + $0x78] sm:$0xf0] }
 0x2de   :  { %4208 = vmatpush.bf16.msra.mxu2 %v5711_v52  ;;  %4184 = vmatpush.bf16.msra.mxu0 %v5135_v59  ;;  %v7395_v16 = vld [vmem:[#allocation8 + $0x25c] sm:$0xf]  ;;  %v5071_v27 = vor.u32 %v7331_v12, %v5068_v13  ;;  %v8355_v59 = vadd.f32 %v3968_v40, %v3956_v51 }
 0x2df   :  { %v5324_v17 = vld [vmem:[#allocation8 + $0x278] sm:$0xf0] }
 0x2e0   :  { %4221 = vmatpush.bf16.msra.mxu3 %v5967_v20  ;;  %4197 = vmatpush.bf16.msra.mxu1 %v5391_v45  ;;  %v7467_v22 = vld [vmem:[#allocation8 + $0x49c] sm:$0xf]  ;;  %v5327_v31 = vor.u32 %v7395_v16, %v5324_v17  ;;  %v3957_v16 = vpop.f32.mrf.mxu2 }
 0x2e1   :  { %v5612_v24 = vld [vmem:[#allocation8 + $0x4b8] sm:$0xf0] }
 0x2e2   :  { %4209 = vmatpush.bf16.msra.mxu2 %v5679_v1  ;;  %4185 = vmatpush.bf16.msra.mxu0 %v5103_v37  ;;  %v7531_v28 = vld [vmem:[#allocation8 + $0x69c] sm:$0xf]  ;;  %v5615_v39 = vor.u32 %v7467_v22, %v5612_v24  ;;  %v3970_v24 = vpop.f32.mrf.mxu3 }
 0x2e3   :  { %v5868_v29 = vld [vmem:[#allocation8 + $0x6b8] sm:$0xf0] }
 0x2e4   :  { %4222 = vmatpush.bf16.msra.mxu3 %v5935_v5  ;;  %v7323_v30 = vld [vmem:[#allocation8 + $0x1c] sm:$0xf]  ;;  %4198 = vmatpush.bf16.msra.mxu1 %v5359_v11  ;;  %v5871_v47 = vor.u32 %v7531_v28, %v5868_v29 }
 0x2e5   :  { %v5292_v36 = vld [vmem:[#allocation8 + $0x238] sm:$0xf0]  ;;  %v5039_v53 = vor.u32 %v7323_v30, %v5036_v32 }
 0x2e6   :  { %4210 = vmatpush.bf16.msra.mxu2 %v5647_v15  ;;  %v7635_v14 = vld [vmem:[#allocation8 + $0x9dc] sm:$0xf]  ;;  %4186 = vmatpush.bf16.msra.mxu0 %v5071_v27  ;;  %v5295_v54 = vor.u32 %v7387_v33, %v5292_v36 }
 0x2e7   :  { %v6284_v42 = vld [vmem:[#allocation8 + $0x9f8] sm:$0xf0] }
 0x2e8   :  { %v7699_v43 = vld [vmem:[#allocation8 + $0xbdc] sm:$0xf]  ;;  %4223 = vmatpush.bf16.msra.mxu3 %v5903_v21  ;;  %4199 = vmatpush.bf16.msra.mxu1 %v5327_v31  ;;  %v6287_v57 = vor.u32 %v7635_v14, %v6284_v42 }
 0x2e9   :  { %v6540_v41 = vld [vmem:[#allocation8 + $0xbf8] sm:$0xf0] }
 0x2ea   :  { %v7459_v48 = vld [vmem:[#allocation8 + $0x45c] sm:$0xf]  ;;  %4211 = vmatpush.bf16.msra.mxu2 %v5615_v39  ;;  %v6543_v61 = vor.u32 %v7699_v43, %v6540_v41  ;;  %4187 = vmatpush.bf16.msra.mxu0 %v5039_v53 }
 0x2eb   :  { %v5580_v52 = vld [vmem:[#allocation8 + $0x478] sm:$0xf0] }
 0x2ec   :  { %v7523_v20 = vld [vmem:[#allocation8 + $0x65c] sm:$0xf]  ;;  %v5583_v60 = vor.u32 %v7459_v48, %v5580_v52  ;;  %4224 = vmatpush.bf16.msra.mxu3 %v5871_v47  ;;  %4200 = vmatpush.bf16.msra.mxu1 %v5295_v54 }
 0x2ed   :  { %v5836_v56 = vld [vmem:[#allocation8 + $0x678] sm:$0xf0]  ;;  %4188 = vmatmul.bf16.vlgmr.msra.gmra.mxu0 %v8252_v3 }
 0x2ee   :  { %v7627_v58 = vld [vmem:[#allocation8 + $0x99c] sm:$0xf]  ;;  %v5839_v1 = vor.u32 %v7523_v20, %v5836_v56  ;;  %4232 = vmatpush.bf16.msrb.mxu0 %v6287_v57  ;;  %4212 = vmatpush.bf16.msra.mxu2 %v5583_v60  ;;  %v8361_v56 = vpop.f32.mrf.mxu0 }
 0x2ef   :  { %v6252_v45 = vld [vmem:[#allocation8 + $0x9b8] sm:$0xf0]  ;;  %4201 = vmatmul.bf16.vlgmr.msra.gmra.mxu1 %v8254_v9 }
 0x2f0   :  { %v7691_v62 = vld [vmem:[#allocation8 + $0xb9c] sm:$0xf]  ;;  %v6255_v37 = vor.u32 %v7627_v58, %v6252_v45  ;;  %4245 = vmatpush.bf16.msrb.mxu1 %v6543_v61  ;;  %4225 = vmatpush.bf16.msra.mxu3 %v5839_v1  ;;  %v8363_v58 = vpop.f32.mrf.mxu1 }
 0x2f1   :  { %v6508_v63 = vld [vmem:[#allocation8 + $0xbb8] sm:$0xf0] }
 0x2f2   :  { %v7451_v0 = vld [vmem:[#allocation8 + $0x41c] sm:$0xf]  ;;  %v6511_v11 = vor.u32 %v7691_v62, %v6508_v63  ;;  %4233 = vmatpush.bf16.msrb.mxu0 %v6255_v37 }
 0x2f3   :  { %v5548_v2 = vld [vmem:[#allocation8 + $0x438] sm:$0xf0] }
 0x2f4   :  { %v7515_v4 = vld [vmem:[#allocation8 + $0x61c] sm:$0xf]  ;;  %v5551_v12 = vor.u32 %v7451_v0, %v5548_v2  ;;  %4246 = vmatpush.bf16.msrb.mxu1 %v6511_v11 }
 0x2f5   :  { %v5804_v5 = vld [vmem:[#allocation8 + $0x638] sm:$0xf0] }
 0x2f6   :  { %v7763_v6 = vld [vmem:[#allocation8 + $0xddc] sm:$0xf]  ;;  %v5807_v17 = vor.u32 %v7515_v4, %v5804_v5  ;;  %4213 = vmatpush.bf16.msra.mxu2 %v5551_v12 }
 0x2f7   :  { %v6796_v7 = vld [vmem:[#allocation8 + $0xdf8] sm:$0xf0] }
 0x2f8   :  { %v7827_v8 = vld [vmem:[#allocation8 + $0xfdc] sm:$0xf]  ;;  %v6799_v18 = vor.u32 %v7763_v6, %v6796_v7  ;;  %4226 = vmatpush.bf16.msra.mxu3 %v5807_v17  ;;  %v3983_v17 = vpop.f32.mrf.mxu0  ;;  %v3996_v24 = vpop.f32.mrf.mxu1 }
 0x2f9   :  { %v7052_v10 = vld [vmem:[#allocation8 + $0xff8] sm:$0xf0]  ;;  %4214 = vmatmul.bf16.vlgmr.msra.gmra.mxu2 %v8260_v38  ;;  %v7860_v17 = vld [vmem:[#allocation11 + $0xe0] sm:$0xff] }
 0x2fa   :  { %v7619_v13 = vld [vmem:[#allocation8 + $0x95c] sm:$0xf]  ;;  %v7055_v25 = vor.u32 %v7827_v8, %v7052_v10  ;;  %4258 = vmatpush.bf16.msrb.mxu2 %v6799_v18 }
 0x2fb   :  { %v6220_v15 = vld [vmem:[#allocation8 + $0x978] sm:$0xf0]  ;;  %4227 = vmatmul.bf16.vlgmr.msra.gmra.mxu3 %v8262_v44 }
 0x2fc   :  { %v7683_v21 = vld [vmem:[#allocation8 + $0xb5c] sm:$0xf]  ;;  %v6223_v29 = vor.u32 %v7619_v13, %v6220_v15  ;;  %4271 = vmatpush.bf16.msrb.mxu3 %v7055_v25 }
 0x2fd   :  { %v6476_v22 = vld [vmem:[#allocation8 + $0xb78] sm:$0xf0] }
 0x2fe   :  { %v7755_v27 = vld [vmem:[#allocation8 + $0xd9c] sm:$0xf]  ;;  %v6479_v32 = vor.u32 %v7683_v21, %v6476_v22  ;;  %4234 = vmatpush.bf16.msrb.mxu0 %v6223_v29 }
 0x2ff   :  { %v6764_v28 = vld [vmem:[#allocation8 + $0xdb8] sm:$0xf0] }
 0x300   :  { %v7819_v30 = vld [vmem:[#allocation8 + $0xf9c] sm:$0xf]  ;;  %v6767_v3 = vor.u32 %v7755_v27, %v6764_v28  ;;  %4247 = vmatpush.bf16.msrb.mxu1 %v6479_v32 }
 0x301   :  { %v7020_v31 = vld [vmem:[#allocation8 + $0xfb8] sm:$0xf0] }
 0x302   :  { %v7611_v33 = vld [vmem:[#allocation8 + $0x91c] sm:$0xf]  ;;  %v7023_v42 = vor.u32 %v7819_v30, %v7020_v31  ;;  %4259 = vmatpush.bf16.msrb.mxu2 %v6767_v3  ;;  %v8365_v3 = vpop.f32.mrf.mxu2 }
 0x303   :  { %v6188_v36 = vld [vmem:[#allocation8 + $0x938] sm:$0xf0] }
 0x304   :  { %v7675_v39 = vld [vmem:[#allocation8 + $0xb1c] sm:$0xf]  ;;  %v6191_v46 = vor.u32 %v7611_v33, %v6188_v36  ;;  %4272 = vmatpush.bf16.msrb.mxu3 %v7023_v42 }
 0x305   :  { %v6444_v14 = vld [vmem:[#allocation8 + $0xb38] sm:$0xf0] }
 0x306   :  { %v7747_v9 = vld [vmem:[#allocation8 + $0xd5c] sm:$0xf]  ;;  %v6447_v48 = vor.u32 %v7675_v39, %v6444_v14  ;;  %4235 = vmatpush.bf16.msrb.mxu0 %v6191_v46 }
 0x307   :  { %v6732_v43 = vld [vmem:[#allocation8 + $0xd78] sm:$0xf0] }
 0x308   :  { %v7811_v47 = vld [vmem:[#allocation8 + $0xf5c] sm:$0xf]  ;;  %v6735_v40 = vor.u32 %v7747_v9, %v6732_v43  ;;  %4248 = vmatpush.bf16.msrb.mxu1 %v6447_v48  ;;  %v8367_v9 = vpop.f32.mrf.mxu3  ;;  %v7839_v48 = vld [vmem:[#allocation11 + $0x38] sm:$0xff] }
 0x309   :  { %v6988_v41 = vld [vmem:[#allocation8 + $0xf78] sm:$0xf0] }
 0x30a   :  { %v7603_v52 = vld [vmem:[#allocation8 + $0x8dc] sm:$0xf]  ;;  %v6991_v54 = vor.u32 %v7811_v47, %v6988_v41  ;;  %4260 = vmatpush.bf16.msrb.mxu2 %v6735_v40 }
 0x30b   :  { %v6156_v51 = vld [vmem:[#allocation8 + $0x8f8] sm:$0xf0] }
 0x30c   :  { %v7667_v53 = vld [vmem:[#allocation8 + $0xadc] sm:$0xf]  ;;  %v6159_v61 = vor.u32 %v7603_v52, %v6156_v51  ;;  %4273 = vmatpush.bf16.msrb.mxu3 %v6991_v54  ;;  %v7847_v52 = vld [vmem:[#allocation11 + $0x78] sm:$0xff] }
 0x30d   :  { %v6412_v20 = vld [vmem:[#allocation8 + $0xaf8] sm:$0xf0] }
 0x30e   :  { %v7739_v57 = vld [vmem:[#allocation8 + $0xd1c] sm:$0xf]  ;;  %v6415_v45 = vor.u32 %v7667_v53, %v6412_v20  ;;  %4236 = vmatpush.bf16.msrb.mxu0 %v6159_v61 }
 0x30f   :  { %v6700_v38 = vld [vmem:[#allocation8 + $0xd38] sm:$0xf0] }
 0x310   :  { %v7803_v60 = vld [vmem:[#allocation8 + $0xf1c] sm:$0xf]  ;;  %v6703_v1 = vor.u32 %v7739_v57, %v6700_v38  ;;  %4249 = vmatpush.bf16.msrb.mxu1 %v6415_v45 }
 0x311   :  { %v6956_v44 = vld [vmem:[#allocation8 + $0xf38] sm:$0xf0] }
 0x312   :  { %v7595_v62 = vld [vmem:[#allocation8 + $0x89c] sm:$0xf]  ;;  %v6959_v4 = vor.u32 %v7803_v60, %v6956_v44  ;;  %4261 = vmatpush.bf16.msrb.mxu2 %v6703_v1  ;;  %v4009_v44 = vpop.f32.mrf.mxu2  ;;  %v7863_v1 = vld [vmem:[#allocation11 + $0xf8] sm:$0xff] }
 0x313   :  { %v6124_v63 = vld [vmem:[#allocation8 + $0x8b8] sm:$0xf0] }
 0x314   :  { %v7659_v0 = vld [vmem:[#allocation8 + $0xa9c] sm:$0xf]  ;;  %v6127_v7 = vor.u32 %v7595_v62, %v6124_v63  ;;  %4274 = vmatpush.bf16.msrb.mxu3 %v6959_v4  ;;  %v7855_v62 = vld [vmem:[#allocation11 + $0xb8] sm:$0xff]  ;;  %v4022_v63 = vpop.f32.mrf.mxu3 }
 0x315   :  { %v6380_v2 = vld [vmem:[#allocation8 + $0xab8] sm:$0xf0] }
 0x316   :  { %v7731_v5 = vld [vmem:[#allocation8 + $0xcdc] sm:$0xf]  ;;  %v6383_v10 = vor.u32 %v7659_v0, %v6380_v2  ;;  %4237 = vmatpush.bf16.msrb.mxu0 %v6127_v7  ;;  %v7837_v0 = vld [vmem:[#allocation11 + $0x28] sm:$0xff]  ;;  %v8372_v7 = vld [vmem:[#allocation10] sm:$0xff] }
 0x317   :  { %v6668_v6 = vld [vmem:[#allocation8 + $0xcf8] sm:$0xf0]  ;;  %v7845_v2 = vld [vmem:[#allocation11 + $0x68] sm:$0xff] }
 0x318   :  { %v7795_v37 = vld [vmem:[#allocation8 + $0xedc] sm:$0xf]  ;;  %v6671_v13 = vor.u32 %v7731_v5, %v6668_v6  ;;  %4250 = vmatpush.bf16.msrb.mxu1 %v6383_v10  ;;  %v4284_v6 = vmul.f32 0.5, %v8302_v23  ;;  %v7853_v10 = vld [vmem:[#allocation11 + $0xa8] sm:$0xff] }
 0x319   :  { %v6924_v8 = vld [vmem:[#allocation8 + $0xef8] sm:$0xf0] }
 0x31a   :  { %v7587_v11 = vld [vmem:[#allocation8 + $0x85c] sm:$0xf]  ;;  %v6927_v18 = vor.u32 %v7795_v37, %v6924_v8  ;;  %4262 = vmatpush.bf16.msrb.mxu2 %v6671_v13  ;;  %v4285_v37 = vmul.f32 0.5, %v8311_v34  ;;  %v7844_v8 = vld [vmem:[#allocation11 + $0x60] sm:$0xff]  ;;  %7925 = vtanh.f32 %v4284_v6  ;;  %v4046_v13 = vpop.f32.mrf.mxu1  ;;  %v4286_v34 = vmul.f32 0.5, %v8325_v35  ;;  %v7877_v6 = vld [vmem:[#allocation11 + $0x168] sm:$0xff] }
 0x31b   :  { %v6092_v12 = vld [vmem:[#allocation8 + $0x878] sm:$0xf0] }
 0x31c   :  { %v7651_v15 = vld [vmem:[#allocation8 + $0xa5c] sm:$0xf]  ;;  %v6095_v25 = vor.u32 %v7587_v11, %v6092_v12  ;;  %4275 = vmatpush.bf16.msrb.mxu3 %v6927_v18  ;;  %v4033_v11 = vpop.f32.mrf.mxu0  ;;  %v7861_v12 = vld [vmem:[#allocation11 + $0xe8] sm:$0xff]  ;;  %7927 = vtanh.f32 %v4285_v37  ;;  %v4288_v37 = vmul.f32 0.5, %v8355_v59 }
 0x31d   :  { %v6348_v16 = vld [vmem:[#allocation8 + $0xa78] sm:$0xf0]  ;;  %7929 = vtanh.f32 %v4286_v34  ;;  %v7875_v34 = vld [vmem:[#allocation11 + $0x158] sm:$0xff] }
 0x31e   :  { %v7723_v21 = vld [vmem:[#allocation8 + $0xc9c] sm:$0xf]  ;;  %v6351_v29 = vor.u32 %v7651_v15, %v6348_v16  ;;  %4238 = vmatpush.bf16.msrb.mxu0 %v6095_v25  ;;  %v7835_v15 = vld [vmem:[#allocation11 + $0x18] sm:$0xff]  ;;  %v4287_v16 = vmul.f32 0.5, %v8341_v49 }
 0x31f   :  { %v6636_v22 = vld [vmem:[#allocation8 + $0xcb8] sm:$0xf0]  ;;  %v7851_v25 = vld [vmem:[#allocation11 + $0x98] sm:$0xff] }
 0x320   :  { %v7787_v27 = vld [vmem:[#allocation8 + $0xe9c] sm:$0xf]  ;;  %v6639_v32 = vor.u32 %v7723_v21, %v6636_v22  ;;  %4251 = vmatpush.bf16.msrb.mxu1 %v6351_v29  ;;  %v7926_v22 = vpop.eup %7925  ;;  %7931 = vtanh.f32 %v4287_v16  ;;  %v7833_v29 = vld [vmem:[#allocation11 + $0x8] sm:$0xff] }
 0x321   :  { %v6892_v28 = vld [vmem:[#allocation8 + $0xeb8] sm:$0xf0]  ;;  %7933 = vtanh.f32 %v4288_v37 }
 0x322   :  { %v7579_v30 = vld [vmem:[#allocation8 + $0x81c] sm:$0xf]  ;;  %v6895_v39 = vor.u32 %v7787_v27, %v6892_v28  ;;  %4263 = vmatpush.bf16.msrb.mxu2 %v6639_v32  ;;  %v7928_v27 = vpop.eup %7927  ;;  %v7859_v28 = vld [vmem:[#allocation11 + $0xd8] sm:$0xff]  ;;  %v4048_v49 = vpop.f32.mrf.mxu1 }
 0x323   :  { %v6060_v31 = vld [vmem:[#allocation8 + $0x838] sm:$0xf0] }
 0x324   :  { %v7643_v33 = vld [vmem:[#allocation8 + $0xa1c] sm:$0xf]  ;;  %v6063_v43 = vor.u32 %v7579_v30, %v6060_v31  ;;  %4276 = vmatpush.bf16.msrb.mxu3 %v6895_v39  ;;  %v4035_v35 = vpop.f32.mrf.mxu0  ;;  %v4300_v30 = vmul.f32 0.5, %v7926_v22  ;;  %v4301_v31 = vmul.f32 0.5, %v7928_v27  ;;  %v7930_v39 = vpop.eup %7929  ;;  %v7865_v22 = vld [vmem:[#allocation11 + $0x108] sm:$0xff] }
 0x325   :  { %v6316_v36 = vld [vmem:[#allocation8 + $0xa38] sm:$0xf0]  ;;  %v7873_v27 = vld [vmem:[#allocation11 + $0x148] sm:$0xff] }
 0x326   :  { %v7715_v14 = vld [vmem:[#allocation8 + $0xc5c] sm:$0xf]  ;;  %v6319_v41 = vor.u32 %v7643_v33, %v6316_v36  ;;  %4239 = vmatpush.bf16.msrb.mxu0 %v6063_v43  ;;  %v4059_v36 = vpop.f32.mrf.mxu2  ;;  %v7832_v43 = vld [vmem:[#allocation11] sm:$0xff] }
 0x327   :  { %v6604_v42 = vld [vmem:[#allocation8 + $0xc78] sm:$0xf0] }
 0x328   :  { %v7779_v46 = vld [vmem:[#allocation8 + $0xe5c] sm:$0xf]  ;;  %v6607_v51 = vor.u32 %v7715_v14, %v6604_v42  ;;  %4252 = vmatpush.bf16.msrb.mxu1 %v6319_v41  ;;  %v4072_v42 = vpop.f32.mrf.mxu3  ;;  %v7840_v41 = vld [vmem:[#allocation11 + $0x40] sm:$0xff] }
 0x329   :  { %v6860_v47 = vld [vmem:[#allocation8 + $0xe78] sm:$0xf0]  ;;  %4240 = vmatmul.bf16.vlgmr.msrb.gmra.mxu0 %v8266_v19  ;;  %v881_v19 = vperm.slane %v8372_v7, 5 }
 0x32a   :  { %v6863_v40 = vor.u32 %v7779_v46, %v6860_v47  ;;  %v7707_v53 = vld [vmem:[#allocation8 + $0xc1c] sm:$0xf]  ;;  %4840 = vmatpush.bf16.msra.mxu0 %v7839_v48  ;;  %4264 = vmatpush.bf16.msrb.mxu2 %v6607_v51  ;;  %v7932_v46 = vpop.eup %7931  ;;  %v4308_v47 = vadd.f32 0.5, %v4300_v30  ;;  %v7871_v48 = vld [vmem:[#allocation11 + $0x138] sm:$0xff] }
 0x32b   :  { %v6572_v20 = vld [vmem:[#allocation8 + $0xc38] sm:$0xf0]  ;;  %4253 = vmatmul.bf16.vlgmr.msrb.gmra.mxu1 %v8268_v26  ;;  %v7836_v26 = vld [vmem:[#allocation11 + $0x20] sm:$0xff]  ;;  %v3982_v23 = vadd.f32 %v8361_v56, %v881_v19  ;;  %v7879_v51 = vld [vmem:[#allocation11 + $0x178] sm:$0xff] }
 0x32c   :  { %v7771_v54 = vld [vmem:[#allocation8 + $0xe1c] sm:$0xf]  ;;  %4853 = vmatpush.bf16.msra.mxu1 %v7847_v52  ;;  %v6575_v60 = vor.u32 %v7707_v53, %v6572_v20  ;;  %4277 = vmatpush.bf16.msrb.mxu3 %v6863_v40  ;;  %v4309_v52 = vadd.f32 0.5, %v4301_v31  ;;  %v7849_v40 = vld [vmem:[#allocation11 + $0x88] sm:$0xff]  ;;  %v4303_v20 = vmul.f32 0.5, %v7932_v46  ;;  %v7883_v30 = vld [vmem:[#allocation11 + $0x198] sm:$0xff] }
 0x32d   :  { %v6828_v57 = vld [vmem:[#allocation8 + $0xe38] sm:$0xf0]  ;;  %v3995_v18 = vadd.f32 %v8363_v58, %v3982_v23  ;;  %v7841_v58 = vld [vmem:[#allocation11 + $0x48] sm:$0xff]  ;;  %v4085_v23 = vpop.f32.mrf.mxu0  ;;  %v7872_v31 = vld [vmem:[#allocation11 + $0x140] sm:$0xff] }
 0x32e   :  { %v7838_v38 = vld [vmem:[#allocation11 + $0x30] sm:$0xff]  ;;  %v6831_v45 = vor.u32 %v7771_v54, %v6828_v57  ;;  %4265 = vmatpush.bf16.msrb.mxu2 %v6575_v60  ;;  %v7857_v53 = vld [vmem:[#allocation11 + $0xc8] sm:$0xff]  ;;  %v4316_v57 = vpack.c.bf16 %v4308_v47, %v4308_v47  ;;  %v4061_v63 = vpop.f32.mrf.mxu2  ;;  %v7880_v47 = vld [vmem:[#allocation11 + $0x180] sm:$0xff] }
 0x32f   :  { %v7846_v61 = vld [vmem:[#allocation11 + $0x70] sm:$0xff]  ;;  %4841 = vmatpush.bf16.msra.mxu0 %v7838_v38  ;;  %v4008_v24 = vadd.f32 %v8365_v3, %v3995_v18 }
 0x330   :  { %4854 = vmatpush.bf16.msra.mxu1 %v7846_v61  ;;  %4278 = vmatpush.bf16.msrb.mxu3 %v6831_v45  ;;  %v7854_v4 = vld [vmem:[#allocation11 + $0xb0] sm:$0xff]  ;;  %v4317_v61 = vpack.c.bf16 %v4309_v52, %v4309_v52  ;;  %v7848_v45 = vld [vmem:[#allocation11 + $0x80] sm:$0xff] }
 0x331   :  { %v7862_v5 = vld [vmem:[#allocation11 + $0xf0] sm:$0xff]  ;;  %4266 = vmatmul.bf16.vlgmr.msrb.gmra.mxu2 %v8272_v50  ;;  %v7843_v50 = vld [vmem:[#allocation11 + $0x58] sm:$0xff]  ;;  %v4021_v32 = vadd.f32 %v8367_v9, %v4008_v24  ;;  %v4302_v9 = vmul.f32 0.5, %v7930_v39  ;;  %v7884_v24 = vld [vmem:[#allocation11 + $0x1a0] sm:$0xff]  ;;  %v882_v39 = vperm.slane %v8372_v7, 6 }
 0x332   :  { %4866 = vmatpush.bf16.msra.mxu2 %v7855_v62  ;;  %v7834_v21 = vld [vmem:[#allocation11 + $0x10] sm:$0xff] }
 0x333   :  { %4842 = vmatpush.bf16.msra.mxu0 %v7837_v0  ;;  %4279 = vmatmul.bf16.vlgmr.msrb.gmra.mxu3 %v8274_v55  ;;  %v7852_v55 = vld [vmem:[#allocation11 + $0xa0] sm:$0xff]  ;;  %v7842_v56 = vld [vmem:[#allocation11 + $0x50] sm:$0xff]  ;;  %v4034_v14 = vadd.f32 %v4033_v11, %v4021_v32  ;;  %v4310_v62 = vadd.f32 0.5, %v4302_v9  ;;  %v4311_v0 = vadd.f32 0.5, %v4303_v20  ;;  %v4086_v46 = vadd.f32 %v4085_v23, %v882_v39  ;;  %v7891_v23 = vld [vmem:[#allocation11 + $0x1d8] sm:$0xff] }
 0x334   :  { %4879 = vmatpush.bf16.msra.mxu3 %v7863_v1  ;;  %4855 = vmatpush.bf16.msra.mxu1 %v7845_v2  ;;  %v7850_v33 = vld [vmem:[#allocation11 + $0x90] sm:$0xff]  ;;  %v7856_v1 = vld [vmem:[#allocation11 + $0xc0] sm:$0xff]  ;;  %v4074_v2 = vpop.f32.mrf.mxu3 }
 0x335   :  { %v7858_v3 = vld [vmem:[#allocation11 + $0xd0] sm:$0xff]  ;;  %v4047_v54 = vadd.f32 %v4046_v13, %v4034_v14  ;;  %v4318_v19 = vpack.c.bf16 %v4310_v62, %v4310_v62 }
 0x336   :  { %4867 = vmatpush.bf16.msra.mxu2 %v7854_v4  ;;  %v7870_v38 = vld [vmem:[#allocation11 + $0x130] sm:$0xff]  ;;  %v7869_v4 = vld [vmem:[#allocation11 + $0x128] sm:$0xff] }
 0x337   :  { %4843 = vmatpush.bf16.msra.mxu0 %v7836_v26  ;;  %v4060_v60 = vadd.f32 %v4059_v36, %v4047_v54  ;;  %v7878_v44 = vld [vmem:[#allocation11 + $0x170] sm:$0xff]  ;;  %v4319_v26 = vpack.c.bf16 %v4311_v0, %v4311_v0  ;;  %v7895_v0 = vld [vmem:[#allocation11 + $0x1f8] sm:$0xff] }
 0x338   :  { %4880 = vmatpush.bf16.msra.mxu3 %v7862_v5  ;;  %4856 = vmatpush.bf16.msra.mxu1 %v7844_v8  ;;  %v7868_v8 = vld [vmem:[#allocation11 + $0x120] sm:$0xff]  ;;  %v7886_v13 = vld [vmem:[#allocation11 + $0x1b0] sm:$0xff] }
 0x339   :  { %v4073_v5 = vadd.f32 %v4072_v42, %v4060_v60  ;;  %v7866_v59 = vld [vmem:[#allocation11 + $0x110] sm:$0xff] }
 0x33a   :  { %4868 = vmatpush.bf16.msra.mxu2 %v7853_v10  ;;  %v7887_v10 = vld [vmem:[#allocation11 + $0x1b8] sm:$0xff]  ;;  %v7874_v16 = vld [vmem:[#allocation11 + $0x150] sm:$0xff] }
 0x33b   :  { %4844 = vmatpush.bf16.msra.mxu0 %v7835_v15  ;;  %v4289_v11 = vmul.f32 0.5, %v4073_v5  ;;  %v4098_v15 = vpop.f32.mrf.mxu1  ;;  %v7894_v5 = vld [vmem:[#allocation11 + $0x1f0] sm:$0xff] }
 0x33c   :  { %4881 = vmatpush.bf16.msra.mxu3 %v7861_v12  ;;  %4857 = vmatpush.bf16.msra.mxu1 %v7843_v50  ;;  %v7876_v12 = vld [vmem:[#allocation11 + $0x160] sm:$0xff]  ;;  %v7867_v50 = vld [vmem:[#allocation11 + $0x118] sm:$0xff]  ;;  %v4124_v49 = vpop.f32.mrf.mxu3 }
 0x33d   :  { %7935 = vtanh.f32 %v4289_v11 }
 0x33e   :  { %4869 = vmatpush.bf16.msra.mxu2 %v7852_v55  ;;  %v7885_v55 = vld [vmem:[#allocation11 + $0x1a8] sm:$0xff] }
 0x33f   :  { %4845 = vmatpush.bf16.msra.mxu0 %v7834_v21  ;;  %v4087_v21 = vpop.f32.mrf.mxu0 }
 0x340   :  { %4882 = vmatpush.bf16.msra.mxu3 %v7860_v17  ;;  %4858 = vmatpush.bf16.msra.mxu1 %v7842_v56  ;;  %v7934_v17 = vpop.eup %7933 }
 0x342   :  { %4870 = vmatpush.bf16.msra.mxu2 %v7851_v25  ;;  %v4304_v25 = vmul.f32 0.5, %v7934_v17 }
 0x343   :  { %4846 = vmatpush.bf16.msra.mxu0 %v7833_v29  ;;  %v7936_v18 = vpop.eup %7935  ;;  %v4100_v56 = vpop.f32.mrf.mxu1  ;;  %v7864_v29 = vld [vmem:[#allocation11 + $0x100] sm:$0xff] }
 0x344   :  { %4883 = vmatpush.bf16.msra.mxu3 %v7859_v28  ;;  %4859 = vmatpush.bf16.msra.mxu1 %v7841_v58  ;;  %v4305_v35 = vmul.f32 0.5, %v7936_v18  ;;  %v4111_v28 = vpop.f32.mrf.mxu2  ;;  %v4312_v58 = vadd.f32 0.5, %v4304_v25  ;;  %v4126_v42 = vpop.f32.mrf.mxu3 }
 0x346   :  { %4871 = vmatpush.bf16.msra.mxu2 %v7850_v33  ;;  %v4313_v32 = vadd.f32 0.5, %v4305_v35  ;;  %v7882_v33 = vld [vmem:[#allocation11 + $0x190] sm:$0xff]  ;;  %v4320_v36 = vpack.c.bf16 %v4312_v58, %v4312_v58 }
 0x347   :  { %4847 = vmatpush.bf16.msra.mxu0 %v7832_v43  ;;  %v7881_v43 = vld [vmem:[#allocation11 + $0x188] sm:$0xff] }
 0x348   :  { %4884 = vmatpush.bf16.msra.mxu3 %v7858_v3  ;;  %4860 = vmatpush.bf16.msra.mxu1 %v7840_v41  ;;  %v4321_v3 = vpack.c.bf16 %v4313_v32, %v4313_v32  ;;  %v4099_v41 = vadd.f32 %v4098_v15, %v4086_v46  ;;  %v883_v15 = vperm.slane %v8372_v7, 7 }
 0x34a   :  { %4872 = vmatpush.bf16.msra.mxu2 %v7849_v40  ;;  %4848 = vmatmul.bf16.vlgmr.msra.gmra.mxu0 %v4316_v57  ;;  %v4112_v52 = vadd.f32 %v4111_v28, %v4099_v41 }
 0x34b   :  { %4892 = vmatpush.bf16.msrb.mxu0 %v7871_v48  ;;  %4861 = vmatmul.bf16.vlgmr.msra.gmra.mxu1 %v4317_v61  ;;  %v4137_v48 = vpop.f32.mrf.mxu0 }
 0x34c   :  { %4905 = vmatpush.bf16.msrb.mxu1 %v7879_v51  ;;  %4885 = vmatpush.bf16.msra.mxu3 %v7857_v53  ;;  %v4113_v14 = vpop.f32.mrf.mxu2  ;;  %v4150_v51 = vpop.f32.mrf.mxu1  ;;  %v4125_v40 = vadd.f32 %v4124_v49, %v4112_v52 }
 0x34e   :  { %4873 = vmatpush.bf16.msra.mxu2 %v7848_v45  ;;  %v4138_v9 = vadd.f32 %v4137_v48, %v4125_v40 }
 0x34f   :  { %4893 = vmatpush.bf16.msrb.mxu0 %v7870_v38 }
 0x350   :  { %4906 = vmatpush.bf16.msrb.mxu1 %v7878_v44  ;;  %4886 = vmatpush.bf16.msra.mxu3 %v7856_v1  ;;  %v4151_v54 = vadd.f32 %v4150_v51, %v4138_v9 }
 0x351   :  { %4874 = vmatmul.bf16.vlgmr.msra.gmra.mxu2 %v4318_v19 }
 0x352   :  { %4918 = vmatpush.bf16.msrb.mxu2 %v7887_v10  ;;  %v7892_v10 = vld [vmem:[#allocation11 + $0x1e0] sm:$0xff] }
 0x353   :  { %4894 = vmatpush.bf16.msrb.mxu0 %v7869_v4  ;;  %4887 = vmatmul.bf16.vlgmr.msra.gmra.mxu3 %v4319_v26  ;;  %v4139_v53 = vpop.f32.mrf.mxu0  ;;  %v7893_v26 = vld [vmem:[#allocation11 + $0x1e8] sm:$0xff] }
 0x354   :  { %4907 = vmatpush.bf16.msrb.mxu1 %v7877_v6  ;;  %v4152_v20 = vpop.f32.mrf.mxu1  ;;  %4931 = vmatpush.bf16.msrb.mxu3 %v7895_v0 }
 0x356   :  { %4919 = vmatpush.bf16.msrb.mxu2 %v7886_v13  ;;  %v7890_v13 = vld [vmem:[#allocation11 + $0x1d0] sm:$0xff] }
 0x357   :  { %4895 = vmatpush.bf16.msrb.mxu0 %v7868_v8 }
 0x358   :  { %4908 = vmatpush.bf16.msrb.mxu1 %v7876_v12  ;;  %v4163_v57 = vpop.f32.mrf.mxu2  ;;  %4932 = vmatpush.bf16.msrb.mxu3 %v7894_v5 }
 0x359   :  { %v4164_v38 = vadd.f32 %v4163_v57, %v4151_v54 }
 0x35a   :  { %4920 = vmatpush.bf16.msrb.mxu2 %v7885_v55  ;;  %v4176_v61 = vpop.f32.mrf.mxu3 }
 0x35b   :  { %4896 = vmatpush.bf16.msrb.mxu0 %v7867_v50  ;;  %v4177_v60 = vadd.f32 %v4176_v61, %v4164_v38 }
 0x35c   :  { %4909 = vmatpush.bf16.msrb.mxu1 %v7875_v34  ;;  %4933 = vmatpush.bf16.msrb.mxu3 %v7893_v26 }
 0x35d   :  { %v4290_v44 = vmul.f32 0.5, %v4177_v60 }
 0x35e   :  { %4921 = vmatpush.bf16.msrb.mxu2 %v7884_v24 }
 0x35f   :  { %4897 = vmatpush.bf16.msrb.mxu0 %v7866_v59  ;;  %7937 = vtanh.f32 %v4290_v44  ;;  %v7889_v59 = vld [vmem:[#allocation11 + $0x1c8] sm:$0xff] }
 0x360   :  { %4910 = vmatpush.bf16.msrb.mxu1 %v7874_v16  ;;  %v4165_v45 = vpop.f32.mrf.mxu2  ;;  %4934 = vmatpush.bf16.msrb.mxu3 %v7892_v10  ;;  %v7888_v16 = vld [vmem:[#allocation11 + $0x1c0] sm:$0xff] }
 0x362   :  { %4922 = vmatpush.bf16.msrb.mxu2 %v7883_v30  ;;  %v4178_v62 = vpop.f32.mrf.mxu3 }
 0x363   :  { %4898 = vmatpush.bf16.msrb.mxu0 %v7865_v22 }
 0x364   :  { %4911 = vmatpush.bf16.msrb.mxu1 %v7873_v27  ;;  %4935 = vmatpush.bf16.msrb.mxu3 %v7891_v23 }
 0x365   :  { %v7938_v63 = vpop.eup %7937 }
 0x366   :  { %4923 = vmatpush.bf16.msrb.mxu2 %v7882_v33  ;;  %v4306_v1 = vmul.f32 0.5, %v7938_v63 }
 0x367   :  { %4899 = vmatpush.bf16.msrb.mxu0 %v7864_v29 }
 0x368   :  { %4912 = vmatpush.bf16.msrb.mxu1 %v7872_v31  ;;  %v4314_v2 = vadd.f32 0.5, %v4306_v1  ;;  %4936 = vmatpush.bf16.msrb.mxu3 %v7890_v13 }
 0x36a   :  { %4900 = vmatmul.bf16.vlgmr.msrb.gmra.mxu0 %v4320_v36  ;;  %4924 = vmatpush.bf16.msrb.mxu2 %v7881_v43  ;;  %v4189_v4 = vpop.f32.mrf.mxu0  ;;  %v4322_v6 = vpack.c.bf16 %v4314_v2, %v4314_v2  ;;  %v7908_v36 = vld [vmem:[#allocation13] ss:$0 sm:$0xff] }
 0x36b   :  { %4913 = vmatmul.bf16.vlgmr.msrb.gmra.mxu1 %v4321_v3  ;;  %v4190_v55 = vadd.f32 %v4189_v4, %v883_v15 }
 0x36c   :  { %v4202_v19 = vpop.f32.mrf.mxu1  ;;  %4937 = vmatpush.bf16.msrb.mxu3 %v7889_v59 }
 0x36d   :  { %v4203_v17 = vadd.f32 %v4202_v19, %v4190_v55 }
 0x36e   :  { %4925 = vmatpush.bf16.msrb.mxu2 %v7880_v47 }
 0x370   :  { %4938 = vmatpush.bf16.msrb.mxu3 %v7888_v16 }
 0x371   :  { %4926 = vmatmul.bf16.vlgmr.msrb.gmra.mxu2 %v4322_v6 }
 0x372   :  { %v4191_v37 = vpop.f32.mrf.mxu0 }
 0x374   :  { %v4204_v8 = vpop.f32.mrf.mxu1 }
 0x37c   :  { %v4215_v11 = vpop.f32.mrf.mxu2 }
 0x37d   :  { %v4216_v21 = vadd.f32 %v4215_v11, %v4203_v17 }
 0x37e   :  { %v4228_v12 = vpop.f32.mrf.mxu3 }
 0x37f   :  { %v4229_v22 = vadd.f32 %v4228_v12, %v4216_v21 }
 0x384   :  { %v4217_v50 = vpop.f32.mrf.mxu2 }
 0x386   :  { %v4230_v34 = vpop.f32.mrf.mxu3 }
 0x3a6   :  { %v4241_v18 = vpop.f32.mrf.mxu0 }
 0x3a7   :  { %v4242_v24 = vadd.f32 %v4241_v18, %v4229_v22 }
 0x3a8   :  { %v4254_v56 = vpop.f32.mrf.mxu1 }
 0x3a9   :  { %v4255_v35 = vadd.f32 %v4254_v56, %v4242_v24 }
 0x3ae   :  { %v4243_v25 = vpop.f32.mrf.mxu0 }
 0x3b0   :  { %v4256_v27 = vpop.f32.mrf.mxu1 }
 0x3b4   :  { %v4267_v28 = vpop.f32.mrf.mxu2 }
 0x3b5   :  { %v4268_v49 = vadd.f32 %v4267_v28, %v4255_v35 }
 0x3b6   :  { %v4280_v29 = vpop.f32.mrf.mxu3 }
 0x3b7   :  { %v4281_v7 = vadd.f32 %v4280_v29, %v4268_v49 }
 0x3b9   :  { %v4291_v30 = vmul.f32 0.5, %v4281_v7 }
 0x3bb   :  { %7939 = vtanh.f32 %v4291_v30 }
 0x3bc   :  { %v4269_v58 = vpop.f32.mrf.mxu2 }
 0x3be   :  { %v4282_v31 = vpop.f32.mrf.mxu3 }
 0x3c1   :  { %v7940_v32 = vpop.eup %7939 }
 0x3c2   :  { %v4307_v33 = vmul.f32 0.5, %v7940_v32 }
 0x3c4   :  { %v4315_v3 = vadd.f32 0.5, %v4307_v33 }
 0x3c6   :  { %v4323_v14 = vpack.c.bf16 %v4315_v3, %v4315_v3 }
 0x3c7   :  { %v4849_v39 = vpop.f32.mrf.mxu0 }
 0x3c8   :  { %v4850_v42 = vadd.f32 %v7908_v36, %v4849_v39  ;;  %v4862_v43 = vpop.f32.mrf.mxu1  ;;  %4939 = vmatmul.bf16.vlgmr.msrb.gmra.mxu3 %v4323_v14 }
 0x3ca   :  { %v4863_v46 = vadd.f32 %v4862_v43, %v4850_v42 }
 0x3cf   :  { %v4851_v47 = vpop.f32.mrf.mxu0 }
 0x3d0   :  { %v4864_v41 = vpop.f32.mrf.mxu1 }
 0x3d4   :  { %v4875_v48 = vpop.f32.mrf.mxu2 }
 0x3d5   :  { %v4876_v52 = vadd.f32 %v4875_v48, %v4863_v46 }
 0x3d6   :  { %v4888_v51 = vpop.f32.mrf.mxu3 }
 0x3d7   :  { %v4889_v40 = vadd.f32 %v4888_v51, %v4876_v52 }
 0x3dc   :  { %v4877_v9 = vpop.f32.mrf.mxu2 }
 0x3de   :  { %v4890_v53 = vpop.f32.mrf.mxu3 }
 0x3e7   :  { %v4901_v20 = vpop.f32.mrf.mxu0 }
 0x3e8   :  { %v4902_v54 = vadd.f32 %v4901_v20, %v4889_v40  ;;  %v4914_v57 = vpop.f32.mrf.mxu1 }
 0x3ea   :  { %v4915_v38 = vadd.f32 %v4914_v57, %v4902_v54 }
 0x3ef   :  { %v4903_v61 = vpop.f32.mrf.mxu0 }
 0x3f0   :  { %v4916_v60 = vpop.f32.mrf.mxu1 }
 0x3f4   :  { %v4927_v44 = vpop.f32.mrf.mxu2 }
 0x3f5   :  { %v4928_v62 = vadd.f32 %v4927_v44, %v4915_v38 }
 0x3fc   :  { %v4929_v45 = vpop.f32.mrf.mxu2 }
 0x44b   :  { %v4940_v63 = vpop.f32.mrf.mxu3 }
 0x44c   :  { %v4941_v1 = vadd.f32 %v4940_v63, %v4928_v62 }
 0x44e   :  { %vm4944_vm2 = vcmp.ge.f32.partialorder %v4941_v1, 0.0  ;;  %v4945_v0 = vmul.f32 0.01, %v4941_v1 }
 0x450   :  { %v4946_v2 = vsel %vm4944_vm2, %v4941_v1, %v4945_v0 }
 0x451   :  { %4947 = vst [vmem:[#allocation14] sm:$0xff] %v4946_v2 }
 0x452   :  { %4958 = dma.vmem_to_hbm [thread:$0]  %s4954_s6, 128, %s4956_s14, [#allocation4]  }
 0x453   :  { %v4942_v4 = vpop.f32.mrf.mxu3 }
 0x454   :  { %8143 = dma.done.wait [#allocation4], 128  }
 0x455   :  { %8144 = vsyncadd [#allocation4], 4294967168 }
 0x456   :  { %4963 = vsyncpa [#allocation3], 1 }
 0x457   :  { %4964 = vsyncpa [#allocation6], 1 }
 0x458   :  { %4965 = vsyncpa [#allocation9], 1 }
 0x459   :  { %4966 = vsyncpa [#allocation12], 1 }
 0x45a   :  { %4967 = vsyncpa [#allocation4], 1 }

// kernel: tpu_custom_call.1
= control target key start
LH: loop header
LB: loop body
LE: loop exit
PB: predicated region body
PF: predicated region fallthrough
CT: control target
= control target key end

     0   :  { %12 = vsyncpa [#allocation3], 0  ;;  %s8390_s0 = inlined_call_operand.hbm [shape: f32[8,12], index: 0, kind: input, shape index: {}]   ;;  %s8391_s1 = inlined_call_operand.hbm [shape: bf16[12,1024], index: 1, kind: input, shape index: {}]   ;;  %s8392_s2 = inlined_call_operand.hbm [shape: f32[1,1024], index: 2, kind: input, shape index: {}]   ;;  %s8393_s3 = inlined_call_operand.hbm [shape: bf16[1024,1024], index: 3, kind: input, shape index: {}]   ;;  %s8394_s4 = inlined_call_operand.hbm [shape: f32[1,1024], index: 4, kind: input, shape index: {}]   ;;  %s8395_s5 = inlined_call_operand.hbm [shape: bf16[1024,128], index: 5, kind: input, shape index: {}]   ;;  %s8396_s6 = inlined_call_operand.hbm [shape: f32[1,128], index: 6, kind: input, shape index: {}]   ;;  %s8397_s7 = inlined_call_operand.hbm [shape: f32[8,128], index: 7, kind: output, shape index: {}]  }
   0x1   :  { %13 = vsyncpa [#allocation6], 0 }
   0x2   :  { %14 = vsyncpa [#allocation9], 0 }
   0x3   :  { %15 = vsyncpa [#allocation12], 0  ;;  %s32_s26 = sshll.u32 %s8391_s1, 4  ;;  %s33_s26 = int_to_ptr.hbm [resolvable:$true] %s32_s26 }
   0x4   :  { %16 = vsyncpa [#allocation4], 0  ;;  %s8145_s27 = smov [#allocation5]   ;;  %s56_s8 = sshll.u32 %s8393_s3, 4  ;;  %s57_s8 = int_to_ptr.hbm [resolvable:$true] %s56_s8 }
   0x5   :  { %s34_s28 = sshll.u32 %s8145_s27, 4  ;;  %s8146_s9 = smov 512   ;;  %s35_s28 = int_to_ptr.vmem [resolvable:$true] %s34_s28 }
   0x6   :  { %s8147_s10 = smov 32   ;;  %s8148_s11 = smov [#allocation8]  }
   0x7   :  { %40 = dma.hbm_to_vmem [thread:$0]  %s33_s26, 1024, %s35_s28, [#allocation6], %s8146_s9, %s8146_s9, %s8147_s10  }
   0x8   :  { %s58_s12 = sshll.u32 %s8148_s11, 4  ;;  %s80_s15 = sshll.u32 %s8395_s5, 4  ;;  %s59_s12 = int_to_ptr.vmem [resolvable:$true] %s58_s12  ;;  %s81_s15 = int_to_ptr.hbm [resolvable:$true] %s80_s15 }
   0x9   :  { %64 = dma.hbm_to_vmem [thread:$0]  %s57_s8, 65536, %s59_s12, [#allocation9], %s8146_s9, %s8146_s9, %s8147_s10  }
   0xa   :  { %s8149_s1 = smov [#allocation11]   ;;  %s22_s3 = sshll.u32 %s8390_s0, 4  ;;  %s23_s3 = int_to_ptr.hbm [resolvable:$true] %s22_s3 }
   0xb   :  { %s82_s16 = sshll.u32 %s8149_s1, 4  ;;  %s8150_s19 = smov 64   ;;  %s83_s16 = int_to_ptr.vmem [resolvable:$true] %s82_s16 }
   0xc   :  { %s8151_s20 = smov 4   ;;  %s8152_s21 = smov [#allocation2]  }
   0xd   :  { %88 = dma.hbm_to_vmem [thread:$0]  %s81_s15, 8192, %s83_s16, [#allocation12], %s8150_s19, %s8150_s19, %s8151_s20  }
   0xe   :  { %s24_s22 = sshll.u32 %s8152_s21, 4  ;;  %s46_s5 = sshll.u32 %s8392_s2, 4  ;;  %s25_s22 = int_to_ptr.vmem [resolvable:$true] %s24_s22  ;;  %s47_s5 = int_to_ptr.hbm [resolvable:$true] %s46_s5 }
   0xf   :  { %27 = dma.hbm_to_vmem [thread:$0]  %s23_s3, 128, %s25_s22, [#allocation3]  }
  0x10   :  { %s70_s27 = sshll.u32 %s8394_s4, 4  ;;  %s8153_s28 = smov [#allocation7]   ;;  %s71_s27 = int_to_ptr.hbm [resolvable:$true] %s70_s27 }
  0x11   :  { %s48_s29 = sshll.u32 %s8153_s28, 4  ;;  %s8154_s0 = smov [#allocation10]   ;;  %s49_s29 = int_to_ptr.vmem [resolvable:$true] %s48_s29 }
  0x12   :  { %51 = dma.hbm_to_vmem [thread:$0]  %s47_s5, 128, %s49_s29, [#allocation6]  }
  0x13   :  { %s72_s30 = sshll.u32 %s8154_s0, 4  ;;  %s94_s10 = sshll.u32 %s8396_s6, 4  ;;  %s73_s30 = int_to_ptr.vmem [resolvable:$true] %s72_s30  ;;  %s95_s10 = int_to_ptr.hbm [resolvable:$true] %s94_s10 }
  0x14   :  { %75 = dma.hbm_to_vmem [thread:$0]  %s71_s27, 128, %s73_s30, [#allocation9]  }
  0x15   :  { %s8155_s2 = smov [#allocation13]  }
  0x16   :  { %s96_s11 = sshll.u32 %s8155_s2, 4  ;;  %s97_s11 = int_to_ptr.vmem [resolvable:$true] %s96_s11 }
  0x17   :  { %99 = dma.hbm_to_vmem [thread:$0]  %s95_s10, 16, %s97_s11, [#allocation12]  }
  0x18   :  { %8135 = dma.done.wait [#allocation3], 128  }
  0x19   :  { %8136 = vsyncadd [#allocation3], 4294967168 }
  0x1a   :  { %8137 = dma.done.wait [#allocation6], 1152  }
  0x1b   :  { %8138 = vsyncadd [#allocation6], 4294966144 }
  0x1c   :  { %8139 = dma.done.wait [#allocation9], 65664  }
  0x1d   :  { %8140 = vsyncadd [#allocation9], 4294901632 }
  0x1e   :  { %8141 = dma.done.wait [#allocation12], 8208  }
  0x1f   :  { %8142 = vsyncadd [#allocation12], 4294959088  ;;  %vm193_vm0 = vcmask 1045504   ;;  %v4970_v0 = vld [vmem:[#allocation5] sm:$0xf]  ;;  %v129_v11 = vld [vmem:[#allocation2] sm:$0xff] }
  0x20   :  { %v7316_v1 = vld [vmem:[#allocation5 + $0x1c] sm:$0x30]  ;;  %v7312_v2 = vld [vmem:[#allocation5 + $0x4] sm:$0xf]  ;;  %v4978_v5 = vld [vmem:[#allocation5 + $0x8] sm:$0xf]  ;;  %v8219_v14 = vpack.c.bf16 %v129_v11, %v129_v11 }
  0x21   :  { %v4971_v3 = vor.u32 %v7316_v1, %v4970_v0  ;;  %v4972_v4 = vld [vmem:[#allocation5 + $0x20] sm:$0x30]  ;;  %v7317_v6 = vld [vmem:[#allocation5 + $0x24] sm:$0x30]  ;;  %v7313_v9 = vld [vmem:[#allocation5 + $0xc] sm:$0xf] }
  0x22   :  { %v4975_v7 = vor.u32 %v7312_v2, %v4972_v4  ;;  %v4979_v8 = vor.u32 %v7317_v6, %v4978_v5  ;;  %v4980_v10 = vld [vmem:[#allocation5 + $0x28] sm:$0x30]  ;;  %vm189_vm1 = vcmask 97280   ;;  %v4986_v15 = vld [vmem:[#allocation5 + $0x10] sm:$0xf]  ;;  %s8156_s4 = smov [#allocation14]  }
  0x23   :  { %v195_v12 = vsel %vm193_vm0, %v4971_v3, 0  ;;  %v4983_v13 = vor.u32 %v7313_v9, %v4980_v10  ;;  %v7318_v16 = vld [vmem:[#allocation5 + $0x2c] sm:$0x30]  ;;  %v7314_v20 = vld [vmem:[#allocation5 + $0x14] sm:$0xf]  ;;  %s4953_s6 = sshll.u32 %s8156_s4, 4  ;;  %s4954_s6 = int_to_ptr.vmem [resolvable:$true] %s4953_s6 }
  0x24   :  { %225 = vmatpush.bf16.msra.mxu0 %v195_v12  ;;  %v198_v17 = vsel %vm193_vm0, %v4975_v7, 0  ;;  %v201_v18 = vsel %vm193_vm0, %v4979_v8, 0  ;;  %v4987_v19 = vor.u32 %v7318_v16, %v4986_v15  ;;  %v4988_v21 = vld [vmem:[#allocation5 + $0x30] sm:$0x30]  ;;  %v4994_v24 = vld [vmem:[#allocation5 + $0x18] sm:$0xf] }
  0x25   :  { %238 = vmatpush.bf16.msra.mxu1 %v198_v17  ;;  %251 = vmatpush.bf16.msra.mxu2 %v201_v18  ;;  %v204_v22 = vsel %vm193_vm0, %v4983_v13, 0  ;;  %v4991_v23 = vor.u32 %v7314_v20, %v4988_v21  ;;  %v7319_v25 = vld [vmem:[#allocation5 + $0x34] sm:$0x30]  ;;  %v7315_v28 = vld [vmem:[#allocation5 + $0x1c] sm:$0xf]  ;;  %s4955_s14 = sshll.u32 %s8397_s7, 4  ;;  %s4956_s14 = int_to_ptr.hbm [resolvable:$true] %s4955_s14 }
  0x26   :  { %264 = vmatpush.bf16.msra.mxu3 %v204_v22  ;;  %v207_v26 = vsel %vm193_vm0, %v4987_v19, 0  ;;  %v4995_v27 = vor.u32 %v7319_v25, %v4994_v24  ;;  %v4996_v29 = vld [vmem:[#allocation5 + $0x38] sm:$0x30]  ;;  %v5234_v32 = vld [vmem:[#allocation8 + $0x1c0] sm:$0xf] }
  0x27   :  { %5000 = vmatmul.msk.bf16.vlgmr.msra.gmra.mxu0 %vm189_vm1, %v8219_v14  ;;  %v210_v30 = vsel %vm193_vm0, %v4991_v23, 0  ;;  %v4999_v31 = vor.u32 %v7315_v28, %v4996_v29  ;;  %v7380_v33 = vld [vmem:[#allocation8 + $0x1dc] sm:$0xf0] }
  0x28   :  { %5001 = vmatmul.msk.bf16.vlgmr.msra.gmra.mxu1 %vm189_vm1, %v8219_v14  ;;  %5002 = vmatmul.msk.bf16.vlgmr.msra.gmra.mxu2 %vm189_vm1, %v8219_v14  ;;  %v213_v34 = vsel %vm193_vm0, %v4995_v27, 0  ;;  %v5235_v35 = vor.u32 %v7380_v33, %v5234_v32  ;;  %v5490_v36 = vld [vmem:[#allocation8 + $0x3c0] sm:$0xf] }
  0x29   :  { %v7444_v37 = vld [vmem:[#allocation8 + $0x3dc] sm:$0xf0]  ;;  %5003 = vmatmul.msk.bf16.vlgmr.msra.gmra.mxu3 %vm189_vm1, %v8219_v14  ;;  %277 = vmatpush.bf16.msrb.mxu0 %v207_v26  ;;  %v216_v38 = vsel %vm193_vm0, %v4999_v31, 0 }
  0x2a   :  { %v5491_v39 = vor.u32 %v7444_v37, %v5490_v36  ;;  %v5202_v40 = vld [vmem:[#allocation8 + $0x180] sm:$0xf]  ;;  %290 = vmatpush.bf16.msrb.mxu1 %v210_v30  ;;  %303 = vmatpush.bf16.msrb.mxu2 %v213_v34 }
  0x2b   :  { %v7372_v41 = vld [vmem:[#allocation8 + $0x19c] sm:$0xf0]  ;;  %316 = vmatpush.bf16.msrb.mxu3 %v216_v38 }
  0x2c   :  { %v5458_v42 = vld [vmem:[#allocation8 + $0x380] sm:$0xf]  ;;  %v5203_v45 = vor.u32 %v7372_v41, %v5202_v40 }
  0x2d   :  { %v7436_v43 = vld [vmem:[#allocation8 + $0x39c] sm:$0xf0]  ;;  %3452 = vmatpush.bf16.msra.mxu0 %v5235_v35 }
  0x2e   :  { %v5746_v44 = vld [vmem:[#allocation8 + $0x5c0] sm:$0xf]  ;;  %3465 = vmatpush.bf16.msra.mxu1 %v5491_v39  ;;  %v5459_v49 = vor.u32 %v7436_v43, %v5458_v42 }
  0x2f   :  { %v7508_v46 = vld [vmem:[#allocation8 + $0x5dc] sm:$0xf0] }
  0x30   :  { %v6002_v47 = vld [vmem:[#allocation8 + $0x7c0] sm:$0xf]  ;;  %v5747_v50 = vor.u32 %v7508_v46, %v5746_v44 }
  0x31   :  { %v7572_v48 = vld [vmem:[#allocation8 + $0x7dc] sm:$0xf0]  ;;  %3453 = vmatpush.bf16.msra.mxu0 %v5203_v45 }
  0x32   :  { %v6003_v51 = vor.u32 %v7572_v48, %v6002_v47  ;;  %v5170_v52 = vld [vmem:[#allocation8 + $0x140] sm:$0xf]  ;;  %3478 = vmatpush.bf16.msra.mxu2 %v5747_v50  ;;  %3466 = vmatpush.bf16.msra.mxu1 %v5459_v49 }
  0x33   :  { %v7364_v53 = vld [vmem:[#allocation8 + $0x15c] sm:$0xf0] }
  0x34   :  { %v5426_v54 = vld [vmem:[#allocation8 + $0x340] sm:$0xf]  ;;  %3491 = vmatpush.bf16.msra.mxu3 %v6003_v51  ;;  %v5171_v61 = vor.u32 %v7364_v53, %v5170_v52 }
  0x35   :  { %v7428_v55 = vld [vmem:[#allocation8 + $0x35c] sm:$0xf0] }
  0x36   :  { %v5714_v56 = vld [vmem:[#allocation8 + $0x580] sm:$0xf]  ;;  %v5427_v63 = vor.u32 %v7428_v55, %v5426_v54  ;;  %3454 = vmatpush.bf16.msra.mxu0 %v5171_v61 }
  0x37   :  { %v7500_v57 = vld [vmem:[#allocation8 + $0x59c] sm:$0xf0]  ;;  %5004 = vmatmul.msk.bf16.vlgmr.msrb.gmra.mxu0 %vm189_vm1, %v8219_v14 }
  0x38   :  { %v5715_v58 = vor.u32 %v7500_v57, %v5714_v56  ;;  %v5970_v59 = vld [vmem:[#allocation8 + $0x780] sm:$0xf]  ;;  %3467 = vmatpush.bf16.msra.mxu1 %v5427_v63  ;;  %5006 = vmatmul.msk.bf16.vlgmr.msrb.gmra.mxu2 %vm189_vm1, %v8219_v14 }
  0x39   :  { %v7564_v60 = vld [vmem:[#allocation8 + $0x79c] sm:$0xf0]  ;;  %5005 = vmatmul.msk.bf16.vlgmr.msrb.gmra.mxu1 %vm189_vm1, %v8219_v14  ;;  %5007 = vmatmul.msk.bf16.vlgmr.msrb.gmra.mxu3 %vm189_vm1, %v8219_v14 }
  0x3a   :  { %v5971_v62 = vor.u32 %v7564_v60, %v5970_v59  ;;  %v5682_v0 = vld [vmem:[#allocation8 + $0x540] sm:$0xf]  ;;  %3479 = vmatpush.bf16.msra.mxu2 %v5715_v58 }
  0x3b   :  { %v7492_v1 = vld [vmem:[#allocation8 + $0x55c] sm:$0xf0] }
  0x3c   :  { %v5938_v2 = vld [vmem:[#allocation8 + $0x740] sm:$0xf]  ;;  %3492 = vmatpush.bf16.msra.mxu3 %v5971_v62  ;;  %v5683_v7 = vor.u32 %v7492_v1, %v5682_v0 }
  0x3d   :  { %v7556_v3 = vld [vmem:[#allocation8 + $0x75c] sm:$0xf0] }
  0x3e   :  { %v5138_v4 = vld [vmem:[#allocation8 + $0x100] sm:$0xf]  ;;  %v5939_v8 = vor.u32 %v7556_v3, %v5938_v2  ;;  %3480 = vmatpush.bf16.msra.mxu2 %v5683_v7 }
  0x3f   :  { %v7356_v5 = vld [vmem:[#allocation8 + $0x11c] sm:$0xf0] }
  0x40   :  { %v5394_v6 = vld [vmem:[#allocation8 + $0x300] sm:$0xf]  ;;  %v5139_v15 = vor.u32 %v7356_v5, %v5138_v4  ;;  %3493 = vmatpush.bf16.msra.mxu3 %v5939_v8 }
  0x41   :  { %v7420_v9 = vld [vmem:[#allocation8 + $0x31c] sm:$0xf0] }
  0x42   :  { %v5650_v10 = vld [vmem:[#allocation8 + $0x500] sm:$0xf]  ;;  %v5395_v16 = vor.u32 %v7420_v9, %v5394_v6  ;;  %3455 = vmatpush.bf16.msra.mxu0 %v5139_v15 }
  0x43   :  { %v7484_v11 = vld [vmem:[#allocation8 + $0x51c] sm:$0xf0] }
  0x44   :  { %v5906_v12 = vld [vmem:[#allocation8 + $0x700] sm:$0xf]  ;;  %v5651_v20 = vor.u32 %v7484_v11, %v5650_v10  ;;  %3468 = vmatpush.bf16.msra.mxu1 %v5395_v16 }
  0x45   :  { %v7548_v13 = vld [vmem:[#allocation8 + $0x71c] sm:$0xf0] }
  0x46   :  { %v5106_v17 = vld [vmem:[#allocation8 + $0xc0] sm:$0xf]  ;;  %v5907_v22 = vor.u32 %v7548_v13, %v5906_v12  ;;  %3481 = vmatpush.bf16.msra.mxu2 %v5651_v20 }
  0x47   :  { %v7348_v18 = vld [vmem:[#allocation8 + $0xdc] sm:$0xf0] }
  0x48   :  { %v5362_v19 = vld [vmem:[#allocation8 + $0x2c0] sm:$0xf]  ;;  %v5107_v27 = vor.u32 %v7348_v18, %v5106_v17  ;;  %3494 = vmatpush.bf16.msra.mxu3 %v5907_v22 }
  0x49   :  { %v7412_v21 = vld [vmem:[#allocation8 + $0x2dc] sm:$0xf0] }
  0x4a   :  { %v5618_v23 = vld [vmem:[#allocation8 + $0x4c0] sm:$0xf]  ;;  %v5363_v28 = vor.u32 %v7412_v21, %v5362_v19  ;;  %3456 = vmatpush.bf16.msra.mxu0 %v5107_v27 }
  0x4b   :  { %v7476_v24 = vld [vmem:[#allocation8 + $0x4dc] sm:$0xf0] }
  0x4c   :  { %v5874_v25 = vld [vmem:[#allocation8 + $0x6c0] sm:$0xf]  ;;  %v5619_v32 = vor.u32 %v7476_v24, %v5618_v23  ;;  %3469 = vmatpush.bf16.msra.mxu1 %v5363_v28 }
  0x4d   :  { %v7540_v26 = vld [vmem:[#allocation8 + $0x6dc] sm:$0xf0] }
  0x4e   :  { %v5074_v29 = vld [vmem:[#allocation8 + $0x80] sm:$0xf]  ;;  %v5875_v34 = vor.u32 %v7540_v26, %v5874_v25  ;;  %3482 = vmatpush.bf16.msra.mxu2 %v5619_v32 }
  0x4f   :  { %v7340_v30 = vld [vmem:[#allocation8 + $0x9c] sm:$0xf0] }
  0x50   :  { %v5330_v31 = vld [vmem:[#allocation8 + $0x280] sm:$0xf]  ;;  %v5075_v39 = vor.u32 %v7340_v30, %v5074_v29  ;;  %3495 = vmatpush.bf16.msra.mxu3 %v5875_v34 }
  0x51   :  { %v7404_v33 = vld [vmem:[#allocation8 + $0x29c] sm:$0xf0] }
  0x52   :  { %v5586_v35 = vld [vmem:[#allocation8 + $0x480] sm:$0xf]  ;;  %v5331_v14 = vor.u32 %v7404_v33, %v5330_v31  ;;  %3457 = vmatpush.bf16.msra.mxu0 %v5075_v39 }
  0x53   :  { %v7468_v36 = vld [vmem:[#allocation8 + $0x49c] sm:$0xf0] }
  0x54   :  { %v5842_v37 = vld [vmem:[#allocation8 + $0x680] sm:$0xf]  ;;  %v5587_v43 = vor.u32 %v7468_v36, %v5586_v35  ;;  %3470 = vmatpush.bf16.msra.mxu1 %v5331_v14 }
  0x55   :  { %v7532_v38 = vld [vmem:[#allocation8 + $0x69c] sm:$0xf0] }
  0x56   :  { %v5042_v40 = vld [vmem:[#allocation8 + $0x40] sm:$0xf]  ;;  %v5843_v45 = vor.u32 %v7532_v38, %v5842_v37  ;;  %3483 = vmatpush.bf16.msra.mxu2 %v5587_v43 }
  0x57   :  { %v7332_v41 = vld [vmem:[#allocation8 + $0x5c] sm:$0xf0] }
  0x58   :  { %v5298_v42 = vld [vmem:[#allocation8 + $0x240] sm:$0xf]  ;;  %v5043_v50 = vor.u32 %v7332_v41, %v5042_v40  ;;  %3496 = vmatpush.bf16.msra.mxu3 %v5843_v45 }
  0x59   :  { %v7396_v44 = vld [vmem:[#allocation8 + $0x25c] sm:$0xf0] }
  0x5a   :  { %v5554_v46 = vld [vmem:[#allocation8 + $0x440] sm:$0xf]  ;;  %v5299_v54 = vor.u32 %v7396_v44, %v5298_v42  ;;  %3458 = vmatpush.bf16.msra.mxu0 %v5043_v50 }
  0x5b   :  { %v7460_v47 = vld [vmem:[#allocation8 + $0x45c] sm:$0xf0] }
  0x5c   :  { %v5810_v48 = vld [vmem:[#allocation8 + $0x640] sm:$0xf]  ;;  %v5555_v58 = vor.u32 %v7460_v47, %v5554_v46  ;;  %3471 = vmatpush.bf16.msra.mxu1 %v5299_v54 }
  0x5d   :  { %v7524_v49 = vld [vmem:[#allocation8 + $0x65c] sm:$0xf0] }
  0x5e   :  { %v5010_v51 = vld [vmem:[#allocation8] sm:$0xf]  ;;  %v5811_v61 = vor.u32 %v7524_v49, %v5810_v48  ;;  %3484 = vmatpush.bf16.msra.mxu2 %v5555_v58 }
  0x5f   :  { %v7324_v52 = vld [vmem:[#allocation8 + $0x1c] sm:$0xf0] }
  0x60   :  { %v5266_v53 = vld [vmem:[#allocation8 + $0x200] sm:$0xf]  ;;  %v5011_v1 = vor.u32 %v7324_v52, %v5010_v51  ;;  %3497 = vmatpush.bf16.msra.mxu3 %v5811_v61 }
  0x61   :  { %v7388_v55 = vld [vmem:[#allocation8 + $0x21c] sm:$0xf0] }
  0x62   :  { %v6258_v56 = vld [vmem:[#allocation8 + $0x9c0] sm:$0xf]  ;;  %v5267_v5 = vor.u32 %v7388_v55, %v5266_v53  ;;  %3459 = vmatpush.bf16.msra.mxu0 %v5011_v1 }
  0x63   :  { %v7636_v57 = vld [vmem:[#allocation8 + $0x9dc] sm:$0xf0] }
  0x64   :  { %v6514_v59 = vld [vmem:[#allocation8 + $0xbc0] sm:$0xf]  ;;  %v6259_v6 = vor.u32 %v7636_v57, %v6258_v56  ;;  %3472 = vmatpush.bf16.msra.mxu1 %v5267_v5 }
  0x65   :  { %v7700_v60 = vld [vmem:[#allocation8 + $0xbdc] sm:$0xf0] }
  0x66   :  { %v5522_v62 = vld [vmem:[#allocation8 + $0x400] sm:$0xf]  ;;  %v6515_v9 = vor.u32 %v7700_v60, %v6514_v59  ;;  %3504 = vmatpush.bf16.msrb.mxu0 %v6259_v6 }
  0x67   :  { %v7452_v63 = vld [vmem:[#allocation8 + $0x41c] sm:$0xf0] }
  0x68   :  { %v5778_v0 = vld [vmem:[#allocation8 + $0x600] sm:$0xf]  ;;  %v5523_v12 = vor.u32 %v7452_v63, %v5522_v62  ;;  %3517 = vmatpush.bf16.msrb.mxu1 %v6515_v9 }
  0x69   :  { %v7516_v2 = vld [vmem:[#allocation8 + $0x61c] sm:$0xf0] }
  0x6a   :  { %v6770_v3 = vld [vmem:[#allocation8 + $0xdc0] sm:$0xf]  ;;  %v5779_v16 = vor.u32 %v7516_v2, %v5778_v0  ;;  %3485 = vmatpush.bf16.msra.mxu2 %v5523_v12 }
  0x6b   :  { %v7764_v4 = vld [vmem:[#allocation8 + $0xddc] sm:$0xf0] }
  0x6c   :  { %v7026_v7 = vld [vmem:[#allocation8 + $0xfc0] sm:$0xf]  ;;  %v6771_v17 = vor.u32 %v7764_v4, %v6770_v3  ;;  %3498 = vmatpush.bf16.msra.mxu3 %v5779_v16 }
  0x6d   :  { %v7828_v8 = vld [vmem:[#allocation8 + $0xfdc] sm:$0xf0] }
  0x6e   :  { %v6226_v10 = vld [vmem:[#allocation8 + $0x980] sm:$0xf]  ;;  %v7027_v18 = vor.u32 %v7828_v8, %v7026_v7  ;;  %3530 = vmatpush.bf16.msrb.mxu2 %v6771_v17 }
  0x6f   :  { %v7628_v11 = vld [vmem:[#allocation8 + $0x99c] sm:$0xf0] }
  0x70   :  { %v6482_v13 = vld [vmem:[#allocation8 + $0xb80] sm:$0xf]  ;;  %v6227_v21 = vor.u32 %v7628_v11, %v6226_v10  ;;  %3543 = vmatpush.bf16.msrb.mxu3 %v7027_v18 }
  0x71   :  { %v7692_v15 = vld [vmem:[#allocation8 + $0xb9c] sm:$0xf0] }
  0x72   :  { %v6738_v19 = vld [vmem:[#allocation8 + $0xd80] sm:$0xf]  ;;  %v6483_v24 = vor.u32 %v7692_v15, %v6482_v13  ;;  %3505 = vmatpush.bf16.msrb.mxu0 %v6227_v21 }
  0x73   :  { %v7756_v20 = vld [vmem:[#allocation8 + $0xd9c] sm:$0xf0] }
  0x74   :  { %v6994_v22 = vld [vmem:[#allocation8 + $0xf80] sm:$0xf]  ;;  %v6739_v29 = vor.u32 %v7756_v20, %v6738_v19  ;;  %3518 = vmatpush.bf16.msrb.mxu1 %v6483_v24 }
  0x75   :  { %v7820_v23 = vld [vmem:[#allocation8 + $0xf9c] sm:$0xf0] }
  0x76   :  { %v6194_v25 = vld [vmem:[#allocation8 + $0x940] sm:$0xf]  ;;  %v6995_v30 = vor.u32 %v7820_v23, %v6994_v22  ;;  %3531 = vmatpush.bf16.msrb.mxu2 %v6739_v29 }
  0x77   :  { %v7620_v26 = vld [vmem:[#allocation8 + $0x95c] sm:$0xf0] }
  0x78   :  { %v6450_v27 = vld [vmem:[#allocation8 + $0xb40] sm:$0xf]  ;;  %v6195_v31 = vor.u32 %v7620_v26, %v6194_v25  ;;  %3544 = vmatpush.bf16.msrb.mxu3 %v6995_v30 }
  0x79   :  { %v7684_v28 = vld [vmem:[#allocation8 + $0xb5c] sm:$0xf0] }
  0x7a   :  { %v6451_v32 = vor.u32 %v7684_v28, %v6450_v27  ;;  %3506 = vmatpush.bf16.msrb.mxu0 %v6195_v31  ;;  %v6162_v33 = vld [vmem:[#allocation8 + $0x900] sm:$0xf] }
  0x7b   :  { %v7612_v34 = vld [vmem:[#allocation8 + $0x91c] sm:$0xf0] }
  0x7c   :  { %3519 = vmatpush.bf16.msrb.mxu1 %v6451_v32  ;;  %v6418_v35 = vld [vmem:[#allocation8 + $0xb00] sm:$0xf]  ;;  %v6163_v36 = vor.u32 %v7612_v34, %v6162_v33 }
  0x7d   :  { %v7676_v37 = vld [vmem:[#allocation8 + $0xb1c] sm:$0xf0] }
  0x7e   :  { %v6419_v38 = vor.u32 %v7676_v37, %v6418_v35  ;;  %v6706_v39 = vld [vmem:[#allocation8 + $0xd40] sm:$0xf]  ;;  %3507 = vmatpush.bf16.msrb.mxu0 %v6163_v36  ;;  %v8244_v35 = vld [vmem:[#allocation7] sm:$0xff] }
  0x7f   :  { %v7748_v14 = vld [vmem:[#allocation8 + $0xd5c] sm:$0xf0]  ;;  %v141_v36 = vperm.slane %v8244_v35, 0  ;;  %v142_v37 = vperm.slane %v8244_v35, 1 }
  0x80   :  { %v6962_v40 = vld [vmem:[#allocation8 + $0xf40] sm:$0xf]  ;;  %v6707_v41 = vor.u32 %v7748_v14, %v6706_v39  ;;  %3520 = vmatpush.bf16.msrb.mxu1 %v6419_v38 }
  0x81   :  { %v7812_v42 = vld [vmem:[#allocation8 + $0xf5c] sm:$0xf0] }
  0x82   :  { %v6963_v43 = vor.u32 %v7812_v42, %v6962_v40  ;;  %v6130_v44 = vld [vmem:[#allocation8 + $0x8c0] sm:$0xf]  ;;  %3532 = vmatpush.bf16.msrb.mxu2 %v6707_v41 }
  0x83   :  { %v7604_v45 = vld [vmem:[#allocation8 + $0x8dc] sm:$0xf0] }
  0x84   :  { %v6386_v46 = vld [vmem:[#allocation8 + $0xac0] sm:$0xf]  ;;  %v6131_v47 = vor.u32 %v7604_v45, %v6130_v44  ;;  %3545 = vmatpush.bf16.msrb.mxu3 %v6963_v43  ;;  %v143_v43 = vperm.slane %v8244_v35, 2  ;;  %v144_v44 = vperm.slane %v8244_v35, 3 }
  0x85   :  { %v7668_v48 = vld [vmem:[#allocation8 + $0xadc] sm:$0xf0] }
  0x86   :  { %v6387_v49 = vor.u32 %v7668_v48, %v6386_v46  ;;  %v6674_v50 = vld [vmem:[#allocation8 + $0xd00] sm:$0xf]  ;;  %3508 = vmatpush.bf16.msrb.mxu0 %v6131_v47 }
  0x87   :  { %v7740_v51 = vld [vmem:[#allocation8 + $0xd1c] sm:$0xf0] }
  0x88   :  { %v6930_v52 = vld [vmem:[#allocation8 + $0xf00] sm:$0xf]  ;;  %v6675_v53 = vor.u32 %v7740_v51, %v6674_v50  ;;  %3521 = vmatpush.bf16.msrb.mxu1 %v6387_v49 }
  0x89   :  { %v7804_v54 = vld [vmem:[#allocation8 + $0xf1c] sm:$0xf0] }
  0x8a   :  { %v6931_v55 = vor.u32 %v7804_v54, %v6930_v52  ;;  %v6098_v56 = vld [vmem:[#allocation8 + $0x880] sm:$0xf]  ;;  %3533 = vmatpush.bf16.msrb.mxu2 %v6675_v53 }
  0x8b   :  { %v7596_v57 = vld [vmem:[#allocation8 + $0x89c] sm:$0xf0] }
  0x8c   :  { %v6354_v58 = vld [vmem:[#allocation8 + $0xa80] sm:$0xf]  ;;  %v6099_v59 = vor.u32 %v7596_v57, %v6098_v56  ;;  %3546 = vmatpush.bf16.msrb.mxu3 %v6931_v55  ;;  %v7376_v56 = vld [vmem:[#allocation8 + $0x1c4] sm:$0xf] }
  0x8d   :  { %v7660_v60 = vld [vmem:[#allocation8 + $0xa9c] sm:$0xf0]  ;;  %v5236_v57 = vld [vmem:[#allocation8 + $0x1e0] sm:$0xf0] }
  0x8e   :  { %v6355_v61 = vor.u32 %v7660_v60, %v6354_v58  ;;  %v6642_v62 = vld [vmem:[#allocation8 + $0xcc0] sm:$0xf]  ;;  %3509 = vmatpush.bf16.msrb.mxu0 %v6099_v59  ;;  %v145_v59 = vperm.slane %v8244_v35, 4  ;;  %v7440_v60 = vld [vmem:[#allocation8 + $0x3c4] sm:$0xf] }
  0x8f   :  { %v7732_v63 = vld [vmem:[#allocation8 + $0xcdc] sm:$0xf0] }
  0x90   :  { %v6898_v0 = vld [vmem:[#allocation8 + $0xec0] sm:$0xf]  ;;  %v6643_v1 = vor.u32 %v7732_v63, %v6642_v62  ;;  %3522 = vmatpush.bf16.msrb.mxu1 %v6355_v61  ;;  %v5492_v61 = vld [vmem:[#allocation8 + $0x3e0] sm:$0xf0]  ;;  %v146_v63 = vperm.slane %v8244_v35, 5 }
  0x91   :  { %v7796_v2 = vld [vmem:[#allocation8 + $0xedc] sm:$0xf0] }
  0x92   :  { %v6899_v3 = vor.u32 %v7796_v2, %v6898_v0  ;;  %v6066_v4 = vld [vmem:[#allocation8 + $0x840] sm:$0xf]  ;;  %3534 = vmatpush.bf16.msrb.mxu2 %v6643_v1  ;;  %v5239_v2 = vor.u32 %v7376_v56, %v5236_v57  ;;  %v7488_v57 = vld [vmem:[#allocation8 + $0x544] sm:$0xf] }
  0x93   :  { %v7588_v5 = vld [vmem:[#allocation8 + $0x85c] sm:$0xf0] }
  0x94   :  { %v6322_v6 = vld [vmem:[#allocation8 + $0xa40] sm:$0xf]  ;;  %v6067_v7 = vor.u32 %v7588_v5, %v6066_v4  ;;  %3547 = vmatpush.bf16.msrb.mxu3 %v6899_v3 }
  0x95   :  { %v7652_v8 = vld [vmem:[#allocation8 + $0xa5c] sm:$0xf0] }
  0x96   :  { %v6323_v9 = vor.u32 %v7652_v8, %v6322_v6  ;;  %v6610_v10 = vld [vmem:[#allocation8 + $0xc80] sm:$0xf]  ;;  %3510 = vmatpush.bf16.msrb.mxu0 %v6067_v7  ;;  %v5495_v6 = vor.u32 %v7440_v60, %v5492_v61  ;;  %v7368_v7 = vld [vmem:[#allocation8 + $0x184] sm:$0xf] }
  0x97   :  { %v7724_v11 = vld [vmem:[#allocation8 + $0xc9c] sm:$0xf0]  ;;  %v5204_v8 = vld [vmem:[#allocation8 + $0x1a0] sm:$0xf0] }
  0x98   :  { %v6866_v12 = vld [vmem:[#allocation8 + $0xe80] sm:$0xf]  ;;  %v6611_v13 = vor.u32 %v7724_v11, %v6610_v10  ;;  %3523 = vmatpush.bf16.msrb.mxu1 %v6323_v9 }
  0x99   :  { %v7788_v15 = vld [vmem:[#allocation8 + $0xe9c] sm:$0xf0] }
  0x9a   :  { %v6867_v16 = vor.u32 %v7788_v15, %v6866_v12  ;;  %v6034_v17 = vld [vmem:[#allocation8 + $0x800] sm:$0xf]  ;;  %3535 = vmatpush.bf16.msrb.mxu2 %v6611_v13  ;;  %v7432_v12 = vld [vmem:[#allocation8 + $0x384] sm:$0xf] }
  0x9b   :  { %v7580_v18 = vld [vmem:[#allocation8 + $0x81c] sm:$0xf0]  ;;  %v5460_v13 = vld [vmem:[#allocation8 + $0x3a0] sm:$0xf0] }
  0x9c   :  { %v6290_v19 = vld [vmem:[#allocation8 + $0xa00] sm:$0xf]  ;;  %v6035_v20 = vor.u32 %v7580_v18, %v6034_v17  ;;  %3548 = vmatpush.bf16.msrb.mxu3 %v6867_v16  ;;  %v147_v17 = vperm.slane %v8244_v35, 6  ;;  %v7504_v18 = vld [vmem:[#allocation8 + $0x5c4] sm:$0xf] }
  0x9d   :  { %v7644_v21 = vld [vmem:[#allocation8 + $0xa1c] sm:$0xf0] }
  0x9e   :  { %v6291_v22 = vor.u32 %v7644_v21, %v6290_v19  ;;  %3511 = vmatpush.bf16.msrb.mxu0 %v6035_v20  ;;  %v6578_v23 = vld [vmem:[#allocation8 + $0xc40] sm:$0xf]  ;;  %v5748_v19 = vld [vmem:[#allocation8 + $0x5e0] sm:$0xf0] }
  0x9f   :  { %v7716_v24 = vld [vmem:[#allocation8 + $0xc5c] sm:$0xf0] }
  0xa0   :  { %v6834_v25 = vld [vmem:[#allocation8 + $0xe40] sm:$0xf]  ;;  %3524 = vmatpush.bf16.msrb.mxu1 %v6291_v22  ;;  %v6579_v26 = vor.u32 %v7716_v24, %v6578_v23  ;;  %v5207_v23 = vor.u32 %v7368_v7, %v5204_v8  ;;  %v7568_v24 = vld [vmem:[#allocation8 + $0x7c4] sm:$0xf] }
  0xa1   :  { %v7780_v27 = vld [vmem:[#allocation8 + $0xe5c] sm:$0xf0]  ;;  %v7408_v8 = vld [vmem:[#allocation8 + $0x2c4] sm:$0xf] }
  0xa2   :  { %v6835_v28 = vor.u32 %v7780_v27, %v6834_v25  ;;  %3536 = vmatpush.bf16.msrb.mxu2 %v6579_v26  ;;  %v6546_v29 = vld [vmem:[#allocation8 + $0xc00] sm:$0xf]  ;;  %v6004_v25 = vld [vmem:[#allocation8 + $0x7e0] sm:$0xf0] }
  0xa3   :  { %v7708_v30 = vld [vmem:[#allocation8 + $0xc1c] sm:$0xf0] }
  0xa4   :  { %3549 = vmatpush.bf16.msrb.mxu3 %v6835_v28  ;;  %v6547_v31 = vor.u32 %v7708_v30, %v6546_v29  ;;  %v6802_v32 = vld [vmem:[#allocation8 + $0xe00] sm:$0xf]  ;;  %v227_v38 = vpop.f32.mrf.mxu0  ;;  %v5463_v28 = vor.u32 %v7432_v12, %v5460_v13  ;;  %v7360_v29 = vld [vmem:[#allocation8 + $0x144] sm:$0xf] }
  0xa5   :  { %v7772_v33 = vld [vmem:[#allocation8 + $0xe1c] sm:$0xf0]  ;;  %v228_v39 = vadd.f32 %v227_v38, %v141_v36  ;;  %v240_v14 = vpop.f32.mrf.mxu1  ;;  %v5172_v30 = vld [vmem:[#allocation8 + $0x160] sm:$0xf0] }
  0xa6   :  { %v6803_v34 = vor.u32 %v7772_v33, %v6802_v32  ;;  %3537 = vmatpush.bf16.msrb.mxu2 %v6547_v31  ;;  %v241_v40 = vadd.f32 %v240_v14, %v142_v37  ;;  %v148_v32 = vperm.slane %v8244_v35, 7  ;;  %v7424_v33 = vld [vmem:[#allocation8 + $0x344] sm:$0xf]  ;;  %v5751_v37 = vor.u32 %v7504_v18, %v5748_v19 }
  0xa7   :  { %v322_v41 = vmul.f32 0.5, %v228_v39  ;;  %v6007_v14 = vor.u32 %v7568_v24, %v6004_v25  ;;  %v5652_v18 = vld [vmem:[#allocation8 + $0x520] sm:$0xf0] }
  0xa8   :  { %3550 = vmatpush.bf16.msrb.mxu3 %v6803_v34  ;;  %v323_v42 = vmul.f32 0.5, %v241_v40  ;;  %v5428_v34 = vld [vmem:[#allocation8 + $0x360] sm:$0xf0]  ;;  %v5175_v40 = vor.u32 %v7360_v29, %v5172_v30 }
  0xa9   :  { %7909 = vtanh.f32 %v322_v41  ;;  %v7496_v41 = vld [vmem:[#allocation8 + $0x584] sm:$0xf]  ;;  %v5431_v35 = vor.u32 %v7424_v33, %v5428_v34 }
  0xaa   :  { %7911 = vtanh.f32 %v323_v42  ;;  %v5716_v42 = vld [vmem:[#allocation8 + $0x5a0] sm:$0xf0] }
  0xab   :  { %v253_v45 = vpop.f32.mrf.mxu2  ;;  %v5719_v56 = vor.u32 %v7496_v41, %v5716_v42  ;;  %v7336_v25 = vld [vmem:[#allocation8 + $0x84] sm:$0xf] }
  0xac   :  { %v254_v46 = vadd.f32 %v253_v45, %v143_v43  ;;  %v266_v47 = vpop.f32.mrf.mxu3  ;;  %v229_v48 = vpop.f32.mrf.mxu0  ;;  %v7560_v43 = vld [vmem:[#allocation8 + $0x784] sm:$0xf] }
  0xad   :  { %v267_v49 = vadd.f32 %v266_v47, %v144_v44  ;;  %v242_v50 = vpop.f32.mrf.mxu1  ;;  %v5972_v47 = vld [vmem:[#allocation8 + $0x7a0] sm:$0xf0] }
  0xae   :  { %v324_v51 = vmul.f32 0.5, %v254_v46  ;;  %v7352_v48 = vld [vmem:[#allocation8 + $0x104] sm:$0xf]  ;;  %v5975_v61 = vor.u32 %v7560_v43, %v5972_v47 }
  0xaf   :  { %v7910_v52 = vpop.eup %7909  ;;  %v325_v53 = vmul.f32 0.5, %v267_v49  ;;  %v5140_v49 = vld [vmem:[#allocation8 + $0x120] sm:$0xf0] }
  0xb0   :  { %v7912_v54 = vpop.eup %7911  ;;  %v338_v55 = vmul.f32 0.5, %v7910_v52  ;;  %7913 = vtanh.f32 %v324_v51  ;;  %v7416_v52 = vld [vmem:[#allocation8 + $0x304] sm:$0xf] }
  0xb1   :  { %v339_v58 = vmul.f32 0.5, %v7912_v54  ;;  %7915 = vtanh.f32 %v325_v53  ;;  %v5396_v53 = vld [vmem:[#allocation8 + $0x320] sm:$0xf0] }
  0xb2   :  { %v346_v62 = vadd.f32 0.5, %v338_v55  ;;  %v5332_v29 = vld [vmem:[#allocation8 + $0x2a0] sm:$0xf0] }
  0xb3   :  { %v347_v0 = vadd.f32 0.5, %v339_v58  ;;  %v255_v1 = vpop.f32.mrf.mxu2  ;;  %v5684_v58 = vld [vmem:[#allocation8 + $0x560] sm:$0xf0] }
  0xb4   :  { %v8252_v3 = vpack.c.bf16 %v346_v62, %v346_v62  ;;  %v268_v4 = vpop.f32.mrf.mxu3  ;;  %v279_v5 = vpop.f32.mrf.mxu0  ;;  %v5143_v62 = vor.u32 %v7352_v48, %v5140_v49  ;;  %v5687_v12 = vor.u32 %v7488_v57, %v5684_v58  ;;  %v5620_v33 = vld [vmem:[#allocation8 + $0x4e0] sm:$0xf0] }
  0xb5   :  { %v8254_v9 = vpack.c.bf16 %v347_v0, %v347_v0  ;;  %v280_v10 = vadd.f32 %v279_v5, %v145_v59  ;;  %v5940_v0 = vld [vmem:[#allocation8 + $0x760] sm:$0xf0]  ;;  %v5399_v4 = vor.u32 %v7416_v52, %v5396_v53 }
  0xb6   :  { %v292_v11 = vpop.f32.mrf.mxu1  ;;  %v7914_v15 = vpop.eup %7913  ;;  %3460 = vmatmul.bf16.vlgmr.msra.gmra.mxu0 %v8252_v3  ;;  %v7344_v5 = vld [vmem:[#allocation8 + $0xc4] sm:$0xf] }
  0xb7   :  { %v293_v16 = vadd.f32 %v292_v11, %v146_v63  ;;  %v7916_v20 = vpop.eup %7915  ;;  %v340_v21 = vmul.f32 0.5, %v7914_v15  ;;  %v326_v22 = vmul.f32 0.5, %v280_v10  ;;  %3473 = vmatmul.bf16.vlgmr.msra.gmra.mxu1 %v8254_v9  ;;  %3556 = vmatpush.bf16.msra.mxu0 %v5239_v2  ;;  %v7552_v63 = vld [vmem:[#allocation8 + $0x744] sm:$0xf] }
  0xb8   :  { %v341_v26 = vmul.f32 0.5, %v7916_v20  ;;  %3569 = vmatpush.bf16.msra.mxu1 %v5495_v6  ;;  %v5108_v6 = vld [vmem:[#allocation8 + $0xe0] sm:$0xf0]  ;;  %v5943_v15 = vor.u32 %v7552_v63, %v5940_v0 }
  0xb9   :  { %v327_v27 = vmul.f32 0.5, %v293_v16  ;;  %v348_v31 = vadd.f32 0.5, %v340_v21  ;;  %7917 = vtanh.f32 %v326_v22  ;;  %v5364_v10 = vld [vmem:[#allocation8 + $0x2e0] sm:$0xf0]  ;;  %v5111_v20 = vor.u32 %v7344_v5, %v5108_v6 }
  0xba   :  { %v349_v36 = vadd.f32 0.5, %v341_v26  ;;  %v5367_v21 = vor.u32 %v7408_v8, %v5364_v10  ;;  %v7544_v22 = vld [vmem:[#allocation8 + $0x704] sm:$0xf] }
  0xbb   :  { %7919 = vtanh.f32 %v327_v27  ;;  %v8260_v38 = vpack.c.bf16 %v348_v31, %v348_v31  ;;  %v305_v39 = vpop.f32.mrf.mxu2  ;;  %3557 = vmatpush.bf16.msra.mxu0 %v5207_v23  ;;  %v5908_v23 = vld [vmem:[#allocation8 + $0x720] sm:$0xf0] }
  0xbc   :  { %v8262_v44 = vpack.c.bf16 %v349_v36, %v349_v36  ;;  %v306_v45 = vadd.f32 %v305_v39, %v147_v17  ;;  %v318_v46 = vpop.f32.mrf.mxu3  ;;  %3570 = vmatpush.bf16.msra.mxu1 %v5463_v28  ;;  %v281_v50 = vpop.f32.mrf.mxu0  ;;  %v7480_v17 = vld [vmem:[#allocation8 + $0x504] sm:$0xf] }
  0xbd   :  { %v319_v51 = vadd.f32 %v318_v46, %v148_v32  ;;  %3486 = vmatmul.bf16.vlgmr.msra.gmra.mxu2 %v8260_v38  ;;  %v5076_v27 = vld [vmem:[#allocation8 + $0xa0] sm:$0xf0]  ;;  %v5655_v31 = vor.u32 %v7480_v17, %v5652_v18 }
  0xbe   :  { %v294_v54 = vpop.f32.mrf.mxu1  ;;  %v328_v55 = vmul.f32 0.5, %v306_v45  ;;  %3499 = vmatmul.bf16.vlgmr.msra.gmra.mxu3 %v8262_v44  ;;  %3582 = vmatpush.bf16.msra.mxu2 %v5751_v37  ;;  %v7400_v28 = vld [vmem:[#allocation8 + $0x284] sm:$0xf]  ;;  %v5911_v37 = vor.u32 %v7544_v22, %v5908_v23  ;;  %v5079_v41 = vor.u32 %v7336_v25, %v5076_v27 }
  0xbf   :  { %v7918_v59 = vpop.eup %7917  ;;  %v329_v60 = vmul.f32 0.5, %v319_v51  ;;  %3595 = vmatpush.bf16.msra.mxu3 %v6007_v14  ;;  %3558 = vmatpush.bf16.msra.mxu0 %v5175_v40  ;;  %v7472_v32 = vld [vmem:[#allocation8 + $0x4c4] sm:$0xf]  ;;  %v5335_v42 = vor.u32 %v7400_v28, %v5332_v29 }
  0xc0   :  { %v342_v2 = vmul.f32 0.5, %v7918_v59  ;;  %7921 = vtanh.f32 %v328_v55  ;;  %3571 = vmatpush.bf16.msra.mxu1 %v5431_v35  ;;  %v7536_v39 = vld [vmem:[#allocation8 + $0x6c4] sm:$0xf]  ;;  %v5623_v49 = vor.u32 %v7472_v32, %v5620_v33 }
  0xc1   :  { %v7920_v1 = vpop.eup %7919  ;;  %7923 = vtanh.f32 %v329_v60  ;;  %v5876_v14 = vld [vmem:[#allocation8 + $0x6e0] sm:$0xf0] }
  0xc2   :  { %v343_v7 = vmul.f32 0.5, %v7920_v1  ;;  %v350_v11 = vadd.f32 0.5, %v342_v2  ;;  %3583 = vmatpush.bf16.msra.mxu2 %v5719_v56  ;;  %v7328_v43 = vld [vmem:[#allocation8 + $0x44] sm:$0xf]  ;;  %v5879_v51 = vor.u32 %v7536_v39, %v5876_v14 }
  0xc3   :  { %3596 = vmatpush.bf16.msra.mxu3 %v5975_v61  ;;  %3559 = vmatpush.bf16.msra.mxu0 %v5143_v62  ;;  %v307_v16 = vpop.f32.mrf.mxu2  ;;  %v5044_v45 = vld [vmem:[#allocation8 + $0x60] sm:$0xf0] }
  0xc4   :  { %v351_v13 = vadd.f32 0.5, %v343_v7  ;;  %v8266_v19 = vpack.c.bf16 %v350_v11, %v350_v11  ;;  %3572 = vmatpush.bf16.msra.mxu1 %v5399_v4  ;;  %v320_v24 = vpop.f32.mrf.mxu3  ;;  %v7392_v35 = vld [vmem:[#allocation8 + $0x244] sm:$0xf]  ;;  %v5047_v56 = vor.u32 %v7328_v43, %v5044_v45 }
  0xc5   :  { %v5300_v47 = vld [vmem:[#allocation8 + $0x260] sm:$0xf0] }
  0xc6   :  { %v8268_v26 = vpack.c.bf16 %v351_v13, %v351_v13  ;;  %v7922_v30 = vpop.eup %7921  ;;  %3584 = vmatpush.bf16.msra.mxu2 %v5687_v12  ;;  %3512 = vmatmul.bf16.vlgmr.msrb.gmra.mxu0 %v8266_v19  ;;  %v7464_v52 = vld [vmem:[#allocation8 + $0x484] sm:$0xf]  ;;  %v5303_v57 = vor.u32 %v7392_v35, %v5300_v47 }
  0xc7   :  { %v7924_v34 = vpop.eup %7923  ;;  %v344_v36 = vmul.f32 0.5, %v7922_v30  ;;  %3597 = vmatpush.bf16.msra.mxu3 %v5943_v15  ;;  %3560 = vmatpush.bf16.msra.mxu0 %v5111_v20  ;;  %v5588_v53 = vld [vmem:[#allocation8 + $0x4a0] sm:$0xf0] }
  0xc8   :  { %3525 = vmatmul.bf16.vlgmr.msrb.gmra.mxu1 %v8268_v26  ;;  %v345_v40 = vmul.f32 0.5, %v7924_v34  ;;  %v7528_v54 = vld [vmem:[#allocation8 + $0x684] sm:$0xf]  ;;  %v5591_v0 = vor.u32 %v7464_v52, %v5588_v53 }
  0xc9   :  { %3573 = vmatpush.bf16.msra.mxu1 %v5367_v21  ;;  %v352_v46 = vadd.f32 0.5, %v344_v36  ;;  %v5844_v58 = vld [vmem:[#allocation8 + $0x6a0] sm:$0xf0] }
  0xca   :  { %v353_v48 = vadd.f32 0.5, %v345_v40  ;;  %3585 = vmatpush.bf16.msra.mxu2 %v5655_v31  ;;  %v7320_v59 = vld [vmem:[#allocation8 + $0x4] sm:$0xf]  ;;  %v5847_v5 = vor.u32 %v7528_v54, %v5844_v58 }
  0xcb   :  { %v8272_v50 = vpack.c.bf16 %v352_v46, %v352_v46  ;;  %3598 = vmatpush.bf16.msra.mxu3 %v5911_v37  ;;  %3561 = vmatpush.bf16.msra.mxu0 %v5079_v41  ;;  %v5012_v60 = vld [vmem:[#allocation8 + $0x20] sm:$0xf0] }
  0xcc   :  { %v8274_v55 = vpack.c.bf16 %v353_v48, %v353_v48  ;;  %v7384_v61 = vld [vmem:[#allocation8 + $0x204] sm:$0xf]  ;;  %v5015_v8 = vor.u32 %v7320_v59, %v5012_v60 }
  0xcd   :  { %3574 = vmatpush.bf16.msra.mxu1 %v5335_v42  ;;  %3538 = vmatmul.bf16.vlgmr.msrb.gmra.mxu2 %v8272_v50  ;;  %v5268_v62 = vld [vmem:[#allocation8 + $0x220] sm:$0xf0] }
  0xce   :  { %v7632_v63 = vld [vmem:[#allocation8 + $0x9c4] sm:$0xf]  ;;  %3551 = vmatmul.bf16.vlgmr.msrb.gmra.mxu3 %v8274_v55  ;;  %3586 = vmatpush.bf16.msra.mxu2 %v5623_v49  ;;  %v5271_v10 = vor.u32 %v7384_v61, %v5268_v62 }
  0xcf   :  { %v6260_v1 = vld [vmem:[#allocation8 + $0x9e0] sm:$0xf0]  ;;  %3599 = vmatpush.bf16.msra.mxu3 %v5879_v51  ;;  %3562 = vmatpush.bf16.msra.mxu0 %v5047_v56 }
  0xd0   :  { %v7696_v2 = vld [vmem:[#allocation8 + $0xbc4] sm:$0xf]  ;;  %v6263_v13 = vor.u32 %v7632_v63, %v6260_v1 }
  0xd1   :  { %v6516_v4 = vld [vmem:[#allocation8 + $0xbe0] sm:$0xf0]  ;;  %3575 = vmatpush.bf16.msra.mxu1 %v5303_v57 }
  0xd2   :  { %v7456_v6 = vld [vmem:[#allocation8 + $0x444] sm:$0xf]  ;;  %v6519_v15 = vor.u32 %v7696_v2, %v6516_v4  ;;  %3587 = vmatpush.bf16.msra.mxu2 %v5591_v0 }
  0xd3   :  { %v5556_v7 = vld [vmem:[#allocation8 + $0x460] sm:$0xf0]  ;;  %3600 = vmatpush.bf16.msra.mxu3 %v5847_v5  ;;  %3563 = vmatpush.bf16.msra.mxu0 %v5015_v8 }
  0xd4   :  { %v7520_v11 = vld [vmem:[#allocation8 + $0x644] sm:$0xf]  ;;  %v5559_v17 = vor.u32 %v7456_v6, %v5556_v7 }
  0xd5   :  { %v5812_v12 = vld [vmem:[#allocation8 + $0x660] sm:$0xf0]  ;;  %3576 = vmatpush.bf16.msra.mxu1 %v5271_v10 }
  0xd6   :  { %v7624_v16 = vld [vmem:[#allocation8 + $0x984] sm:$0xf]  ;;  %v5815_v22 = vor.u32 %v7520_v11, %v5812_v12  ;;  %3588 = vmatpush.bf16.msra.mxu2 %v5559_v17  ;;  %3564 = vmatmul.bf16.vlgmr.msra.gmra.mxu0 %v8252_v3 }
  0xd7   :  { %v6228_v18 = vld [vmem:[#allocation8 + $0x9a0] sm:$0xf0]  ;;  %3608 = vmatpush.bf16.msrb.mxu0 %v6263_v13 }
  0xd8   :  { %v7688_v20 = vld [vmem:[#allocation8 + $0xb84] sm:$0xf]  ;;  %v6231_v30 = vor.u32 %v7624_v16, %v6228_v18  ;;  %3601 = vmatpush.bf16.msra.mxu3 %v5815_v22  ;;  %3577 = vmatmul.bf16.vlgmr.msra.gmra.mxu1 %v8254_v9 }
  0xd9   :  { %v6484_v21 = vld [vmem:[#allocation8 + $0xba0] sm:$0xf0]  ;;  %3621 = vmatpush.bf16.msrb.mxu1 %v6519_v15 }
  0xda   :  { %v7448_v23 = vld [vmem:[#allocation8 + $0x404] sm:$0xf]  ;;  %v6487_v31 = vor.u32 %v7688_v20, %v6484_v21 }
  0xdb   :  { %v5524_v24 = vld [vmem:[#allocation8 + $0x420] sm:$0xf0]  ;;  %3609 = vmatpush.bf16.msrb.mxu0 %v6231_v30 }
  0xdc   :  { %v7512_v25 = vld [vmem:[#allocation8 + $0x604] sm:$0xf]  ;;  %v5527_v36 = vor.u32 %v7448_v23, %v5524_v24 }
  0xdd   :  { %v5780_v27 = vld [vmem:[#allocation8 + $0x620] sm:$0xf0]  ;;  %3622 = vmatpush.bf16.msrb.mxu1 %v6487_v31 }
  0xde   :  { %v7760_v28 = vld [vmem:[#allocation8 + $0xdc4] sm:$0xf]  ;;  %v5783_v40 = vor.u32 %v7512_v25, %v5780_v27  ;;  %3589 = vmatpush.bf16.msra.mxu2 %v5527_v36 }
  0xdf   :  { %v6772_v29 = vld [vmem:[#allocation8 + $0xde0] sm:$0xf0] }
  0xe0   :  { %v7824_v32 = vld [vmem:[#allocation8 + $0xfc4] sm:$0xf]  ;;  %v6775_v41 = vor.u32 %v7760_v28, %v6772_v29  ;;  %3602 = vmatpush.bf16.msra.mxu3 %v5783_v40 }
  0xe1   :  { %v7028_v33 = vld [vmem:[#allocation8 + $0xfe0] sm:$0xf0]  ;;  %3590 = vmatmul.bf16.vlgmr.msra.gmra.mxu2 %v8260_v38 }
  0xe2   :  { %v7616_v34 = vld [vmem:[#allocation8 + $0x944] sm:$0xf]  ;;  %v7031_v42 = vor.u32 %v7824_v32, %v7028_v33  ;;  %3634 = vmatpush.bf16.msrb.mxu2 %v6775_v41 }
  0xe3   :  { %v6196_v37 = vld [vmem:[#allocation8 + $0x960] sm:$0xf0]  ;;  %3603 = vmatmul.bf16.vlgmr.msra.gmra.mxu3 %v8262_v44 }
  0xe4   :  { %v7680_v39 = vld [vmem:[#allocation8 + $0xb44] sm:$0xf]  ;;  %v6199_v46 = vor.u32 %v7616_v34, %v6196_v37  ;;  %3647 = vmatpush.bf16.msrb.mxu3 %v7031_v42 }
  0xe5   :  { %v6452_v14 = vld [vmem:[#allocation8 + $0xb60] sm:$0xf0] }
  0xe6   :  { %v7752_v43 = vld [vmem:[#allocation8 + $0xd84] sm:$0xf]  ;;  %v6455_v35 = vor.u32 %v7680_v39, %v6452_v14  ;;  %3610 = vmatpush.bf16.msrb.mxu0 %v6199_v46  ;;  %v5242_v46 = vld [vmem:[#allocation8 + $0x1c8] sm:$0xf] }
  0xe7   :  { %v6740_v45 = vld [vmem:[#allocation8 + $0xda0] sm:$0xf0] }
  0xe8   :  { %v7816_v47 = vld [vmem:[#allocation8 + $0xf84] sm:$0xf]  ;;  %v6743_v54 = vor.u32 %v7752_v43, %v6740_v45  ;;  %3623 = vmatpush.bf16.msrb.mxu1 %v6455_v35 }
  0xe9   :  { %v6996_v48 = vld [vmem:[#allocation8 + $0xfa0] sm:$0xf0] }
  0xea   :  { %v7608_v49 = vld [vmem:[#allocation8 + $0x904] sm:$0xf]  ;;  %v6999_v56 = vor.u32 %v7816_v47, %v6996_v48  ;;  %3635 = vmatpush.bf16.msrb.mxu2 %v6743_v54  ;;  %v7381_v47 = vld [vmem:[#allocation8 + $0x1e4] sm:$0xf0] }
  0xeb   :  { %v6164_v51 = vld [vmem:[#allocation8 + $0x920] sm:$0xf0]  ;;  %v5498_v48 = vld [vmem:[#allocation8 + $0x3c8] sm:$0xf] }
  0xec   :  { %v7672_v52 = vld [vmem:[#allocation8 + $0xb04] sm:$0xf]  ;;  %v6167_v59 = vor.u32 %v7608_v49, %v6164_v51  ;;  %3648 = vmatpush.bf16.msrb.mxu3 %v6999_v56  ;;  %v7445_v49 = vld [vmem:[#allocation8 + $0x3e4] sm:$0xf0] }
  0xed   :  { %v6420_v53 = vld [vmem:[#allocation8 + $0xb20] sm:$0xf0] }
  0xee   :  { %v7744_v57 = vld [vmem:[#allocation8 + $0xd44] sm:$0xf]  ;;  %v6423_v60 = vor.u32 %v7672_v52, %v6420_v53  ;;  %3611 = vmatpush.bf16.msrb.mxu0 %v6167_v59  ;;  %v5243_v59 = vor.u32 %v7381_v47, %v5242_v46  ;;  %v5114_v46 = vld [vmem:[#allocation8 + $0xc8] sm:$0xf] }
  0xef   :  { %v6708_v58 = vld [vmem:[#allocation8 + $0xd60] sm:$0xf0] }
  0xf0   :  { %v7808_v61 = vld [vmem:[#allocation8 + $0xf44] sm:$0xf]  ;;  %v6711_v4 = vor.u32 %v7744_v57, %v6708_v58  ;;  %3624 = vmatpush.bf16.msrb.mxu1 %v6423_v60  ;;  %v5499_v60 = vor.u32 %v7445_v49, %v5498_v48  ;;  %v5370_v48 = vld [vmem:[#allocation8 + $0x2c8] sm:$0xf] }
  0xf1   :  { %v6964_v62 = vld [vmem:[#allocation8 + $0xf60] sm:$0xf0]  ;;  %v7413_v49 = vld [vmem:[#allocation8 + $0x2e4] sm:$0xf0] }
  0xf2   :  { %v7600_v63 = vld [vmem:[#allocation8 + $0x8c4] sm:$0xf]  ;;  %v6967_v5 = vor.u32 %v7808_v61, %v6964_v62  ;;  %3636 = vmatpush.bf16.msrb.mxu2 %v6711_v4  ;;  %v5210_v61 = vld [vmem:[#allocation8 + $0x188] sm:$0xf] }
  0xf3   :  { %v6132_v0 = vld [vmem:[#allocation8 + $0x8e0] sm:$0xf0] }
  0xf4   :  { %v7664_v1 = vld [vmem:[#allocation8 + $0xac4] sm:$0xf]  ;;  %v6135_v8 = vor.u32 %v7600_v63, %v6132_v0  ;;  %3649 = vmatpush.bf16.msrb.mxu3 %v6967_v5  ;;  %v7373_v63 = vld [vmem:[#allocation8 + $0x1a4] sm:$0xf0] }
  0xf5   :  { %v6388_v2 = vld [vmem:[#allocation8 + $0xae0] sm:$0xf0]  ;;  %v5466_v0 = vld [vmem:[#allocation8 + $0x388] sm:$0xf] }
  0xf6   :  { %v7736_v6 = vld [vmem:[#allocation8 + $0xd04] sm:$0xf]  ;;  %v6391_v10 = vor.u32 %v7664_v1, %v6388_v2  ;;  %3612 = vmatpush.bf16.msrb.mxu0 %v6135_v8  ;;  %v7437_v1 = vld [vmem:[#allocation8 + $0x3a4] sm:$0xf0] }
  0xf7   :  { %v6676_v7 = vld [vmem:[#allocation8 + $0xd20] sm:$0xf0]  ;;  %v5754_v8 = vld [vmem:[#allocation8 + $0x5c8] sm:$0xf] }
  0xf8   :  { %v7800_v11 = vld [vmem:[#allocation8 + $0xf04] sm:$0xf]  ;;  %v6679_v18 = vor.u32 %v7736_v6, %v6676_v7  ;;  %3625 = vmatpush.bf16.msrb.mxu1 %v6391_v10  ;;  %v7509_v10 = vld [vmem:[#allocation8 + $0x5e4] sm:$0xf0] }
  0xf9   :  { %v6932_v12 = vld [vmem:[#allocation8 + $0xf20] sm:$0xf0] }
  0xfa   :  { %v7592_v13 = vld [vmem:[#allocation8 + $0x884] sm:$0xf]  ;;  %v6935_v20 = vor.u32 %v7800_v11, %v6932_v12  ;;  %3637 = vmatpush.bf16.msrb.mxu2 %v6679_v18  ;;  %v5211_v11 = vor.u32 %v7373_v63, %v5210_v61  ;;  %v5467_v12 = vor.u32 %v7437_v1, %v5466_v0  ;;  %v7365_v18 = vld [vmem:[#allocation8 + $0x164] sm:$0xf0] }
  0xfb   :  { %v6100_v15 = vld [vmem:[#allocation8 + $0x8a0] sm:$0xf0]  ;;  %v7405_v63 = vld [vmem:[#allocation8 + $0x2a4] sm:$0xf0] }
  0xfc   :  { %v7656_v16 = vld [vmem:[#allocation8 + $0xa84] sm:$0xf]  ;;  %v6103_v23 = vor.u32 %v7592_v13, %v6100_v15  ;;  %3650 = vmatpush.bf16.msrb.mxu3 %v6935_v20  ;;  %v6010_v13 = vld [vmem:[#allocation8 + $0x7c8] sm:$0xf] }
  0xfd   :  { %v6356_v17 = vld [vmem:[#allocation8 + $0xaa0] sm:$0xf0]  ;;  %v7573_v15 = vld [vmem:[#allocation8 + $0x7e4] sm:$0xf0] }
  0xfe   :  { %v7728_v21 = vld [vmem:[#allocation8 + $0xcc4] sm:$0xf]  ;;  %v6359_v24 = vor.u32 %v7656_v16, %v6356_v17  ;;  %3613 = vmatpush.bf16.msrb.mxu0 %v6103_v23  ;;  %v5178_v17 = vld [vmem:[#allocation8 + $0x148] sm:$0xf] }
  0xff   :  { %v6644_v22 = vld [vmem:[#allocation8 + $0xce0] sm:$0xf0]  ;;  %v7429_v23 = vld [vmem:[#allocation8 + $0x364] sm:$0xf0] }
 0x100   :  { %v7792_v25 = vld [vmem:[#allocation8 + $0xec4] sm:$0xf]  ;;  %v6647_v32 = vor.u32 %v7728_v21, %v6644_v22  ;;  %3626 = vmatpush.bf16.msrb.mxu1 %v6359_v24  ;;  %v5755_v21 = vor.u32 %v7509_v10, %v5754_v8  ;;  %v5434_v22 = vld [vmem:[#allocation8 + $0x348] sm:$0xf]  ;;  %v6011_v24 = vor.u32 %v7573_v15, %v6010_v13 }
 0x101   :  { %v6900_v27 = vld [vmem:[#allocation8 + $0xee0] sm:$0xf0]  ;;  %v5626_v1 = vld [vmem:[#allocation8 + $0x4c8] sm:$0xf] }
 0x102   :  { %v7584_v28 = vld [vmem:[#allocation8 + $0x844] sm:$0xf]  ;;  %v6903_v33 = vor.u32 %v7792_v25, %v6900_v27  ;;  %3638 = vmatpush.bf16.msrb.mxu2 %v6647_v32  ;;  %v5722_v25 = vld [vmem:[#allocation8 + $0x588] sm:$0xf] }
 0x103   :  { %v6068_v29 = vld [vmem:[#allocation8 + $0x860] sm:$0xf0]  ;;  %v7501_v27 = vld [vmem:[#allocation8 + $0x5a4] sm:$0xf0] }
 0x104   :  { %v7648_v30 = vld [vmem:[#allocation8 + $0xa44] sm:$0xf]  ;;  %v6071_v39 = vor.u32 %v7584_v28, %v6068_v29  ;;  %3651 = vmatpush.bf16.msrb.mxu3 %v6903_v33  ;;  %v5179_v28 = vor.u32 %v7365_v18, %v5178_v17  ;;  %v5978_v29 = vld [vmem:[#allocation8 + $0x788] sm:$0xf] }
 0x105   :  { %v6324_v31 = vld [vmem:[#allocation8 + $0xa60] sm:$0xf0]  ;;  %v5146_v32 = vld [vmem:[#allocation8 + $0x108] sm:$0xf] }
 0x106   :  { %v7720_v34 = vld [vmem:[#allocation8 + $0xc84] sm:$0xf]  ;;  %v6327_v14 = vor.u32 %v7648_v30, %v6324_v31  ;;  %3614 = vmatpush.bf16.msrb.mxu0 %v6071_v39  ;;  %v7565_v30 = vld [vmem:[#allocation8 + $0x7a4] sm:$0xf0]  ;;  %v5435_v31 = vor.u32 %v7429_v23, %v5434_v22 }
 0x107   :  { %v6612_v36 = vld [vmem:[#allocation8 + $0xca0] sm:$0xf0]  ;;  %v7357_v33 = vld [vmem:[#allocation8 + $0x124] sm:$0xf0]  ;;  %v5979_v39 = vor.u32 %v7565_v30, %v5978_v29 }
 0x108   :  { %v7784_v37 = vld [vmem:[#allocation8 + $0xe84] sm:$0xf]  ;;  %v6615_v35 = vor.u32 %v7720_v34, %v6612_v36  ;;  %3627 = vmatpush.bf16.msrb.mxu1 %v6327_v14  ;;  %v5723_v34 = vor.u32 %v7501_v27, %v5722_v25  ;;  %v5402_v36 = vld [vmem:[#allocation8 + $0x308] sm:$0xf] }
 0x109   :  { %v6868_v40 = vld [vmem:[#allocation8 + $0xea0] sm:$0xf0]  ;;  %v5690_v14 = vld [vmem:[#allocation8 + $0x548] sm:$0xf] }
 0x10a   :  { %v7576_v41 = vld [vmem:[#allocation8 + $0x804] sm:$0xf]  ;;  %v6871_v51 = vor.u32 %v7784_v37, %v6868_v40  ;;  %3639 = vmatpush.bf16.msrb.mxu2 %v6615_v35  ;;  %v7421_v37 = vld [vmem:[#allocation8 + $0x324] sm:$0xf0] }
 0x10b   :  { %v6036_v42 = vld [vmem:[#allocation8 + $0x820] sm:$0xf0]  ;;  %v7493_v40 = vld [vmem:[#allocation8 + $0x564] sm:$0xf0] }
 0x10c   :  { %v7640_v43 = vld [vmem:[#allocation8 + $0xa04] sm:$0xf]  ;;  %v6039_v54 = vor.u32 %v7576_v41, %v6036_v42  ;;  %3652 = vmatpush.bf16.msrb.mxu3 %v6871_v51  ;;  %v5147_v41 = vor.u32 %v7357_v33, %v5146_v32  ;;  %v5946_v42 = vld [vmem:[#allocation8 + $0x748] sm:$0xf]  ;;  %v5691_v47 = vor.u32 %v7493_v40, %v5690_v14 }
 0x10d   :  { %v6292_v45 = vld [vmem:[#allocation8 + $0xa20] sm:$0xf0]  ;;  %v7349_v35 = vld [vmem:[#allocation8 + $0xe4] sm:$0xf0] }
 0x10e   :  { %v7712_v52 = vld [vmem:[#allocation8 + $0xc44] sm:$0xf]  ;;  %v6295_v56 = vor.u32 %v7640_v43, %v6292_v45  ;;  %3615 = vmatpush.bf16.msrb.mxu0 %v6039_v54  ;;  %v7557_v43 = vld [vmem:[#allocation8 + $0x764] sm:$0xf0]  ;;  %v5403_v45 = vor.u32 %v7421_v37, %v5402_v36  ;;  %v5115_v54 = vor.u32 %v7349_v35, %v5114_v46 }
 0x10f   :  { %v6580_v53 = vld [vmem:[#allocation8 + $0xc60] sm:$0xf0]  ;;  %v5947_v51 = vor.u32 %v7557_v43, %v5946_v42  ;;  %v5050_v8 = vld [vmem:[#allocation8 + $0x48] sm:$0xf] }
 0x110   :  { %v7776_v57 = vld [vmem:[#allocation8 + $0xe44] sm:$0xf]  ;;  %v6583_v62 = vor.u32 %v7712_v52, %v6580_v53  ;;  %3628 = vmatpush.bf16.msrb.mxu1 %v6295_v56  ;;  %v5658_v52 = vld [vmem:[#allocation8 + $0x508] sm:$0xf] }
 0x111   :  { %v6836_v58 = vld [vmem:[#allocation8 + $0xe60] sm:$0xf0]  ;;  %3616 = vmatmul.bf16.vlgmr.msrb.gmra.mxu0 %v8266_v19  ;;  %v7485_v53 = vld [vmem:[#allocation8 + $0x524] sm:$0xf0] }
 0x112   :  { %v6839_v2 = vor.u32 %v7776_v57, %v6836_v58  ;;  %v7704_v4 = vld [vmem:[#allocation8 + $0xc04] sm:$0xf]  ;;  %3660 = vmatpush.bf16.msra.mxu0 %v5243_v59  ;;  %3640 = vmatpush.bf16.msrb.mxu2 %v6583_v62  ;;  %v5914_v56 = vld [vmem:[#allocation8 + $0x708] sm:$0xf]  ;;  %v5371_v58 = vor.u32 %v7413_v49, %v5370_v48  ;;  %v5659_v61 = vor.u32 %v7485_v53, %v5658_v52 }
 0x113   :  { %v6548_v5 = vld [vmem:[#allocation8 + $0xc20] sm:$0xf0]  ;;  %3629 = vmatmul.bf16.vlgmr.msrb.gmra.mxu1 %v8268_v26  ;;  %v7549_v57 = vld [vmem:[#allocation8 + $0x724] sm:$0xf0] }
 0x114   :  { %v7768_v6 = vld [vmem:[#allocation8 + $0xe04] sm:$0xf]  ;;  %3673 = vmatpush.bf16.msra.mxu1 %v5499_v60  ;;  %v6551_v16 = vor.u32 %v7704_v4, %v6548_v5  ;;  %3653 = vmatpush.bf16.msrb.mxu3 %v6839_v2  ;;  %v5082_v59 = vld [vmem:[#allocation8 + $0x88] sm:$0xf]  ;;  %v5915_v0 = vor.u32 %v7549_v57, %v5914_v56 }
 0x115   :  { %v6804_v7 = vld [vmem:[#allocation8 + $0xe20] sm:$0xf0]  ;;  %v7341_v60 = vld [vmem:[#allocation8 + $0xa4] sm:$0xf0] }
 0x116   :  { %v6807_v20 = vor.u32 %v7768_v6, %v6804_v7  ;;  %3661 = vmatpush.bf16.msra.mxu0 %v5211_v11  ;;  %3641 = vmatpush.bf16.msrb.mxu2 %v6551_v16  ;;  %v5338_v62 = vld [vmem:[#allocation8 + $0x288] sm:$0xf]  ;;  %v5083_v4 = vor.u32 %v7341_v60, %v5082_v59 }
 0x117   :  { %v7477_v2 = vld [vmem:[#allocation8 + $0x4e4] sm:$0xf0]  ;;  %v5339_v7 = vor.u32 %v7405_v63, %v5338_v62 }
 0x118   :  { %3674 = vmatpush.bf16.msra.mxu1 %v5467_v12  ;;  %3654 = vmatpush.bf16.msrb.mxu3 %v6807_v20  ;;  %v5882_v5 = vld [vmem:[#allocation8 + $0x6c8] sm:$0xf]  ;;  %v5627_v11 = vor.u32 %v7477_v2, %v5626_v1 }
 0x119   :  { %3642 = vmatmul.bf16.vlgmr.msrb.gmra.mxu2 %v8272_v50  ;;  %v7541_v6 = vld [vmem:[#allocation8 + $0x6e4] sm:$0xf0] }
 0x11a   :  { %3686 = vmatpush.bf16.msra.mxu2 %v5755_v21  ;;  %3662 = vmatpush.bf16.msra.mxu0 %v5179_v28  ;;  %v7333_v10 = vld [vmem:[#allocation8 + $0x64] sm:$0xf0]  ;;  %v5883_v15 = vor.u32 %v7541_v6, %v5882_v5 }
 0x11b   :  { %3655 = vmatmul.bf16.vlgmr.msrb.gmra.mxu3 %v8274_v55  ;;  %v5306_v12 = vld [vmem:[#allocation8 + $0x248] sm:$0xf]  ;;  %v5051_v18 = vor.u32 %v7333_v10, %v5050_v8 }
 0x11c   :  { %3699 = vmatpush.bf16.msra.mxu3 %v6011_v24  ;;  %3675 = vmatpush.bf16.msra.mxu1 %v5435_v31  ;;  %v7397_v13 = vld [vmem:[#allocation8 + $0x264] sm:$0xf0] }
 0x11d   :  { %v5594_v16 = vld [vmem:[#allocation8 + $0x488] sm:$0xf]  ;;  %v5307_v23 = vor.u32 %v7397_v13, %v5306_v12 }
 0x11e   :  { %3687 = vmatpush.bf16.msra.mxu2 %v5723_v34  ;;  %3663 = vmatpush.bf16.msra.mxu0 %v5147_v41  ;;  %v7469_v17 = vld [vmem:[#allocation8 + $0x4a4] sm:$0xf0] }
 0x11f   :  { %v5850_v20 = vld [vmem:[#allocation8 + $0x688] sm:$0xf]  ;;  %v5595_v28 = vor.u32 %v7469_v17, %v5594_v16 }
 0x120   :  { %3700 = vmatpush.bf16.msra.mxu3 %v5979_v39  ;;  %3676 = vmatpush.bf16.msra.mxu1 %v5403_v45  ;;  %v7533_v21 = vld [vmem:[#allocation8 + $0x6a4] sm:$0xf0] }
 0x121   :  { %v5018_v22 = vld [vmem:[#allocation8 + $0x8] sm:$0xf]  ;;  %v5851_v32 = vor.u32 %v7533_v21, %v5850_v20 }
 0x122   :  { %3688 = vmatpush.bf16.msra.mxu2 %v5691_v47  ;;  %3664 = vmatpush.bf16.msra.mxu0 %v5115_v54  ;;  %v7325_v24 = vld [vmem:[#allocation8 + $0x24] sm:$0xf0] }
 0x123   :  { %v5274_v25 = vld [vmem:[#allocation8 + $0x208] sm:$0xf]  ;;  %v5019_v37 = vor.u32 %v7325_v24, %v5018_v22 }
 0x124   :  { %3701 = vmatpush.bf16.msra.mxu3 %v5947_v51  ;;  %3677 = vmatpush.bf16.msra.mxu1 %v5371_v58  ;;  %v7389_v27 = vld [vmem:[#allocation8 + $0x224] sm:$0xf0] }
 0x125   :  { %v6266_v29 = vld [vmem:[#allocation8 + $0x9c8] sm:$0xf]  ;;  %v5275_v40 = vor.u32 %v7389_v27, %v5274_v25 }
 0x126   :  { %3689 = vmatpush.bf16.msra.mxu2 %v5659_v61  ;;  %3665 = vmatpush.bf16.msra.mxu0 %v5083_v4  ;;  %v7637_v30 = vld [vmem:[#allocation8 + $0x9e4] sm:$0xf0] }
 0x127   :  { %v6522_v31 = vld [vmem:[#allocation8 + $0xbc8] sm:$0xf]  ;;  %v6267_v41 = vor.u32 %v7637_v30, %v6266_v29 }
 0x128   :  { %3702 = vmatpush.bf16.msra.mxu3 %v5915_v0  ;;  %3678 = vmatpush.bf16.msra.mxu1 %v5339_v7  ;;  %v7701_v33 = vld [vmem:[#allocation8 + $0xbe4] sm:$0xf0] }
 0x129   :  { %v5562_v34 = vld [vmem:[#allocation8 + $0x448] sm:$0xf]  ;;  %v6523_v43 = vor.u32 %v7701_v33, %v6522_v31 }
 0x12a   :  { %3690 = vmatpush.bf16.msra.mxu2 %v5627_v11  ;;  %v7461_v36 = vld [vmem:[#allocation8 + $0x464] sm:$0xf0]  ;;  %3666 = vmatpush.bf16.msra.mxu0 %v5051_v18 }
 0x12b   :  { %v5818_v39 = vld [vmem:[#allocation8 + $0x648] sm:$0xf]  ;;  %v5563_v45 = vor.u32 %v7461_v36, %v5562_v34 }
 0x12c   :  { %3703 = vmatpush.bf16.msra.mxu3 %v5883_v15  ;;  %v7525_v14 = vld [vmem:[#allocation8 + $0x664] sm:$0xf0]  ;;  %3679 = vmatpush.bf16.msra.mxu1 %v5307_v23 }
 0x12d   :  { %v6234_v42 = vld [vmem:[#allocation8 + $0x988] sm:$0xf]  ;;  %v5819_v48 = vor.u32 %v7525_v14, %v5818_v39 }
 0x12e   :  { %3691 = vmatpush.bf16.msra.mxu2 %v5595_v28  ;;  %v7629_v46 = vld [vmem:[#allocation8 + $0x9a4] sm:$0xf0]  ;;  %3667 = vmatpush.bf16.msra.mxu0 %v5019_v37 }
 0x12f   :  { %v6490_v35 = vld [vmem:[#allocation8 + $0xb88] sm:$0xf]  ;;  %v6235_v57 = vor.u32 %v7629_v46, %v6234_v42 }
 0x130   :  { %v7693_v47 = vld [vmem:[#allocation8 + $0xba4] sm:$0xf0]  ;;  %3704 = vmatpush.bf16.msra.mxu3 %v5851_v32  ;;  %3680 = vmatpush.bf16.msra.mxu1 %v5275_v40 }
 0x131   :  { %v5530_v49 = vld [vmem:[#allocation8 + $0x408] sm:$0xf]  ;;  %v6491_v60 = vor.u32 %v7693_v47, %v6490_v35  ;;  %3668 = vmatmul.bf16.vlgmr.msra.gmra.mxu0 %v8252_v3 }
 0x132   :  { %v7453_v51 = vld [vmem:[#allocation8 + $0x424] sm:$0xf0]  ;;  %3712 = vmatpush.bf16.msrb.mxu0 %v6267_v41  ;;  %3692 = vmatpush.bf16.msra.mxu2 %v5563_v45 }
 0x133   :  { %v5786_v52 = vld [vmem:[#allocation8 + $0x608] sm:$0xf]  ;;  %v5531_v61 = vor.u32 %v7453_v51, %v5530_v49  ;;  %3681 = vmatmul.bf16.vlgmr.msra.gmra.mxu1 %v8254_v9 }
 0x134   :  { %v7517_v53 = vld [vmem:[#allocation8 + $0x624] sm:$0xf0]  ;;  %3725 = vmatpush.bf16.msrb.mxu1 %v6523_v43  ;;  %3705 = vmatpush.bf16.msra.mxu3 %v5819_v48 }
 0x135   :  { %v6778_v54 = vld [vmem:[#allocation8 + $0xdc8] sm:$0xf]  ;;  %v5787_v0 = vor.u32 %v7517_v53, %v5786_v52 }
 0x136   :  { %v7765_v56 = vld [vmem:[#allocation8 + $0xde4] sm:$0xf0]  ;;  %3713 = vmatpush.bf16.msrb.mxu0 %v6235_v57  ;;  %3693 = vmatpush.bf16.msra.mxu2 %v5531_v61 }
 0x137   :  { %v7034_v58 = vld [vmem:[#allocation8 + $0xfc8] sm:$0xf]  ;;  %v6779_v1 = vor.u32 %v7765_v56, %v6778_v54 }
 0x138   :  { %v7829_v59 = vld [vmem:[#allocation8 + $0xfe4] sm:$0xf0]  ;;  %3726 = vmatpush.bf16.msrb.mxu1 %v6491_v60  ;;  %3706 = vmatpush.bf16.msra.mxu3 %v5787_v0 }
 0x139   :  { %v6202_v62 = vld [vmem:[#allocation8 + $0x948] sm:$0xf]  ;;  %v7035_v5 = vor.u32 %v7829_v59, %v7034_v58  ;;  %3694 = vmatmul.bf16.vlgmr.msra.gmra.mxu2 %v8260_v38 }
 0x13a   :  { %v7621_v63 = vld [vmem:[#allocation8 + $0x964] sm:$0xf0]  ;;  %3738 = vmatpush.bf16.msrb.mxu2 %v6779_v1 }
 0x13b   :  { %v6458_v2 = vld [vmem:[#allocation8 + $0xb48] sm:$0xf]  ;;  %v6203_v8 = vor.u32 %v7621_v63, %v6202_v62  ;;  %3707 = vmatmul.bf16.vlgmr.msra.gmra.mxu3 %v8262_v44 }
 0x13c   :  { %v7685_v4 = vld [vmem:[#allocation8 + $0xb64] sm:$0xf0]  ;;  %3751 = vmatpush.bf16.msrb.mxu3 %v7035_v5 }
 0x13d   :  { %v6746_v6 = vld [vmem:[#allocation8 + $0xd88] sm:$0xf]  ;;  %v6459_v12 = vor.u32 %v7685_v4, %v6458_v2  ;;  %3714 = vmatpush.bf16.msrb.mxu0 %v6203_v8 }
 0x13e   :  { %v7757_v7 = vld [vmem:[#allocation8 + $0xda4] sm:$0xf0] }
 0x13f   :  { %v7002_v10 = vld [vmem:[#allocation8 + $0xf88] sm:$0xf]  ;;  %v6747_v16 = vor.u32 %v7757_v7, %v6746_v6  ;;  %3727 = vmatpush.bf16.msrb.mxu1 %v6459_v12  ;;  %v7441_v12 = vld [vmem:[#allocation8 + $0x3cc] sm:$0xf] }
 0x140   :  { %v7821_v11 = vld [vmem:[#allocation8 + $0xfa4] sm:$0xf0] }
 0x141   :  { %v6170_v13 = vld [vmem:[#allocation8 + $0x908] sm:$0xf]  ;;  %v7003_v20 = vor.u32 %v7821_v11, %v7002_v10  ;;  %3739 = vmatpush.bf16.msrb.mxu2 %v6747_v16  ;;  %v7377_v10 = vld [vmem:[#allocation8 + $0x1cc] sm:$0xf] }
 0x142   :  { %v7613_v15 = vld [vmem:[#allocation8 + $0x924] sm:$0xf0]  ;;  %v5244_v11 = vld [vmem:[#allocation8 + $0x1e8] sm:$0xf0] }
 0x143   :  { %v6426_v17 = vld [vmem:[#allocation8 + $0xb08] sm:$0xf]  ;;  %v6171_v23 = vor.u32 %v7613_v15, %v6170_v13  ;;  %3752 = vmatpush.bf16.msrb.mxu3 %v7003_v20  ;;  %v5500_v15 = vld [vmem:[#allocation8 + $0x3e8] sm:$0xf0] }
 0x144   :  { %v7677_v18 = vld [vmem:[#allocation8 + $0xb24] sm:$0xf0] }
 0x145   :  { %v6714_v21 = vld [vmem:[#allocation8 + $0xd48] sm:$0xf]  ;;  %v6427_v27 = vor.u32 %v7677_v18, %v6426_v17  ;;  %3715 = vmatpush.bf16.msrb.mxu0 %v6171_v23  ;;  %v5247_v23 = vor.u32 %v7377_v10, %v5244_v11  ;;  %v7553_v11 = vld [vmem:[#allocation8 + $0x74c] sm:$0xf] }
 0x146   :  { %v7749_v22 = vld [vmem:[#allocation8 + $0xd64] sm:$0xf0] }
 0x147   :  { %v6970_v24 = vld [vmem:[#allocation8 + $0xf48] sm:$0xf]  ;;  %v6715_v30 = vor.u32 %v7749_v22, %v6714_v21  ;;  %3728 = vmatpush.bf16.msrb.mxu1 %v6427_v27 }
 0x148   :  { %v7813_v25 = vld [vmem:[#allocation8 + $0xf64] sm:$0xf0] }
 0x149   :  { %v6138_v28 = vld [vmem:[#allocation8 + $0x8c8] sm:$0xf]  ;;  %v6971_v33 = vor.u32 %v7813_v25, %v6970_v24  ;;  %3740 = vmatpush.bf16.msrb.mxu2 %v6715_v30  ;;  %v7369_v24 = vld [vmem:[#allocation8 + $0x18c] sm:$0xf]  ;;  %v5503_v25 = vor.u32 %v7441_v12, %v5500_v15 }
 0x14a   :  { %v7605_v29 = vld [vmem:[#allocation8 + $0x8e4] sm:$0xf0]  ;;  %v5468_v30 = vld [vmem:[#allocation8 + $0x3a8] sm:$0xf0] }
 0x14b   :  { %v6394_v31 = vld [vmem:[#allocation8 + $0xac8] sm:$0xf]  ;;  %v6139_v37 = vor.u32 %v7605_v29, %v6138_v28  ;;  %3753 = vmatpush.bf16.msrb.mxu3 %v6971_v33  ;;  %v5212_v28 = vld [vmem:[#allocation8 + $0x1a8] sm:$0xf0] }
 0x14c   :  { %v7669_v32 = vld [vmem:[#allocation8 + $0xae4] sm:$0xf0]  ;;  %v7433_v29 = vld [vmem:[#allocation8 + $0x38c] sm:$0xf] }
 0x14d   :  { %v6682_v34 = vld [vmem:[#allocation8 + $0xd08] sm:$0xf]  ;;  %v6395_v40 = vor.u32 %v7669_v32, %v6394_v31  ;;  %3716 = vmatpush.bf16.msrb.mxu0 %v6139_v37  ;;  %v7505_v37 = vld [vmem:[#allocation8 + $0x5cc] sm:$0xf] }
 0x14e   :  { %v7741_v36 = vld [vmem:[#allocation8 + $0xd24] sm:$0xf0]  ;;  %v5948_v12 = vld [vmem:[#allocation8 + $0x768] sm:$0xf0] }
 0x14f   :  { %v6938_v39 = vld [vmem:[#allocation8 + $0xf08] sm:$0xf]  ;;  %v6683_v43 = vor.u32 %v7741_v36, %v6682_v34  ;;  %3729 = vmatpush.bf16.msrb.mxu1 %v6395_v40  ;;  %v7569_v40 = vld [vmem:[#allocation8 + $0x7cc] sm:$0xf] }
 0x150   :  { %v7805_v14 = vld [vmem:[#allocation8 + $0xf24] sm:$0xf0]  ;;  %v7345_v15 = vld [vmem:[#allocation8 + $0xcc] sm:$0xf] }
 0x151   :  { %v6106_v41 = vld [vmem:[#allocation8 + $0x888] sm:$0xf]  ;;  %v6939_v35 = vor.u32 %v7805_v14, %v6938_v39  ;;  %3741 = vmatpush.bf16.msrb.mxu2 %v6683_v43  ;;  %v5756_v39 = vld [vmem:[#allocation8 + $0x5e8] sm:$0xf0]  ;;  %v5215_v14 = vor.u32 %v7369_v24, %v5212_v28 }
 0x152   :  { %v7597_v42 = vld [vmem:[#allocation8 + $0x8a4] sm:$0xf0]  ;;  %v5660_v24 = vld [vmem:[#allocation8 + $0x528] sm:$0xf0] }
 0x153   :  { %v6362_v45 = vld [vmem:[#allocation8 + $0xa88] sm:$0xf]  ;;  %v6107_v49 = vor.u32 %v7597_v42, %v6106_v41  ;;  %3754 = vmatpush.bf16.msrb.mxu3 %v6939_v35  ;;  %v6012_v41 = vld [vmem:[#allocation8 + $0x7e8] sm:$0xf0]  ;;  %v5471_v42 = vor.u32 %v7433_v29, %v5468_v30  ;;  %v8290_v35 = vld [vmem:[#allocation10] sm:$0xff] }
 0x154   :  { %v7661_v46 = vld [vmem:[#allocation8 + $0xaa4] sm:$0xf0]  ;;  %v5916_v28 = vld [vmem:[#allocation8 + $0x728] sm:$0xf0] }
 0x155   :  { %v6650_v47 = vld [vmem:[#allocation8 + $0xcc8] sm:$0xf]  ;;  %v6363_v53 = vor.u32 %v7661_v46, %v6362_v45  ;;  %3717 = vmatpush.bf16.msrb.mxu0 %v6107_v49  ;;  %v7361_v45 = vld [vmem:[#allocation8 + $0x14c] sm:$0xf] }
 0x156   :  { %v7733_v48 = vld [vmem:[#allocation8 + $0xce4] sm:$0xf0]  ;;  %v5180_v46 = vld [vmem:[#allocation8 + $0x168] sm:$0xf0] }
 0x157   :  { %v6906_v51 = vld [vmem:[#allocation8 + $0xec8] sm:$0xf]  ;;  %v6651_v57 = vor.u32 %v7733_v48, %v6650_v47  ;;  %3730 = vmatpush.bf16.msrb.mxu1 %v6363_v53  ;;  %v5759_v48 = vor.u32 %v7505_v37, %v5756_v39  ;;  %v7425_v49 = vld [vmem:[#allocation8 + $0x34c] sm:$0xf] }
 0x158   :  { %v7797_v52 = vld [vmem:[#allocation8 + $0xee4] sm:$0xf0]  ;;  %v7497_v53 = vld [vmem:[#allocation8 + $0x58c] sm:$0xf] }
 0x159   :  { %v6074_v54 = vld [vmem:[#allocation8 + $0x848] sm:$0xf]  ;;  %v6907_v60 = vor.u32 %v7797_v52, %v6906_v51  ;;  %3742 = vmatpush.bf16.msrb.mxu2 %v6651_v57  ;;  %v5436_v51 = vld [vmem:[#allocation8 + $0x368] sm:$0xf0]  ;;  %v6015_v52 = vor.u32 %v7569_v40, %v6012_v41  ;;  %v876_v57 = vperm.slane %v8290_v35, 0 }
 0x15a   :  { %v7589_v56 = vld [vmem:[#allocation8 + $0x864] sm:$0xf0]  ;;  %v7337_v30 = vld [vmem:[#allocation8 + $0x8c] sm:$0xf] }
 0x15b   :  { %v6330_v58 = vld [vmem:[#allocation8 + $0xa48] sm:$0xf]  ;;  %v6075_v63 = vor.u32 %v7589_v56, %v6074_v54  ;;  %3755 = vmatpush.bf16.msrb.mxu3 %v6907_v60  ;;  %v5724_v54 = vld [vmem:[#allocation8 + $0x5a8] sm:$0xf0]  ;;  %v5183_v56 = vor.u32 %v7361_v45, %v5180_v46  ;;  %v5439_v60 = vor.u32 %v7425_v49, %v5436_v51 }
 0x15c   :  { %v7653_v59 = vld [vmem:[#allocation8 + $0xa64] sm:$0xf0]  ;;  %v7473_v39 = vld [vmem:[#allocation8 + $0x4cc] sm:$0xf] }
 0x15d   :  { %v6618_v61 = vld [vmem:[#allocation8 + $0xc88] sm:$0xf]  ;;  %v6331_v4 = vor.u32 %v7653_v59, %v6330_v58  ;;  %3718 = vmatpush.bf16.msrb.mxu0 %v6075_v63  ;;  %v7561_v58 = vld [vmem:[#allocation8 + $0x78c] sm:$0xf]  ;;  %v5727_v63 = vor.u32 %v7497_v53, %v5724_v54 }
 0x15e   :  { %v7725_v62 = vld [vmem:[#allocation8 + $0xca4] sm:$0xf0]  ;;  %v5980_v59 = vld [vmem:[#allocation8 + $0x7a8] sm:$0xf0] }
 0x15f   :  { %v6874_v0 = vld [vmem:[#allocation8 + $0xe88] sm:$0xf]  ;;  %v6619_v8 = vor.u32 %v7725_v62, %v6618_v61  ;;  %3731 = vmatpush.bf16.msrb.mxu1 %v6331_v4  ;;  %v7353_v61 = vld [vmem:[#allocation8 + $0x10c] sm:$0xf]  ;;  %v5983_v4 = vor.u32 %v7561_v58, %v5980_v59 }
 0x160   :  { %v7789_v1 = vld [vmem:[#allocation8 + $0xea4] sm:$0xf0]  ;;  %v5148_v62 = vld [vmem:[#allocation8 + $0x128] sm:$0xf0] }
 0x161   :  { %v6042_v2 = vld [vmem:[#allocation8 + $0x808] sm:$0xf]  ;;  %v6875_v13 = vor.u32 %v7789_v1, %v6874_v0  ;;  %3743 = vmatpush.bf16.msrb.mxu2 %v6619_v8  ;;  %v7417_v0 = vld [vmem:[#allocation8 + $0x30c] sm:$0xf]  ;;  %v3474_v8 = vpop.f32.mrf.mxu1  ;;  %v5151_v10 = vor.u32 %v7353_v61, %v5148_v62  ;;  %v3500_v62 = vpop.f32.mrf.mxu3 }
 0x162   :  { %v7581_v5 = vld [vmem:[#allocation8 + $0x824] sm:$0xf0]  ;;  %v5404_v1 = vld [vmem:[#allocation8 + $0x328] sm:$0xf0] }
 0x163   :  { %v6298_v6 = vld [vmem:[#allocation8 + $0xa08] sm:$0xf]  ;;  %v6043_v18 = vor.u32 %v7581_v5, %v6042_v2  ;;  %3756 = vmatpush.bf16.msrb.mxu3 %v6875_v13  ;;  %v3461_v2 = vpop.f32.mrf.mxu0  ;;  %v7489_v5 = vld [vmem:[#allocation8 + $0x54c] sm:$0xf]  ;;  %v5407_v13 = vor.u32 %v7417_v0, %v5404_v1 }
 0x164   :  { %v7645_v7 = vld [vmem:[#allocation8 + $0xa24] sm:$0xf0]  ;;  %v7329_v46 = vld [vmem:[#allocation8 + $0x4c] sm:$0xf] }
 0x165   :  { %v6586_v16 = vld [vmem:[#allocation8 + $0xc48] sm:$0xf]  ;;  %v6299_v22 = vor.u32 %v7645_v7, %v6298_v6  ;;  %3719 = vmatpush.bf16.msrb.mxu0 %v6043_v18  ;;  %v5692_v6 = vld [vmem:[#allocation8 + $0x568] sm:$0xf0]  ;;  %v3462_v7 = vadd.f32 %v3461_v2, %v876_v57 }
 0x166   :  { %v7717_v17 = vld [vmem:[#allocation8 + $0xc64] sm:$0xf0]  ;;  %v5695_v18 = vor.u32 %v7489_v5, %v5692_v6  ;;  %v7393_v49 = vld [vmem:[#allocation8 + $0x24c] sm:$0xf] }
 0x167   :  { %v6842_v20 = vld [vmem:[#allocation8 + $0xe48] sm:$0xf]  ;;  %v6587_v27 = vor.u32 %v7717_v17, %v6586_v16  ;;  %3732 = vmatpush.bf16.msrb.mxu1 %v6299_v22  ;;  %v5116_v16 = vld [vmem:[#allocation8 + $0xe8] sm:$0xf0]  ;;  %v3475_v17 = vadd.f32 %v3474_v8, %v3462_v7  ;;  %v5951_v22 = vor.u32 %v7553_v11, %v5948_v12 }
 0x168   :  { %v7781_v21 = vld [vmem:[#allocation8 + $0xe64] sm:$0xf0]  ;;  %3720 = vmatmul.bf16.vlgmr.msrb.gmra.mxu0 %v8266_v19  ;;  %v5308_v51 = vld [vmem:[#allocation8 + $0x268] sm:$0xf0] }
 0x169   :  { %v6843_v31 = vor.u32 %v7781_v21, %v6842_v20  ;;  %v6554_v32 = vld [vmem:[#allocation8 + $0xc08] sm:$0xf]  ;;  %3764 = vmatpush.bf16.msra.mxu0 %v5247_v23  ;;  %3744 = vmatpush.bf16.msrb.mxu2 %v6587_v27  ;;  %v7409_v20 = vld [vmem:[#allocation8 + $0x2cc] sm:$0xf]  ;;  %v3476_v40 = vpop.f32.mrf.mxu1 }
 0x16a   :  { %v7709_v33 = vld [vmem:[#allocation8 + $0xc24] sm:$0xf0]  ;;  %3733 = vmatmul.bf16.vlgmr.msrb.gmra.mxu1 %v8268_v26  ;;  %v5372_v21 = vld [vmem:[#allocation8 + $0x2e8] sm:$0xf0] }
 0x16b   :  { %v6810_v34 = vld [vmem:[#allocation8 + $0xe08] sm:$0xf]  ;;  %3777 = vmatpush.bf16.msra.mxu1 %v5503_v25  ;;  %v6555_v43 = vor.u32 %v7709_v33, %v6554_v32  ;;  %3757 = vmatpush.bf16.msrb.mxu3 %v6843_v31  ;;  %v7481_v23 = vld [vmem:[#allocation8 + $0x50c] sm:$0xf]  ;;  %v5119_v25 = vor.u32 %v7345_v15, %v5116_v16  ;;  %v5375_v29 = vor.u32 %v7409_v20, %v5372_v21 }
 0x16c   :  { %v7773_v36 = vld [vmem:[#allocation8 + $0xe24] sm:$0xf0]  ;;  %v7545_v27 = vld [vmem:[#allocation8 + $0x70c] sm:$0xf]  ;;  %v5663_v32 = vor.u32 %v7481_v23, %v5660_v24 }
 0x16d   :  { %v6811_v47 = vor.u32 %v7773_v36, %v6810_v34  ;;  %3765 = vmatpush.bf16.msra.mxu0 %v5215_v14  ;;  %3745 = vmatpush.bf16.msrb.mxu2 %v6555_v43  ;;  %v5084_v31 = vld [vmem:[#allocation8 + $0xa8] sm:$0xf0]  ;;  %v3463_v36 = vpop.f32.mrf.mxu0  ;;  %v5919_v37 = vor.u32 %v7545_v27, %v5916_v28 }
 0x16e   :  { %v7401_v33 = vld [vmem:[#allocation8 + $0x28c] sm:$0xf]  ;;  %v5087_v41 = vor.u32 %v7337_v30, %v5084_v31 }
 0x16f   :  { %3778 = vmatpush.bf16.msra.mxu1 %v5471_v42  ;;  %3758 = vmatpush.bf16.msrb.mxu3 %v6811_v47  ;;  %v5340_v34 = vld [vmem:[#allocation8 + $0x2a8] sm:$0xf0] }
 0x170   :  { %3746 = vmatmul.bf16.vlgmr.msrb.gmra.mxu2 %v8272_v50  ;;  %v5628_v14 = vld [vmem:[#allocation8 + $0x4e8] sm:$0xf0]  ;;  %v5343_v45 = vor.u32 %v7401_v33, %v5340_v34 }
 0x171   :  { %3790 = vmatpush.bf16.msra.mxu2 %v5759_v48  ;;  %3766 = vmatpush.bf16.msra.mxu0 %v5183_v56  ;;  %v7537_v42 = vld [vmem:[#allocation8 + $0x6cc] sm:$0xf]  ;;  %v5631_v48 = vor.u32 %v7473_v39, %v5628_v14  ;;  %v3487_v56 = vpop.f32.mrf.mxu2  ;;  %v3526_v16 = vpop.f32.mrf.mxu1 }
 0x172   :  { %3759 = vmatmul.bf16.vlgmr.msrb.gmra.mxu3 %v8274_v55  ;;  %v5884_v43 = vld [vmem:[#allocation8 + $0x6e8] sm:$0xf0]  ;;  %v3488_v61 = vadd.f32 %v3487_v56, %v3475_v17 }
 0x173   :  { %3803 = vmatpush.bf16.msra.mxu3 %v6015_v52  ;;  %3779 = vmatpush.bf16.msra.mxu1 %v5439_v60  ;;  %v5052_v47 = vld [vmem:[#allocation8 + $0x68] sm:$0xf0]  ;;  %v5887_v52 = vor.u32 %v7537_v42, %v5884_v43 }
 0x174   :  { %v7465_v53 = vld [vmem:[#allocation8 + $0x48c] sm:$0xf]  ;;  %v5055_v57 = vor.u32 %v7329_v46, %v5052_v47  ;;  %v3501_v8 = vadd.f32 %v3500_v62, %v3488_v61 }
 0x175   :  { %3791 = vmatpush.bf16.msra.mxu2 %v5727_v63  ;;  %3767 = vmatpush.bf16.msra.mxu0 %v5151_v10  ;;  %v5596_v54 = vld [vmem:[#allocation8 + $0x4a8] sm:$0xf0]  ;;  %v5311_v63 = vor.u32 %v7393_v49, %v5308_v51  ;;  %v3513_v10 = vpop.f32.mrf.mxu0 }
 0x176   :  { %v7529_v58 = vld [vmem:[#allocation8 + $0x68c] sm:$0xf]  ;;  %v3514_v21 = vadd.f32 %v3513_v10, %v3501_v8 }
 0x177   :  { %3804 = vmatpush.bf16.msra.mxu3 %v5983_v4  ;;  %3780 = vmatpush.bf16.msra.mxu1 %v5407_v13  ;;  %v5852_v59 = vld [vmem:[#allocation8 + $0x6a8] sm:$0xf0]  ;;  %v5599_v4 = vor.u32 %v7465_v53, %v5596_v54 }
 0x178   :  { %v7321_v60 = vld [vmem:[#allocation8 + $0xc] sm:$0xf]  ;;  %v5855_v11 = vor.u32 %v7529_v58, %v5852_v59  ;;  %v3527_v31 = vadd.f32 %v3526_v16, %v3514_v21 }
 0x179   :  { %3792 = vmatpush.bf16.msra.mxu2 %v5695_v18  ;;  %3768 = vmatpush.bf16.msra.mxu0 %v5119_v25  ;;  %v5020_v0 = vld [vmem:[#allocation8 + $0x28] sm:$0xf0] }
 0x17a   :  { %v7385_v1 = vld [vmem:[#allocation8 + $0x20c] sm:$0xf]  ;;  %v5023_v17 = vor.u32 %v7321_v60, %v5020_v0 }
 0x17b   :  { %3805 = vmatpush.bf16.msra.mxu3 %v5951_v22  ;;  %3781 = vmatpush.bf16.msra.mxu1 %v5375_v29  ;;  %v5276_v2 = vld [vmem:[#allocation8 + $0x228] sm:$0xf0] }
 0x17c   :  { %v7633_v5 = vld [vmem:[#allocation8 + $0x9cc] sm:$0xf]  ;;  %v5279_v22 = vor.u32 %v7385_v1, %v5276_v2 }
 0x17d   :  { %3793 = vmatpush.bf16.msra.mxu2 %v5663_v32  ;;  %3769 = vmatpush.bf16.msra.mxu0 %v5087_v41  ;;  %v6268_v6 = vld [vmem:[#allocation8 + $0x9e8] sm:$0xf0]  ;;  %v3502_v41 = vpop.f32.mrf.mxu3  ;;  %v3515_v51 = vpop.f32.mrf.mxu0 }
 0x17e   :  { %v7697_v7 = vld [vmem:[#allocation8 + $0xbcc] sm:$0xf]  ;;  %v6271_v23 = vor.u32 %v7633_v5, %v6268_v6 }
 0x17f   :  { %3806 = vmatpush.bf16.msra.mxu3 %v5919_v37  ;;  %3782 = vmatpush.bf16.msra.mxu1 %v5343_v45  ;;  %v6524_v12 = vld [vmem:[#allocation8 + $0xbe8] sm:$0xf0]  ;;  %v3489_v37 = vpop.f32.mrf.mxu2 }
 0x180   :  { %v7457_v13 = vld [vmem:[#allocation8 + $0x44c] sm:$0xf]  ;;  %v6527_v25 = vor.u32 %v7697_v7, %v6524_v12 }
 0x181   :  { %3794 = vmatpush.bf16.msra.mxu2 %v5631_v48  ;;  %v5564_v15 = vld [vmem:[#allocation8 + $0x468] sm:$0xf0]  ;;  %3770 = vmatpush.bf16.msra.mxu0 %v5055_v57  ;;  %v3528_v57 = vpop.f32.mrf.mxu1 }
 0x182   :  { %v7521_v18 = vld [vmem:[#allocation8 + $0x64c] sm:$0xf]  ;;  %v5567_v27 = vor.u32 %v7457_v13, %v5564_v15  ;;  %v877_v15 = vperm.slane %v8290_v35, 1 }
 0x183   :  { %3807 = vmatpush.bf16.msra.mxu3 %v5887_v52  ;;  %v5820_v20 = vld [vmem:[#allocation8 + $0x668] sm:$0xf0]  ;;  %3783 = vmatpush.bf16.msra.mxu1 %v5311_v63 }
 0x184   :  { %v7625_v24 = vld [vmem:[#allocation8 + $0x98c] sm:$0xf]  ;;  %v5823_v32 = vor.u32 %v7521_v18, %v5820_v20 }
 0x185   :  { %3795 = vmatpush.bf16.msra.mxu2 %v5599_v4  ;;  %v6236_v28 = vld [vmem:[#allocation8 + $0x9a8] sm:$0xf0]  ;;  %3771 = vmatpush.bf16.msra.mxu0 %v5023_v17  ;;  %v3552_v13 = vpop.f32.mrf.mxu3 }
 0x186   :  { %v7689_v29 = vld [vmem:[#allocation8 + $0xb8c] sm:$0xf]  ;;  %v6239_v42 = vor.u32 %v7625_v24, %v6236_v28  ;;  %v3565_v28 = vpop.f32.mrf.mxu0 }
 0x187   :  { %v6492_v30 = vld [vmem:[#allocation8 + $0xba8] sm:$0xf0]  ;;  %3808 = vmatpush.bf16.msra.mxu3 %v5855_v11  ;;  %3784 = vmatpush.bf16.msra.mxu1 %v5279_v22  ;;  %v3539_v7 = vpop.f32.mrf.mxu2 }
 0x188   :  { %v7449_v33 = vld [vmem:[#allocation8 + $0x40c] sm:$0xf]  ;;  %v6495_v46 = vor.u32 %v7689_v29, %v6492_v30  ;;  %3772 = vmatmul.bf16.vlgmr.msra.gmra.mxu0 %v8252_v3  ;;  %v3540_v12 = vadd.f32 %v3539_v7, %v3527_v31 }
 0x189   :  { %v5532_v34 = vld [vmem:[#allocation8 + $0x428] sm:$0xf0]  ;;  %3816 = vmatpush.bf16.msrb.mxu0 %v6271_v23  ;;  %3796 = vmatpush.bf16.msra.mxu2 %v5567_v27 }
 0x18a   :  { %v7513_v36 = vld [vmem:[#allocation8 + $0x60c] sm:$0xf]  ;;  %v5535_v47 = vor.u32 %v7449_v33, %v5532_v34  ;;  %3785 = vmatmul.bf16.vlgmr.msra.gmra.mxu1 %v8254_v9  ;;  %v8302_v23 = vadd.f32 %v3552_v13, %v3540_v12  ;;  %v3578_v33 = vpop.f32.mrf.mxu1 }
 0x18b   :  { %v5788_v39 = vld [vmem:[#allocation8 + $0x628] sm:$0xf0]  ;;  %3829 = vmatpush.bf16.msrb.mxu1 %v6527_v25  ;;  %3809 = vmatpush.bf16.msra.mxu3 %v5823_v32  ;;  %v3566_v32 = vadd.f32 %v3565_v28, %v877_v15  ;;  %v5250_v15 = vld [vmem:[#allocation8 + $0x1d0] sm:$0xf] }
 0x18c   :  { %v7761_v14 = vld [vmem:[#allocation8 + $0xdcc] sm:$0xf]  ;;  %v5791_v52 = vor.u32 %v7513_v36, %v5788_v39 }
 0x18d   :  { %v6780_v40 = vld [vmem:[#allocation8 + $0xde8] sm:$0xf0]  ;;  %3817 = vmatpush.bf16.msrb.mxu0 %v6239_v42  ;;  %3797 = vmatpush.bf16.msra.mxu2 %v5535_v47  ;;  %v3579_v41 = vadd.f32 %v3578_v33, %v3566_v32  ;;  %v3554_v51 = vpop.f32.mrf.mxu3  ;;  %v5218_v33 = vld [vmem:[#allocation8 + $0x190] sm:$0xf] }
 0x18e   :  { %v7825_v43 = vld [vmem:[#allocation8 + $0xfcc] sm:$0xf]  ;;  %v6783_v53 = vor.u32 %v7761_v14, %v6780_v40  ;;  %v6018_v51 = vld [vmem:[#allocation8 + $0x7d0] sm:$0xf] }
 0x18f   :  { %v7036_v45 = vld [vmem:[#allocation8 + $0xfe8] sm:$0xf0]  ;;  %3830 = vmatpush.bf16.msrb.mxu1 %v6495_v46  ;;  %3810 = vmatpush.bf16.msra.mxu3 %v5791_v52  ;;  %v3541_v46 = vpop.f32.mrf.mxu2 }
 0x190   :  { %v7617_v48 = vld [vmem:[#allocation8 + $0x94c] sm:$0xf]  ;;  %v7039_v58 = vor.u32 %v7825_v43, %v7036_v45  ;;  %3798 = vmatmul.bf16.vlgmr.msra.gmra.mxu2 %v8260_v38 }
 0x191   :  { %v6204_v49 = vld [vmem:[#allocation8 + $0x968] sm:$0xf0]  ;;  %3842 = vmatpush.bf16.msrb.mxu2 %v6783_v53 }
 0x192   :  { %v7681_v54 = vld [vmem:[#allocation8 + $0xb4c] sm:$0xf]  ;;  %v6207_v61 = vor.u32 %v7617_v48, %v6204_v49  ;;  %3811 = vmatmul.bf16.vlgmr.msra.gmra.mxu3 %v8262_v44 }
 0x193   :  { %v6460_v56 = vld [vmem:[#allocation8 + $0xb68] sm:$0xf0]  ;;  %3855 = vmatpush.bf16.msrb.mxu3 %v7039_v58 }
 0x194   :  { %v7753_v59 = vld [vmem:[#allocation8 + $0xd8c] sm:$0xf]  ;;  %v6463_v0 = vor.u32 %v7681_v54, %v6460_v56  ;;  %3818 = vmatpush.bf16.msrb.mxu0 %v6207_v61 }
 0x195   :  { %v6748_v60 = vld [vmem:[#allocation8 + $0xda8] sm:$0xf0] }
 0x196   :  { %v7817_v62 = vld [vmem:[#allocation8 + $0xf8c] sm:$0xf]  ;;  %v6751_v4 = vor.u32 %v7753_v59, %v6748_v60  ;;  %3831 = vmatpush.bf16.msrb.mxu1 %v6463_v0 }
 0x197   :  { %v7004_v63 = vld [vmem:[#allocation8 + $0xfa8] sm:$0xf0] }
 0x198   :  { %v7609_v1 = vld [vmem:[#allocation8 + $0x90c] sm:$0xf]  ;;  %v7007_v8 = vor.u32 %v7817_v62, %v7004_v63  ;;  %3843 = vmatpush.bf16.msrb.mxu2 %v6751_v4  ;;  %v3567_v62 = vpop.f32.mrf.mxu0 }
 0x199   :  { %v6172_v2 = vld [vmem:[#allocation8 + $0x928] sm:$0xf0] }
 0x19a   :  { %v7673_v5 = vld [vmem:[#allocation8 + $0xb0c] sm:$0xf]  ;;  %v6175_v16 = vor.u32 %v7609_v1, %v6172_v2  ;;  %3856 = vmatpush.bf16.msrb.mxu3 %v7007_v8  ;;  %v3580_v2 = vpop.f32.mrf.mxu1 }
 0x19b   :  { %v6428_v6 = vld [vmem:[#allocation8 + $0xb28] sm:$0xf0]  ;;  %v7502_v2 = vld [vmem:[#allocation8 + $0x5ac] sm:$0xf0] }
 0x19c   :  { %v7745_v10 = vld [vmem:[#allocation8 + $0xd4c] sm:$0xf]  ;;  %v6431_v20 = vor.u32 %v7673_v5, %v6428_v6  ;;  %3819 = vmatpush.bf16.msrb.mxu0 %v6175_v16  ;;  %v7382_v16 = vld [vmem:[#allocation8 + $0x1ec] sm:$0xf0] }
 0x19d   :  { %v6716_v11 = vld [vmem:[#allocation8 + $0xd68] sm:$0xf0]  ;;  %v5251_v32 = vor.u32 %v7382_v16, %v5250_v15  ;;  %v5698_v16 = vld [vmem:[#allocation8 + $0x550] sm:$0xf] }
 0x19e   :  { %v7809_v17 = vld [vmem:[#allocation8 + $0xf4c] sm:$0xf]  ;;  %v6719_v24 = vor.u32 %v7745_v10, %v6716_v11  ;;  %3832 = vmatpush.bf16.msrb.mxu1 %v6431_v20  ;;  %v7446_v20 = vld [vmem:[#allocation8 + $0x3ec] sm:$0xf0] }
 0x19f   :  { %v6972_v18 = vld [vmem:[#allocation8 + $0xf68] sm:$0xf0] }
 0x1a0   :  { %v7601_v21 = vld [vmem:[#allocation8 + $0x8cc] sm:$0xf]  ;;  %v6975_v29 = vor.u32 %v7809_v17, %v6972_v18  ;;  %3844 = vmatpush.bf16.msrb.mxu2 %v6719_v24  ;;  %v5506_v17 = vld [vmem:[#allocation8 + $0x3d0] sm:$0xf]  ;;  %v3591_v24 = vpop.f32.mrf.mxu2 }
 0x1a1   :  { %v6140_v22 = vld [vmem:[#allocation8 + $0x8e8] sm:$0xf0] }
 0x1a2   :  { %v7665_v25 = vld [vmem:[#allocation8 + $0xacc] sm:$0xf]  ;;  %v6143_v34 = vor.u32 %v7601_v21, %v6140_v22  ;;  %3857 = vmatpush.bf16.msrb.mxu3 %v6975_v29 }
 0x1a3   :  { %v6396_v27 = vld [vmem:[#allocation8 + $0xae8] sm:$0xf0] }
 0x1a4   :  { %v7737_v30 = vld [vmem:[#allocation8 + $0xd0c] sm:$0xf]  ;;  %v6399_v39 = vor.u32 %v7665_v25, %v6396_v27  ;;  %3820 = vmatpush.bf16.msrb.mxu0 %v6143_v34  ;;  %v3604_v25 = vpop.f32.mrf.mxu3  ;;  %v5507_v34 = vor.u32 %v7446_v20, %v5506_v17  ;;  %v7494_v17 = vld [vmem:[#allocation8 + $0x56c] sm:$0xf0] }
 0x1a5   :  { %v6684_v31 = vld [vmem:[#allocation8 + $0xd28] sm:$0xf0]  ;;  %v5954_v20 = vld [vmem:[#allocation8 + $0x750] sm:$0xf] }
 0x1a6   :  { %v7801_v36 = vld [vmem:[#allocation8 + $0xf0c] sm:$0xf]  ;;  %v6687_v42 = vor.u32 %v7737_v30, %v6684_v31  ;;  %3833 = vmatpush.bf16.msrb.mxu1 %v6399_v39  ;;  %v3592_v30 = vadd.f32 %v3591_v24, %v3579_v41  ;;  %v5474_v39 = vld [vmem:[#allocation8 + $0x390] sm:$0xf] }
 0x1a7   :  { %v6940_v37 = vld [vmem:[#allocation8 + $0xf28] sm:$0xf0]  ;;  %v5762_v41 = vld [vmem:[#allocation8 + $0x5d0] sm:$0xf] }
 0x1a8   :  { %v7593_v14 = vld [vmem:[#allocation8 + $0x88c] sm:$0xf]  ;;  %v6943_v47 = vor.u32 %v7801_v36, %v6940_v37  ;;  %3845 = vmatpush.bf16.msrb.mxu2 %v6687_v42  ;;  %v7374_v37 = vld [vmem:[#allocation8 + $0x1ac] sm:$0xf0]  ;;  %v3593_v62 = vpop.f32.mrf.mxu2 }
 0x1a9   :  { %v6108_v40 = vld [vmem:[#allocation8 + $0x8a8] sm:$0xf0]  ;;  %v5122_v24 = vld [vmem:[#allocation8 + $0xd0] sm:$0xf] }
 0x1aa   :  { %v7657_v43 = vld [vmem:[#allocation8 + $0xa8c] sm:$0xf]  ;;  %v6111_v52 = vor.u32 %v7593_v14, %v6108_v40  ;;  %3858 = vmatpush.bf16.msrb.mxu3 %v6943_v47  ;;  %v7438_v14 = vld [vmem:[#allocation8 + $0x3ac] sm:$0xf0]  ;;  %v8304_v40 = vadd.f32 %v3604_v25, %v3592_v30  ;;  %v3617_v30 = vpop.f32.mrf.mxu0 }
 0x1ab   :  { %v6364_v45 = vld [vmem:[#allocation8 + $0xaa8] sm:$0xf0]  ;;  %v7350_v25 = vld [vmem:[#allocation8 + $0xec] sm:$0xf0] }
 0x1ac   :  { %v7729_v48 = vld [vmem:[#allocation8 + $0xccc] sm:$0xf]  ;;  %v6367_v56 = vor.u32 %v7657_v43, %v6364_v45  ;;  %3821 = vmatpush.bf16.msrb.mxu0 %v6111_v52  ;;  %v7574_v52 = vld [vmem:[#allocation8 + $0x7ec] sm:$0xf0] }
 0x1ad   :  { %v6652_v49 = vld [vmem:[#allocation8 + $0xce8] sm:$0xf0] }
 0x1ae   :  { %v7793_v53 = vld [vmem:[#allocation8 + $0xecc] sm:$0xf]  ;;  %v6655_v59 = vor.u32 %v7729_v48, %v6652_v49  ;;  %3834 = vmatpush.bf16.msrb.mxu1 %v6367_v56  ;;  %v7510_v48 = vld [vmem:[#allocation8 + $0x5ec] sm:$0xf0]  ;;  %v5219_v49 = vor.u32 %v7374_v37, %v5218_v33  ;;  %v5123_v37 = vor.u32 %v7350_v25, %v5122_v24 }
 0x1af   :  { %v6908_v54 = vld [vmem:[#allocation8 + $0xee8] sm:$0xf0]  ;;  %v5186_v56 = vld [vmem:[#allocation8 + $0x150] sm:$0xf] }
 0x1b0   :  { %v7585_v57 = vld [vmem:[#allocation8 + $0x84c] sm:$0xf]  ;;  %v6911_v63 = vor.u32 %v7793_v53, %v6908_v54  ;;  %3846 = vmatpush.bf16.msrb.mxu2 %v6655_v59  ;;  %v5475_v53 = vor.u32 %v7438_v14, %v5474_v39  ;;  %v5763_v59 = vor.u32 %v7510_v48, %v5762_v41  ;;  %v7486_v33 = vld [vmem:[#allocation8 + $0x52c] sm:$0xf0] }
 0x1b1   :  { %v6076_v58 = vld [vmem:[#allocation8 + $0x868] sm:$0xf0]  ;;  %v5922_v39 = vld [vmem:[#allocation8 + $0x710] sm:$0xf] }
 0x1b2   :  { %v7649_v60 = vld [vmem:[#allocation8 + $0xa4c] sm:$0xf]  ;;  %v6079_v4 = vor.u32 %v7585_v57, %v6076_v58  ;;  %3859 = vmatpush.bf16.msrb.mxu3 %v6911_v63  ;;  %v7366_v57 = vld [vmem:[#allocation8 + $0x16c] sm:$0xf0]  ;;  %v3606_v63 = vpop.f32.mrf.mxu3  ;;  %v3619_v62 = vpop.f32.mrf.mxu0 }
 0x1b3   :  { %v6332_v61 = vld [vmem:[#allocation8 + $0xa68] sm:$0xf0]  ;;  %v7550_v14 = vld [vmem:[#allocation8 + $0x72c] sm:$0xf0] }
 0x1b4   :  { %v7721_v0 = vld [vmem:[#allocation8 + $0xc8c] sm:$0xf]  ;;  %v6335_v8 = vor.u32 %v7649_v60, %v6332_v61  ;;  %3822 = vmatpush.bf16.msrb.mxu0 %v6079_v4  ;;  %v5442_v60 = vld [vmem:[#allocation8 + $0x350] sm:$0xf]  ;;  %v5187_v4 = vor.u32 %v7366_v57, %v5186_v56 }
 0x1b5   :  { %v6620_v1 = vld [vmem:[#allocation8 + $0xca8] sm:$0xf0]  ;;  %v7430_v61 = vld [vmem:[#allocation8 + $0x36c] sm:$0xf0] }
 0x1b6   :  { %v7785_v5 = vld [vmem:[#allocation8 + $0xe8c] sm:$0xf]  ;;  %v6623_v13 = vor.u32 %v7721_v0, %v6620_v1  ;;  %3835 = vmatpush.bf16.msrb.mxu1 %v6335_v8  ;;  %v6019_v0 = vor.u32 %v7574_v52, %v6018_v51  ;;  %v5730_v1 = vld [vmem:[#allocation8 + $0x590] sm:$0xf] }
 0x1b7   :  { %v6876_v6 = vld [vmem:[#allocation8 + $0xea8] sm:$0xf0]  ;;  %v5154_v8 = vld [vmem:[#allocation8 + $0x110] sm:$0xf] }
 0x1b8   :  { %v7577_v7 = vld [vmem:[#allocation8 + $0x80c] sm:$0xf]  ;;  %v6879_v18 = vor.u32 %v7785_v5, %v6876_v6  ;;  %3847 = vmatpush.bf16.msrb.mxu2 %v6623_v13  ;;  %v5986_v5 = vld [vmem:[#allocation8 + $0x790] sm:$0xf] }
 0x1b9   :  { %v6044_v10 = vld [vmem:[#allocation8 + $0x828] sm:$0xf0]  ;;  %v7566_v6 = vld [vmem:[#allocation8 + $0x7ac] sm:$0xf0] }
 0x1ba   :  { %v7641_v11 = vld [vmem:[#allocation8 + $0xa0c] sm:$0xf]  ;;  %v6047_v27 = vor.u32 %v7577_v7, %v6044_v10  ;;  %3860 = vmatpush.bf16.msrb.mxu3 %v6879_v18  ;;  %v5443_v7 = vor.u32 %v7430_v61, %v5442_v60  ;;  %v7358_v10 = vld [vmem:[#allocation8 + $0x12c] sm:$0xf0]  ;;  %v5987_v15 = vor.u32 %v7566_v6, %v5986_v5 }
 0x1bb   :  { %v6300_v12 = vld [vmem:[#allocation8 + $0xa28] sm:$0xf0]  ;;  %v7422_v13 = vld [vmem:[#allocation8 + $0x32c] sm:$0xf0]  ;;  %v5155_v18 = vor.u32 %v7358_v10, %v5154_v8 }
 0x1bc   :  { %v7713_v21 = vld [vmem:[#allocation8 + $0xc4c] sm:$0xf]  ;;  %v6303_v31 = vor.u32 %v7641_v11, %v6300_v12  ;;  %3823 = vmatpush.bf16.msrb.mxu0 %v6047_v27  ;;  %v5731_v11 = vor.u32 %v7502_v2, %v5730_v1  ;;  %v5410_v12 = vld [vmem:[#allocation8 + $0x310] sm:$0xf]  ;;  %v5699_v27 = vor.u32 %v7494_v17, %v5698_v16 }
 0x1bd   :  { %v6588_v22 = vld [vmem:[#allocation8 + $0xc68] sm:$0xf0]  ;;  %v5346_v41 = vld [vmem:[#allocation8 + $0x290] sm:$0xf] }
 0x1be   :  { %v7777_v28 = vld [vmem:[#allocation8 + $0xe4c] sm:$0xf]  ;;  %v6591_v36 = vor.u32 %v7713_v21, %v6588_v22  ;;  %3836 = vmatpush.bf16.msrb.mxu1 %v6303_v31  ;;  %v7558_v21 = vld [vmem:[#allocation8 + $0x76c] sm:$0xf0]  ;;  %v5411_v22 = vor.u32 %v7422_v13, %v5410_v12 }
 0x1bf   :  { %v6844_v29 = vld [vmem:[#allocation8 + $0xe68] sm:$0xf0]  ;;  %3824 = vmatmul.bf16.vlgmr.msrb.gmra.mxu0 %v8266_v19  ;;  %v5955_v31 = vor.u32 %v7558_v21, %v5954_v20  ;;  %v7406_v48 = vld [vmem:[#allocation8 + $0x2ac] sm:$0xf0] }
 0x1c0   :  { %v6847_v42 = vor.u32 %v7777_v28, %v6844_v29  ;;  %v7705_v43 = vld [vmem:[#allocation8 + $0xc0c] sm:$0xf]  ;;  %3868 = vmatpush.bf16.msra.mxu0 %v5251_v32  ;;  %3848 = vmatpush.bf16.msrb.mxu2 %v6591_v36  ;;  %v5378_v28 = vld [vmem:[#allocation8 + $0x2d0] sm:$0xf]  ;;  %v3630_v36 = vpop.f32.mrf.mxu1  ;;  %v5347_v56 = vor.u32 %v7406_v48, %v5346_v41 }
 0x1c1   :  { %v6556_v45 = vld [vmem:[#allocation8 + $0xc28] sm:$0xf0]  ;;  %3837 = vmatmul.bf16.vlgmr.msrb.gmra.mxu1 %v8268_v26  ;;  %v7414_v29 = vld [vmem:[#allocation8 + $0x2ec] sm:$0xf0] }
 0x1c2   :  { %v7769_v46 = vld [vmem:[#allocation8 + $0xe0c] sm:$0xf]  ;;  %3881 = vmatpush.bf16.msra.mxu1 %v5507_v34  ;;  %v6559_v54 = vor.u32 %v7705_v43, %v6556_v45  ;;  %3861 = vmatpush.bf16.msrb.mxu3 %v6847_v42  ;;  %v5666_v32 = vld [vmem:[#allocation8 + $0x510] sm:$0xf]  ;;  %v3618_v34 = vadd.f32 %v3617_v30, %v8304_v40  ;;  %v5379_v42 = vor.u32 %v7414_v29, %v5378_v28 }
 0x1c3   :  { %v6812_v47 = vld [vmem:[#allocation8 + $0xe28] sm:$0xf0]  ;;  %v5090_v43 = vld [vmem:[#allocation8 + $0x90] sm:$0xf] }
 0x1c4   :  { %v6815_v58 = vor.u32 %v7769_v46, %v6812_v47  ;;  %3869 = vmatpush.bf16.msra.mxu0 %v5219_v49  ;;  %3849 = vmatpush.bf16.msrb.mxu2 %v6559_v54  ;;  %v7342_v45 = vld [vmem:[#allocation8 + $0xac] sm:$0xf0]  ;;  %v3631_v46 = vadd.f32 %v3630_v36, %v3618_v34  ;;  %v5667_v47 = vor.u32 %v7486_v33, %v5666_v32 }
 0x1c5   :  { %v5923_v49 = vor.u32 %v7550_v14, %v5922_v39  ;;  %v5634_v51 = vld [vmem:[#allocation8 + $0x4d0] sm:$0xf]  ;;  %v5091_v40 = vor.u32 %v7342_v45, %v5090_v43 }
 0x1c6   :  { %3882 = vmatpush.bf16.msra.mxu1 %v5475_v53  ;;  %3862 = vmatpush.bf16.msrb.mxu3 %v6815_v58  ;;  %v7478_v52 = vld [vmem:[#allocation8 + $0x4ec] sm:$0xf0] }
 0x1c7   :  { %3850 = vmatmul.bf16.vlgmr.msrb.gmra.mxu2 %v8272_v50  ;;  %v5890_v53 = vld [vmem:[#allocation8 + $0x6d0] sm:$0xf] }
 0x1c8   :  { %3894 = vmatpush.bf16.msra.mxu2 %v5763_v59  ;;  %3870 = vmatpush.bf16.msra.mxu0 %v5187_v4  ;;  %v7542_v54 = vld [vmem:[#allocation8 + $0x6ec] sm:$0xf0]  ;;  %v5635_v59 = vor.u32 %v7478_v52, %v5634_v51  ;;  %v3632_v2 = vpop.f32.mrf.mxu1 }
 0x1c9   :  { %3863 = vmatmul.bf16.vlgmr.msrb.gmra.mxu3 %v8274_v55  ;;  %v5058_v57 = vld [vmem:[#allocation8 + $0x50] sm:$0xf]  ;;  %v5891_v63 = vor.u32 %v7542_v54, %v5890_v53 }
 0x1ca   :  { %3907 = vmatpush.bf16.msra.mxu3 %v6019_v0  ;;  %3883 = vmatpush.bf16.msra.mxu1 %v5443_v7  ;;  %v7334_v58 = vld [vmem:[#allocation8 + $0x6c] sm:$0xf0] }
 0x1cb   :  { %v5314_v60 = vld [vmem:[#allocation8 + $0x250] sm:$0xf]  ;;  %v5059_v4 = vor.u32 %v7334_v58, %v5058_v57 }
 0x1cc   :  { %3895 = vmatpush.bf16.msra.mxu2 %v5731_v11  ;;  %3871 = vmatpush.bf16.msra.mxu0 %v5155_v18  ;;  %v7398_v61 = vld [vmem:[#allocation8 + $0x26c] sm:$0xf0]  ;;  %v3643_v18 = vpop.f32.mrf.mxu2 }
 0x1cd   :  { %v5602_v0 = vld [vmem:[#allocation8 + $0x490] sm:$0xf]  ;;  %v5315_v8 = vor.u32 %v7398_v61, %v5314_v60  ;;  %v3644_v25 = vadd.f32 %v3643_v18, %v3631_v46  ;;  %v878_v18 = vperm.slane %v8290_v35, 2 }
 0x1ce   :  { %3908 = vmatpush.bf16.msra.mxu3 %v5987_v15  ;;  %3884 = vmatpush.bf16.msra.mxu1 %v5411_v22  ;;  %v7470_v1 = vld [vmem:[#allocation8 + $0x4ac] sm:$0xf0] }
 0x1cf   :  { %v5858_v5 = vld [vmem:[#allocation8 + $0x690] sm:$0xf]  ;;  %v5603_v13 = vor.u32 %v7470_v1, %v5602_v0 }
 0x1d0   :  { %3896 = vmatpush.bf16.msra.mxu2 %v5699_v27  ;;  %3872 = vmatpush.bf16.msra.mxu0 %v5123_v37  ;;  %v7534_v6 = vld [vmem:[#allocation8 + $0x6ac] sm:$0xf0]  ;;  %v3656_v27 = vpop.f32.mrf.mxu3  ;;  %v3682_v35 = vpop.f32.mrf.mxu1 }
 0x1d1   :  { %v5026_v7 = vld [vmem:[#allocation8 + $0x10] sm:$0xf]  ;;  %v5859_v20 = vor.u32 %v7534_v6, %v5858_v5  ;;  %v8311_v34 = vadd.f32 %v3656_v27, %v3644_v25 }
 0x1d2   :  { %3909 = vmatpush.bf16.msra.mxu3 %v5955_v31  ;;  %3885 = vmatpush.bf16.msra.mxu1 %v5379_v42  ;;  %v7326_v10 = vld [vmem:[#allocation8 + $0x2c] sm:$0xf0] }
 0x1d3   :  { %v5282_v11 = vld [vmem:[#allocation8 + $0x210] sm:$0xf]  ;;  %v5027_v28 = vor.u32 %v7326_v10, %v5026_v7 }
 0x1d4   :  { %3897 = vmatpush.bf16.msra.mxu2 %v5667_v47  ;;  %3873 = vmatpush.bf16.msra.mxu0 %v5091_v40  ;;  %v7390_v12 = vld [vmem:[#allocation8 + $0x22c] sm:$0xf0]  ;;  %v3645_v58 = vpop.f32.mrf.mxu2 }
 0x1d5   :  { %v6274_v15 = vld [vmem:[#allocation8 + $0x9d0] sm:$0xf]  ;;  %v5283_v31 = vor.u32 %v7390_v12, %v5282_v11 }
 0x1d6   :  { %3910 = vmatpush.bf16.msra.mxu3 %v5923_v49  ;;  %3886 = vmatpush.bf16.msra.mxu1 %v5347_v56  ;;  %v7638_v16 = vld [vmem:[#allocation8 + $0x9ec] sm:$0xf0] }
 0x1d7   :  { %v6530_v17 = vld [vmem:[#allocation8 + $0xbd0] sm:$0xf]  ;;  %v6275_v32 = vor.u32 %v7638_v16, %v6274_v15 }
 0x1d8   :  { %3898 = vmatpush.bf16.msra.mxu2 %v5635_v59  ;;  %v7702_v21 = vld [vmem:[#allocation8 + $0xbec] sm:$0xf0]  ;;  %3874 = vmatpush.bf16.msra.mxu0 %v5059_v4 }
 0x1d9   :  { %v5570_v22 = vld [vmem:[#allocation8 + $0x450] sm:$0xf]  ;;  %v6531_v36 = vor.u32 %v7702_v21, %v6530_v17 }
 0x1da   :  { %3911 = vmatpush.bf16.msra.mxu3 %v5891_v63  ;;  %v7462_v24 = vld [vmem:[#allocation8 + $0x46c] sm:$0xf0]  ;;  %3887 = vmatpush.bf16.msra.mxu1 %v5315_v8  ;;  %v3658_v63 = vpop.f32.mrf.mxu3 }
 0x1db   :  { %v5826_v29 = vld [vmem:[#allocation8 + $0x650] sm:$0xf]  ;;  %v5571_v37 = vor.u32 %v7462_v24, %v5570_v22 }
 0x1dc   :  { %v7526_v30 = vld [vmem:[#allocation8 + $0x66c] sm:$0xf0]  ;;  %3899 = vmatpush.bf16.msra.mxu2 %v5603_v13  ;;  %3875 = vmatpush.bf16.msra.mxu0 %v5027_v28 }
 0x1dd   :  { %v6242_v33 = vld [vmem:[#allocation8 + $0x990] sm:$0xf]  ;;  %v5827_v43 = vor.u32 %v7526_v30, %v5826_v29 }
 0x1de   :  { %v7630_v39 = vld [vmem:[#allocation8 + $0x9ac] sm:$0xf0]  ;;  %3912 = vmatpush.bf16.msra.mxu3 %v5859_v20  ;;  %3888 = vmatpush.bf16.msra.mxu1 %v5283_v31  ;;  %v3669_v31 = vpop.f32.mrf.mxu0 }
 0x1df   :  { %v6498_v14 = vld [vmem:[#allocation8 + $0xb90] sm:$0xf]  ;;  %v6243_v51 = vor.u32 %v7630_v39, %v6242_v33  ;;  %3876 = vmatmul.bf16.vlgmr.msra.gmra.mxu0 %v8252_v3 }
 0x1e0   :  { %v7694_v42 = vld [vmem:[#allocation8 + $0xbac] sm:$0xf0]  ;;  %3920 = vmatpush.bf16.msrb.mxu0 %v6275_v32  ;;  %3900 = vmatpush.bf16.msra.mxu2 %v5571_v37  ;;  %v3670_v37 = vadd.f32 %v3669_v31, %v878_v18  ;;  %v7442_v18 = vld [vmem:[#allocation8 + $0x3d4] sm:$0xf] }
 0x1e1   :  { %v5538_v45 = vld [vmem:[#allocation8 + $0x410] sm:$0xf]  ;;  %v6499_v53 = vor.u32 %v7694_v42, %v6498_v14  ;;  %3889 = vmatmul.bf16.vlgmr.msra.gmra.mxu1 %v8254_v9 }
 0x1e2   :  { %v7454_v46 = vld [vmem:[#allocation8 + $0x42c] sm:$0xf0]  ;;  %3933 = vmatpush.bf16.msrb.mxu1 %v6531_v36  ;;  %3913 = vmatpush.bf16.msra.mxu3 %v5827_v43 }
 0x1e3   :  { %v5794_v47 = vld [vmem:[#allocation8 + $0x610] sm:$0xf]  ;;  %v5539_v54 = vor.u32 %v7454_v46, %v5538_v45 }
 0x1e4   :  { %v7518_v41 = vld [vmem:[#allocation8 + $0x62c] sm:$0xf0]  ;;  %3921 = vmatpush.bf16.msrb.mxu0 %v6243_v51 }
 0x1e5   :  { %v6786_v48 = vld [vmem:[#allocation8 + $0xdd0] sm:$0xf]  ;;  %v5795_v59 = vor.u32 %v7518_v41, %v5794_v47  ;;  %3901 = vmatpush.bf16.msra.mxu2 %v5539_v54  ;;  %v3683_v47 = vadd.f32 %v3682_v35, %v3670_v37 }
 0x1e6   :  { %v7766_v49 = vld [vmem:[#allocation8 + $0xdec] sm:$0xf0]  ;;  %3934 = vmatpush.bf16.msrb.mxu1 %v6499_v53  ;;  %v3671_v63 = vpop.f32.mrf.mxu0 }
 0x1e7   :  { %v7042_v52 = vld [vmem:[#allocation8 + $0xfd0] sm:$0xf]  ;;  %v6787_v60 = vor.u32 %v7766_v49, %v6786_v48  ;;  %3914 = vmatpush.bf16.msra.mxu3 %v5795_v59  ;;  %v5444_v63 = vld [vmem:[#allocation8 + $0x370] sm:$0xf0] }
 0x1e8   :  { %v7830_v40 = vld [vmem:[#allocation8 + $0xfec] sm:$0xf0]  ;;  %3902 = vmatmul.bf16.vlgmr.msra.gmra.mxu2 %v8260_v38 }
 0x1e9   :  { %v6210_v56 = vld [vmem:[#allocation8 + $0x950] sm:$0xf]  ;;  %v7043_v0 = vor.u32 %v7830_v40, %v7042_v52  ;;  %3946 = vmatpush.bf16.msrb.mxu2 %v6787_v60 }
 0x1ea   :  { %v7622_v57 = vld [vmem:[#allocation8 + $0x96c] sm:$0xf0]  ;;  %3915 = vmatmul.bf16.vlgmr.msra.gmra.mxu3 %v8262_v44 }
 0x1eb   :  { %v6466_v61 = vld [vmem:[#allocation8 + $0xb50] sm:$0xf]  ;;  %v6211_v4 = vor.u32 %v7622_v57, %v6210_v56  ;;  %3959 = vmatpush.bf16.msrb.mxu3 %v7043_v0 }
 0x1ec   :  { %v7686_v62 = vld [vmem:[#allocation8 + $0xb6c] sm:$0xf0] }
 0x1ed   :  { %v6754_v1 = vld [vmem:[#allocation8 + $0xd90] sm:$0xf]  ;;  %v6467_v7 = vor.u32 %v7686_v62, %v6466_v61  ;;  %3922 = vmatpush.bf16.msrb.mxu0 %v6211_v4  ;;  %v3684_v4 = vpop.f32.mrf.mxu1 }
 0x1ee   :  { %v7758_v2 = vld [vmem:[#allocation8 + $0xdac] sm:$0xf0]  ;;  %v5732_v4 = vld [vmem:[#allocation8 + $0x5b0] sm:$0xf0] }
 0x1ef   :  { %v7010_v5 = vld [vmem:[#allocation8 + $0xf90] sm:$0xf]  ;;  %v6755_v11 = vor.u32 %v7758_v2, %v6754_v1  ;;  %3935 = vmatpush.bf16.msrb.mxu1 %v6467_v7 }
 0x1f0   :  { %v7822_v6 = vld [vmem:[#allocation8 + $0xfac] sm:$0xf0] }
 0x1f1   :  { %v6178_v8 = vld [vmem:[#allocation8 + $0x910] sm:$0xf]  ;;  %v7011_v15 = vor.u32 %v7822_v6, %v7010_v5  ;;  %3947 = vmatpush.bf16.msrb.mxu2 %v6755_v11 }
 0x1f2   :  { %v7614_v10 = vld [vmem:[#allocation8 + $0x92c] sm:$0xf0] }
 0x1f3   :  { %v6434_v12 = vld [vmem:[#allocation8 + $0xb10] sm:$0xf]  ;;  %v6179_v20 = vor.u32 %v7614_v10, %v6178_v8  ;;  %3960 = vmatpush.bf16.msrb.mxu3 %v7011_v15 }
 0x1f4   :  { %v7678_v13 = vld [vmem:[#allocation8 + $0xb2c] sm:$0xf0] }
 0x1f5   :  { %v6722_v16 = vld [vmem:[#allocation8 + $0xd50] sm:$0xf]  ;;  %v6435_v24 = vor.u32 %v7678_v13, %v6434_v12  ;;  %3923 = vmatpush.bf16.msrb.mxu0 %v6179_v20  ;;  %v3695_v20 = vpop.f32.mrf.mxu2 }
 0x1f6   :  { %v7750_v17 = vld [vmem:[#allocation8 + $0xd6c] sm:$0xf0] }
 0x1f7   :  { %v6978_v21 = vld [vmem:[#allocation8 + $0xf50] sm:$0xf]  ;;  %v6723_v28 = vor.u32 %v7750_v17, %v6722_v16  ;;  %3936 = vmatpush.bf16.msrb.mxu1 %v6435_v24  ;;  %v7378_v16 = vld [vmem:[#allocation8 + $0x1d4] sm:$0xf] }
 0x1f8   :  { %v7814_v22 = vld [vmem:[#allocation8 + $0xf6c] sm:$0xf0]  ;;  %v5252_v17 = vld [vmem:[#allocation8 + $0x1f0] sm:$0xf0] }
 0x1f9   :  { %v6146_v25 = vld [vmem:[#allocation8 + $0x8d0] sm:$0xf]  ;;  %v6979_v32 = vor.u32 %v7814_v22, %v6978_v21  ;;  %3948 = vmatpush.bf16.msrb.mxu2 %v6723_v28  ;;  %v5508_v22 = vld [vmem:[#allocation8 + $0x3f0] sm:$0xf0]  ;;  %v3708_v28 = vpop.f32.mrf.mxu3 }
 0x1fa   :  { %v7606_v27 = vld [vmem:[#allocation8 + $0x8ec] sm:$0xf0]  ;;  %v5511_v35 = vor.u32 %v7442_v18, %v5508_v22  ;;  %v5700_v18 = vld [vmem:[#allocation8 + $0x570] sm:$0xf0] }
 0x1fb   :  { %v6402_v29 = vld [vmem:[#allocation8 + $0xad0] sm:$0xf]  ;;  %v6147_v39 = vor.u32 %v7606_v27, %v6146_v25  ;;  %3961 = vmatpush.bf16.msrb.mxu3 %v6979_v32  ;;  %v3696_v27 = vadd.f32 %v3695_v20, %v3683_v47  ;;  %v5956_v22 = vld [vmem:[#allocation8 + $0x770] sm:$0xf0] }
 0x1fc   :  { %v7670_v30 = vld [vmem:[#allocation8 + $0xaec] sm:$0xf0] }
 0x1fd   :  { %v6690_v33 = vld [vmem:[#allocation8 + $0xd10] sm:$0xf]  ;;  %v6403_v43 = vor.u32 %v7670_v30, %v6402_v29  ;;  %3924 = vmatpush.bf16.msrb.mxu0 %v6147_v39  ;;  %v8318_v37 = vadd.f32 %v3708_v28, %v3696_v27  ;;  %v5124_v27 = vld [vmem:[#allocation8 + $0xf0] sm:$0xf0] }
 0x1fe   :  { %v7742_v36 = vld [vmem:[#allocation8 + $0xd2c] sm:$0xf0] }
 0x1ff   :  { %v6946_v14 = vld [vmem:[#allocation8 + $0xf10] sm:$0xf]  ;;  %v6691_v41 = vor.u32 %v7742_v36, %v6690_v33  ;;  %3937 = vmatpush.bf16.msrb.mxu1 %v6403_v43  ;;  %v5255_v33 = vor.u32 %v7378_v16, %v5252_v17  ;;  %v7370_v36 = vld [vmem:[#allocation8 + $0x194] sm:$0xf] }
 0x200   :  { %v7806_v42 = vld [vmem:[#allocation8 + $0xf2c] sm:$0xf0]  ;;  %v5476_v43 = vld [vmem:[#allocation8 + $0x3b0] sm:$0xf0] }
 0x201   :  { %v6114_v45 = vld [vmem:[#allocation8 + $0x890] sm:$0xf]  ;;  %v6947_v51 = vor.u32 %v7806_v42, %v6946_v14  ;;  %3949 = vmatpush.bf16.msrb.mxu2 %v6691_v41  ;;  %v5220_v14 = vld [vmem:[#allocation8 + $0x1b0] sm:$0xf0] }
 0x202   :  { %v7598_v46 = vld [vmem:[#allocation8 + $0x8ac] sm:$0xf0]  ;;  %v7434_v42 = vld [vmem:[#allocation8 + $0x394] sm:$0xf] }
 0x203   :  { %v6370_v48 = vld [vmem:[#allocation8 + $0xa90] sm:$0xf]  ;;  %v6115_v53 = vor.u32 %v7598_v46, %v6114_v45  ;;  %3962 = vmatpush.bf16.msrb.mxu3 %v6947_v51  ;;  %v5764_v51 = vld [vmem:[#allocation8 + $0x5f0] sm:$0xf0] }
 0x204   :  { %v7662_v49 = vld [vmem:[#allocation8 + $0xaac] sm:$0xf0]  ;;  %v7490_v17 = vld [vmem:[#allocation8 + $0x554] sm:$0xf] }
 0x205   :  { %v6658_v52 = vld [vmem:[#allocation8 + $0xcd0] sm:$0xf]  ;;  %v6371_v57 = vor.u32 %v7662_v49, %v6370_v48  ;;  %3925 = vmatpush.bf16.msrb.mxu0 %v6115_v53  ;;  %v7506_v49 = vld [vmem:[#allocation8 + $0x5d4] sm:$0xf]  ;;  %v5703_v28 = vor.u32 %v7490_v17, %v5700_v18 }
 0x206   :  { %v7734_v40 = vld [vmem:[#allocation8 + $0xcec] sm:$0xf0]  ;;  %v6020_v53 = vld [vmem:[#allocation8 + $0x7f0] sm:$0xf0] }
 0x207   :  { %v6914_v54 = vld [vmem:[#allocation8 + $0xed0] sm:$0xf]  ;;  %v6659_v60 = vor.u32 %v7734_v40, %v6658_v52  ;;  %3938 = vmatpush.bf16.msrb.mxu1 %v6371_v57  ;;  %v5223_v52 = vor.u32 %v7370_v36, %v5220_v14  ;;  %v7570_v40 = vld [vmem:[#allocation8 + $0x7d4] sm:$0xf] }
 0x208   :  { %v7798_v56 = vld [vmem:[#allocation8 + $0xeec] sm:$0xf0]  ;;  %v7362_v57 = vld [vmem:[#allocation8 + $0x154] sm:$0xf] }
 0x209   :  { %v6082_v58 = vld [vmem:[#allocation8 + $0x850] sm:$0xf]  ;;  %v6915_v0 = vor.u32 %v7798_v56, %v6914_v54  ;;  %3950 = vmatpush.bf16.msrb.mxu2 %v6659_v60  ;;  %v5479_v54 = vor.u32 %v7434_v42, %v5476_v43  ;;  %v5668_v36 = vld [vmem:[#allocation8 + $0x530] sm:$0xf0] }
 0x20a   :  { %v7590_v59 = vld [vmem:[#allocation8 + $0x86c] sm:$0xf0]  ;;  %v7546_v42 = vld [vmem:[#allocation8 + $0x714] sm:$0xf] }
 0x20b   :  { %v6338_v61 = vld [vmem:[#allocation8 + $0xa50] sm:$0xf]  ;;  %v6083_v5 = vor.u32 %v7590_v59, %v6082_v58  ;;  %3963 = vmatpush.bf16.msrb.mxu3 %v6915_v0  ;;  %v5188_v58 = vld [vmem:[#allocation8 + $0x170] sm:$0xf0]  ;;  %v3697_v59 = vpop.f32.mrf.mxu2  ;;  %v3710_v0 = vpop.f32.mrf.mxu3 }
 0x20c   :  { %v7654_v62 = vld [vmem:[#allocation8 + $0xa6c] sm:$0xf0]  ;;  %v5924_v43 = vld [vmem:[#allocation8 + $0x730] sm:$0xf0] }
 0x20d   :  { %v6626_v1 = vld [vmem:[#allocation8 + $0xc90] sm:$0xf]  ;;  %v6339_v10 = vor.u32 %v7654_v62, %v6338_v61  ;;  %3926 = vmatpush.bf16.msrb.mxu0 %v6083_v5  ;;  %v5767_v61 = vor.u32 %v7506_v49, %v5764_v51  ;;  %v7426_v62 = vld [vmem:[#allocation8 + $0x354] sm:$0xf]  ;;  %v5191_v5 = vor.u32 %v7362_v57, %v5188_v58 }
 0x20e   :  { %v7726_v2 = vld [vmem:[#allocation8 + $0xcac] sm:$0xf0]  ;;  %v7402_v49 = vld [vmem:[#allocation8 + $0x294] sm:$0xf] }
 0x20f   :  { %v6882_v6 = vld [vmem:[#allocation8 + $0xe90] sm:$0xf]  ;;  %v6627_v15 = vor.u32 %v7726_v2, %v6626_v1  ;;  %3939 = vmatpush.bf16.msrb.mxu1 %v6339_v10  ;;  %v6023_v1 = vor.u32 %v7570_v40, %v6020_v53  ;;  %v7498_v2 = vld [vmem:[#allocation8 + $0x594] sm:$0xf] }
 0x210   :  { %v7790_v7 = vld [vmem:[#allocation8 + $0xeac] sm:$0xf0]  ;;  %v7354_v10 = vld [vmem:[#allocation8 + $0x114] sm:$0xf] }
 0x211   :  { %v6050_v8 = vld [vmem:[#allocation8 + $0x810] sm:$0xf]  ;;  %v6883_v21 = vor.u32 %v7790_v7, %v6882_v6  ;;  %3951 = vmatpush.bf16.msrb.mxu2 %v6627_v15  ;;  %v7562_v6 = vld [vmem:[#allocation8 + $0x794] sm:$0xf] }
 0x212   :  { %v7582_v11 = vld [vmem:[#allocation8 + $0x82c] sm:$0xf0]  ;;  %v5988_v7 = vld [vmem:[#allocation8 + $0x7b0] sm:$0xf0] }
 0x213   :  { %v6306_v12 = vld [vmem:[#allocation8 + $0xa10] sm:$0xf]  ;;  %v6051_v29 = vor.u32 %v7582_v11, %v6050_v8  ;;  %3964 = vmatpush.bf16.msrb.mxu3 %v6883_v21  ;;  %v5447_v8 = vor.u32 %v7426_v62, %v5444_v63  ;;  %v5156_v11 = vld [vmem:[#allocation8 + $0x130] sm:$0xf0]  ;;  %v5991_v16 = vor.u32 %v7562_v6, %v5988_v7 }
 0x214   :  { %v7646_v13 = vld [vmem:[#allocation8 + $0xa2c] sm:$0xf0]  ;;  %v5412_v15 = vld [vmem:[#allocation8 + $0x330] sm:$0xf0]  ;;  %v5159_v20 = vor.u32 %v7354_v10, %v5156_v11 }
 0x215   :  { %v6594_v24 = vld [vmem:[#allocation8 + $0xc50] sm:$0xf]  ;;  %v6307_v32 = vor.u32 %v7646_v13, %v6306_v12  ;;  %3927 = vmatpush.bf16.msrb.mxu0 %v6051_v29  ;;  %v5735_v12 = vor.u32 %v7498_v2, %v5732_v4  ;;  %v7418_v13 = vld [vmem:[#allocation8 + $0x314] sm:$0xf] }
 0x216   :  { %v7718_v25 = vld [vmem:[#allocation8 + $0xc6c] sm:$0xf0]  ;;  %v7554_v21 = vld [vmem:[#allocation8 + $0x754] sm:$0xf] }
 0x217   :  { %v6850_v30 = vld [vmem:[#allocation8 + $0xe50] sm:$0xf]  ;;  %v6595_v39 = vor.u32 %v7718_v25, %v6594_v24  ;;  %3940 = vmatpush.bf16.msrb.mxu1 %v6307_v32  ;;  %v5415_v24 = vor.u32 %v7418_v13, %v5412_v15  ;;  %v7346_v25 = vld [vmem:[#allocation8 + $0xd4] sm:$0xf]  ;;  %v5959_v32 = vor.u32 %v7554_v21, %v5956_v22 }
 0x218   :  { %v7782_v31 = vld [vmem:[#allocation8 + $0xe6c] sm:$0xf0]  ;;  %3928 = vmatmul.bf16.vlgmr.msrb.gmra.mxu0 %v8266_v19  ;;  %v7410_v29 = vld [vmem:[#allocation8 + $0x2d4] sm:$0xf]  ;;  %v5127_v14 = vor.u32 %v7346_v25, %v5124_v27 }
 0x219   :  { %v6851_v45 = vor.u32 %v7782_v31, %v6850_v30  ;;  %v6562_v46 = vld [vmem:[#allocation8 + $0xc10] sm:$0xf]  ;;  %3972 = vmatpush.bf16.msra.mxu0 %v5255_v33  ;;  %3952 = vmatpush.bf16.msrb.mxu2 %v6595_v39  ;;  %v5380_v30 = vld [vmem:[#allocation8 + $0x2f0] sm:$0xf0]  ;;  %v3721_v31 = vpop.f32.mrf.mxu0  ;;  %v3734_v39 = vpop.f32.mrf.mxu1 }
 0x21a   :  { %v7710_v47 = vld [vmem:[#allocation8 + $0xc2c] sm:$0xf0]  ;;  %3941 = vmatmul.bf16.vlgmr.msrb.gmra.mxu1 %v8268_v26  ;;  %v7482_v33 = vld [vmem:[#allocation8 + $0x514] sm:$0xf] }
 0x21b   :  { %v6818_v41 = vld [vmem:[#allocation8 + $0xe10] sm:$0xf]  ;;  %3985 = vmatpush.bf16.msra.mxu1 %v5511_v35  ;;  %v6563_v56 = vor.u32 %v7710_v47, %v6562_v46  ;;  %3965 = vmatpush.bf16.msrb.mxu3 %v6851_v45  ;;  %v3722_v35 = vadd.f32 %v3721_v31, %v8318_v37  ;;  %v5383_v45 = vor.u32 %v7410_v29, %v5380_v30  ;;  %v7338_v46 = vld [vmem:[#allocation8 + $0x94] sm:$0xf] }
 0x21c   :  { %v7774_v48 = vld [vmem:[#allocation8 + $0xe2c] sm:$0xf0]  ;;  %v5092_v47 = vld [vmem:[#allocation8 + $0xb0] sm:$0xf0] }
 0x21d   :  { %v6819_v60 = vor.u32 %v7774_v48, %v6818_v41  ;;  %3973 = vmatpush.bf16.msra.mxu0 %v5223_v52  ;;  %3953 = vmatpush.bf16.msrb.mxu2 %v6563_v56  ;;  %v3735_v41 = vadd.f32 %v3734_v39, %v3722_v35  ;;  %v5671_v48 = vor.u32 %v7482_v33, %v5668_v36  ;;  %v5348_v51 = vld [vmem:[#allocation8 + $0x2b0] sm:$0xf0] }
 0x21e   :  { %v5927_v52 = vor.u32 %v7546_v42, %v5924_v43  ;;  %v7474_v40 = vld [vmem:[#allocation8 + $0x4d4] sm:$0xf]  ;;  %v5095_v37 = vor.u32 %v7338_v46, %v5092_v47  ;;  %v5351_v57 = vor.u32 %v7402_v49, %v5348_v51 }
 0x21f   :  { %3986 = vmatpush.bf16.msra.mxu1 %v5479_v54  ;;  %3966 = vmatpush.bf16.msrb.mxu3 %v6819_v60  ;;  %v5636_v53 = vld [vmem:[#allocation8 + $0x4f0] sm:$0xf0] }
 0x220   :  { %3954 = vmatmul.bf16.vlgmr.msrb.gmra.mxu2 %v8272_v50  ;;  %v7538_v54 = vld [vmem:[#allocation8 + $0x6d4] sm:$0xf]  ;;  %v5639_v60 = vor.u32 %v7474_v40, %v5636_v53 }
 0x221   :  { %3998 = vmatpush.bf16.msra.mxu2 %v5767_v61  ;;  %3974 = vmatpush.bf16.msra.mxu0 %v5191_v5  ;;  %v5892_v56 = vld [vmem:[#allocation8 + $0x6f0] sm:$0xf0]  ;;  %v3723_v63 = vpop.f32.mrf.mxu0  ;;  %v3736_v4 = vpop.f32.mrf.mxu1 }
 0x222   :  { %3967 = vmatmul.bf16.vlgmr.msrb.gmra.mxu3 %v8274_v55  ;;  %v7330_v58 = vld [vmem:[#allocation8 + $0x54] sm:$0xf]  ;;  %v5895_v0 = vor.u32 %v7538_v54, %v5892_v56 }
 0x223   :  { %4011 = vmatpush.bf16.msra.mxu3 %v6023_v1  ;;  %3987 = vmatpush.bf16.msra.mxu1 %v5447_v8  ;;  %v5060_v59 = vld [vmem:[#allocation8 + $0x70] sm:$0xf0] }
 0x224   :  { %v7394_v61 = vld [vmem:[#allocation8 + $0x254] sm:$0xf]  ;;  %v5063_v5 = vor.u32 %v7330_v58, %v5060_v59 }
 0x225   :  { %3999 = vmatpush.bf16.msra.mxu2 %v5735_v12  ;;  %3975 = vmatpush.bf16.msra.mxu0 %v5159_v20  ;;  %v5316_v62 = vld [vmem:[#allocation8 + $0x270] sm:$0xf0]  ;;  %v3747_v20 = vpop.f32.mrf.mxu2 }
 0x226   :  { %v7466_v1 = vld [vmem:[#allocation8 + $0x494] sm:$0xf]  ;;  %v5319_v10 = vor.u32 %v7394_v61, %v5316_v62  ;;  %v3748_v27 = vadd.f32 %v3747_v20, %v3735_v41  ;;  %v8330_v20 = vld [vmem:[#allocation10] sm:$0xff] }
 0x227   :  { %4012 = vmatpush.bf16.msra.mxu3 %v5991_v16  ;;  %3988 = vmatpush.bf16.msra.mxu1 %v5415_v24  ;;  %v5604_v2 = vld [vmem:[#allocation8 + $0x4b0] sm:$0xf0] }
 0x228   :  { %v7530_v6 = vld [vmem:[#allocation8 + $0x694] sm:$0xf]  ;;  %v5607_v15 = vor.u32 %v7466_v1, %v5604_v2 }
 0x229   :  { %4000 = vmatpush.bf16.msra.mxu2 %v5703_v28  ;;  %3976 = vmatpush.bf16.msra.mxu0 %v5127_v14  ;;  %v5860_v7 = vld [vmem:[#allocation8 + $0x6b0] sm:$0xf0]  ;;  %v3760_v28 = vpop.f32.mrf.mxu3 }
 0x22a   :  { %v7322_v8 = vld [vmem:[#allocation8 + $0x14] sm:$0xf]  ;;  %v5863_v21 = vor.u32 %v7530_v6, %v5860_v7  ;;  %v8325_v35 = vadd.f32 %v3760_v28, %v3748_v27 }
 0x22b   :  { %4013 = vmatpush.bf16.msra.mxu3 %v5959_v32  ;;  %3989 = vmatpush.bf16.msra.mxu1 %v5383_v45  ;;  %v5028_v11 = vld [vmem:[#allocation8 + $0x30] sm:$0xf0] }
 0x22c   :  { %v7386_v12 = vld [vmem:[#allocation8 + $0x214] sm:$0xf]  ;;  %v5031_v29 = vor.u32 %v7322_v8, %v5028_v11 }
 0x22d   :  { %4001 = vmatpush.bf16.msra.mxu2 %v5671_v48  ;;  %3977 = vmatpush.bf16.msra.mxu0 %v5095_v37  ;;  %v5284_v13 = vld [vmem:[#allocation8 + $0x230] sm:$0xf0]  ;;  %v3749_v59 = vpop.f32.mrf.mxu2 }
 0x22e   :  { %v7634_v16 = vld [vmem:[#allocation8 + $0x9d4] sm:$0xf]  ;;  %v5287_v32 = vor.u32 %v7386_v12, %v5284_v13 }
 0x22f   :  { %4014 = vmatpush.bf16.msra.mxu3 %v5927_v52  ;;  %3990 = vmatpush.bf16.msra.mxu1 %v5351_v57  ;;  %v6276_v17 = vld [vmem:[#allocation8 + $0x9f0] sm:$0xf0] }
 0x230   :  { %v7698_v18 = vld [vmem:[#allocation8 + $0xbd4] sm:$0xf]  ;;  %v6279_v33 = vor.u32 %v7634_v16, %v6276_v17 }
 0x231   :  { %4002 = vmatpush.bf16.msra.mxu2 %v5639_v60  ;;  %v6532_v22 = vld [vmem:[#allocation8 + $0xbf0] sm:$0xf0]  ;;  %3978 = vmatpush.bf16.msra.mxu0 %v5063_v5 }
 0x232   :  { %v7458_v24 = vld [vmem:[#allocation8 + $0x454] sm:$0xf]  ;;  %v6535_v39 = vor.u32 %v7698_v18, %v6532_v22 }
 0x233   :  { %4015 = vmatpush.bf16.msra.mxu3 %v5895_v0  ;;  %v5572_v25 = vld [vmem:[#allocation8 + $0x470] sm:$0xf0]  ;;  %3991 = vmatpush.bf16.msra.mxu1 %v5319_v10  ;;  %v3762_v0 = vpop.f32.mrf.mxu3 }
 0x234   :  { %v7522_v30 = vld [vmem:[#allocation8 + $0x654] sm:$0xf]  ;;  %v5575_v14 = vor.u32 %v7458_v24, %v5572_v25 }
 0x235   :  { %v5828_v31 = vld [vmem:[#allocation8 + $0x670] sm:$0xf0]  ;;  %4003 = vmatpush.bf16.msra.mxu2 %v5607_v15  ;;  %3979 = vmatpush.bf16.msra.mxu0 %v5031_v29 }
 0x236   :  { %v7626_v36 = vld [vmem:[#allocation8 + $0x994] sm:$0xf]  ;;  %v5831_v46 = vor.u32 %v7522_v30, %v5828_v31 }
 0x237   :  { %v6244_v42 = vld [vmem:[#allocation8 + $0x9b0] sm:$0xf0]  ;;  %4016 = vmatpush.bf16.msra.mxu3 %v5863_v21  ;;  %3992 = vmatpush.bf16.msra.mxu1 %v5287_v32  ;;  %v879_v21 = vperm.slane %v8330_v20, 3 }
 0x238   :  { %v7690_v43 = vld [vmem:[#allocation8 + $0xb94] sm:$0xf]  ;;  %v6247_v40 = vor.u32 %v7626_v36, %v6244_v42  ;;  %3980 = vmatmul.bf16.vlgmr.msra.gmra.mxu0 %v8252_v3 }
 0x239   :  { %v6500_v45 = vld [vmem:[#allocation8 + $0xbb0] sm:$0xf0]  ;;  %4024 = vmatpush.bf16.msrb.mxu0 %v6279_v33  ;;  %4004 = vmatpush.bf16.msra.mxu2 %v5575_v14  ;;  %v3773_v33 = vpop.f32.mrf.mxu0 }
 0x23a   :  { %v7450_v47 = vld [vmem:[#allocation8 + $0x414] sm:$0xf]  ;;  %v6503_v54 = vor.u32 %v7690_v43, %v6500_v45  ;;  %3993 = vmatmul.bf16.vlgmr.msra.gmra.mxu1 %v8254_v9  ;;  %v3774_v42 = vadd.f32 %v3773_v33, %v879_v21  ;;  %v3786_v43 = vpop.f32.mrf.mxu1  ;;  %v5258_v21 = vld [vmem:[#allocation8 + $0x1d8] sm:$0xf] }
 0x23b   :  { %v5540_v41 = vld [vmem:[#allocation8 + $0x430] sm:$0xf0]  ;;  %4037 = vmatpush.bf16.msrb.mxu1 %v6535_v39  ;;  %4017 = vmatpush.bf16.msra.mxu3 %v5831_v46 }
 0x23c   :  { %v7514_v48 = vld [vmem:[#allocation8 + $0x614] sm:$0xf]  ;;  %v5543_v56 = vor.u32 %v7450_v47, %v5540_v41 }
 0x23d   :  { %v5796_v49 = vld [vmem:[#allocation8 + $0x630] sm:$0xf0]  ;;  %4025 = vmatpush.bf16.msrb.mxu0 %v6247_v40 }
 0x23e   :  { %v7762_v51 = vld [vmem:[#allocation8 + $0xdd4] sm:$0xf]  ;;  %v5799_v60 = vor.u32 %v7514_v48, %v5796_v49  ;;  %4005 = vmatpush.bf16.msra.mxu2 %v5543_v56 }
 0x23f   :  { %v6788_v52 = vld [vmem:[#allocation8 + $0xdf0] sm:$0xf0]  ;;  %4038 = vmatpush.bf16.msrb.mxu1 %v6503_v54 }
 0x240   :  { %v7826_v53 = vld [vmem:[#allocation8 + $0xfd4] sm:$0xf]  ;;  %v6791_v61 = vor.u32 %v7762_v51, %v6788_v52  ;;  %4018 = vmatpush.bf16.msra.mxu3 %v5799_v60  ;;  %v3787_v51 = vadd.f32 %v3786_v43, %v3774_v42  ;;  %v5226_v43 = vld [vmem:[#allocation8 + $0x198] sm:$0xf] }
 0x241   :  { %v7044_v37 = vld [vmem:[#allocation8 + $0xff0] sm:$0xf0]  ;;  %4006 = vmatmul.bf16.vlgmr.msra.gmra.mxu2 %v8260_v38 }
 0x242   :  { %v7618_v57 = vld [vmem:[#allocation8 + $0x954] sm:$0xf]  ;;  %v7047_v1 = vor.u32 %v7826_v53, %v7044_v37  ;;  %4050 = vmatpush.bf16.msrb.mxu2 %v6791_v61 }
 0x243   :  { %v6212_v58 = vld [vmem:[#allocation8 + $0x970] sm:$0xf0]  ;;  %4019 = vmatmul.bf16.vlgmr.msra.gmra.mxu3 %v8262_v44 }
 0x244   :  { %v7682_v62 = vld [vmem:[#allocation8 + $0xb54] sm:$0xf]  ;;  %v6215_v5 = vor.u32 %v7618_v57, %v6212_v58  ;;  %4063 = vmatpush.bf16.msrb.mxu3 %v7047_v1 }
 0x245   :  { %v6468_v63 = vld [vmem:[#allocation8 + $0xb70] sm:$0xf0] }
 0x246   :  { %v7754_v2 = vld [vmem:[#allocation8 + $0xd94] sm:$0xf]  ;;  %v6471_v8 = vor.u32 %v7682_v62, %v6468_v63  ;;  %4026 = vmatpush.bf16.msrb.mxu0 %v6215_v5 }
 0x247   :  { %v6756_v4 = vld [vmem:[#allocation8 + $0xdb0] sm:$0xf0] }
 0x248   :  { %v7818_v6 = vld [vmem:[#allocation8 + $0xf94] sm:$0xf]  ;;  %v6759_v12 = vor.u32 %v7754_v2, %v6756_v4  ;;  %4039 = vmatpush.bf16.msrb.mxu1 %v6471_v8  ;;  %v3775_v2 = vpop.f32.mrf.mxu0 }
 0x249   :  { %v7012_v7 = vld [vmem:[#allocation8 + $0xfb0] sm:$0xf0] }
 0x24a   :  { %v7610_v10 = vld [vmem:[#allocation8 + $0x914] sm:$0xf]  ;;  %v7015_v16 = vor.u32 %v7818_v6, %v7012_v7  ;;  %4051 = vmatpush.bf16.msrb.mxu2 %v6759_v12  ;;  %v3788_v7 = vpop.f32.mrf.mxu1 }
 0x24b   :  { %v6180_v11 = vld [vmem:[#allocation8 + $0x930] sm:$0xf0] }
 0x24c   :  { %v7674_v13 = vld [vmem:[#allocation8 + $0xb14] sm:$0xf]  ;;  %v6183_v22 = vor.u32 %v7610_v10, %v6180_v11  ;;  %4064 = vmatpush.bf16.msrb.mxu3 %v7015_v16 }
 0x24d   :  { %v6436_v15 = vld [vmem:[#allocation8 + $0xb30] sm:$0xf0] }
 0x24e   :  { %v7746_v17 = vld [vmem:[#allocation8 + $0xd54] sm:$0xf]  ;;  %v6439_v27 = vor.u32 %v7674_v13, %v6436_v15  ;;  %4027 = vmatpush.bf16.msrb.mxu0 %v6183_v22  ;;  %v7383_v22 = vld [vmem:[#allocation8 + $0x1f4] sm:$0xf0] }
 0x24f   :  { %v6724_v18 = vld [vmem:[#allocation8 + $0xd70] sm:$0xf0]  ;;  %v5259_v42 = vor.u32 %v7383_v22, %v5258_v21  ;;  %v5418_v21 = vld [vmem:[#allocation8 + $0x318] sm:$0xf] }
 0x250   :  { %v7810_v24 = vld [vmem:[#allocation8 + $0xf54] sm:$0xf]  ;;  %v6727_v30 = vor.u32 %v7746_v17, %v6724_v18  ;;  %4040 = vmatpush.bf16.msrb.mxu1 %v6439_v27  ;;  %v7423_v22 = vld [vmem:[#allocation8 + $0x334] sm:$0xf0] }
 0x251   :  { %v6980_v25 = vld [vmem:[#allocation8 + $0xf70] sm:$0xf0] }
 0x252   :  { %v7602_v28 = vld [vmem:[#allocation8 + $0x8d4] sm:$0xf]  ;;  %v6983_v36 = vor.u32 %v7810_v24, %v6980_v25  ;;  %4052 = vmatpush.bf16.msrb.mxu2 %v6727_v30  ;;  %v5514_v24 = vld [vmem:[#allocation8 + $0x3d8] sm:$0xf]  ;;  %v3799_v25 = vpop.f32.mrf.mxu2 }
 0x253   :  { %v6148_v29 = vld [vmem:[#allocation8 + $0x8f0] sm:$0xf0] }
 0x254   :  { %v7666_v31 = vld [vmem:[#allocation8 + $0xad4] sm:$0xf]  ;;  %v6151_v45 = vor.u32 %v7602_v28, %v6148_v29  ;;  %4065 = vmatpush.bf16.msrb.mxu3 %v6983_v36  ;;  %v7447_v28 = vld [vmem:[#allocation8 + $0x3f4] sm:$0xf0] }
 0x255   :  { %v6404_v32 = vld [vmem:[#allocation8 + $0xaf0] sm:$0xf0] }
 0x256   :  { %v7738_v39 = vld [vmem:[#allocation8 + $0xd14] sm:$0xf]  ;;  %v6407_v41 = vor.u32 %v7666_v31, %v6404_v32  ;;  %4028 = vmatpush.bf16.msrb.mxu0 %v6151_v45  ;;  %v3800_v31 = vadd.f32 %v3799_v25, %v3787_v51  ;;  %v3812_v32 = vpop.f32.mrf.mxu3  ;;  %v5706_v25 = vld [vmem:[#allocation8 + $0x558] sm:$0xf] }
 0x257   :  { %v6692_v14 = vld [vmem:[#allocation8 + $0xd30] sm:$0xf0] }
 0x258   :  { %v7802_v46 = vld [vmem:[#allocation8 + $0xf14] sm:$0xf]  ;;  %v6695_v52 = vor.u32 %v7738_v39, %v6692_v14  ;;  %4041 = vmatpush.bf16.msrb.mxu1 %v6407_v41  ;;  %v8334_v45 = vadd.f32 %v3812_v32, %v3800_v31  ;;  %v7375_v41 = vld [vmem:[#allocation8 + $0x1b4] sm:$0xf0]  ;;  %v5419_v31 = vor.u32 %v7423_v22, %v5418_v21 }
 0x259   :  { %v6948_v47 = vld [vmem:[#allocation8 + $0xf30] sm:$0xf0]  ;;  %v5130_v32 = vld [vmem:[#allocation8 + $0xd8] sm:$0xf] }
 0x25a   :  { %v7594_v48 = vld [vmem:[#allocation8 + $0x894] sm:$0xf]  ;;  %v6951_v37 = vor.u32 %v7802_v46, %v6948_v47  ;;  %4053 = vmatpush.bf16.msrb.mxu2 %v6695_v52  ;;  %v5515_v46 = vor.u32 %v7447_v28, %v5514_v24  ;;  %v7327_v21 = vld [vmem:[#allocation8 + $0x34] sm:$0xf0] }
 0x25b   :  { %v6116_v49 = vld [vmem:[#allocation8 + $0x8b0] sm:$0xf0]  ;;  %v5290_v22 = vld [vmem:[#allocation8 + $0x218] sm:$0xf] }
 0x25c   :  { %v7658_v40 = vld [vmem:[#allocation8 + $0xa94] sm:$0xf]  ;;  %v6119_v57 = vor.u32 %v7594_v48, %v6116_v49  ;;  %4066 = vmatpush.bf16.msrb.mxu3 %v6951_v37  ;;  %v5482_v48 = vld [vmem:[#allocation8 + $0x398] sm:$0xf] }
 0x25d   :  { %v6372_v53 = vld [vmem:[#allocation8 + $0xab0] sm:$0xf0]  ;;  %v7439_v49 = vld [vmem:[#allocation8 + $0x3b4] sm:$0xf0] }
 0x25e   :  { %v7730_v54 = vld [vmem:[#allocation8 + $0xcd4] sm:$0xf]  ;;  %v6375_v60 = vor.u32 %v7658_v40, %v6372_v53  ;;  %4029 = vmatpush.bf16.msrb.mxu0 %v6119_v57  ;;  %v5227_v57 = vor.u32 %v7375_v41, %v5226_v43 }
 0x25f   :  { %v6660_v56 = vld [vmem:[#allocation8 + $0xcf0] sm:$0xf0] }
 0x260   :  { %v7794_v58 = vld [vmem:[#allocation8 + $0xed4] sm:$0xf]  ;;  %v6663_v63 = vor.u32 %v7730_v54, %v6660_v56  ;;  %4042 = vmatpush.bf16.msrb.mxu1 %v6375_v60  ;;  %v5770_v54 = vld [vmem:[#allocation8 + $0x5d8] sm:$0xf]  ;;  %v5483_v60 = vor.u32 %v7439_v49, %v5482_v48  ;;  %v3838_v48 = vpop.f32.mrf.mxu1 }
 0x261   :  { %v6916_v59 = vld [vmem:[#allocation8 + $0xef0] sm:$0xf0]  ;;  %v7511_v56 = vld [vmem:[#allocation8 + $0x5f4] sm:$0xf0] }
 0x262   :  { %v7586_v61 = vld [vmem:[#allocation8 + $0x854] sm:$0xf]  ;;  %v6919_v4 = vor.u32 %v7794_v58, %v6916_v59  ;;  %4054 = vmatpush.bf16.msrb.mxu2 %v6663_v63  ;;  %v6026_v58 = vld [vmem:[#allocation8 + $0x7d8] sm:$0xf]  ;;  %v5771_v2 = vor.u32 %v7511_v56, %v5770_v54 }
 0x263   :  { %v6084_v62 = vld [vmem:[#allocation8 + $0x870] sm:$0xf0]  ;;  %v7575_v59 = vld [vmem:[#allocation8 + $0x7f4] sm:$0xf0] }
 0x264   :  { %v7650_v0 = vld [vmem:[#allocation8 + $0xa54] sm:$0xf]  ;;  %v6087_v8 = vor.u32 %v7586_v61, %v6084_v62  ;;  %4067 = vmatpush.bf16.msrb.mxu3 %v6919_v4  ;;  %v5194_v62 = vld [vmem:[#allocation8 + $0x158] sm:$0xf]  ;;  %v6027_v7 = vor.u32 %v7575_v59, %v6026_v58 }
 0x265   :  { %v6340_v1 = vld [vmem:[#allocation8 + $0xa70] sm:$0xf0]  ;;  %v7367_v63 = vld [vmem:[#allocation8 + $0x174] sm:$0xf0] }
 0x266   :  { %v7722_v5 = vld [vmem:[#allocation8 + $0xc94] sm:$0xf]  ;;  %v6343_v13 = vor.u32 %v7650_v0, %v6340_v1  ;;  %4030 = vmatpush.bf16.msrb.mxu0 %v6087_v8  ;;  %v3801_v0 = vpop.f32.mrf.mxu2  ;;  %v5450_v4 = vld [vmem:[#allocation8 + $0x358] sm:$0xf] }
 0x267   :  { %v6628_v6 = vld [vmem:[#allocation8 + $0xcb0] sm:$0xf0]  ;;  %v5738_v8 = vld [vmem:[#allocation8 + $0x598] sm:$0xf] }
 0x268   :  { %v7786_v10 = vld [vmem:[#allocation8 + $0xe94] sm:$0xf]  ;;  %v6631_v18 = vor.u32 %v7722_v5, %v6628_v6  ;;  %4043 = vmatpush.bf16.msrb.mxu1 %v6343_v13  ;;  %v7431_v5 = vld [vmem:[#allocation8 + $0x374] sm:$0xf0]  ;;  %v3814_v6 = vpop.f32.mrf.mxu3 }
 0x269   :  { %v6884_v11 = vld [vmem:[#allocation8 + $0xeb0] sm:$0xf0]  ;;  %v7567_v13 = vld [vmem:[#allocation8 + $0x7b4] sm:$0xf0] }
 0x26a   :  { %v7578_v12 = vld [vmem:[#allocation8 + $0x814] sm:$0xf]  ;;  %v6887_v27 = vor.u32 %v7786_v10, %v6884_v11  ;;  %4055 = vmatpush.bf16.msrb.mxu2 %v6631_v18  ;;  %v7503_v10 = vld [vmem:[#allocation8 + $0x5b4] sm:$0xf0]  ;;  %v5195_v11 = vor.u32 %v7367_v63, %v5194_v62 }
 0x26b   :  { %v6052_v15 = vld [vmem:[#allocation8 + $0x830] sm:$0xf0]  ;;  %v5739_v18 = vor.u32 %v7503_v10, %v5738_v8  ;;  %v7407_v58 = vld [vmem:[#allocation8 + $0x2b4] sm:$0xf0] }
 0x26c   :  { %v7642_v16 = vld [vmem:[#allocation8 + $0xa14] sm:$0xf]  ;;  %v6055_v33 = vor.u32 %v7578_v12, %v6052_v15  ;;  %4068 = vmatpush.bf16.msrb.mxu3 %v6887_v27  ;;  %v5994_v12 = vld [vmem:[#allocation8 + $0x798] sm:$0xf]  ;;  %v5451_v15 = vor.u32 %v7431_v5, %v5450_v4 }
 0x26d   :  { %v6308_v17 = vld [vmem:[#allocation8 + $0xa30] sm:$0xf0]  ;;  %v5995_v24 = vor.u32 %v7567_v13, %v5994_v12  ;;  %v7495_v27 = vld [vmem:[#allocation8 + $0x574] sm:$0xf0]  ;;  %v3840_v12 = vpop.f32.mrf.mxu1 }
 0x26e   :  { %v7714_v29 = vld [vmem:[#allocation8 + $0xc54] sm:$0xf]  ;;  %v6311_v14 = vor.u32 %v7642_v16, %v6308_v17  ;;  %4031 = vmatpush.bf16.msrb.mxu0 %v6055_v33  ;;  %v5162_v16 = vld [vmem:[#allocation8 + $0x118] sm:$0xf] }
 0x26f   :  { %v6596_v30 = vld [vmem:[#allocation8 + $0xc70] sm:$0xf0]  ;;  %v7359_v17 = vld [vmem:[#allocation8 + $0x134] sm:$0xf0] }
 0x270   :  { %v7778_v36 = vld [vmem:[#allocation8 + $0xe54] sm:$0xf]  ;;  %v6599_v47 = vor.u32 %v7714_v29, %v6596_v30  ;;  %4044 = vmatpush.bf16.msrb.mxu1 %v6311_v14  ;;  %v5163_v28 = vor.u32 %v7359_v17, %v5162_v16  ;;  %v5962_v29 = vld [vmem:[#allocation8 + $0x758] sm:$0xf] }
 0x271   :  { %v6852_v39 = vld [vmem:[#allocation8 + $0xe70] sm:$0xf0]  ;;  %4032 = vmatmul.bf16.vlgmr.msrb.gmra.mxu0 %v8266_v19  ;;  %v7559_v30 = vld [vmem:[#allocation8 + $0x774] sm:$0xf0] }
 0x272   :  { %v6855_v52 = vor.u32 %v7778_v36, %v6852_v39  ;;  %v7706_v51 = vld [vmem:[#allocation8 + $0xc14] sm:$0xf]  ;;  %4076 = vmatpush.bf16.msra.mxu0 %v5259_v42  ;;  %4056 = vmatpush.bf16.msrb.mxu2 %v6599_v47  ;;  %v7351_v33 = vld [vmem:[#allocation8 + $0xf4] sm:$0xf0]  ;;  %v5707_v36 = vor.u32 %v7495_v27, %v5706_v25  ;;  %v3825_v42 = vpop.f32.mrf.mxu0  ;;  %v5963_v43 = vor.u32 %v7559_v30, %v5962_v29  ;;  %v3851_v30 = vpop.f32.mrf.mxu2 }
 0x273   :  { %v6564_v40 = vld [vmem:[#allocation8 + $0xc30] sm:$0xf0]  ;;  %4045 = vmatmul.bf16.vlgmr.msrb.gmra.mxu1 %v8268_v26  ;;  %v5386_v39 = vld [vmem:[#allocation8 + $0x2d8] sm:$0xf]  ;;  %v3826_v41 = vadd.f32 %v3825_v42, %v8334_v45  ;;  %v5131_v49 = vor.u32 %v7351_v33, %v5130_v32 }
 0x274   :  { %v7770_v53 = vld [vmem:[#allocation8 + $0xe14] sm:$0xf]  ;;  %4089 = vmatpush.bf16.msra.mxu1 %v5515_v46  ;;  %v6567_v61 = vor.u32 %v7706_v51, %v6564_v40  ;;  %4069 = vmatpush.bf16.msrb.mxu3 %v6855_v52  ;;  %v7415_v14 = vld [vmem:[#allocation8 + $0x2f4] sm:$0xf0] }
 0x275   :  { %v6820_v37 = vld [vmem:[#allocation8 + $0xe30] sm:$0xf0]  ;;  %v5674_v46 = vld [vmem:[#allocation8 + $0x518] sm:$0xf]  ;;  %v5387_v40 = vor.u32 %v7415_v14, %v5386_v39  ;;  %v3839_v54 = vadd.f32 %v3838_v48, %v3826_v41  ;;  %v3864_v14 = vpop.f32.mrf.mxu3 }
 0x276   :  { %v6823_v1 = vor.u32 %v7770_v53, %v6820_v37  ;;  %4077 = vmatpush.bf16.msra.mxu0 %v5227_v57  ;;  %4057 = vmatpush.bf16.msrb.mxu2 %v6567_v61  ;;  %v7487_v47 = vld [vmem:[#allocation8 + $0x534] sm:$0xf0] }
 0x277   :  { %v5930_v52 = vld [vmem:[#allocation8 + $0x718] sm:$0xf]  ;;  %v5675_v56 = vor.u32 %v7487_v47, %v5674_v46  ;;  %v3852_v39 = vadd.f32 %v3851_v30, %v3839_v54 }
 0x278   :  { %4090 = vmatpush.bf16.msra.mxu1 %v5483_v60  ;;  %4070 = vmatpush.bf16.msrb.mxu3 %v6823_v1  ;;  %v7551_v51 = vld [vmem:[#allocation8 + $0x734] sm:$0xf0] }
 0x279   :  { %4058 = vmatmul.bf16.vlgmr.msrb.gmra.mxu2 %v8272_v50  ;;  %v5098_v53 = vld [vmem:[#allocation8 + $0x98] sm:$0xf]  ;;  %v5931_v59 = vor.u32 %v7551_v51, %v5930_v52 }
 0x27a   :  { %4102 = vmatpush.bf16.msra.mxu2 %v5771_v2  ;;  %4078 = vmatpush.bf16.msra.mxu0 %v5195_v11  ;;  %v7343_v37 = vld [vmem:[#allocation8 + $0xb4] sm:$0xf0] }
 0x27b   :  { %4071 = vmatmul.bf16.vlgmr.msrb.gmra.mxu3 %v8274_v55  ;;  %v5354_v57 = vld [vmem:[#allocation8 + $0x298] sm:$0xf]  ;;  %v5099_v45 = vor.u32 %v7343_v37, %v5098_v53 }
 0x27c   :  { %4115 = vmatpush.bf16.msra.mxu3 %v6027_v7  ;;  %4091 = vmatpush.bf16.msra.mxu1 %v5451_v15  ;;  %v5642_v60 = vld [vmem:[#allocation8 + $0x4d8] sm:$0xf]  ;;  %v5355_v0 = vor.u32 %v7407_v58, %v5354_v57  ;;  %v3827_v7 = vpop.f32.mrf.mxu0 }
 0x27d   :  { %v7479_v61 = vld [vmem:[#allocation8 + $0x4f4] sm:$0xf0] }
 0x27e   :  { %4103 = vmatpush.bf16.msra.mxu2 %v5739_v18  ;;  %4079 = vmatpush.bf16.msra.mxu0 %v5163_v28  ;;  %v5898_v62 = vld [vmem:[#allocation8 + $0x6d8] sm:$0xf]  ;;  %v5643_v4 = vor.u32 %v7479_v61, %v5642_v60 }
 0x27f   :  { %v7543_v63 = vld [vmem:[#allocation8 + $0x6f4] sm:$0xf0] }
 0x280   :  { %4116 = vmatpush.bf16.msra.mxu3 %v5995_v24  ;;  %4092 = vmatpush.bf16.msra.mxu1 %v5419_v31  ;;  %v5066_v1 = vld [vmem:[#allocation8 + $0x58] sm:$0xf]  ;;  %v5899_v8 = vor.u32 %v7543_v63, %v5898_v62 }
 0x281   :  { %v7335_v2 = vld [vmem:[#allocation8 + $0x74] sm:$0xf0] }
 0x282   :  { %4104 = vmatpush.bf16.msra.mxu2 %v5707_v36  ;;  %4080 = vmatpush.bf16.msra.mxu0 %v5131_v49  ;;  %v5322_v5 = vld [vmem:[#allocation8 + $0x258] sm:$0xf]  ;;  %v5067_v13 = vor.u32 %v7335_v2, %v5066_v1  ;;  %v8341_v49 = vadd.f32 %v3864_v14, %v3852_v39 }
 0x283   :  { %v7399_v6 = vld [vmem:[#allocation8 + $0x274] sm:$0xf0] }
 0x284   :  { %4117 = vmatpush.bf16.msra.mxu3 %v5963_v43  ;;  %4093 = vmatpush.bf16.msra.mxu1 %v5387_v40  ;;  %v5610_v10 = vld [vmem:[#allocation8 + $0x498] sm:$0xf]  ;;  %v5323_v18 = vor.u32 %v7399_v6, %v5322_v5  ;;  %v3853_v5 = vpop.f32.mrf.mxu2 }
 0x285   :  { %v7471_v11 = vld [vmem:[#allocation8 + $0x4b4] sm:$0xf0] }
 0x286   :  { %4105 = vmatpush.bf16.msra.mxu2 %v5675_v56  ;;  %4081 = vmatpush.bf16.msra.mxu0 %v5099_v45  ;;  %v5866_v15 = vld [vmem:[#allocation8 + $0x698] sm:$0xf]  ;;  %v5611_v25 = vor.u32 %v7471_v11, %v5610_v10  ;;  %v3866_v11 = vpop.f32.mrf.mxu3 }
 0x287   :  { %v7535_v16 = vld [vmem:[#allocation8 + $0x6b4] sm:$0xf0] }
 0x288   :  { %4118 = vmatpush.bf16.msra.mxu3 %v5931_v59  ;;  %v5034_v17 = vld [vmem:[#allocation8 + $0x18] sm:$0xf]  ;;  %4094 = vmatpush.bf16.msra.mxu1 %v5355_v0  ;;  %v5867_v31 = vor.u32 %v7535_v16, %v5866_v15 }
 0x289   :  { %v7391_v24 = vld [vmem:[#allocation8 + $0x234] sm:$0xf0]  ;;  %v5035_v42 = vor.u32 %v7327_v21, %v5034_v17 }
 0x28a   :  { %4106 = vmatpush.bf16.msra.mxu2 %v5643_v4  ;;  %v6282_v27 = vld [vmem:[#allocation8 + $0x9d8] sm:$0xf]  ;;  %4082 = vmatpush.bf16.msra.mxu0 %v5067_v13  ;;  %v5291_v47 = vor.u32 %v7391_v24, %v5290_v22 }
 0x28b   :  { %v7639_v28 = vld [vmem:[#allocation8 + $0x9f4] sm:$0xf0] }
 0x28c   :  { %v6538_v29 = vld [vmem:[#allocation8 + $0xbd8] sm:$0xf]  ;;  %4119 = vmatpush.bf16.msra.mxu3 %v5899_v8  ;;  %4095 = vmatpush.bf16.msra.mxu1 %v5323_v18  ;;  %v6283_v41 = vor.u32 %v7639_v28, %v6282_v27 }
 0x28d   :  { %v7703_v32 = vld [vmem:[#allocation8 + $0xbf4] sm:$0xf0] }
 0x28e   :  { %v5578_v33 = vld [vmem:[#allocation8 + $0x458] sm:$0xf]  ;;  %4107 = vmatpush.bf16.msra.mxu2 %v5611_v25  ;;  %v6539_v52 = vor.u32 %v7703_v32, %v6538_v29  ;;  %4083 = vmatpush.bf16.msra.mxu0 %v5035_v42  ;;  %v880_v32 = vperm.slane %v8330_v20, 4  ;;  %v3890_v20 = vpop.f32.mrf.mxu1 }
 0x28f   :  { %v7463_v36 = vld [vmem:[#allocation8 + $0x474] sm:$0xf0] }
 0x290   :  { %v5834_v43 = vld [vmem:[#allocation8 + $0x658] sm:$0xf]  ;;  %v5579_v51 = vor.u32 %v7463_v36, %v5578_v33  ;;  %4120 = vmatpush.bf16.msra.mxu3 %v5867_v31  ;;  %4096 = vmatpush.bf16.msra.mxu1 %v5291_v47 }
 0x291   :  { %v7527_v46 = vld [vmem:[#allocation8 + $0x674] sm:$0xf0]  ;;  %4084 = vmatmul.bf16.vlgmr.msra.gmra.mxu0 %v8252_v3 }
 0x292   :  { %v6250_v48 = vld [vmem:[#allocation8 + $0x998] sm:$0xf]  ;;  %v5835_v56 = vor.u32 %v7527_v46, %v5834_v43  ;;  %4128 = vmatpush.bf16.msrb.mxu0 %v6283_v41  ;;  %4108 = vmatpush.bf16.msra.mxu2 %v5579_v51 }
 0x293   :  { %v7631_v40 = vld [vmem:[#allocation8 + $0x9b4] sm:$0xf0]  ;;  %4097 = vmatmul.bf16.vlgmr.msra.gmra.mxu1 %v8254_v9 }
 0x294   :  { %v6506_v53 = vld [vmem:[#allocation8 + $0xb98] sm:$0xf]  ;;  %v6251_v45 = vor.u32 %v7631_v40, %v6250_v48  ;;  %4141 = vmatpush.bf16.msrb.mxu1 %v6539_v52  ;;  %4121 = vmatpush.bf16.msra.mxu3 %v5835_v56  ;;  %v3877_v48 = vpop.f32.mrf.mxu0 }
 0x295   :  { %v7695_v37 = vld [vmem:[#allocation8 + $0xbb4] sm:$0xf0] }
 0x296   :  { %v5546_v54 = vld [vmem:[#allocation8 + $0x418] sm:$0xf]  ;;  %v6507_v0 = vor.u32 %v7695_v37, %v6506_v53  ;;  %4129 = vmatpush.bf16.msrb.mxu0 %v6251_v45  ;;  %v3878_v53 = vadd.f32 %v3877_v48, %v880_v32  ;;  %v7379_v32 = vld [vmem:[#allocation8 + $0x1dc] sm:$0xf] }
 0x297   :  { %v7455_v57 = vld [vmem:[#allocation8 + $0x434] sm:$0xf0] }
 0x298   :  { %v5802_v58 = vld [vmem:[#allocation8 + $0x618] sm:$0xf]  ;;  %v5547_v1 = vor.u32 %v7455_v57, %v5546_v54  ;;  %4142 = vmatpush.bf16.msrb.mxu1 %v6507_v0 }
 0x299   :  { %v7519_v59 = vld [vmem:[#allocation8 + $0x634] sm:$0xf0] }
 0x29a   :  { %v6794_v60 = vld [vmem:[#allocation8 + $0xdd8] sm:$0xf]  ;;  %v5803_v6 = vor.u32 %v7519_v59, %v5802_v58  ;;  %4109 = vmatpush.bf16.msra.mxu2 %v5547_v1 }
 0x29b   :  { %v7767_v61 = vld [vmem:[#allocation8 + $0xdf4] sm:$0xf0] }
 0x29c   :  { %v7050_v62 = vld [vmem:[#allocation8 + $0xfd8] sm:$0xf]  ;;  %v6795_v7 = vor.u32 %v7767_v61, %v6794_v60  ;;  %4122 = vmatpush.bf16.msra.mxu3 %v5803_v6  ;;  %v3891_v60 = vadd.f32 %v3890_v20, %v3878_v53  ;;  %v7371_v20 = vld [vmem:[#allocation8 + $0x19c] sm:$0xf] }
 0x29d   :  { %v7831_v63 = vld [vmem:[#allocation8 + $0xff4] sm:$0xf0]  ;;  %4110 = vmatmul.bf16.vlgmr.msra.gmra.mxu2 %v8260_v38 }
 0x29e   :  { %v6218_v2 = vld [vmem:[#allocation8 + $0x958] sm:$0xf]  ;;  %v7051_v12 = vor.u32 %v7831_v63, %v7050_v62  ;;  %4154 = vmatpush.bf16.msrb.mxu2 %v6795_v7 }
 0x29f   :  { %v7623_v4 = vld [vmem:[#allocation8 + $0x974] sm:$0xf0]  ;;  %4123 = vmatmul.bf16.vlgmr.msra.gmra.mxu3 %v8262_v44 }
 0x2a0   :  { %v6474_v8 = vld [vmem:[#allocation8 + $0xb58] sm:$0xf]  ;;  %v6219_v16 = vor.u32 %v7623_v4, %v6218_v2  ;;  %4167 = vmatpush.bf16.msrb.mxu3 %v7051_v12 }
 0x2a1   :  { %v7687_v10 = vld [vmem:[#allocation8 + $0xb74] sm:$0xf0] }
 0x2a2   :  { %v6762_v13 = vld [vmem:[#allocation8 + $0xd98] sm:$0xf]  ;;  %v6475_v21 = vor.u32 %v7687_v10, %v6474_v8  ;;  %4130 = vmatpush.bf16.msrb.mxu0 %v6219_v16 }
 0x2a3   :  { %v7759_v15 = vld [vmem:[#allocation8 + $0xdb4] sm:$0xf0] }
 0x2a4   :  { %v7018_v17 = vld [vmem:[#allocation8 + $0xf98] sm:$0xf]  ;;  %v6763_v25 = vor.u32 %v7759_v15, %v6762_v13  ;;  %4143 = vmatpush.bf16.msrb.mxu1 %v6475_v21  ;;  %v3879_v13 = vpop.f32.mrf.mxu0 }
 0x2a5   :  { %v7823_v18 = vld [vmem:[#allocation8 + $0xfb4] sm:$0xf0] }
 0x2a6   :  { %v6186_v22 = vld [vmem:[#allocation8 + $0x918] sm:$0xf]  ;;  %v7019_v29 = vor.u32 %v7823_v18, %v7018_v17  ;;  %4155 = vmatpush.bf16.msrb.mxu2 %v6763_v25  ;;  %v3892_v18 = vpop.f32.mrf.mxu1 }
 0x2a7   :  { %v7615_v24 = vld [vmem:[#allocation8 + $0x934] sm:$0xf0] }
 0x2a8   :  { %v6442_v27 = vld [vmem:[#allocation8 + $0xb18] sm:$0xf]  ;;  %v6187_v33 = vor.u32 %v7615_v24, %v6186_v22  ;;  %4168 = vmatpush.bf16.msrb.mxu3 %v7019_v29 }
 0x2a9   :  { %v7679_v28 = vld [vmem:[#allocation8 + $0xb34] sm:$0xf0] }
 0x2aa   :  { %v6730_v30 = vld [vmem:[#allocation8 + $0xd58] sm:$0xf]  ;;  %v6443_v14 = vor.u32 %v7679_v28, %v6442_v27  ;;  %4131 = vmatpush.bf16.msrb.mxu0 %v6187_v33  ;;  %v5260_v33 = vld [vmem:[#allocation8 + $0x1f8] sm:$0xf0] }
 0x2ab   :  { %v7751_v31 = vld [vmem:[#allocation8 + $0xd74] sm:$0xf0]  ;;  %v5263_v53 = vor.u32 %v7379_v32, %v5260_v33  ;;  %v7419_v32 = vld [vmem:[#allocation8 + $0x31c] sm:$0xf] }
 0x2ac   :  { %v6986_v36 = vld [vmem:[#allocation8 + $0xf58] sm:$0xf]  ;;  %v6731_v46 = vor.u32 %v7751_v31, %v6730_v30  ;;  %4144 = vmatpush.bf16.msrb.mxu1 %v6443_v14  ;;  %v5420_v33 = vld [vmem:[#allocation8 + $0x338] sm:$0xf0] }
 0x2ad   :  { %v7815_v39 = vld [vmem:[#allocation8 + $0xf74] sm:$0xf0] }
 0x2ae   :  { %v6154_v42 = vld [vmem:[#allocation8 + $0x8d8] sm:$0xf]  ;;  %v6987_v52 = vor.u32 %v7815_v39, %v6986_v36  ;;  %4156 = vmatpush.bf16.msrb.mxu2 %v6731_v46  ;;  %v7443_v36 = vld [vmem:[#allocation8 + $0x3dc] sm:$0xf]  ;;  %v3903_v39 = vpop.f32.mrf.mxu2 }
 0x2af   :  { %v7607_v43 = vld [vmem:[#allocation8 + $0x8f4] sm:$0xf0] }
 0x2b0   :  { %v6410_v47 = vld [vmem:[#allocation8 + $0xad8] sm:$0xf]  ;;  %v6155_v37 = vor.u32 %v7607_v43, %v6154_v42  ;;  %4169 = vmatpush.bf16.msrb.mxu3 %v6987_v52  ;;  %v5516_v42 = vld [vmem:[#allocation8 + $0x3f8] sm:$0xf0] }
 0x2b1   :  { %v7671_v41 = vld [vmem:[#allocation8 + $0xaf4] sm:$0xf0] }
 0x2b2   :  { %v6698_v51 = vld [vmem:[#allocation8 + $0xd18] sm:$0xf]  ;;  %v6411_v57 = vor.u32 %v7671_v41, %v6410_v47  ;;  %4132 = vmatpush.bf16.msrb.mxu0 %v6155_v37  ;;  %v3904_v47 = vadd.f32 %v3903_v39, %v3891_v60  ;;  %v3916_v41 = vpop.f32.mrf.mxu3  ;;  %v7491_v39 = vld [vmem:[#allocation8 + $0x55c] sm:$0xf] }
 0x2b3   :  { %v7743_v40 = vld [vmem:[#allocation8 + $0xd34] sm:$0xf0] }
 0x2b4   :  { %v6954_v56 = vld [vmem:[#allocation8 + $0xf18] sm:$0xf]  ;;  %v6699_v61 = vor.u32 %v7743_v40, %v6698_v51  ;;  %4145 = vmatpush.bf16.msrb.mxu1 %v6411_v57  ;;  %v8348_v37 = vadd.f32 %v3916_v41, %v3904_v47  ;;  %v5228_v57 = vld [vmem:[#allocation8 + $0x1b8] sm:$0xf0]  ;;  %v5423_v47 = vor.u32 %v7419_v32, %v5420_v33 }
 0x2b5   :  { %v7807_v54 = vld [vmem:[#allocation8 + $0xf34] sm:$0xf0]  ;;  %v7347_v41 = vld [vmem:[#allocation8 + $0xdc] sm:$0xf] }
 0x2b6   :  { %v6122_v58 = vld [vmem:[#allocation8 + $0x898] sm:$0xf]  ;;  %v6955_v63 = vor.u32 %v7807_v54, %v6954_v56  ;;  %4157 = vmatpush.bf16.msrb.mxu2 %v6699_v61  ;;  %v5519_v56 = vor.u32 %v7443_v36, %v5516_v42  ;;  %v5036_v32 = vld [vmem:[#allocation8 + $0x38] sm:$0xf0] }
 0x2b7   :  { %v7599_v59 = vld [vmem:[#allocation8 + $0x8b4] sm:$0xf0]  ;;  %v7387_v33 = vld [vmem:[#allocation8 + $0x21c] sm:$0xf] }
 0x2b8   :  { %v6378_v45 = vld [vmem:[#allocation8 + $0xa98] sm:$0xf]  ;;  %v6123_v2 = vor.u32 %v7599_v59, %v6122_v58  ;;  %4170 = vmatpush.bf16.msrb.mxu3 %v6955_v63  ;;  %v7435_v58 = vld [vmem:[#allocation8 + $0x39c] sm:$0xf] }
 0x2b9   :  { %v7663_v62 = vld [vmem:[#allocation8 + $0xab4] sm:$0xf0]  ;;  %v5484_v59 = vld [vmem:[#allocation8 + $0x3b8] sm:$0xf0] }
 0x2ba   :  { %v6666_v0 = vld [vmem:[#allocation8 + $0xcd8] sm:$0xf]  ;;  %v6379_v6 = vor.u32 %v7663_v62, %v6378_v45  ;;  %4133 = vmatpush.bf16.msrb.mxu0 %v6123_v2  ;;  %v5231_v2 = vor.u32 %v7371_v20, %v5228_v57 }
 0x2bb   :  { %v7735_v1 = vld [vmem:[#allocation8 + $0xcf4] sm:$0xf0] }
 0x2bc   :  { %v6922_v4 = vld [vmem:[#allocation8 + $0xed8] sm:$0xf]  ;;  %v6667_v10 = vor.u32 %v7735_v1, %v6666_v0  ;;  %4146 = vmatpush.bf16.msrb.mxu1 %v6379_v6  ;;  %v7507_v0 = vld [vmem:[#allocation8 + $0x5dc] sm:$0xf]  ;;  %v5487_v6 = vor.u32 %v7435_v58, %v5484_v59  ;;  %v3942_v58 = vpop.f32.mrf.mxu1 }
 0x2bd   :  { %v7799_v5 = vld [vmem:[#allocation8 + $0xef4] sm:$0xf0]  ;;  %v5772_v1 = vld [vmem:[#allocation8 + $0x5f8] sm:$0xf0] }
 0x2be   :  { %v6090_v7 = vld [vmem:[#allocation8 + $0x858] sm:$0xf]  ;;  %v6923_v15 = vor.u32 %v7799_v5, %v6922_v4  ;;  %4158 = vmatpush.bf16.msrb.mxu2 %v6667_v10  ;;  %v7571_v4 = vld [vmem:[#allocation8 + $0x7dc] sm:$0xf]  ;;  %v5775_v13 = vor.u32 %v7507_v0, %v5772_v1 }
 0x2bf   :  { %v7591_v8 = vld [vmem:[#allocation8 + $0x874] sm:$0xf0]  ;;  %v6028_v5 = vld [vmem:[#allocation8 + $0x7f8] sm:$0xf0] }
 0x2c0   :  { %v6346_v11 = vld [vmem:[#allocation8 + $0xa58] sm:$0xf]  ;;  %v6091_v21 = vor.u32 %v7591_v8, %v6090_v7  ;;  %4171 = vmatpush.bf16.msrb.mxu3 %v6923_v15  ;;  %v7363_v8 = vld [vmem:[#allocation8 + $0x15c] sm:$0xf]  ;;  %v6031_v18 = vor.u32 %v7571_v4, %v6028_v5 }
 0x2c1   :  { %v7655_v12 = vld [vmem:[#allocation8 + $0xa74] sm:$0xf0]  ;;  %v5196_v10 = vld [vmem:[#allocation8 + $0x178] sm:$0xf0] }
 0x2c2   :  { %v6634_v16 = vld [vmem:[#allocation8 + $0xc98] sm:$0xf]  ;;  %v6347_v27 = vor.u32 %v7655_v12, %v6346_v11  ;;  %4134 = vmatpush.bf16.msrb.mxu0 %v6091_v21  ;;  %v3905_v11 = vpop.f32.mrf.mxu2  ;;  %v7427_v15 = vld [vmem:[#allocation8 + $0x35c] sm:$0xf] }
 0x2c3   :  { %v7727_v17 = vld [vmem:[#allocation8 + $0xcb4] sm:$0xf0]  ;;  %v7499_v21 = vld [vmem:[#allocation8 + $0x59c] sm:$0xf] }
 0x2c4   :  { %v6890_v22 = vld [vmem:[#allocation8 + $0xe98] sm:$0xf]  ;;  %v6635_v31 = vor.u32 %v7727_v17, %v6634_v16  ;;  %4147 = vmatpush.bf16.msrb.mxu1 %v6347_v27  ;;  %v5452_v16 = vld [vmem:[#allocation8 + $0x378] sm:$0xf0]  ;;  %v3918_v17 = vpop.f32.mrf.mxu3 }
 0x2c5   :  { %v7791_v24 = vld [vmem:[#allocation8 + $0xeb4] sm:$0xf0]  ;;  %v5996_v27 = vld [vmem:[#allocation8 + $0x7b8] sm:$0xf0] }
 0x2c6   :  { %v6058_v25 = vld [vmem:[#allocation8 + $0x818] sm:$0xf]  ;;  %v6891_v14 = vor.u32 %v7791_v24, %v6890_v22  ;;  %4159 = vmatpush.bf16.msrb.mxu2 %v6635_v31  ;;  %v5740_v22 = vld [vmem:[#allocation8 + $0x5b8] sm:$0xf0]  ;;  %v5199_v24 = vor.u32 %v7363_v8, %v5196_v10 }
 0x2c7   :  { %v7583_v28 = vld [vmem:[#allocation8 + $0x834] sm:$0xf0]  ;;  %v5743_v31 = vor.u32 %v7499_v21, %v5740_v22  ;;  %v5356_v4 = vld [vmem:[#allocation8 + $0x2b8] sm:$0xf0] }
 0x2c8   :  { %v6314_v29 = vld [vmem:[#allocation8 + $0xa18] sm:$0xf]  ;;  %v6059_v48 = vor.u32 %v7583_v28, %v6058_v25  ;;  %4172 = vmatpush.bf16.msrb.mxu3 %v6891_v14  ;;  %v7563_v25 = vld [vmem:[#allocation8 + $0x79c] sm:$0xf]  ;;  %v5455_v28 = vor.u32 %v7427_v15, %v5452_v16 }
 0x2c9   :  { %v7647_v30 = vld [vmem:[#allocation8 + $0xa34] sm:$0xf0]  ;;  %v5999_v36 = vor.u32 %v7563_v25, %v5996_v27  ;;  %v5708_v14 = vld [vmem:[#allocation8 + $0x578] sm:$0xf0]  ;;  %v3944_v25 = vpop.f32.mrf.mxu1 }
 0x2ca   :  { %v6602_v43 = vld [vmem:[#allocation8 + $0xc58] sm:$0xf]  ;;  %v6315_v40 = vor.u32 %v7647_v30, %v6314_v29  ;;  %4135 = vmatpush.bf16.msrb.mxu0 %v6059_v48  ;;  %v7355_v29 = vld [vmem:[#allocation8 + $0x11c] sm:$0xf] }
 0x2cb   :  { %v7719_v46 = vld [vmem:[#allocation8 + $0xc74] sm:$0xf0]  ;;  %v5164_v30 = vld [vmem:[#allocation8 + $0x138] sm:$0xf0] }
 0x2cc   :  { %v6858_v52 = vld [vmem:[#allocation8 + $0xe58] sm:$0xf]  ;;  %v6603_v54 = vor.u32 %v7719_v46, %v6602_v43  ;;  %4148 = vmatpush.bf16.msrb.mxu1 %v6315_v40  ;;  %v5167_v42 = vor.u32 %v7355_v29, %v5164_v30  ;;  %v7555_v43 = vld [vmem:[#allocation8 + $0x75c] sm:$0xf] }
 0x2cd   :  { %v7783_v51 = vld [vmem:[#allocation8 + $0xe74] sm:$0xf0]  ;;  %4136 = vmatmul.bf16.vlgmr.msrb.gmra.mxu0 %v8266_v19  ;;  %v5964_v46 = vld [vmem:[#allocation8 + $0x778] sm:$0xf0] }
 0x2ce   :  { %v6859_v61 = vor.u32 %v7783_v51, %v6858_v52  ;;  %v6570_v60 = vld [vmem:[#allocation8 + $0xc18] sm:$0xf]  ;;  %4180 = vmatpush.bf16.msra.mxu0 %v5263_v53  ;;  %4160 = vmatpush.bf16.msrb.mxu2 %v6603_v54  ;;  %v5132_v48 = vld [vmem:[#allocation8 + $0xf8] sm:$0xf0]  ;;  %v5711_v52 = vor.u32 %v7491_v39, %v5708_v14  ;;  %v3929_v53 = vpop.f32.mrf.mxu0  ;;  %v5967_v20 = vor.u32 %v7555_v43, %v5964_v46  ;;  %v3955_v46 = vpop.f32.mrf.mxu2 }
 0x2cf   :  { %v7711_v45 = vld [vmem:[#allocation8 + $0xc34] sm:$0xf0]  ;;  %4149 = vmatmul.bf16.vlgmr.msrb.gmra.mxu1 %v8268_v26  ;;  %v7411_v51 = vld [vmem:[#allocation8 + $0x2dc] sm:$0xf]  ;;  %v3930_v57 = vadd.f32 %v3929_v53, %v8348_v37  ;;  %v5135_v59 = vor.u32 %v7347_v41, %v5132_v48 }
 0x2d0   :  { %v6826_v62 = vld [vmem:[#allocation8 + $0xe18] sm:$0xf]  ;;  %4193 = vmatpush.bf16.msra.mxu1 %v5519_v56  ;;  %v6571_v7 = vor.u32 %v7711_v45, %v6570_v60  ;;  %4173 = vmatpush.bf16.msrb.mxu3 %v6859_v61  ;;  %v5388_v40 = vld [vmem:[#allocation8 + $0x2f8] sm:$0xf0] }
 0x2d1   :  { %v7775_v63 = vld [vmem:[#allocation8 + $0xe34] sm:$0xf0]  ;;  %v7483_v56 = vld [vmem:[#allocation8 + $0x51c] sm:$0xf]  ;;  %v5391_v45 = vor.u32 %v7411_v51, %v5388_v40  ;;  %v3943_v0 = vadd.f32 %v3942_v58, %v3930_v57  ;;  %v3968_v40 = vpop.f32.mrf.mxu3 }
 0x2d2   :  { %v6827_v12 = vor.u32 %v7775_v63, %v6826_v62  ;;  %4181 = vmatpush.bf16.msra.mxu0 %v5231_v2  ;;  %4161 = vmatpush.bf16.msrb.mxu2 %v6571_v7  ;;  %v5676_v54 = vld [vmem:[#allocation8 + $0x538] sm:$0xf0] }
 0x2d3   :  { %v7547_v61 = vld [vmem:[#allocation8 + $0x71c] sm:$0xf]  ;;  %v5679_v1 = vor.u32 %v7483_v56, %v5676_v54  ;;  %v3956_v51 = vadd.f32 %v3955_v46, %v3943_v0 }
 0x2d4   :  { %4194 = vmatpush.bf16.msra.mxu1 %v5487_v6  ;;  %4174 = vmatpush.bf16.msrb.mxu3 %v6827_v12  ;;  %v5932_v60 = vld [vmem:[#allocation8 + $0x738] sm:$0xf0] }
 0x2d5   :  { %4162 = vmatmul.bf16.vlgmr.msrb.gmra.mxu2 %v8272_v50  ;;  %v7339_v62 = vld [vmem:[#allocation8 + $0x9c] sm:$0xf]  ;;  %v5935_v5 = vor.u32 %v7547_v61, %v5932_v60 }
 0x2d6   :  { %4206 = vmatpush.bf16.msra.mxu2 %v5775_v13  ;;  %4182 = vmatpush.bf16.msra.mxu0 %v5199_v24  ;;  %v5100_v63 = vld [vmem:[#allocation8 + $0xb8] sm:$0xf0] }
 0x2d7   :  { %4175 = vmatmul.bf16.vlgmr.msrb.gmra.mxu3 %v8274_v55  ;;  %v7403_v2 = vld [vmem:[#allocation8 + $0x29c] sm:$0xf]  ;;  %v5103_v37 = vor.u32 %v7339_v62, %v5100_v63 }
 0x2d8   :  { %4219 = vmatpush.bf16.msra.mxu3 %v6031_v18  ;;  %4195 = vmatpush.bf16.msra.mxu1 %v5455_v28  ;;  %v7475_v6 = vld [vmem:[#allocation8 + $0x4dc] sm:$0xf]  ;;  %v5359_v11 = vor.u32 %v7403_v2, %v5356_v4  ;;  %v3931_v18 = vpop.f32.mrf.mxu0 }
 0x2d9   :  { %v5644_v7 = vld [vmem:[#allocation8 + $0x4f8] sm:$0xf0] }
 0x2da   :  { %4207 = vmatpush.bf16.msra.mxu2 %v5743_v31  ;;  %4183 = vmatpush.bf16.msra.mxu0 %v5167_v42  ;;  %v7539_v8 = vld [vmem:[#allocation8 + $0x6dc] sm:$0xf]  ;;  %v5647_v15 = vor.u32 %v7475_v6, %v5644_v7 }
 0x2db   :  { %v5900_v10 = vld [vmem:[#allocation8 + $0x6f8] sm:$0xf0] }
 0x2dc   :  { %4220 = vmatpush.bf16.msra.mxu3 %v5999_v36  ;;  %4196 = vmatpush.bf16.msra.mxu1 %v5423_v47  ;;  %v7331_v12 = vld [vmem:[#allocation8 + $0x5c] sm:$0xf]  ;;  %v5903_v21 = vor.u32 %v7539_v8, %v5900_v10 }
 0x2dd   :  { %v5068_v13 = vld [vmem:[#allocation8 + $0x78] sm:$0xf0] }
 0x2de   :  { %4208 = vmatpush.bf16.msra.mxu2 %v5711_v52  ;;  %4184 = vmatpush.bf16.msra.mxu0 %v5135_v59  ;;  %v7395_v16 = vld [vmem:[#allocation8 + $0x25c] sm:$0xf]  ;;  %v5071_v27 = vor.u32 %v7331_v12, %v5068_v13  ;;  %v8355_v59 = vadd.f32 %v3968_v40, %v3956_v51 }
 0x2df   :  { %v5324_v17 = vld [vmem:[#allocation8 + $0x278] sm:$0xf0] }
 0x2e0   :  { %4221 = vmatpush.bf16.msra.mxu3 %v5967_v20  ;;  %4197 = vmatpush.bf16.msra.mxu1 %v5391_v45  ;;  %v7467_v22 = vld [vmem:[#allocation8 + $0x49c] sm:$0xf]  ;;  %v5327_v31 = vor.u32 %v7395_v16, %v5324_v17  ;;  %v3957_v16 = vpop.f32.mrf.mxu2 }
 0x2e1   :  { %v5612_v24 = vld [vmem:[#allocation8 + $0x4b8] sm:$0xf0] }
 0x2e2   :  { %4209 = vmatpush.bf16.msra.mxu2 %v5679_v1  ;;  %4185 = vmatpush.bf16.msra.mxu0 %v5103_v37  ;;  %v7531_v28 = vld [vmem:[#allocation8 + $0x69c] sm:$0xf]  ;;  %v5615_v39 = vor.u32 %v7467_v22, %v5612_v24  ;;  %v3970_v24 = vpop.f32.mrf.mxu3 }
 0x2e3   :  { %v5868_v29 = vld [vmem:[#allocation8 + $0x6b8] sm:$0xf0] }
 0x2e4   :  { %4222 = vmatpush.bf16.msra.mxu3 %v5935_v5  ;;  %v7323_v30 = vld [vmem:[#allocation8 + $0x1c] sm:$0xf]  ;;  %4198 = vmatpush.bf16.msra.mxu1 %v5359_v11  ;;  %v5871_v47 = vor.u32 %v7531_v28, %v5868_v29 }
 0x2e5   :  { %v5292_v36 = vld [vmem:[#allocation8 + $0x238] sm:$0xf0]  ;;  %v5039_v53 = vor.u32 %v7323_v30, %v5036_v32 }
 0x2e6   :  { %4210 = vmatpush.bf16.msra.mxu2 %v5647_v15  ;;  %v7635_v14 = vld [vmem:[#allocation8 + $0x9dc] sm:$0xf]  ;;  %4186 = vmatpush.bf16.msra.mxu0 %v5071_v27  ;;  %v5295_v54 = vor.u32 %v7387_v33, %v5292_v36 }
 0x2e7   :  { %v6284_v42 = vld [vmem:[#allocation8 + $0x9f8] sm:$0xf0] }
 0x2e8   :  { %v7699_v43 = vld [vmem:[#allocation8 + $0xbdc] sm:$0xf]  ;;  %4223 = vmatpush.bf16.msra.mxu3 %v5903_v21  ;;  %4199 = vmatpush.bf16.msra.mxu1 %v5327_v31  ;;  %v6287_v57 = vor.u32 %v7635_v14, %v6284_v42 }
 0x2e9   :  { %v6540_v41 = vld [vmem:[#allocation8 + $0xbf8] sm:$0xf0] }
 0x2ea   :  { %v7459_v48 = vld [vmem:[#allocation8 + $0x45c] sm:$0xf]  ;;  %4211 = vmatpush.bf16.msra.mxu2 %v5615_v39  ;;  %v6543_v61 = vor.u32 %v7699_v43, %v6540_v41  ;;  %4187 = vmatpush.bf16.msra.mxu0 %v5039_v53 }
 0x2eb   :  { %v5580_v52 = vld [vmem:[#allocation8 + $0x478] sm:$0xf0] }
 0x2ec   :  { %v7523_v20 = vld [vmem:[#allocation8 + $0x65c] sm:$0xf]  ;;  %v5583_v60 = vor.u32 %v7459_v48, %v5580_v52  ;;  %4224 = vmatpush.bf16.msra.mxu3 %v5871_v47  ;;  %4200 = vmatpush.bf16.msra.mxu1 %v5295_v54 }
 0x2ed   :  { %v5836_v56 = vld [vmem:[#allocation8 + $0x678] sm:$0xf0]  ;;  %4188 = vmatmul.bf16.vlgmr.msra.gmra.mxu0 %v8252_v3 }
 0x2ee   :  { %v7627_v58 = vld [vmem:[#allocation8 + $0x99c] sm:$0xf]  ;;  %v5839_v1 = vor.u32 %v7523_v20, %v5836_v56  ;;  %4232 = vmatpush.bf16.msrb.mxu0 %v6287_v57  ;;  %4212 = vmatpush.bf16.msra.mxu2 %v5583_v60  ;;  %v8361_v56 = vpop.f32.mrf.mxu0 }
 0x2ef   :  { %v6252_v45 = vld [vmem:[#allocation8 + $0x9b8] sm:$0xf0]  ;;  %4201 = vmatmul.bf16.vlgmr.msra.gmra.mxu1 %v8254_v9 }
 0x2f0   :  { %v7691_v62 = vld [vmem:[#allocation8 + $0xb9c] sm:$0xf]  ;;  %v6255_v37 = vor.u32 %v7627_v58, %v6252_v45  ;;  %4245 = vmatpush.bf16.msrb.mxu1 %v6543_v61  ;;  %4225 = vmatpush.bf16.msra.mxu3 %v5839_v1  ;;  %v8363_v58 = vpop.f32.mrf.mxu1 }
 0x2f1   :  { %v6508_v63 = vld [vmem:[#allocation8 + $0xbb8] sm:$0xf0] }
 0x2f2   :  { %v7451_v0 = vld [vmem:[#allocation8 + $0x41c] sm:$0xf]  ;;  %v6511_v11 = vor.u32 %v7691_v62, %v6508_v63  ;;  %4233 = vmatpush.bf16.msrb.mxu0 %v6255_v37 }
 0x2f3   :  { %v5548_v2 = vld [vmem:[#allocation8 + $0x438] sm:$0xf0] }
 0x2f4   :  { %v7515_v4 = vld [vmem:[#allocation8 + $0x61c] sm:$0xf]  ;;  %v5551_v12 = vor.u32 %v7451_v0, %v5548_v2  ;;  %4246 = vmatpush.bf16.msrb.mxu1 %v6511_v11 }
 0x2f5   :  { %v5804_v5 = vld [vmem:[#allocation8 + $0x638] sm:$0xf0] }
 0x2f6   :  { %v7763_v6 = vld [vmem:[#allocation8 + $0xddc] sm:$0xf]  ;;  %v5807_v17 = vor.u32 %v7515_v4, %v5804_v5  ;;  %4213 = vmatpush.bf16.msra.mxu2 %v5551_v12 }
 0x2f7   :  { %v6796_v7 = vld [vmem:[#allocation8 + $0xdf8] sm:$0xf0] }
 0x2f8   :  { %v7827_v8 = vld [vmem:[#allocation8 + $0xfdc] sm:$0xf]  ;;  %v6799_v18 = vor.u32 %v7763_v6, %v6796_v7  ;;  %4226 = vmatpush.bf16.msra.mxu3 %v5807_v17  ;;  %v3983_v17 = vpop.f32.mrf.mxu0  ;;  %v3996_v24 = vpop.f32.mrf.mxu1 }
 0x2f9   :  { %v7052_v10 = vld [vmem:[#allocation8 + $0xff8] sm:$0xf0]  ;;  %4214 = vmatmul.bf16.vlgmr.msra.gmra.mxu2 %v8260_v38  ;;  %v7860_v17 = vld [vmem:[#allocation11 + $0xe0] sm:$0xff] }
 0x2fa   :  { %v7619_v13 = vld [vmem:[#allocation8 + $0x95c] sm:$0xf]  ;;  %v7055_v25 = vor.u32 %v7827_v8, %v7052_v10  ;;  %4258 = vmatpush.bf16.msrb.mxu2 %v6799_v18 }
 0x2fb   :  { %v6220_v15 = vld [vmem:[#allocation8 + $0x978] sm:$0xf0]  ;;  %4227 = vmatmul.bf16.vlgmr.msra.gmra.mxu3 %v8262_v44 }
 0x2fc   :  { %v7683_v21 = vld [vmem:[#allocation8 + $0xb5c] sm:$0xf]  ;;  %v6223_v29 = vor.u32 %v7619_v13, %v6220_v15  ;;  %4271 = vmatpush.bf16.msrb.mxu3 %v7055_v25 }
 0x2fd   :  { %v6476_v22 = vld [vmem:[#allocation8 + $0xb78] sm:$0xf0] }
 0x2fe   :  { %v7755_v27 = vld [vmem:[#allocation8 + $0xd9c] sm:$0xf]  ;;  %v6479_v32 = vor.u32 %v7683_v21, %v6476_v22  ;;  %4234 = vmatpush.bf16.msrb.mxu0 %v6223_v29 }
 0x2ff   :  { %v6764_v28 = vld [vmem:[#allocation8 + $0xdb8] sm:$0xf0] }
 0x300   :  { %v7819_v30 = vld [vmem:[#allocation8 + $0xf9c] sm:$0xf]  ;;  %v6767_v3 = vor.u32 %v7755_v27, %v6764_v28  ;;  %4247 = vmatpush.bf16.msrb.mxu1 %v6479_v32 }
 0x301   :  { %v7020_v31 = vld [vmem:[#allocation8 + $0xfb8] sm:$0xf0] }
 0x302   :  { %v7611_v33 = vld [vmem:[#allocation8 + $0x91c] sm:$0xf]  ;;  %v7023_v42 = vor.u32 %v7819_v30, %v7020_v31  ;;  %4259 = vmatpush.bf16.msrb.mxu2 %v6767_v3  ;;  %v8365_v3 = vpop.f32.mrf.mxu2 }
 0x303   :  { %v6188_v36 = vld [vmem:[#allocation8 + $0x938] sm:$0xf0] }
 0x304   :  { %v7675_v39 = vld [vmem:[#allocation8 + $0xb1c] sm:$0xf]  ;;  %v6191_v46 = vor.u32 %v7611_v33, %v6188_v36  ;;  %4272 = vmatpush.bf16.msrb.mxu3 %v7023_v42 }
 0x305   :  { %v6444_v14 = vld [vmem:[#allocation8 + $0xb38] sm:$0xf0] }
 0x306   :  { %v7747_v9 = vld [vmem:[#allocation8 + $0xd5c] sm:$0xf]  ;;  %v6447_v48 = vor.u32 %v7675_v39, %v6444_v14  ;;  %4235 = vmatpush.bf16.msrb.mxu0 %v6191_v46 }
 0x307   :  { %v6732_v43 = vld [vmem:[#allocation8 + $0xd78] sm:$0xf0] }
 0x308   :  { %v7811_v47 = vld [vmem:[#allocation8 + $0xf5c] sm:$0xf]  ;;  %v6735_v40 = vor.u32 %v7747_v9, %v6732_v43  ;;  %4248 = vmatpush.bf16.msrb.mxu1 %v6447_v48  ;;  %v8367_v9 = vpop.f32.mrf.mxu3  ;;  %v7839_v48 = vld [vmem:[#allocation11 + $0x38] sm:$0xff] }
 0x309   :  { %v6988_v41 = vld [vmem:[#allocation8 + $0xf78] sm:$0xf0] }
 0x30a   :  { %v7603_v52 = vld [vmem:[#allocation8 + $0x8dc] sm:$0xf]  ;;  %v6991_v54 = vor.u32 %v7811_v47, %v6988_v41  ;;  %4260 = vmatpush.bf16.msrb.mxu2 %v6735_v40 }
 0x30b   :  { %v6156_v51 = vld [vmem:[#allocation8 + $0x8f8] sm:$0xf0] }
 0x30c   :  { %v7667_v53 = vld [vmem:[#allocation8 + $0xadc] sm:$0xf]  ;;  %v6159_v61 = vor.u32 %v7603_v52, %v6156_v51  ;;  %4273 = vmatpush.bf16.msrb.mxu3 %v6991_v54  ;;  %v7847_v52 = vld [vmem:[#allocation11 + $0x78] sm:$0xff] }
 0x30d   :  { %v6412_v20 = vld [vmem:[#allocation8 + $0xaf8] sm:$0xf0] }
 0x30e   :  { %v7739_v57 = vld [vmem:[#allocation8 + $0xd1c] sm:$0xf]  ;;  %v6415_v45 = vor.u32 %v7667_v53, %v6412_v20  ;;  %4236 = vmatpush.bf16.msrb.mxu0 %v6159_v61 }
 0x30f   :  { %v6700_v38 = vld [vmem:[#allocation8 + $0xd38] sm:$0xf0] }
 0x310   :  { %v7803_v60 = vld [vmem:[#allocation8 + $0xf1c] sm:$0xf]  ;;  %v6703_v1 = vor.u32 %v7739_v57, %v6700_v38  ;;  %4249 = vmatpush.bf16.msrb.mxu1 %v6415_v45 }
 0x311   :  { %v6956_v44 = vld [vmem:[#allocation8 + $0xf38] sm:$0xf0] }
 0x312   :  { %v7595_v62 = vld [vmem:[#allocation8 + $0x89c] sm:$0xf]  ;;  %v6959_v4 = vor.u32 %v7803_v60, %v6956_v44  ;;  %4261 = vmatpush.bf16.msrb.mxu2 %v6703_v1  ;;  %v4009_v44 = vpop.f32.mrf.mxu2  ;;  %v7863_v1 = vld [vmem:[#allocation11 + $0xf8] sm:$0xff] }
 0x313   :  { %v6124_v63 = vld [vmem:[#allocation8 + $0x8b8] sm:$0xf0] }
 0x314   :  { %v7659_v0 = vld [vmem:[#allocation8 + $0xa9c] sm:$0xf]  ;;  %v6127_v7 = vor.u32 %v7595_v62, %v6124_v63  ;;  %4274 = vmatpush.bf16.msrb.mxu3 %v6959_v4  ;;  %v7855_v62 = vld [vmem:[#allocation11 + $0xb8] sm:$0xff]  ;;  %v4022_v63 = vpop.f32.mrf.mxu3 }
 0x315   :  { %v6380_v2 = vld [vmem:[#allocation8 + $0xab8] sm:$0xf0] }
 0x316   :  { %v7731_v5 = vld [vmem:[#allocation8 + $0xcdc] sm:$0xf]  ;;  %v6383_v10 = vor.u32 %v7659_v0, %v6380_v2  ;;  %4237 = vmatpush.bf16.msrb.mxu0 %v6127_v7  ;;  %v7837_v0 = vld [vmem:[#allocation11 + $0x28] sm:$0xff]  ;;  %v8372_v7 = vld [vmem:[#allocation10] sm:$0xff] }
 0x317   :  { %v6668_v6 = vld [vmem:[#allocation8 + $0xcf8] sm:$0xf0]  ;;  %v7845_v2 = vld [vmem:[#allocation11 + $0x68] sm:$0xff] }
 0x318   :  { %v7795_v37 = vld [vmem:[#allocation8 + $0xedc] sm:$0xf]  ;;  %v6671_v13 = vor.u32 %v7731_v5, %v6668_v6  ;;  %4250 = vmatpush.bf16.msrb.mxu1 %v6383_v10  ;;  %v4284_v6 = vmul.f32 0.5, %v8302_v23  ;;  %v7853_v10 = vld [vmem:[#allocation11 + $0xa8] sm:$0xff] }
 0x319   :  { %v6924_v8 = vld [vmem:[#allocation8 + $0xef8] sm:$0xf0] }
 0x31a   :  { %v7587_v11 = vld [vmem:[#allocation8 + $0x85c] sm:$0xf]  ;;  %v6927_v18 = vor.u32 %v7795_v37, %v6924_v8  ;;  %4262 = vmatpush.bf16.msrb.mxu2 %v6671_v13  ;;  %v4285_v37 = vmul.f32 0.5, %v8311_v34  ;;  %v7844_v8 = vld [vmem:[#allocation11 + $0x60] sm:$0xff]  ;;  %7925 = vtanh.f32 %v4284_v6  ;;  %v4046_v13 = vpop.f32.mrf.mxu1  ;;  %v4286_v34 = vmul.f32 0.5, %v8325_v35  ;;  %v7877_v6 = vld [vmem:[#allocation11 + $0x168] sm:$0xff] }
 0x31b   :  { %v6092_v12 = vld [vmem:[#allocation8 + $0x878] sm:$0xf0] }
 0x31c   :  { %v7651_v15 = vld [vmem:[#allocation8 + $0xa5c] sm:$0xf]  ;;  %v6095_v25 = vor.u32 %v7587_v11, %v6092_v12  ;;  %4275 = vmatpush.bf16.msrb.mxu3 %v6927_v18  ;;  %v4033_v11 = vpop.f32.mrf.mxu0  ;;  %v7861_v12 = vld [vmem:[#allocation11 + $0xe8] sm:$0xff]  ;;  %7927 = vtanh.f32 %v4285_v37  ;;  %v4288_v37 = vmul.f32 0.5, %v8355_v59 }
 0x31d   :  { %v6348_v16 = vld [vmem:[#allocation8 + $0xa78] sm:$0xf0]  ;;  %7929 = vtanh.f32 %v4286_v34  ;;  %v7875_v34 = vld [vmem:[#allocation11 + $0x158] sm:$0xff] }
 0x31e   :  { %v7723_v21 = vld [vmem:[#allocation8 + $0xc9c] sm:$0xf]  ;;  %v6351_v29 = vor.u32 %v7651_v15, %v6348_v16  ;;  %4238 = vmatpush.bf16.msrb.mxu0 %v6095_v25  ;;  %v7835_v15 = vld [vmem:[#allocation11 + $0x18] sm:$0xff]  ;;  %v4287_v16 = vmul.f32 0.5, %v8341_v49 }
 0x31f   :  { %v6636_v22 = vld [vmem:[#allocation8 + $0xcb8] sm:$0xf0]  ;;  %v7851_v25 = vld [vmem:[#allocation11 + $0x98] sm:$0xff] }
 0x320   :  { %v7787_v27 = vld [vmem:[#allocation8 + $0xe9c] sm:$0xf]  ;;  %v6639_v32 = vor.u32 %v7723_v21, %v6636_v22  ;;  %4251 = vmatpush.bf16.msrb.mxu1 %v6351_v29  ;;  %v7926_v22 = vpop.eup %7925  ;;  %7931 = vtanh.f32 %v4287_v16  ;;  %v7833_v29 = vld [vmem:[#allocation11 + $0x8] sm:$0xff] }
 0x321   :  { %v6892_v28 = vld [vmem:[#allocation8 + $0xeb8] sm:$0xf0]  ;;  %7933 = vtanh.f32 %v4288_v37 }
 0x322   :  { %v7579_v30 = vld [vmem:[#allocation8 + $0x81c] sm:$0xf]  ;;  %v6895_v39 = vor.u32 %v7787_v27, %v6892_v28  ;;  %4263 = vmatpush.bf16.msrb.mxu2 %v6639_v32  ;;  %v7928_v27 = vpop.eup %7927  ;;  %v7859_v28 = vld [vmem:[#allocation11 + $0xd8] sm:$0xff]  ;;  %v4048_v49 = vpop.f32.mrf.mxu1 }
 0x323   :  { %v6060_v31 = vld [vmem:[#allocation8 + $0x838] sm:$0xf0] }
 0x324   :  { %v7643_v33 = vld [vmem:[#allocation8 + $0xa1c] sm:$0xf]  ;;  %v6063_v43 = vor.u32 %v7579_v30, %v6060_v31  ;;  %4276 = vmatpush.bf16.msrb.mxu3 %v6895_v39  ;;  %v4035_v35 = vpop.f32.mrf.mxu0  ;;  %v4300_v30 = vmul.f32 0.5, %v7926_v22  ;;  %v4301_v31 = vmul.f32 0.5, %v7928_v27  ;;  %v7930_v39 = vpop.eup %7929  ;;  %v7865_v22 = vld [vmem:[#allocation11 + $0x108] sm:$0xff] }
 0x325   :  { %v6316_v36 = vld [vmem:[#allocation8 + $0xa38] sm:$0xf0]  ;;  %v7873_v27 = vld [vmem:[#allocation11 + $0x148] sm:$0xff] }
 0x326   :  { %v7715_v14 = vld [vmem:[#allocation8 + $0xc5c] sm:$0xf]  ;;  %v6319_v41 = vor.u32 %v7643_v33, %v6316_v36  ;;  %4239 = vmatpush.bf16.msrb.mxu0 %v6063_v43  ;;  %v4059_v36 = vpop.f32.mrf.mxu2  ;;  %v7832_v43 = vld [vmem:[#allocation11] sm:$0xff] }
 0x327   :  { %v6604_v42 = vld [vmem:[#allocation8 + $0xc78] sm:$0xf0] }
 0x328   :  { %v7779_v46 = vld [vmem:[#allocation8 + $0xe5c] sm:$0xf]  ;;  %v6607_v51 = vor.u32 %v7715_v14, %v6604_v42  ;;  %4252 = vmatpush.bf16.msrb.mxu1 %v6319_v41  ;;  %v4072_v42 = vpop.f32.mrf.mxu3  ;;  %v7840_v41 = vld [vmem:[#allocation11 + $0x40] sm:$0xff] }
 0x329   :  { %v6860_v47 = vld [vmem:[#allocation8 + $0xe78] sm:$0xf0]  ;;  %4240 = vmatmul.bf16.vlgmr.msrb.gmra.mxu0 %v8266_v19  ;;  %v881_v19 = vperm.slane %v8372_v7, 5 }
 0x32a   :  { %v6863_v40 = vor.u32 %v7779_v46, %v6860_v47  ;;  %v7707_v53 = vld [vmem:[#allocation8 + $0xc1c] sm:$0xf]  ;;  %4840 = vmatpush.bf16.msra.mxu0 %v7839_v48  ;;  %4264 = vmatpush.bf16.msrb.mxu2 %v6607_v51  ;;  %v7932_v46 = vpop.eup %7931  ;;  %v4308_v47 = vadd.f32 0.5, %v4300_v30  ;;  %v7871_v48 = vld [vmem:[#allocation11 + $0x138] sm:$0xff] }
 0x32b   :  { %v6572_v20 = vld [vmem:[#allocation8 + $0xc38] sm:$0xf0]  ;;  %4253 = vmatmul.bf16.vlgmr.msrb.gmra.mxu1 %v8268_v26  ;;  %v7836_v26 = vld [vmem:[#allocation11 + $0x20] sm:$0xff]  ;;  %v3982_v23 = vadd.f32 %v8361_v56, %v881_v19  ;;  %v7879_v51 = vld [vmem:[#allocation11 + $0x178] sm:$0xff] }
 0x32c   :  { %v7771_v54 = vld [vmem:[#allocation8 + $0xe1c] sm:$0xf]  ;;  %4853 = vmatpush.bf16.msra.mxu1 %v7847_v52  ;;  %v6575_v60 = vor.u32 %v7707_v53, %v6572_v20  ;;  %4277 = vmatpush.bf16.msrb.mxu3 %v6863_v40  ;;  %v4309_v52 = vadd.f32 0.5, %v4301_v31  ;;  %v7849_v40 = vld [vmem:[#allocation11 + $0x88] sm:$0xff]  ;;  %v4303_v20 = vmul.f32 0.5, %v7932_v46  ;;  %v7883_v30 = vld [vmem:[#allocation11 + $0x198] sm:$0xff] }
 0x32d   :  { %v6828_v57 = vld [vmem:[#allocation8 + $0xe38] sm:$0xf0]  ;;  %v3995_v18 = vadd.f32 %v8363_v58, %v3982_v23  ;;  %v7841_v58 = vld [vmem:[#allocation11 + $0x48] sm:$0xff]  ;;  %v4085_v23 = vpop.f32.mrf.mxu0  ;;  %v7872_v31 = vld [vmem:[#allocation11 + $0x140] sm:$0xff] }
 0x32e   :  { %v7838_v38 = vld [vmem:[#allocation11 + $0x30] sm:$0xff]  ;;  %v6831_v45 = vor.u32 %v7771_v54, %v6828_v57  ;;  %4265 = vmatpush.bf16.msrb.mxu2 %v6575_v60  ;;  %v7857_v53 = vld [vmem:[#allocation11 + $0xc8] sm:$0xff]  ;;  %v4316_v57 = vpack.c.bf16 %v4308_v47, %v4308_v47  ;;  %v4061_v63 = vpop.f32.mrf.mxu2  ;;  %v7880_v47 = vld [vmem:[#allocation11 + $0x180] sm:$0xff] }
 0x32f   :  { %v7846_v61 = vld [vmem:[#allocation11 + $0x70] sm:$0xff]  ;;  %4841 = vmatpush.bf16.msra.mxu0 %v7838_v38  ;;  %v4008_v24 = vadd.f32 %v8365_v3, %v3995_v18 }
 0x330   :  { %4854 = vmatpush.bf16.msra.mxu1 %v7846_v61  ;;  %4278 = vmatpush.bf16.msrb.mxu3 %v6831_v45  ;;  %v7854_v4 = vld [vmem:[#allocation11 + $0xb0] sm:$0xff]  ;;  %v4317_v61 = vpack.c.bf16 %v4309_v52, %v4309_v52  ;;  %v7848_v45 = vld [vmem:[#allocation11 + $0x80] sm:$0xff] }
 0x331   :  { %v7862_v5 = vld [vmem:[#allocation11 + $0xf0] sm:$0xff]  ;;  %4266 = vmatmul.bf16.vlgmr.msrb.gmra.mxu2 %v8272_v50  ;;  %v7843_v50 = vld [vmem:[#allocation11 + $0x58] sm:$0xff]  ;;  %v4021_v32 = vadd.f32 %v8367_v9, %v4008_v24  ;;  %v4302_v9 = vmul.f32 0.5, %v7930_v39  ;;  %v7884_v24 = vld [vmem:[#allocation11 + $0x1a0] sm:$0xff]  ;;  %v882_v39 = vperm.slane %v8372_v7, 6 }
 0x332   :  { %4866 = vmatpush.bf16.msra.mxu2 %v7855_v62  ;;  %v7834_v21 = vld [vmem:[#allocation11 + $0x10] sm:$0xff] }
 0x333   :  { %4842 = vmatpush.bf16.msra.mxu0 %v7837_v0  ;;  %4279 = vmatmul.bf16.vlgmr.msrb.gmra.mxu3 %v8274_v55  ;;  %v7852_v55 = vld [vmem:[#allocation11 + $0xa0] sm:$0xff]  ;;  %v7842_v56 = vld [vmem:[#allocation11 + $0x50] sm:$0xff]  ;;  %v4034_v14 = vadd.f32 %v4033_v11, %v4021_v32  ;;  %v4310_v62 = vadd.f32 0.5, %v4302_v9  ;;  %v4311_v0 = vadd.f32 0.5, %v4303_v20  ;;  %v4086_v46 = vadd.f32 %v4085_v23, %v882_v39  ;;  %v7891_v23 = vld [vmem:[#allocation11 + $0x1d8] sm:$0xff] }
 0x334   :  { %4879 = vmatpush.bf16.msra.mxu3 %v7863_v1  ;;  %4855 = vmatpush.bf16.msra.mxu1 %v7845_v2  ;;  %v7850_v33 = vld [vmem:[#allocation11 + $0x90] sm:$0xff]  ;;  %v7856_v1 = vld [vmem:[#allocation11 + $0xc0] sm:$0xff]  ;;  %v4074_v2 = vpop.f32.mrf.mxu3 }
 0x335   :  { %v7858_v3 = vld [vmem:[#allocation11 + $0xd0] sm:$0xff]  ;;  %v4047_v54 = vadd.f32 %v4046_v13, %v4034_v14  ;;  %v4318_v19 = vpack.c.bf16 %v4310_v62, %v4310_v62 }
 0x336   :  { %4867 = vmatpush.bf16.msra.mxu2 %v7854_v4  ;;  %v7870_v38 = vld [vmem:[#allocation11 + $0x130] sm:$0xff]  ;;  %v7869_v4 = vld [vmem:[#allocation11 + $0x128] sm:$0xff] }
 0x337   :  { %4843 = vmatpush.bf16.msra.mxu0 %v7836_v26  ;;  %v4060_v60 = vadd.f32 %v4059_v36, %v4047_v54  ;;  %v7878_v44 = vld [vmem:[#allocation11 + $0x170] sm:$0xff]  ;;  %v4319_v26 = vpack.c.bf16 %v4311_v0, %v4311_v0  ;;  %v7895_v0 = vld [vmem:[#allocation11 + $0x1f8] sm:$0xff] }
 0x338   :  { %4880 = vmatpush.bf16.msra.mxu3 %v7862_v5  ;;  %4856 = vmatpush.bf16.msra.mxu1 %v7844_v8  ;;  %v7868_v8 = vld [vmem:[#allocation11 + $0x120] sm:$0xff]  ;;  %v7886_v13 = vld [vmem:[#allocation11 + $0x1b0] sm:$0xff] }
 0x339   :  { %v4073_v5 = vadd.f32 %v4072_v42, %v4060_v60  ;;  %v7866_v59 = vld [vmem:[#allocation11 + $0x110] sm:$0xff] }
 0x33a   :  { %4868 = vmatpush.bf16.msra.mxu2 %v7853_v10  ;;  %v7887_v10 = vld [vmem:[#allocation11 + $0x1b8] sm:$0xff]  ;;  %v7874_v16 = vld [vmem:[#allocation11 + $0x150] sm:$0xff] }
 0x33b   :  { %4844 = vmatpush.bf16.msra.mxu0 %v7835_v15  ;;  %v4289_v11 = vmul.f32 0.5, %v4073_v5  ;;  %v4098_v15 = vpop.f32.mrf.mxu1  ;;  %v7894_v5 = vld [vmem:[#allocation11 + $0x1f0] sm:$0xff] }
 0x33c   :  { %4881 = vmatpush.bf16.msra.mxu3 %v7861_v12  ;;  %4857 = vmatpush.bf16.msra.mxu1 %v7843_v50  ;;  %v7876_v12 = vld [vmem:[#allocation11 + $0x160] sm:$0xff]  ;;  %v7867_v50 = vld [vmem:[#allocation11 + $0x118] sm:$0xff]  ;;  %v4124_v49 = vpop.f32.mrf.mxu3 }
 0x33d   :  { %7935 = vtanh.f32 %v4289_v11 }
 0x33e   :  { %4869 = vmatpush.bf16.msra.mxu2 %v7852_v55  ;;  %v7885_v55 = vld [vmem:[#allocation11 + $0x1a8] sm:$0xff] }
 0x33f   :  { %4845 = vmatpush.bf16.msra.mxu0 %v7834_v21  ;;  %v4087_v21 = vpop.f32.mrf.mxu0 }
 0x340   :  { %4882 = vmatpush.bf16.msra.mxu3 %v7860_v17  ;;  %4858 = vmatpush.bf16.msra.mxu1 %v7842_v56  ;;  %v7934_v17 = vpop.eup %7933 }
 0x342   :  { %4870 = vmatpush.bf16.msra.mxu2 %v7851_v25  ;;  %v4304_v25 = vmul.f32 0.5, %v7934_v17 }
 0x343   :  { %4846 = vmatpush.bf16.msra.mxu0 %v7833_v29  ;;  %v7936_v18 = vpop.eup %7935  ;;  %v4100_v56 = vpop.f32.mrf.mxu1  ;;  %v7864_v29 = vld [vmem:[#allocation11 + $0x100] sm:$0xff] }
 0x344   :  { %4883 = vmatpush.bf16.msra.mxu3 %v7859_v28  ;;  %4859 = vmatpush.bf16.msra.mxu1 %v7841_v58  ;;  %v4305_v35 = vmul.f32 0.5, %v7936_v18  ;;  %v4111_v28 = vpop.f32.mrf.mxu2  ;;  %v4312_v58 = vadd.f32 0.5, %v4304_v25  ;;  %v4126_v42 = vpop.f32.mrf.mxu3 }
 0x346   :  { %4871 = vmatpush.bf16.msra.mxu2 %v7850_v33  ;;  %v4313_v32 = vadd.f32 0.5, %v4305_v35  ;;  %v7882_v33 = vld [vmem:[#allocation11 + $0x190] sm:$0xff]  ;;  %v4320_v36 = vpack.c.bf16 %v4312_v58, %v4312_v58 }
 0x347   :  { %4847 = vmatpush.bf16.msra.mxu0 %v7832_v43  ;;  %v7881_v43 = vld [vmem:[#allocation11 + $0x188] sm:$0xff] }
 0x348   :  { %4884 = vmatpush.bf16.msra.mxu3 %v7858_v3  ;;  %4860 = vmatpush.bf16.msra.mxu1 %v7840_v41  ;;  %v4321_v3 = vpack.c.bf16 %v4313_v32, %v4313_v32  ;;  %v4099_v41 = vadd.f32 %v4098_v15, %v4086_v46  ;;  %v883_v15 = vperm.slane %v8372_v7, 7 }
 0x34a   :  { %4872 = vmatpush.bf16.msra.mxu2 %v7849_v40  ;;  %4848 = vmatmul.bf16.vlgmr.msra.gmra.mxu0 %v4316_v57  ;;  %v4112_v52 = vadd.f32 %v4111_v28, %v4099_v41 }
 0x34b   :  { %4892 = vmatpush.bf16.msrb.mxu0 %v7871_v48  ;;  %4861 = vmatmul.bf16.vlgmr.msra.gmra.mxu1 %v4317_v61  ;;  %v4137_v48 = vpop.f32.mrf.mxu0 }
 0x34c   :  { %4905 = vmatpush.bf16.msrb.mxu1 %v7879_v51  ;;  %4885 = vmatpush.bf16.msra.mxu3 %v7857_v53  ;;  %v4113_v14 = vpop.f32.mrf.mxu2  ;;  %v4150_v51 = vpop.f32.mrf.mxu1  ;;  %v4125_v40 = vadd.f32 %v4124_v49, %v4112_v52 }
 0x34e   :  { %4873 = vmatpush.bf16.msra.mxu2 %v7848_v45  ;;  %v4138_v9 = vadd.f32 %v4137_v48, %v4125_v40 }
 0x34f   :  { %4893 = vmatpush.bf16.msrb.mxu0 %v7870_v38 }
 0x350   :  { %4906 = vmatpush.bf16.msrb.mxu1 %v7878_v44  ;;  %4886 = vmatpush.bf16.msra.mxu3 %v7856_v1  ;;  %v4151_v54 = vadd.f32 %v4150_v51, %v4138_v9 }
 0x351   :  { %4874 = vmatmul.bf16.vlgmr.msra.gmra.mxu2 %v4318_v19 }
 0x352   :  { %4918 = vmatpush.bf16.msrb.mxu2 %v7887_v10  ;;  %v7892_v10 = vld [vmem:[#allocation11 + $0x1e0] sm:$0xff] }
 0x353   :  { %4894 = vmatpush.bf16.msrb.mxu0 %v7869_v4  ;;  %4887 = vmatmul.bf16.vlgmr.msra.gmra.mxu3 %v4319_v26  ;;  %v4139_v53 = vpop.f32.mrf.mxu0  ;;  %v7893_v26 = vld [vmem:[#allocation11 + $0x1e8] sm:$0xff] }
 0x354   :  { %4907 = vmatpush.bf16.msrb.mxu1 %v7877_v6  ;;  %v4152_v20 = vpop.f32.mrf.mxu1  ;;  %4931 = vmatpush.bf16.msrb.mxu3 %v7895_v0 }
 0x356   :  { %4919 = vmatpush.bf16.msrb.mxu2 %v7886_v13  ;;  %v7890_v13 = vld [vmem:[#allocation11 + $0x1d0] sm:$0xff] }
 0x357   :  { %4895 = vmatpush.bf16.msrb.mxu0 %v7868_v8 }
 0x358   :  { %4908 = vmatpush.bf16.msrb.mxu1 %v7876_v12  ;;  %v4163_v57 = vpop.f32.mrf.mxu2  ;;  %4932 = vmatpush.bf16.msrb.mxu3 %v7894_v5 }
 0x359   :  { %v4164_v38 = vadd.f32 %v4163_v57, %v4151_v54 }
 0x35a   :  { %4920 = vmatpush.bf16.msrb.mxu2 %v7885_v55  ;;  %v4176_v61 = vpop.f32.mrf.mxu3 }
 0x35b   :  { %4896 = vmatpush.bf16.msrb.mxu0 %v7867_v50  ;;  %v4177_v60 = vadd.f32 %v4176_v61, %v4164_v38 }
 0x35c   :  { %4909 = vmatpush.bf16.msrb.mxu1 %v7875_v34  ;;  %4933 = vmatpush.bf16.msrb.mxu3 %v7893_v26 }
 0x35d   :  { %v4290_v44 = vmul.f32 0.5, %v4177_v60 }
 0x35e   :  { %4921 = vmatpush.bf16.msrb.mxu2 %v7884_v24 }
 0x35f   :  { %4897 = vmatpush.bf16.msrb.mxu0 %v7866_v59  ;;  %7937 = vtanh.f32 %v4290_v44  ;;  %v7889_v59 = vld [vmem:[#allocation11 + $0x1c8] sm:$0xff] }
 0x360   :  { %4910 = vmatpush.bf16.msrb.mxu1 %v7874_v16  ;;  %v4165_v45 = vpop.f32.mrf.mxu2  ;;  %4934 = vmatpush.bf16.msrb.mxu3 %v7892_v10  ;;  %v7888_v16 = vld [vmem:[#allocation11 + $0x1c0] sm:$0xff] }
 0x362   :  { %4922 = vmatpush.bf16.msrb.mxu2 %v7883_v30  ;;  %v4178_v62 = vpop.f32.mrf.mxu3 }
 0x363   :  { %4898 = vmatpush.bf16.msrb.mxu0 %v7865_v22 }
 0x364   :  { %4911 = vmatpush.bf16.msrb.mxu1 %v7873_v27  ;;  %4935 = vmatpush.bf16.msrb.mxu3 %v7891_v23 }
 0x365   :  { %v7938_v63 = vpop.eup %7937 }
 0x366   :  { %4923 = vmatpush.bf16.msrb.mxu2 %v7882_v33  ;;  %v4306_v1 = vmul.f32 0.5, %v7938_v63 }
 0x367   :  { %4899 = vmatpush.bf16.msrb.mxu0 %v7864_v29 }
 0x368   :  { %4912 = vmatpush.bf16.msrb.mxu1 %v7872_v31  ;;  %v4314_v2 = vadd.f32 0.5, %v4306_v1  ;;  %4936 = vmatpush.bf16.msrb.mxu3 %v7890_v13 }
 0x36a   :  { %4900 = vmatmul.bf16.vlgmr.msrb.gmra.mxu0 %v4320_v36  ;;  %4924 = vmatpush.bf16.msrb.mxu2 %v7881_v43  ;;  %v4189_v4 = vpop.f32.mrf.mxu0  ;;  %v4322_v6 = vpack.c.bf16 %v4314_v2, %v4314_v2  ;;  %v7908_v36 = vld [vmem:[#allocation13] ss:$0 sm:$0xff] }
 0x36b   :  { %4913 = vmatmul.bf16.vlgmr.msrb.gmra.mxu1 %v4321_v3  ;;  %v4190_v55 = vadd.f32 %v4189_v4, %v883_v15 }
 0x36c   :  { %v4202_v19 = vpop.f32.mrf.mxu1  ;;  %4937 = vmatpush.bf16.msrb.mxu3 %v7889_v59 }
 0x36d   :  { %v4203_v17 = vadd.f32 %v4202_v19, %v4190_v55 }
 0x36e   :  { %4925 = vmatpush.bf16.msrb.mxu2 %v7880_v47 }
 0x370   :  { %4938 = vmatpush.bf16.msrb.mxu3 %v7888_v16 }
 0x371   :  { %4926 = vmatmul.bf16.vlgmr.msrb.gmra.mxu2 %v4322_v6 }
 0x372   :  { %v4191_v37 = vpop.f32.mrf.mxu0 }
 0x374   :  { %v4204_v8 = vpop.f32.mrf.mxu1 }
 0x37c   :  { %v4215_v11 = vpop.f32.mrf.mxu2 }
 0x37d   :  { %v4216_v21 = vadd.f32 %v4215_v11, %v4203_v17 }
 0x37e   :  { %v4228_v12 = vpop.f32.mrf.mxu3 }
 0x37f   :  { %v4229_v22 = vadd.f32 %v4228_v12, %v4216_v21 }
 0x384   :  { %v4217_v50 = vpop.f32.mrf.mxu2 }
 0x386   :  { %v4230_v34 = vpop.f32.mrf.mxu3 }
 0x3a6   :  { %v4241_v18 = vpop.f32.mrf.mxu0 }
 0x3a7   :  { %v4242_v24 = vadd.f32 %v4241_v18, %v4229_v22 }
 0x3a8   :  { %v4254_v56 = vpop.f32.mrf.mxu1 }
 0x3a9   :  { %v4255_v35 = vadd.f32 %v4254_v56, %v4242_v24 }
 0x3ae   :  { %v4243_v25 = vpop.f32.mrf.mxu0 }
 0x3b0   :  { %v4256_v27 = vpop.f32.mrf.mxu1 }
 0x3b4   :  { %v4267_v28 = vpop.f32.mrf.mxu2 }
 0x3b5   :  { %v4268_v49 = vadd.f32 %v4267_v28, %v4255_v35 }
 0x3b6   :  { %v4280_v29 = vpop.f32.mrf.mxu3 }
 0x3b7   :  { %v4281_v7 = vadd.f32 %v4280_v29, %v4268_v49 }
 0x3b9   :  { %v4291_v30 = vmul.f32 0.5, %v4281_v7 }
 0x3bb   :  { %7939 = vtanh.f32 %v4291_v30 }
 0x3bc   :  { %v4269_v58 = vpop.f32.mrf.mxu2 }
 0x3be   :  { %v4282_v31 = vpop.f32.mrf.mxu3 }
 0x3c1   :  { %v7940_v32 = vpop.eup %7939 }
 0x3c2   :  { %v4307_v33 = vmul.f32 0.5, %v7940_v32 }
 0x3c4   :  { %v4315_v3 = vadd.f32 0.5, %v4307_v33 }
 0x3c6   :  { %v4323_v14 = vpack.c.bf16 %v4315_v3, %v4315_v3 }
 0x3c7   :  { %v4849_v39 = vpop.f32.mrf.mxu0 }
 0x3c8   :  { %v4850_v42 = vadd.f32 %v7908_v36, %v4849_v39  ;;  %v4862_v43 = vpop.f32.mrf.mxu1  ;;  %4939 = vmatmul.bf16.vlgmr.msrb.gmra.mxu3 %v4323_v14 }
 0x3ca   :  { %v4863_v46 = vadd.f32 %v4862_v43, %v4850_v42 }
 0x3cf   :  { %v4851_v47 = vpop.f32.mrf.mxu0 }
 0x3d0   :  { %v4864_v41 = vpop.f32.mrf.mxu1 }
 0x3d4   :  { %v4875_v48 = vpop.f32.mrf.mxu2 }
 0x3d5   :  { %v4876_v52 = vadd.f32 %v4875_v48, %v4863_v46 }
 0x3d6   :  { %v4888_v51 = vpop.f32.mrf.mxu3 }
 0x3d7   :  { %v4889_v40 = vadd.f32 %v4888_v51, %v4876_v52 }
 0x3dc   :  { %v4877_v9 = vpop.f32.mrf.mxu2 }
 0x3de   :  { %v4890_v53 = vpop.f32.mrf.mxu3 }
 0x3e7   :  { %v4901_v20 = vpop.f32.mrf.mxu0 }
 0x3e8   :  { %v4902_v54 = vadd.f32 %v4901_v20, %v4889_v40  ;;  %v4914_v57 = vpop.f32.mrf.mxu1 }
 0x3ea   :  { %v4915_v38 = vadd.f32 %v4914_v57, %v4902_v54 }
 0x3ef   :  { %v4903_v61 = vpop.f32.mrf.mxu0 }
 0x3f0   :  { %v4916_v60 = vpop.f32.mrf.mxu1 }
 0x3f4   :  { %v4927_v44 = vpop.f32.mrf.mxu2 }
 0x3f5   :  { %v4928_v62 = vadd.f32 %v4927_v44, %v4915_v38 }
 0x3fc   :  { %v4929_v45 = vpop.f32.mrf.mxu2 }
 0x44b   :  { %v4940_v63 = vpop.f32.mrf.mxu3 }
 0x44c   :  { %v4941_v1 = vadd.f32 %v4940_v63, %v4928_v62 }
 0x44e   :  { %vm4944_vm2 = vcmp.ge.f32.partialorder %v4941_v1, 0.0  ;;  %v4945_v0 = vmul.f32 0.01, %v4941_v1 }
 0x450   :  { %v4946_v2 = vsel %vm4944_vm2, %v4941_v1, %v4945_v0 }
 0x451   :  { %4947 = vst [vmem:[#allocation14] sm:$0xff] %v4946_v2 }
 0x452   :  { %4958 = dma.vmem_to_hbm [thread:$0]  %s4954_s6, 128, %s4956_s14, [#allocation4]  }
 0x453   :  { %v4942_v4 = vpop.f32.mrf.mxu3 }
 0x454   :  { %8143 = dma.done.wait [#allocation4], 128  }
 0x455   :  { %8144 = vsyncadd [#allocation4], 4294967168 }
 0x456   :  { %4963 = vsyncpa [#allocation3], 1 }
 0x457   :  { %4964 = vsyncpa [#allocation6], 1 }
 0x458   :  { %4965 = vsyncpa [#allocation9], 1 }
 0x459   :  { %4966 = vsyncpa [#allocation12], 1 }
 0x45a   :  { %4967 = vsyncpa [#allocation4], 1 }

</bundles_post_ra>
